<compile_context>
chip_gen: v7x
topology: tpu7x:2x2x1
jax: 0.10.0
libtpu: 0.0.40
codegen_flags: <defaults>
</compile_context>

<pallas_src>
import functools

import jax
import jax.numpy as jnp
from jax.experimental import pallas as pl
from jax.experimental.pallas import tpu as pltpu


def _round_up(x, m):
    return ((x + m - 1) // m) * m


def _time_encode_kernel(t_ref, w_ref, b_ref, o_ref):
    # t_ref: (tm, 1) f32; w_ref/b_ref: (1, D) f32; o_ref: (tm, D)
    t = t_ref[...]
    phase = t * w_ref[...] + b_ref[...]      # outer product + bias via broadcast (VPU)
    o_ref[...] = jnp.cos(phase).astype(o_ref.dtype)


@functools.partial(jax.jit, static_argnames=("block_rows",))
def time_encode(t, w, b, *, block_rows=None):
    """t: timestamps, any shape; w: (dim,) = Linear(1, dim).weight[:, 0]; b: (dim,).

    Returns (t.size, dim) float32, matching
    torch.cos(nn.Linear(1, dim)(t.float().reshape(-1, 1))).
    """
    t_flat = t.reshape(-1).astype(jnp.float32)
    n = t_flat.shape[0]
    dim = w.shape[0]

    # Lane-dense feature axis: pad dim to a multiple of 128 so output stores are
    # full unmasked vst's and the VPU runs at full lane occupancy.
    d_pad = _round_up(dim, 128)

    # Row tile: multiple of 8 (f32 sublane), capped at 512 so large N pipelines
    # and the grid has >= 2 steps for megacore sharding.
    if block_rows is None:
        tm = min(512, _round_up(n, 8))
    else:
        tm = block_rows
    assert tm % 8 == 0, "block_rows must be a multiple of 8 (f32 sublane)"
    n_pad = _round_up(n, tm)

    # Zero padding is harmless: padded rows/cols are sliced off below.
    t2 = jnp.zeros((n_pad, 1), jnp.float32).at[:n, 0].set(t_flat)
    w2 = jnp.zeros((1, d_pad), jnp.float32).at[0, :dim].set(w.astype(jnp.float32))
    b2 = jnp.zeros((1, d_pad), jnp.float32).at[0, :dim].set(b.astype(jnp.float32))

    grid = (n_pad // tm,)
    out = pl.pallas_call(
        _time_encode_kernel,
        out_shape=jax.ShapeDtypeStruct((n_pad, d_pad), jnp.float32),
        grid_spec=pltpu.PrefetchScalarGridSpec(
            num_scalar_prefetch=0,
            grid=grid,
            in_specs=[
                pl.BlockSpec((tm, 1), lambda i: (i, 0)),      # t row-tile (streamed)
                pl.BlockSpec((1, d_pad), lambda i: (0, 0)),   # w (tiny, resident)
                pl.BlockSpec((1, d_pad), lambda i: (0, 0)),   # b (tiny, resident)
            ],
            out_specs=pl.BlockSpec((tm, d_pad), lambda i: (i, 0)),
        ),
        compiler_params=pltpu.CompilerParams(
            dimension_semantics=("parallel",)),
    )(t2, w2, b2)

    if n_pad != n or d_pad != dim:
        out = out[:n, :dim]
    return out


def _reference(t, w, b):
    t_flat = t.reshape(-1, 1).astype(jnp.float32)
    return jnp.cos(t_flat * w[None, :] + b[None, :])


if __name__ == "__main__":
    # Module config: TimeEncode(dim=128), default trainable init:
    #   weight = 1 / 10 ** linspace(0, 9, dim) (as a (dim, 1) Linear weight), bias = 0.
    dim = 128                 # multiple of 128 -> lane-dense output, no post-slice
    batch, seq = 8, 128       # timestamps of arbitrary shape; flattened like torch

    key = jax.random.PRNGKey(0)
    t = jax.random.uniform(key, (batch, seq), jnp.float32, 0.0, 100.0)

    w = (1.0 / (10.0 ** jnp.linspace(0.0, 9.0, dim))).astype(jnp.float32)
    b = jnp.zeros((dim,), jnp.float32)

    out = time_encode(t, w, b)
    out = jax.block_until_ready(out)

    ref = _reference(t, w, b)
    assert out.shape == (batch * seq, dim)
    assert jnp.allclose(out, ref, atol=1e-5, rtol=1e-5), "mismatch vs reference"

    print("KERNEL_OK")
</pallas_src>

<mosaic_0001>
module attributes {stable_mosaic.version = 11 : i64} {
  func.func @_time_encode_kernel(%arg0: i32, %arg1: memref<512x1xf32, #tpu.memory_space<vmem>>, %arg2: memref<1x128xf32, #tpu.memory_space<vmem>>, %arg3: memref<1x128xf32, #tpu.memory_space<vmem>>, %arg4: memref<512x128xf32, #tpu.memory_space<vmem>>) attributes {dimension_semantics = [#tpu.dimension_semantics<parallel>], iteration_bounds = array<i64: 2>, scalar_prefetch = 0 : i64, scratch_operands = 0 : i64, tpu.core_type = #tpu.core_type<tc>, window_params = [{transform_indices = @transform_0, window_bounds = array<i64: 512, 1>}, {pipeline_mode = #tpu.pipeline_mode<synchronous>, transform_indices = @transform_1, window_bounds = array<i64: 1, 128>}, {pipeline_mode = #tpu.pipeline_mode<synchronous>, transform_indices = @transform_2, window_bounds = array<i64: 1, 128>}, {transform_indices = @transform_3, window_bounds = array<i64: 512, 128>}]} {
    %c0 = arith.constant 0 : index
    %c0_0 = arith.constant 0 : index
    %0 = vector.load %arg1[%c0, %c0_0] : memref<512x1xf32, #tpu.memory_space<vmem>>, vector<512x1xf32>
    %c0_1 = arith.constant 0 : index
    %c0_2 = arith.constant 0 : index
    %1 = vector.load %arg2[%c0_1, %c0_2] : memref<1x128xf32, #tpu.memory_space<vmem>>, vector<1x128xf32>
    %2 = vector.broadcast %0 : vector<512x1xf32> to vector<512x128xf32>
    %3 = vector.broadcast %1 : vector<1x128xf32> to vector<512x128xf32>
    %4 = arith.mulf %2, %3 : vector<512x128xf32>
    %c0_3 = arith.constant 0 : index
    %c0_4 = arith.constant 0 : index
    %5 = vector.load %arg3[%c0_3, %c0_4] : memref<1x128xf32, #tpu.memory_space<vmem>>, vector<1x128xf32>
    %6 = vector.broadcast %5 : vector<1x128xf32> to vector<512x128xf32>
    %7 = arith.addf %4, %6 : vector<512x128xf32>
    %8 = math.cos %7 : vector<512x128xf32>
    %c0_5 = arith.constant 0 : index
    %c0_6 = arith.constant 0 : index
    %9 = vector.load %arg4[%c0_5, %c0_6] : memref<512x128xf32, #tpu.memory_space<vmem>>, vector<512x128xf32>
    tpu.vector_store %arg4[%c0_5, %c0_6], %8 {strides = array<i32>} : memref<512x128xf32, #tpu.memory_space<vmem>>, vector<512x128xf32>,
    return
  }
  func.func @transform_0(%arg0: i32) -> (i32, i32) {
    %c0_i32 = arith.constant 0 : i32
    %c0_i32_0 = arith.constant 0 : i32
    return %arg0, %c0_i32 : i32, i32
  }
  func.func @transform_1(%arg0: i32) -> (i32, i32) {
    %c0_i32 = arith.constant 0 : i32
    %c0_i32_0 = arith.constant 0 : i32
    %c0_i32_1 = arith.constant 0 : i32
    return %c0_i32, %c0_i32_0 : i32, i32
  }
  func.func @transform_2(%arg0: i32) -> (i32, i32) {
    %c0_i32 = arith.constant 0 : i32
    %c0_i32_0 = arith.constant 0 : i32
    %c0_i32_1 = arith.constant 0 : i32
    return %c0_i32, %c0_i32_0 : i32, i32
  }
  func.func @transform_3(%arg0: i32) -> (i32, i32) {
    %c0_i32 = arith.constant 0 : i32
    %c0_i32_0 = arith.constant 0 : i32
    return %arg0, %c0_i32 : i32, i32
  }
}

</mosaic_0001>

<bundles_post_ra>
// kernel: time_encode.1
= control target key start
LH: loop header
LB: loop body
LE: loop exit
PB: predicated region body
PF: predicated region fallthrough
CT: control target
= control target key end

     0   :  { %8 = vsyncpa [#allocation3], 0  ;;  %s13854_s0 = inlined_call_operand.vmem [shape: f32[1024,1], index: 0, kind: input, shape index: {}]   ;;  %s13855_s1 = inlined_call_operand.vmem [shape: f32[1,128], index: 1, kind: input, shape index: {}]   ;;  %s13856_s2 = inlined_call_operand.vmem [shape: f32[1,128], index: 2, kind: input, shape index: {}]   ;;  %s13857_s3 = inlined_call_operand.hbm [shape: f32[1024,128], index: 3, kind: output, shape index: {}]  }
   0x1   :  { %10 = vsyncpa [#allocation3 + $0x1], 0  ;;  %s8378_s12 = smov 0   ;;  %s8380_s13 = smov 0  }
   0x2   :  { %s8382_s14 = smov 0   ;;  %s8384_s15 = smov 0  }
   0x3 LB: > { %s8399_s16 = sadd.s32 4294967295, %s8346_s15   ;;  %s7430_s17 = sadd.s32 4294967294, %s8346_s15   ;;  %s8346_s15 = sphi %s8384_s15, %s13987_s15   ;;  %s8342_s14 = sphi %s8382_s14, %s13986_s14   ;;  %s8338_s13 = sphi %s8380_s13, %s13985_s13   ;;  %s8334_s12 = sphi %s8378_s12, %s13984_s12  }
   0x4   : > { %s8403_s18 = sadd.s32 1, %s8346_s15   ;;  %s91_s19 = sadd.s32 1, %s8342_s14 }
   0x5   : > { %s88_s20 = ssub.s32 %s8346_s15, %s8403_s18  ;;  %p101_p0 = scmp.ne.s32.totalorder %s8342_s14, %s8338_s13 }
   0x6   : > { %p89_p1 = scmp.eq.s32.totalorder %s88_s20, 0  ;;  %p102_p2 = scmp.eq.s32.totalorder %s8399_s16, 1 }
   0x7   : > { %p107_p3 = scmp.ne.s32.totalorder %s8338_s13, %s8334_s12  ;;  %p108_p4 = scmp.eq.s32.totalorder %s7430_s17, 1 }
   0x8   : > { %s8414_s21 = scalar_select %p89_p1, %s8342_s14, %s91_s19  }
   0x9   : > { %p8416_p5 = por %p102_p2, %p101_p0  ;;  %p8420_p6 = por %p108_p4, %p107_p3 }
   0xa   : > { %p7433_p7 = scmp.ge.s32.totalorder %s8346_s15, 1  ;;  %p141_p8 = scmp.lt.s32.totalorder %s8346_s15, 3 }
   0xc   : > { %p142_p9 = pnand %p7433_p7, %p141_p8 }
   0xd   : > { %s7435_s24 = sshll.u32 (!%p142_p9), %s8399_s16, 6  ;;  %v8348_v0 = vmov (!%p142_p9), 0   ;;  %s162_s6 = sand.u32 (!%p142_p9), 1, %s8338_s13  }
   0xe   : > { %145 = sbr.rel (%p142_p9) target bundleno = 1793 (0x701), region = 32  ;;  %8006 = vset.pattern.permute.xlu1 (!%p142_p9), %v8348_v0  ;;  %8005 = vset.pattern.permute.xlu0 (!%p142_p9), %v8348_v0  ;;  %p166_p10 = scmp.lt.s32.totalorder (!%p142_p9), %s7435_s24, 127 }
   0xf   : > { %s7434_s7 = sshll.u32 (!%p142_p9), %s162_s6, 9  ;;  %s8355_s9 = smov (!%p142_p9), [#allocation2]  }
  0x10   : > { %s8782_s8 = scalar_lea.vmem (!%p142_p9), [#allocation2], %s7434_s7  ;;  %s8288_s10 = sshll.u32 (!%p142_p9), %s8355_s9, 4  ;;  %s8289_s10 = int_to_ptr.vmem [resolvable:$false] %s8288_s10 }
  0x11   : > { %s7368_s29 = sshll.u32 (!%p142_p9), %s8782_s8, 4  ;;  %s8290_s11 = scalar_lea.vmem (!%p142_p9), %s8289_s10, 16384  ;;  %s13807_s29 = int_to_ptr.vmem [resolvable:$true] %s7368_s29 }
  0x12   : > { %s8284_s7 = scalar_lea.vmem (!%p142_p9), %s13807_s29, 8192  ;;  %p8291_p0 = scmp.lt.s32.totalorder (!%p142_p9), %s13807_s29, %s8289_s10 }
  0x13   : > { %p8285_p11 = scmp.ne.s32.totalorder (!%p142_p9), %s13807_s29, %s8284_s7  ;;  %p8292_p1 = scmp.lt.s32.totalorder (!%p142_p9), %s8290_s11, %s8284_s7 }
  0x15   : > { %s13989_s24 = smov (!%p166_p10, %s7435_s24), 127  ;;  %p8286_p12 = pnand %p8285_p11, %p8416_p5 }
  0x16   : > { %s7436_s25 = sshll.u32 %s13989_s24, 3  ;;  %p8293_p2 = por %p8292_p1, %p8291_p0 }
  0x17   : > { %s8430_s28 = scalar_lea.vmem %s13854_s0, %s7436_s25  ;;  %p8287_p13 = pneg %p8286_p12 }
  0x18   : > { %v174_v1 = vld [vmem:[%s8430_s28 + $0x10] sm:$0xff]  ;;  %v172_v2 = vld [vmem:[%s8430_s28] sm:$0xff]  ;;  %v175_v3 = vld [vmem:[%s8430_s28 + $0x18] sm:$0xff] }
  0x19   : > { %249 = vperm.xlu1 %8006, %v174_v1   ;;  %239 = vperm.xlu0 %8005, %v172_v2   ;;  %v173_v4 = vld [vmem:[%s8430_s28 + $0x8] sm:$0xff]  ;;  %v176_v6 = vld [vmem:[%s8430_s28 + $0x20] sm:$0xff]  ;;  %v179_v7 = vld [vmem:[%s8430_s28 + $0x38] sm:$0xff]  ;;  %p8294_p3 = pnand %p8293_p2, %p8287_p13 }
  0x1a   : > { %v177_v5 = vld [vmem:[%s8430_s28 + $0x28] sm:$0xff]  ;;  %v178_v8 = vld [vmem:[%s8430_s28 + $0x30] sm:$0xff]  ;;  %v180_v10 = vld [vmem:[%s8430_s28 + $0x40] sm:$0xff] }
  0x1b   : > { %v181_v9 = vld [vmem:[%s8430_s28 + $0x48] sm:$0xff]  ;;  %v183_v11 = vld [vmem:[%s8430_s28 + $0x58] sm:$0xff]  ;;  %v182_v12 = vld [vmem:[%s8430_s28 + $0x50] sm:$0xff] }
  0x1c   : > { %v185_v13 = vld [vmem:[%s8430_s28 + $0x68] sm:$0xff]  ;;  %v184_v14 = vld [vmem:[%s8430_s28 + $0x60] sm:$0xff]  ;;  %v187_v15 = vld [vmem:[%s8430_s28 + $0x78] sm:$0xff] }
  0x1d   : > { %254 = vperm.xlu1 %8006, %v175_v3   ;;  %244 = vperm.xlu0 %8005, %v173_v4   ;;  %v186_v16 = vld [vmem:[%s8430_s28 + $0x70] sm:$0xff]  ;;  %v189_v17 = vld [vmem:[%s8430_s28 + $0x88] sm:$0xff]  ;;  %v188_v18 = vld [vmem:[%s8430_s28 + $0x80] sm:$0xff] }
  0x1e   : > { %v191_v19 = vld [vmem:[%s8430_s28 + $0x98] sm:$0xff]  ;;  %v190_v20 = vld [vmem:[%s8430_s28 + $0x90] sm:$0xff]  ;;  %v193_v21 = vld [vmem:[%s8430_s28 + $0xa8] sm:$0xff] }
  0x1f   : > { %v192_v22 = vld [vmem:[%s8430_s28 + $0xa0] sm:$0xff]  ;;  %v195_v23 = vld [vmem:[%s8430_s28 + $0xb8] sm:$0xff]  ;;  %v194_v24 = vld [vmem:[%s8430_s28 + $0xb0] sm:$0xff] }
  0x20   : > { %v197_v25 = vld [vmem:[%s8430_s28 + $0xc8] sm:$0xff]  ;;  %v196_v26 = vld [vmem:[%s8430_s28 + $0xc0] sm:$0xff]  ;;  %v199_v27 = vld [vmem:[%s8430_s28 + $0xd8] sm:$0xff] }
  0x21   : > { %264 = vperm.xlu1 %8006, %v177_v5   ;;  %259 = vperm.xlu0 %8005, %v176_v6   ;;  %v198_v28 = vld [vmem:[%s8430_s28 + $0xd0] sm:$0xff]  ;;  %v201_v29 = vld [vmem:[%s8430_s28 + $0xe8] sm:$0xff]  ;;  %v200_v30 = vld [vmem:[%s8430_s28 + $0xe0] sm:$0xff] }
  0x22   : > { %v203_v31 = vld [vmem:[%s8430_s28 + $0xf8] sm:$0xff]  ;;  %v202_v32 = vld [vmem:[%s8430_s28 + $0xf0] sm:$0xff]  ;;  %v205_v33 = vld [vmem:[%s8430_s28 + $0x108] sm:$0xff] }
  0x23   : > { %v204_v34 = vld [vmem:[%s8430_s28 + $0x100] sm:$0xff]  ;;  %v207_v35 = vld [vmem:[%s8430_s28 + $0x118] sm:$0xff]  ;;  %v206_v36 = vld [vmem:[%s8430_s28 + $0x110] sm:$0xff] }
  0x24   : > { %v209_v37 = vld [vmem:[%s8430_s28 + $0x128] sm:$0xff]  ;;  %v208_v38 = vld [vmem:[%s8430_s28 + $0x120] sm:$0xff]  ;;  %v211_v39 = vld [vmem:[%s8430_s28 + $0x138] sm:$0xff] }
  0x25   : > { %274 = vperm.xlu1 %8006, %v179_v7   ;;  %269 = vperm.xlu0 %8005, %v178_v8   ;;  %v210_v40 = vld [vmem:[%s8430_s28 + $0x130] sm:$0xff]  ;;  %v213_v41 = vld [vmem:[%s8430_s28 + $0x148] sm:$0xff]  ;;  %v212_v42 = vld [vmem:[%s8430_s28 + $0x140] sm:$0xff] }
  0x26   : > { %v215_v43 = vld [vmem:[%s8430_s28 + $0x158] sm:$0xff]  ;;  %v214_v44 = vld [vmem:[%s8430_s28 + $0x150] sm:$0xff]  ;;  %v217_v45 = vld [vmem:[%s8430_s28 + $0x168] sm:$0xff] }
  0x27   : > { %v216_v46 = vld [vmem:[%s8430_s28 + $0x160] sm:$0xff]  ;;  %v219_v47 = vld [vmem:[%s8430_s28 + $0x178] sm:$0xff]  ;;  %v218_v48 = vld [vmem:[%s8430_s28 + $0x170] sm:$0xff] }
  0x28   : > { %v221_v49 = vld [vmem:[%s8430_s28 + $0x188] sm:$0xff]  ;;  %v220_v50 = vld [vmem:[%s8430_s28 + $0x180] sm:$0xff]  ;;  %v223_v51 = vld [vmem:[%s8430_s28 + $0x198] sm:$0xff] }
  0x29   : > { %284 = vperm.xlu1 %8006, %v181_v9   ;;  %279 = vperm.xlu0 %8005, %v180_v10   ;;  %v222_v52 = vld [vmem:[%s8430_s28 + $0x190] sm:$0xff]  ;;  %v225_v53 = vld [vmem:[%s8430_s28 + $0x1a8] sm:$0xff]  ;;  %v224_v54 = vld [vmem:[%s8430_s28 + $0x1a0] sm:$0xff] }
  0x2a   : > { %v227_v55 = vld [vmem:[%s8430_s28 + $0x1b8] sm:$0xff]  ;;  %v226_v56 = vld [vmem:[%s8430_s28 + $0x1b0] sm:$0xff]  ;;  %v229_v57 = vld [vmem:[%s8430_s28 + $0x1c8] sm:$0xff] }
  0x2b   : > { %v228_v58 = vld [vmem:[%s8430_s28 + $0x1c0] sm:$0xff]  ;;  %v231_v59 = vld [vmem:[%s8430_s28 + $0x1d8] sm:$0xff]  ;;  %v230_v60 = vld [vmem:[%s8430_s28 + $0x1d0] sm:$0xff] }
  0x2c   : > { %v233_v61 = vld [vmem:[%s8430_s28 + $0x1e8] sm:$0xff]  ;;  %v232_v62 = vld [vmem:[%s8430_s28 + $0x1e0] sm:$0xff]  ;;  %v235_v63 = vld [vmem:[%s8430_s28 + $0x1f8] sm:$0xff] }
  0x2d   : > { %294 = vperm.xlu1 %8006, %v183_v11   ;;  %289 = vperm.xlu0 %8005, %v182_v12   ;;  %v234_v0 = vld [vmem:[%s8430_s28 + $0x1f0] sm:$0xff]  ;;  %v8499_v1 = vld [vmem:[%s13855_s1] ss:$0 sm:$0xff]  ;;  %s7700_s28 = sshll.u32 %s8399_s16, 13  ;;  %s13813_s16 = scalar_lea.sflag [#allocation3], %s162_s6 }
  0x2e   : > { %v8504_v2 = vld [vmem:[%s13856_s2] ss:$0 sm:$0xff]  ;;  %s13805_s5 = scalar_lea.hbm %s13857_s3, %s7700_s28 }
  0x31   : > { %304 = vperm.xlu1 %8006, %v185_v13   ;;  %299 = vperm.xlu0 %8005, %v184_v14  }
  0x35   : > { %314 = vperm.xlu1 %8006, %v187_v15   ;;  %309 = vperm.xlu0 %8005, %v186_v16  }
  0x39   : > { %324 = vperm.xlu1 %8006, %v189_v17   ;;  %319 = vperm.xlu0 %8005, %v188_v18  }
  0x3d   : > { %334 = vperm.xlu1 %8006, %v191_v19   ;;  %329 = vperm.xlu0 %8005, %v190_v20  }
  0x41   : > { %344 = vperm.xlu1 %8006, %v193_v21   ;;  %339 = vperm.xlu0 %8005, %v192_v22  }
  0x45   : > { %354 = vperm.xlu1 %8006, %v195_v23   ;;  %349 = vperm.xlu0 %8005, %v194_v24  }
  0x49   : > { %364 = vperm.xlu1 %8006, %v197_v25   ;;  %359 = vperm.xlu0 %8005, %v196_v26  }
  0x4d   : > { %374 = vperm.xlu1 %8006, %v199_v27   ;;  %369 = vperm.xlu0 %8005, %v198_v28  }
  0x51   : > { %384 = vperm.xlu1 %8006, %v201_v29   ;;  %379 = vperm.xlu0 %8005, %v200_v30  }
  0x55   : > { %394 = vperm.xlu1 %8006, %v203_v31   ;;  %389 = vperm.xlu0 %8005, %v202_v32  }
  0x59   : > { %404 = vperm.xlu1 %8006, %v205_v33   ;;  %399 = vperm.xlu0 %8005, %v204_v34  }
  0x5d   : > { %414 = vperm.xlu1 %8006, %v207_v35   ;;  %409 = vperm.xlu0 %8005, %v206_v36  }
  0x61   : > { %424 = vperm.xlu1 %8006, %v209_v37   ;;  %419 = vperm.xlu0 %8005, %v208_v38  }
  0x65   : > { %434 = vperm.xlu1 %8006, %v211_v39   ;;  %429 = vperm.xlu0 %8005, %v210_v40   ;;  %v8349_v39 = vmov 683565275  }
  0x69   : > { %444 = vperm.xlu1 %8006, %v213_v41   ;;  %439 = vperm.xlu0 %8005, %v212_v42  }
  0x6d   : > { %454 = vperm.xlu1 %8006, %v215_v43   ;;  %449 = vperm.xlu0 %8005, %v214_v44   ;;  %v8350_v43 = vmov 2475754826  }
  0x71   : > { %464 = vperm.xlu1 %8006, %v217_v45   ;;  %459 = vperm.xlu0 %8005, %v216_v46   ;;  %v8351_v45 = vmov 2131351028  }
  0x75   : > { %474 = vperm.xlu1 %8006, %v219_v47   ;;  %469 = vperm.xlu0 %8005, %v218_v48   ;;  %v8352_v47 = vmov 2102212464  }
  0x79   : > { %484 = vperm.xlu1 %8006, %v221_v49   ;;  %479 = vperm.xlu0 %8005, %v220_v50   ;;  %v8353_v49 = vmov 920167782  }
  0x7d   : > { %494 = vperm.xlu1 %8006, %v223_v51   ;;  %489 = vperm.xlu0 %8005, %v222_v52  }
  0x81   : > { %504 = vperm.xlu1 %8006, %v225_v53   ;;  %499 = vperm.xlu0 %8005, %v224_v54  }
  0x85   : > { %514 = vperm.xlu1 %8006, %v227_v55   ;;  %509 = vperm.xlu0 %8005, %v226_v56   ;;  %v8354_v56 = vmov 1326507024  }
  0x89   : > { %524 = vperm.xlu1 %8006, %v229_v57   ;;  %519 = vperm.xlu0 %8005, %v228_v58  }
  0x8d   : > { %534 = vperm.xlu1 %8006, %v231_v59   ;;  %529 = vperm.xlu0 %8005, %v230_v60  }
  0x91   : > { %544 = vperm.xlu1 %8006, %v233_v61   ;;  %539 = vperm.xlu0 %8005, %v232_v62  }
  0x95   : > { %554 = vperm.xlu1 %8006, %v235_v63   ;;  %549 = vperm.xlu0 %8005, %v234_v0  }
  0x98   : > { %v250_v3 = vpop.permute.xlu1 %249  ;;  %v240_v4 = vpop.permute.xlu0 %239 }
  0x99   : > { %v565_v5 = vmul.f32 %v8499_v1, %v250_v3  ;;  %v563_v6 = vmul.f32 %v8499_v1, %v240_v4 }
  0x9b   : > { %v8509_v7 = vadd.f32 %v8504_v2, %v565_v5  ;;  %v8512_v8 = vadd.f32 %v8504_v2, %v563_v6 }
  0x9c   : > { %v255_v9 = vpop.permute.xlu1 %254  ;;  %v245_v27 = vpop.permute.xlu0 %244 }
  0x9d   : > { %v904_v10 = vand.u32 2147483647, %v8509_v7  ;;  %v907_v11 = vand.u32 2139095040, %v8509_v7  ;;  %v698_v12 = vand.u32 2147483647, %v8512_v8  ;;  %v701_v13 = vand.u32 2139095040, %v8512_v8 }
  0x9e   : > { %v566_v15 = vmul.f32 %v8499_v1, %v255_v9  ;;  %v8528_v33 = vmul.f32 %v8499_v1, %v245_v27  ;;  %vm906_vm14 = vcmp.lt.s32.totalorder %v8509_v7, 0 }
  0x9f   : > { %v908_v14 = vshrl.u32 %v907_v11, 23  ;;  %v911_v16 = vand.u32 8388607, %v904_v10  ;;  %v702_v17 = vshrl.u32 %v701_v13, 23  ;;  %v705_v18 = vand.u32 8388607, %v698_v12 }
  0xa0   : > { %v8524_v20 = vadd.f32 %v8504_v2, %v566_v15 }
  0xa1   : > { %v7447_v19 = vadd.s32 4294967169, %v908_v14  ;;  %v7439_v21 = vadd.s32 4294967169, %v702_v17  ;;  %v912_v23 = vor.u32 8388608, %v911_v16  ;;  %v706_v24 = vor.u32 8388608, %v705_v18 }
  0xa2   : > { %v1010_v26 = vand.u32 2139095040, %v8524_v20  ;;  %v1007_v37 = vand.u32 2147483647, %v8524_v20 }
  0xa3   : > { %v914_v22 = vadd.s32 1, %v7447_v19  ;;  %v708_v25 = vadd.s32 1, %v7439_v21  ;;  %v8530_v34 = vshll.u32 %v912_v23, 8  ;;  %v8534_v36 = vshll.u32 %v706_v24, 8 }
  0xa4   : > { %v1011_v29 = vshrl.u32 %v1010_v26, 23 }
  0xa5   : > { %vm915_vm0 = vcmp.gt.s32.totalorder %v914_v22, 0  ;;  %vm709_vm1 = vcmp.gt.s32.totalorder %v708_v25, 0 }
  0xa6   : > { %v916_v28 = vsel %vm915_vm0, %v914_v22, 0  ;;  %v710_v32 = vsel %vm709_vm1, %v708_v25, 0  ;;  %v8538_v42 = vadd.s32 4294967169, %v1011_v29 }
  0xa7   : > { %v917_v30 = vshrl.u32 %v916_v28, 5  ;;  %v918_v31 = vand.u32 31, %v916_v28  ;;  %v8532_v35 = vshrl.u32 %v710_v32, 5  ;;  %v712_v41 = vand.u32 31, %v710_v32 }
  0xa9   : > { %v919_v38 = vsub.s32 32, %v918_v31  ;;  %v921_v40 = vshll.u32 %v8349_v39, %v918_v31  ;;  %v924_v44 = vshll.u32 %v8350_v43, %v918_v31  ;;  %v927_v46 = vshll.u32 %v8351_v45, %v918_v31 }
  0xaa   : > { %v930_v48 = vshll.u32 %v8352_v47, %v918_v31  ;;  %v933_v50 = vshll.u32 %v8353_v49, %v918_v31  ;;  %vm936_vm2 = vcmp.lt.s32.totalorder %v917_v30, 1  ;;  %vm937_vm3 = vcmp.lt.s32.totalorder %v917_v30, 2 }
  0xab   : > { %v922_v51 = vshrl.u32 %v8350_v43, %v919_v38  ;;  %v925_v52 = vshrl.u32 %v8351_v45, %v919_v38  ;;  %v928_v53 = vshrl.u32 %v8352_v47, %v919_v38  ;;  %v920_v54 = vshrl.u32 %v8349_v39, %v919_v38 }
  0xac   : > { %v931_v55 = vshrl.u32 %v8353_v49, %v919_v38  ;;  %v934_v57 = vshrl.u32 %v8354_v56, %v919_v38  ;;  %v713_v61 = vsub.s32 32, %v712_v41  ;;  %vm938_vm4 = vcmp.lt.s32.totalorder %v917_v30, 3 }
  0xad   : > { %v923_v58 = vor.u32 %v922_v51, %v921_v40  ;;  %v926_v59 = vor.u32 %v925_v52, %v924_v44  ;;  %v929_v60 = vor.u32 %v928_v53, %v927_v46  ;;  %vm939_vm5 = vcmp.lt.s32.totalorder %v917_v30, 4 }
  0xae   : > { %v932_v62 = vor.u32 %v931_v55, %v930_v48  ;;  %v935_v63 = vor.u32 %v934_v57, %v933_v50  ;;  %v715_v13 = vshll.u32 %v8349_v39, %v712_v41  ;;  %v716_v16 = vshrl.u32 %v8350_v43, %v713_v61 }
  0xaf   : > { %v940_v0 = vsel %vm936_vm2, %v920_v54, %v923_v58  ;;  %v941_v3 = vsel %vm939_vm5, %v929_v60, 2102212464  ;;  %v944_v4 = vsel %vm936_vm2, %v923_v58, %v926_v59  ;;  %v948_v5 = vsel %vm936_vm2, %v926_v59, %v929_v60 }
  0xb0   : > { %v942_v6 = vsel %vm938_vm4, %v926_v59, %v941_v3  ;;  %v945_v9 = vsel %vm939_vm5, %v932_v62, 920167782  ;;  %v949_v11 = vsel %vm939_vm5, %v935_v63, 1326507024  ;;  %v718_v17 = vshll.u32 %v8350_v43, %v712_v41 }
  0xb1   : > { %v946_v14 = vsel %vm938_vm4, %v929_v60, %v945_v9  ;;  %v950_v15 = vsel %vm938_vm4, %v932_v62, %v949_v11  ;;  %v943_v18 = vsel %vm937_vm3, %v940_v0, %v942_v6  ;;  %v719_v22 = vshrl.u32 %v8351_v45, %v713_v61 }
  0xb2   : > { %v947_v19 = vsel %vm937_vm3, %v944_v4, %v946_v14  ;;  %v951_v21 = vsel %vm937_vm3, %v948_v5, %v950_v15  ;;  %v717_v27 = vor.u32 %v716_v16, %v715_v13  ;;  %v721_v29 = vshll.u32 %v8351_v45, %v712_v41 }
  0xb3   : > { %v8561_v23 = vmul.u32.u64.low %v8530_v34, %v951_v21  ;;  %v8562_v24 = vmul.u32.u64.high %v8530_v34, %v951_v21, %v8561_v23  ;;  %v8565_v25 = vmul.u32.u64.low %v8530_v34, %v947_v19  ;;  %v8566_v26 = vmul.u32.u64.high %v8530_v34, %v947_v19, %v8565_v25 }
  0xb4   : > { %v720_v28 = vor.u32 %v719_v22, %v718_v17  ;;  %v722_v31 = vshrl.u32 %v8352_v47, %v713_v61  ;;  %v714_v32 = vshrl.u32 %v8349_v39, %v713_v61  ;;  %v724_v30 = vshll.u32 %v8352_v47, %v712_v41 }
  0xb5   : > { %v725_v38 = vshrl.u32 %v8353_v49, %v713_v61  ;;  %v728_v40 = vshrl.u32 %v8354_v56, %v713_v61  ;;  %v959_v44 = vmul.u32 %v8530_v34, %v943_v18  ;;  %v727_v48 = vshll.u32 %v8353_v49, %v712_v41 }
  0xb6   : > { %v723_v46 = vor.u32 %v722_v31, %v721_v29  ;;  %vm730_vm6 = vcmp.lt.s32.totalorder %v8532_v35, 1  ;;  %vm961_vm7 = vc.u32 %v8562_v24, %v8565_v25  ;;  %v962_v50 = vadd.s32 1, %v8566_v26 }
  0xb7   : > { %v726_v51 = vor.u32 %v725_v38, %v724_v30  ;;  %vm731_vm8 = vcmp.lt.s32.totalorder %v8532_v35, 2  ;;  %v729_v52 = vor.u32 %v728_v40, %v727_v48  ;;  %vm732_vm9 = vcmp.lt.s32.totalorder %v8532_v35, 3 }
  0xb8   : > { %vm733_vm10 = vcmp.lt.s32.totalorder %v8532_v35, 4  ;;  %v738_v53 = vsel %vm730_vm6, %v717_v27, %v720_v28  ;;  %v963_v34 = vsel %vm961_vm7, %v962_v50, %v8566_v26  ;;  %v742_v41 = vsel %vm730_vm6, %v720_v28, %v723_v46 }
  0xb9   : > { %v735_v54 = vsel %vm733_vm10, %v723_v46, 2102212464  ;;  %v739_v55 = vsel %vm733_vm10, %v726_v51, 920167782  ;;  %v964_v57 = vadd.s32 %v963_v34, %v959_v44  ;;  %v734_v58 = vsel %vm730_vm6, %v714_v32, %v717_v27 }
  0xba   : > { %v740_v59 = vsel %vm732_vm9, %v723_v46, %v739_v55  ;;  %v743_v60 = vsel %vm733_vm10, %v729_v52, 1326507024  ;;  %v736_v61 = vsel %vm732_vm9, %v720_v28, %v735_v54  ;;  %v1017_v0 = vadd.s32 1, %v8538_v42 }
  0xbb   : > { %v741_v62 = vsel %vm731_vm8, %v738_v53, %v740_v59  ;;  %v744_v63 = vsel %vm732_vm9, %v726_v51, %v743_v60  ;;  %v965_v3 = vadd.s32 536870912, %v964_v57  ;;  %v1014_v13 = vand.u32 8388607, %v1007_v37 }
  0xbc   : > { %v745_v4 = vsel %vm731_vm8, %v742_v41, %v744_v63  ;;  %v8589_v5 = vmul.u32.u64.low %v8534_v36, %v741_v62  ;;  %v8590_v6 = vmul.u32.u64.high %v8534_v36, %v741_v62, %v8589_v5  ;;  %vm1018_vm11 = vcmp.gt.s32.totalorder %v1017_v0, 0 }
  0xbd   : > { %v8594_v9 = vmul.u32.u64.low %v8534_v36, %v745_v4  ;;  %v8595_v11 = vmul.u32.u64.high %v8534_v36, %v745_v4, %v8594_v9  ;;  %v8599_v14 = vshrl.u32 %v965_v3, 30  ;;  %v737_v42 = vsel %vm731_vm8, %v734_v58, %v736_v61 }
  0xbe   : > { %v1019_v15 = vsel %vm1018_vm11, %v1017_v0, 0  ;;  %v756_v18 = vadd.s32 1, %v8590_v6  ;;  %v8607_v19 = vadd.f32 %v8504_v2, %v8528_v33  ;;  %v753_v21 = vmul.u32 %v8534_v36, %v737_v42 }
  0xbf   : > { %v1021_v16 = vand.u32 31, %v1019_v15  ;;  %v967_v17 = vshll.u32 %v8599_v14, 30  ;;  %vm755_vm12 = vc.u32 %v8595_v11, %v8589_v5  ;;  %v1015_v22 = vor.u32 8388608, %v1014_v13 }
  0xc0   : > { %v757_v35 = vsel %vm755_vm12, %v756_v18, %v8590_v6  ;;  %v960_v28 = vadd.s32 %v8565_v25, %v8562_v24  ;;  %v801_v31 = vand.u32 2147483647, %v8607_v19  ;;  %v804_v36 = vand.u32 2139095040, %v8607_v19 }
  0xc1   : > { %v1022_v23 = vsub.s32 32, %v1021_v16  ;;  %v968_v26 = vsub.s32 %v964_v57, %v967_v17  ;;  %v758_v27 = vadd.s32 %v757_v35, %v753_v21  ;;  %v8616_v30 = vshll.u32 %v1015_v22, 8 }
  0xc2   : > { %v1020_v40 = vshrl.u32 %v1019_v15, 5  ;;  %v990_v48 = vsub.s32 4, %v8599_v14  ;;  %v1030_v24 = vshll.u32 %v8351_v45, %v1021_v16  ;;  %v1024_v52 = vshll.u32 %v8349_v39, %v1021_v16 }
  0xc3   : > { %v970_v29 = vsub.s32 0, %v968_v26  ;;  %v759_v32 = vadd.s32 536870912, %v758_v27  ;;  %v1031_v33 = vshrl.u32 %v8352_v47, %v1022_v23  ;;  %v1025_v44 = vshrl.u32 %v8350_v43, %v1022_v23 }
  0xc4   : > { %v1028_v46 = vshrl.u32 %v8351_v45, %v1022_v23  ;;  %v1034_v25 = vshrl.u32 %v8353_v49, %v1022_v23  ;;  %v1027_v53 = vshll.u32 %v8350_v43, %v1021_v16  ;;  %v1033_v34 = vshll.u32 %v8352_v47, %v1021_v16 }
  0xc5   : > { %v7448_v38 = vmin.u32 %v970_v29, %v968_v26  ;;  %v8622_v50 = vshrl.u32 %v759_v32, 30  ;;  %v1032_v55 = vor.u32 %v1031_v33, %v1030_v24  ;;  %v1037_v41 = vshrl.u32 %v8354_v56, %v1022_v23 }
  0xc6   : > { %v805_v57 = vshrl.u32 %v804_v36, 23  ;;  %v1026_v59 = vor.u32 %v1025_v44, %v1024_v52  ;;  %v1029_v60 = vor.u32 %v1028_v46, %v1027_v53  ;;  %v1035_v61 = vor.u32 %v1034_v25, %v1033_v34 }
  0xc7   : > { %v972_v51 = vclz %v7448_v38  ;;  %v761_v54 = vshll.u32 %v8622_v50, 30  ;;  %v1023_v63 = vshrl.u32 %v8349_v39, %v1022_v23  ;;  %v1036_v0 = vshll.u32 %v8353_v49, %v1021_v16 }
  0xc8   : > { %vm1039_vm13 = vcmp.lt.s32.totalorder %v1020_v40, 1  ;;  %v784_v3 = vsub.s32 4, %v8622_v50  ;;  %vm1040_vm0 = vcmp.lt.s32.totalorder %v1020_v40, 2  ;;  %vm1042_vm1 = vcmp.lt.s32.totalorder %v1020_v40, 4 }
  0xc9   : > { %v7449_v58 = vadd.s32 4294967294, %v972_v51  ;;  %v8631_v62 = vsub.s32 %v758_v27, %v761_v54  ;;  %vm700_vm2 = vcmp.lt.s32.totalorder %v8512_v8, 0  ;;  %v1038_v9 = vor.u32 %v1037_v41, %v1036_v0 }
  0xca   : > { %v1044_v13 = vsel %vm1042_vm1, %v1032_v55, 2102212464  ;;  %v1047_v16 = vsel %vm1039_vm13, %v1026_v59, %v1029_v60  ;;  %v1048_v17 = vsel %vm1042_vm1, %v1035_v61, 920167782  ;;  %vm1041_vm3 = vcmp.lt.s32.totalorder %v1020_v40, 3 }
  0xcb   : > { %vm7450_vm15 = vcmp.lt.s32.totalorder %v7449_v58, 0  ;;  %v764_v6 = vsub.s32 0, %v8631_v62  ;;  %v1043_v22 = vsel %vm1039_vm13, %v1023_v63, %v1026_v59  ;;  %v1049_v27 = vsel %vm1041_vm3, %v1032_v55, %v1048_v17 }
  0xcc   : > { %v975_v4 = vsel %vm7450_vm15, 0, %v7449_v58  ;;  %v1051_v29 = vsel %vm1039_vm13, %v1029_v60, %v1032_v55  ;;  %v1045_v33 = vsel %vm1041_vm3, %v1029_v60, %v1044_v13  ;;  %v1050_v36 = vsel %vm1040_vm0, %v1047_v16, %v1049_v27 }
  0xcd   : > { %v976_v42 = vsub.s32 32, %v975_v4  ;;  %v980_v15 = vsub.s32 4294967266, %v975_v4  ;;  %v977_v18 = vshll.u32 %v968_v26, %v975_v4  ;;  %v7440_v21 = vmin.u32 %v764_v6, %v8631_v62 }
  0xce   : > { %v1052_v38 = vsel %vm1042_vm1, %v1038_v9, 1326507024  ;;  %vm8649_vm4 = vcmp.le.f32.partialorder %v904_v10, 0.7853982  ;;  %vm8655_vm5 = vcmp.le.f32.partialorder %v698_v12, 0.7853982  ;;  %v1046_v54 = vsel %vm1040_vm0, %v1043_v22, %v1045_v33  ;;  %v265_v9 = vpop.permute.xlu1 %264 }
  0xcf   : > { %v978_v23 = vshrl.u32 %v960_v28, %v976_v42  ;;  %v981_v35 = vadd.s32 127, %v980_v15  ;;  %v766_v32 = vclz %v7440_v21  ;;  %v1053_v24 = vsel %vm1041_vm3, %v1035_v61, %v1052_v38  ;;  %v260_v21 = vpop.permute.xlu0 %259 }
  0xd0   : > { %v7443_v28 = vadd.s32 4294967169, %v805_v57  ;;  %v1054_v52 = vsel %vm1040_vm0, %v1051_v29, %v1053_v24  ;;  %v8661_v53 = vmul.u32.u64.low %v8616_v30, %v1050_v36  ;;  %v8662_v34 = vmul.u32.u64.high %v8616_v30, %v1050_v36, %v8661_v53 }
  0xd1   : > { %v979_v44 = vor.u32 %v978_v23, %v977_v18  ;;  %v982_v46 = vshll.u32 %v981_v35, 23  ;;  %v7441_v51 = vadd.s32 4294967294, %v766_v32  ;;  %v991_v12 = vsel %vm906_vm14, %v990_v48, %v8599_v14 }
  0xd2   : > { %v8667_v55 = vmul.u32.u64.low %v8616_v30, %v1054_v52  ;;  %v8668_v41 = vmul.u32.u64.high %v8616_v30, %v1054_v52, %v8667_v55  ;;  %v754_v57 = vadd.s32 %v8589_v5, %v8595_v11  ;;  %v811_v58 = vadd.s32 1, %v7443_v28 }
  0xd3   : > { %v983_v10 = vor.u32 4788187, %v982_v46  ;;  %vm7442_vm6 = vcmp.lt.s32.totalorder %v7441_v51, 0  ;;  %v986_v60 = vcvt.s32.f32 %v979_v44  ;;  %v785_v40 = vsel %vm700_vm2, %v784_v3, %v8622_v50 }
  0xd4   : > { %v769_v61 = vsel %vm7442_vm6, 0, %v7441_v51  ;;  %v1062_v4 = vmul.u32 %v8616_v30, %v1046_v54  ;;  %v1065_v6 = vadd.s32 1, %v8662_v34  ;;  %vm1064_vm7 = vc.u32 %v8668_v41, %v8661_v53 }
  0xd5   : > { %v984_v59 = vand.u32 2147483647, %v983_v10  ;;  %v770_v63 = vsub.s32 32, %v769_v61  ;;  %v774_v0 = vsub.s32 4294967266, %v769_v61  ;;  %v771_v48 = vshll.u32 %v8631_v62, %v769_v61 }
  0xd6   : > { %vm812_vm8 = vcmp.gt.s32.totalorder %v811_v58, 0  ;;  %v1066_v13 = vsel %vm1064_vm7, %v1065_v6, %v8662_v34  ;;  %v568_v30 = vmul.f32 %v8499_v1, %v265_v9  ;;  %v993_v16 = vsel %vm8649_vm4, 0, %v991_v12 }
  0xd7   : > { %v987_v14 = vmul.f32 %v986_v60, %v984_v59  ;;  %v772_v5 = vshrl.u32 %v754_v57, %v770_v63  ;;  %v775_v11 = vadd.s32 127, %v774_v0  ;;  %v813_v42 = vsel %vm812_vm8, %v811_v58, 0 }
  0xd8   : > { %v1067_v3 = vadd.s32 %v1066_v13, %v1062_v4  ;;  %v815_v15 = vand.u32 31, %v813_v42  ;;  %v808_v62 = vand.u32 8388607, %v801_v31  ;;  %v787_v23 = vsel %vm8655_vm5, 0, %v785_v40 }
  0xd9   : > { %v988_v50 = vxor.u32 2147483648, %v987_v14  ;;  %v773_v17 = vor.u32 %v772_v5, %v771_v48  ;;  %v776_v18 = vshll.u32 %v775_v11, 23  ;;  %v8696_v33 = vand.u32 3, %v993_v16 }
  0xda   : > { %v1068_v35 = vadd.s32 536870912, %v1067_v3  ;;  %v816_v27 = vsub.s32 32, %v815_v15  ;;  %v8701_v38 = vmul.f32 %v8499_v1, %v260_v21  ;;  %v8703_v24 = vand.u32 3, %v787_v23 }
  0xdb   : > { %v989_v22 = vsel %vm906_vm14, %v988_v50, %v987_v14  ;;  %v777_v32 = vor.u32 4788187, %v776_v18  ;;  %v780_v46 = vcvt.s32.f32 %v773_v17  ;;  %v809_v51 = vor.u32 8388608, %v808_v62 }
  0xdc   : > { %v992_v29 = vsel %vm8649_vm4, %v8509_v7, %v989_v22  ;;  %v8698_v36 = vshrl.u32 %v1068_v35, 30  ;;  %v819_v26 = vshrl.u32 %v8350_v43, %v816_v27  ;;  %v8708_v52 = vadd.f32 %v8504_v2, %v568_v30 }
  0xdd   : > { %8007 = vcosq.f32 %v992_v29  ;;  %v778_v44 = vand.u32 2147483647, %v777_v32  ;;  %v822_v10 = vshrl.u32 %v8351_v45, %v816_v27  ;;  %v825_v54 = vshrl.u32 %v8352_v47, %v816_v27 }
  0xde   : > { %8009 = vsinq.f32 %v992_v29  ;;  %v1070_v28 = vshll.u32 %v8698_v36, 30  ;;  %v828_v55 = vshrl.u32 %v8353_v49, %v816_v27  ;;  %vm1002_vm9 = vcmp.eq.s32.totalorder %v8696_v33, 2 }
  0xdf   : > { %v781_v34 = vmul.f32 %v780_v46, %v778_v44  ;;  %v8716_v57 = vshrl.u32 %v813_v42, 5  ;;  %v818_v58 = vshll.u32 %v8349_v39, %v815_v15  ;;  %v821_v59 = vshll.u32 %v8350_v43, %v815_v15 }
  0xe0   : > { %v8714_v12 = vsub.s32 %v1067_v3, %v1070_v28  ;;  %vm999_vm10 = vcmp.eq.s32.totalorder %v8696_v33, 0  ;;  %v824_v61 = vshll.u32 %v8351_v45, %v815_v15  ;;  %v827_v40 = vshll.u32 %v8352_v47, %v815_v15 }
  0xe1   : > { %v782_v60 = vxor.u32 2147483648, %v781_v34  ;;  %v831_v63 = vshrl.u32 %v8354_v56, %v816_v27  ;;  %vm998_vm11 = vcmp.lt.s32.totalorder %v8696_v33, 2  ;;  %v1063_v0 = vadd.s32 %v8661_v53, %v8668_v41 }
  0xe2   : > { %v1073_v4 = vsub.s32 0, %v8714_v12  ;;  %v820_v6 = vor.u32 %v819_v26, %v818_v58  ;;  %v830_v9 = vshll.u32 %v8353_v49, %v815_v15  ;;  %vm996_vm12 = vweird.f32 %v8509_v7 }
  0xe3   : > { %v783_v14 = vsel %vm700_vm2, %v782_v60, %v781_v34  ;;  %v823_v48 = vor.u32 %v822_v10, %v821_v59  ;;  %v826_v5 = vor.u32 %v825_v54, %v824_v61  ;;  %v829_v11 = vor.u32 %v828_v55, %v827_v40 }
  0xe4   : > { %v786_v13 = vsel %vm8655_vm5, %v8512_v8, %v783_v14  ;;  %v7452_v53 = vmin.u32 %v1073_v4, %v8714_v12  ;;  %v832_v41 = vor.u32 %v831_v63, %v830_v9  ;;  %v8737_v42 = vshll.u32 %v809_v51, 8 }
  0xe5   : > { %8011 = vcosq.f32 %v786_v13  ;;  %v817_v50 = vshrl.u32 %v8349_v39, %v816_v27  ;;  %vm833_vm13 = vcmp.lt.s32.totalorder %v8716_v57, 1  ;;  %vm834_vm14 = vcmp.lt.s32.totalorder %v8716_v57, 2 }
  0xe6   : > { %8013 = vsinq.f32 %v786_v13  ;;  %v1075_v15 = vclz %v7452_v53  ;;  %vm835_vm15 = vcmp.lt.s32.totalorder %v8716_v57, 3  ;;  %vm836_vm0 = vcmp.lt.s32.totalorder %v8716_v57, 4 }
  0xe7   : > { %v8008_v3 = vpop.eup %8007  ;;  %v841_v16 = vsel %vm833_vm13, %v820_v6, %v823_v48  ;;  %v842_v17 = vsel %vm836_vm0, %v829_v11, 920167782  ;;  %v845_v18 = vsel %vm833_vm13, %v823_v48, %v826_v5  ;;  %v846_v23 = vsel %vm836_vm0, %v832_v41, 1326507024 }
  0xe8   : > { %v8010_v25 = vpop.eup %8009  ;;  %v1003_v30 = vxor.u32 2147483648, %v8008_v3  ;;  %v7453_v21 = vadd.s32 4294967294, %v1075_v15  ;;  %v843_v22 = vsel %vm835_vm15, %v826_v5, %v842_v17  ;;  %vm1009_vm1 = vcmp.lt.s32.totalorder %v8524_v20, 0 }
  0xe9   : > { %v1000_v62 = vxor.u32 2147483648, %v8010_v25  ;;  %v837_v27 = vsel %vm833_vm13, %v817_v50, %v820_v6  ;;  %v838_v29 = vsel %vm836_vm0, %v826_v5, 2102212464  ;;  %v847_v32 = vsel %vm835_vm15, %v829_v11, %v846_v23 }
  0xea   : > { %v1004_v35 = vsel %vm1002_vm9, %v1003_v30, %v8010_v25  ;;  %vm7454_vm2 = vcmp.lt.s32.totalorder %v7453_v21, 0  ;;  %v844_v46 = vsel %vm834_vm14, %v841_v16, %v843_v22  ;;  %v848_v28 = vsel %vm834_vm14, %v845_v18, %v847_v32 }
  0xeb   : > { %v1001_v44 = vsel %vm999_vm10, %v8008_v3, %v1000_v62  ;;  %v1078_v26 = vsel %vm7454_vm2, 0, %v7453_v21  ;;  %v8768_v34 = vmul.u32.u64.low %v8737_v42, %v848_v28  ;;  %v8769_v10 = vmul.u32.u64.high %v8737_v42, %v848_v28, %v8768_v34 }
  0xec   : > { %v1005_v51 = vsel %vm998_vm11, %v1001_v44, %v1004_v35  ;;  %vm790_vm3 = vweird.f32 %v8512_v8  ;;  %vm8776_vm4 = vcmp.le.f32.partialorder %v1007_v37, 0.7853982  ;;  %v1079_v58 = vsub.s32 32, %v1078_v26 }
  0xed   : > { %v1006_v54 = vsel %vm996_vm12, nan, %v1005_v51  ;;  %v1083_v59 = vsub.s32 4294967266, %v1078_v26  ;;  %v839_v33 = vsel %vm835_vm15, %v823_v48, %v838_v29  ;;  %vm793_vm5 = vcmp.eq.s32.totalorder %v8703_v24, 0  ;;  %v275_v29 = vpop.permute.xlu1 %274 }
  0xee   : > { %7292 = vst [vmem:[%s8782_s8 + $0x10] sm:$0xff] %v1006_v54  ;;  %v8787_v7 = vmul.u32.u64.low %v8737_v42, %v844_v46  ;;  %v8788_v60 = vmul.u32.u64.high %v8737_v42, %v844_v46, %v8787_v7  ;;  %v1216_v37 = vand.u32 2139095040, %v8708_v52  ;;  %v1080_v61 = vshll.u32 %v8714_v12, %v1078_v26 }
  0xef   : > { %v1081_v40 = vshrl.u32 %v1063_v0, %v1079_v58  ;;  %v1084_v63 = vadd.s32 127, %v1083_v59  ;;  %v1093_v4 = vsub.s32 4, %v8698_v36  ;;  %v8012_v6 = vpop.eup %8011  ;;  %vm796_vm6 = vcmp.eq.s32.totalorder %v8703_v24, 2 }
  0xf0   : > { %v840_v9 = vsel %vm834_vm14, %v837_v27, %v839_v33  ;;  %v1217_v14 = vshrl.u32 %v1216_v37, 23  ;;  %v8798_v48 = vadd.f32 %v8504_v2, %v8701_v38  ;;  %v8014_v5 = vpop.eup %8013  ;;  %v797_v11 = vxor.u32 2147483648, %v8012_v6 }
  0xf1   : > { %v1082_v13 = vor.u32 %v1081_v40, %v1080_v61  ;;  %v1085_v53 = vshll.u32 %v1084_v63, 23  ;;  %vm858_vm7 = vc.u32 %v8769_v10, %v8787_v7  ;;  %v794_v12 = vxor.u32 2147483648, %v8014_v5 }
  0xf2   : > { %v859_v0 = vadd.s32 1, %v8788_v60  ;;  %v1213_v41 = vand.u32 2147483647, %v8708_v52  ;;  %v7459_v50 = vadd.s32 4294967169, %v1217_v14  ;;  %v798_v3 = vsel %vm796_vm6, %v797_v11, %v8014_v5 }
  0xf3   : > { %v1086_v57 = vor.u32 4788187, %v1085_v53  ;;  %v1094_v38 = vsel %vm1009_vm1, %v1093_v4, %v8698_v36  ;;  %v856_v15 = vmul.u32 %v8737_v42, %v840_v9  ;;  %vm792_vm8 = vcmp.lt.s32.totalorder %v8703_v24, 2 }
  0xf4   : > { %v795_v25 = vsel %vm793_vm5, %v8012_v6, %v794_v12  ;;  %v860_v30 = vsel %vm858_vm7, %v859_v0, %v8788_v60  ;;  %v1223_v16 = vadd.s32 1, %v7459_v50  ;;  %v1089_v62 = vcvt.s32.f32 %v1082_v13 }
  0xf5   : > { %v799_v17 = vsel %vm792_vm8, %v795_v25, %v798_v3  ;;  %v1087_v18 = vand.u32 2147483647, %v1086_v57  ;;  %v861_v21 = vadd.s32 %v860_v30, %v856_v15  ;;  %v1096_v36 = vsel %vm8776_vm4, 0, %v1094_v38 }
  0xf6   : > { %v800_v22 = vsel %vm790_vm3, nan, %v799_v17  ;;  %v1220_v42 = vand.u32 8388607, %v1213_v41  ;;  %vm1224_vm9 = vcmp.gt.s32.totalorder %v1223_v16, 0  ;;  %v1113_v27 = vand.u32 2139095040, %v8798_v48 }
  0xf7   : > { %7290 = vst [vmem:[%s8782_s8] sm:$0xff] %v800_v22  ;;  %v1090_v24 = vmul.f32 %v1089_v62, %v1087_v18  ;;  %v862_v23 = vadd.s32 536870912, %v861_v21  ;;  %v1225_v35 = vsel %vm1224_vm9, %v1223_v16, 0  ;;  %v8821_v8 = vand.u32 3, %v1096_v36 }
  0xf8   : > { %v1227_v32 = vand.u32 31, %v1225_v35  ;;  %v8824_v28 = vadd.s32 %v8787_v7, %v8769_v10  ;;  %v8827_v26 = vmul.f32 %v8499_v1, %v275_v29  ;;  %v1221_v58 = vor.u32 8388608, %v1220_v42 }
  0xf9   : > { %v1091_v44 = vxor.u32 2147483648, %v1090_v24  ;;  %v8819_v46 = vshrl.u32 %v862_v23, 30  ;;  %v1114_v59 = vshrl.u32 %v1113_v27, 23  ;;  %v1226_v40 = vshrl.u32 %v1225_v35, 5 }
  0xfa   : > { %v1228_v51 = vsub.s32 32, %v1227_v32  ;;  %v1230_v60 = vshll.u32 %v8349_v39, %v1227_v32  ;;  %v1233_v37 = vshll.u32 %v8350_v43, %v1227_v32  ;;  %v1236_v63 = vshll.u32 %v8351_v45, %v1227_v32 }
  0xfb   : > { %v1092_v34 = vsel %vm1009_vm1, %v1091_v44, %v1090_v24  ;;  %v864_v54 = vshll.u32 %v8819_v46, 30  ;;  %v1110_v55 = vand.u32 2147483647, %v8798_v48  ;;  %v1239_v11 = vshll.u32 %v8352_v47, %v1227_v32 }
  0xfc   : > { %v1095_v33 = vsel %vm8776_vm4, %v8524_v20, %v1092_v34  ;;  %v1231_v10 = vshrl.u32 %v8350_v43, %v1228_v51  ;;  %v1234_v7 = vshrl.u32 %v8351_v45, %v1228_v51  ;;  %v1237_v61 = vshrl.u32 %v8352_v47, %v1228_v51 }
  0xfd   : > { %8015 = vcosq.f32 %v1095_v33  ;;  %v8838_v1 = vsub.s32 %v861_v21, %v864_v54  ;;  %v1240_v14 = vshrl.u32 %v8353_v49, %v1228_v51  ;;  %v1242_v13 = vshll.u32 %v8353_v49, %v1227_v32 }
  0xfe   : > { %8017 = vsinq.f32 %v1095_v33  ;;  %v1232_v6 = vor.u32 %v1231_v10, %v1230_v60  ;;  %v1235_v9 = vor.u32 %v1234_v7, %v1233_v37  ;;  %v1238_v5 = vor.u32 %v1237_v61, %v1236_v63 }
  0xff   : > { %v867_v4 = vsub.s32 0, %v8838_v1  ;;  %v1243_v53 = vshrl.u32 %v8354_v56, %v1228_v51  ;;  %vm1105_vm10 = vcmp.eq.s32.totalorder %v8821_v8, 2  ;;  %vm803_vm11 = vcmp.lt.s32.totalorder %v8607_v19, 0 }
 0x100   : > { %v887_v0 = vsub.s32 4, %v8819_v46  ;;  %v1261_v50 = vshll.u32 %v1221_v58, 8  ;;  %v7455_v3 = vadd.s32 4294967169, %v1114_v59  ;;  %vm1102_vm12 = vcmp.eq.s32.totalorder %v8821_v8, 0 }
 0x101   : > { %v7444_v12 = vmin.u32 %v867_v4, %v8838_v1  ;;  %v1229_v57 = vshrl.u32 %v8349_v39, %v1228_v51  ;;  %v1241_v38 = vor.u32 %v1240_v14, %v1239_v11  ;;  %v1244_v15 = vor.u32 %v1243_v53, %v1242_v13 }
 0x102   : > { %vm1245_vm13 = vcmp.lt.s32.totalorder %v1226_v40, 1  ;;  %vm1101_vm14 = vcmp.lt.s32.totalorder %v8821_v8, 2  ;;  %vm1247_vm15 = vcmp.lt.s32.totalorder %v1226_v40, 3  ;;  %vm1248_vm0 = vcmp.lt.s32.totalorder %v1226_v40, 4 }
 0x103   : > { %v869_v25 = vclz %v7444_v12  ;;  %v1253_v30 = vsel %vm1245_vm13, %v1232_v6, %v1235_v9  ;;  %vm1099_vm1 = vweird.f32 %v8524_v20  ;;  %v1250_v16 = vsel %vm1248_vm0, %v1238_v5, 2102212464 }
 0x104   : > { %v1254_v17 = vsel %vm1248_vm0, %v1241_v38, 920167782  ;;  %v1257_v18 = vsel %vm1245_vm13, %v1235_v9, %v1238_v5  ;;  %v1258_v62 = vsel %vm1248_vm0, %v1244_v15, 1326507024  ;;  %vm1246_vm2 = vcmp.lt.s32.totalorder %v1226_v40, 2 }
 0x105   : > { %v7445_v21 = vadd.s32 4294967294, %v869_v25  ;;  %v1255_v22 = vsel %vm1247_vm15, %v1238_v5, %v1254_v17  ;;  %v1259_v36 = vsel %vm1247_vm15, %v1241_v38, %v1258_v62  ;;  %v1249_v42 = vsel %vm1245_vm13, %v1229_v57, %v1232_v6 }
 0x106   : > { %v1256_v24 = vsel %vm1246_vm2, %v1253_v30, %v1255_v22  ;;  %v1260_v23 = vsel %vm1246_vm2, %v1257_v18, %v1259_v36  ;;  %v1120_v35 = vadd.s32 1, %v7455_v3  ;;  %v1251_v29 = vsel %vm1247_vm15, %v1235_v9, %v1250_v16 }
 0x107   : > { %v8016_v27 = vpop.eup %8015  ;;  %vm7446_vm3 = vcmp.lt.s32.totalorder %v7445_v21, 0  ;;  %v8862_v32 = vmul.u32.u64.low %v1261_v50, %v1260_v23  ;;  %v8863_v44 = vmul.u32.u64.high %v1261_v50, %v1260_v23, %v8862_v32  ;;  %v1117_v7 = vand.u32 8388607, %v1110_v55 }
 0x108   : > { %v8018_v51 = vpop.eup %8017  ;;  %v1106_v34 = vxor.u32 2147483648, %v8016_v27  ;;  %v872_v54 = vsel %vm7446_vm3, 0, %v7445_v21  ;;  %v8865_v58 = vmul.u32.u64.low %v1261_v50, %v1256_v24  ;;  %v8866_v59 = vmul.u32.u64.high %v1261_v50, %v1256_v24, %v8865_v58 }
 0x109   : > { %v1103_v33 = vxor.u32 2147483648, %v8018_v51  ;;  %v873_v60 = vsub.s32 32, %v872_v54  ;;  %v877_v10 = vsub.s32 4294967266, %v872_v54  ;;  %v888_v61 = vsel %vm803_vm11, %v887_v0, %v8819_v46 }
 0x10a   : > { %v1107_v37 = vsel %vm1105_vm10, %v1106_v34, %v8018_v51  ;;  %v1252_v63 = vsel %vm1246_vm2, %v1249_v42, %v1251_v29  ;;  %vm1121_vm4 = vcmp.gt.s32.totalorder %v1120_v35, 0  ;;  %v874_v6 = vshll.u32 %v8838_v1, %v872_v54 }
 0x10b   : > { %v1104_v4 = vsel %vm1102_vm12, %v8016_v27, %v1103_v33  ;;  %v875_v9 = vshrl.u32 %v8824_v28, %v873_v60  ;;  %v878_v14 = vadd.s32 127, %v877_v10  ;;  %vm1270_vm5 = vc.u32 %v8863_v44, %v8865_v58 }
 0x10c   : > { %v1108_v5 = vsel %vm1101_vm14, %v1104_v4, %v1107_v37  ;;  %v1271_v11 = vadd.s32 1, %v8866_v59  ;;  %v1122_v46 = vsel %vm1121_vm4, %v1120_v35, 0  ;;  %v1268_v12 = vmul.u32 %v1261_v50, %v1252_v63 }
 0x10d   : > { %v1109_v40 = vsel %vm1099_vm1, nan, %v1108_v5  ;;  %v876_v13 = vor.u32 %v875_v9, %v874_v6  ;;  %v879_v53 = vshll.u32 %v878_v14, 23  ;;  %v1124_v28 = vand.u32 31, %v1122_v46 }
 0x10e   : > { %7293 = vst [vmem:[%s8782_s8 + $0x18] sm:$0xff] %v1109_v40  ;;  %v1272_v1 = vsel %vm1270_vm5, %v1271_v11, %v8866_v59  ;;  %vm8892_vm6 = vcmp.le.f32.partialorder %v801_v31, 0.7853982  ;;  %v1118_v57 = vor.u32 8388608, %v1117_v7  ;;  %v8900_v50 = vadd.f32 %v8504_v2, %v8827_v26 }
 0x10f   : > { %v880_v0 = vor.u32 4788187, %v879_v53  ;;  %v1273_v3 = vadd.s32 %v1272_v1, %v1268_v12  ;;  %v883_v38 = vcvt.s32.f32 %v876_v13  ;;  %v890_v20 = vsel %vm8892_vm6, 0, %v888_v61 }
 0x110   : > { %v1125_v15 = vsub.s32 32, %v1124_v28  ;;  %v1127_v16 = vshll.u32 %v8349_v39, %v1124_v28  ;;  %v1130_v31 = vshll.u32 %v8350_v43, %v1124_v28  ;;  %v1133_v62 = vshll.u32 %v8351_v45, %v1124_v28 }
 0x111   : > { %v881_v25 = vand.u32 2147483647, %v880_v0  ;;  %v1274_v30 = vadd.s32 536870912, %v1273_v3  ;;  %v1123_v26 = vshrl.u32 %v1122_v46, 5  ;;  %v1136_v23 = vshll.u32 %v8352_v47, %v1124_v28 }
 0x112   : > { %v1128_v17 = vshrl.u32 %v8350_v43, %v1125_v15  ;;  %v1131_v18 = vshrl.u32 %v8351_v45, %v1125_v15  ;;  %v1134_v21 = vshrl.u32 %v8352_v47, %v1125_v15  ;;  %v1137_v42 = vshrl.u32 %v8353_v49, %v1125_v15 }
 0x113   : > { %v884_v22 = vmul.f32 %v883_v38, %v881_v25  ;;  %v1275_v36 = vshrl.u32 %v1274_v30, 30  ;;  %v1140_v2 = vshrl.u32 %v8354_v56, %v1125_v15  ;;  %v1139_v35 = vshll.u32 %v8353_v49, %v1124_v28 }
 0x114   : > { %v1129_v24 = vor.u32 %v1128_v17, %v1127_v16  ;;  %v1132_v32 = vor.u32 %v1131_v18, %v1130_v31  ;;  %v1135_v51 = vor.u32 %v1134_v21, %v1133_v62  ;;  %v8912_v34 = vand.u32 3, %v890_v20 }
 0x115   : > { %v885_v27 = vxor.u32 2147483648, %v884_v22  ;;  %v1276_v29 = vshll.u32 %v1275_v36, 30  ;;  %v1138_v54 = vor.u32 %v1137_v42, %v1136_v23  ;;  %v1141_v59 = vor.u32 %v1140_v2, %v1139_v35 }
 0x116   : > { %v1158_v10 = vshll.u32 %v1118_v57, 8  ;;  %v1422_v7 = vand.u32 2139095040, %v8900_v50  ;;  %v1126_v61 = vshrl.u32 %v8349_v39, %v1125_v15  ;;  %vm1142_vm7 = vcmp.lt.s32.totalorder %v1123_v26, 1 }
 0x117   : > { %v886_v33 = vsel %vm803_vm11, %v885_v27, %v884_v22  ;;  %v8916_v60 = vsub.s32 %v1273_v3, %v1276_v29  ;;  %vm1145_vm8 = vcmp.lt.s32.totalorder %v1123_v26, 4  ;;  %v1150_v6 = vsel %vm1142_vm7, %v1129_v24, %v1132_v32 }
 0x118   : > { %v889_v37 = vsel %vm8892_vm6, %v8607_v19, %v886_v33  ;;  %v1147_v4 = vsel %vm1145_vm8, %v1135_v51, 2102212464  ;;  %v1151_v9 = vsel %vm1145_vm8, %v1138_v54, 920167782  ;;  %v1154_v14 = vsel %vm1142_vm7, %v1132_v32, %v1135_v51 }
 0x119   : > { %8019 = vcosq.f32 %v889_v37  ;;  %v1279_v63 = vsub.s32 0, %v8916_v60  ;;  %v1155_v5 = vsel %vm1145_vm8, %v1141_v59, 1326507024  ;;  %v1299_v46 = vsub.s32 4, %v1275_v36 }
 0x11a   : > { %8021 = vsinq.f32 %v889_v37  ;;  %vm1143_vm9 = vcmp.lt.s32.totalorder %v1123_v26, 2  ;;  %vm1144_vm10 = vcmp.lt.s32.totalorder %v1123_v26, 3  ;;  %v1146_v40 = vsel %vm1142_vm7, %v1126_v61, %v1129_v24 }
 0x11b   : > { %v7460_v11 = vmin.u32 %v1279_v63, %v8916_v60  ;;  %v1152_v13 = vsel %vm1144_vm10, %v1135_v51, %v1151_v9  ;;  %v1156_v53 = vsel %vm1144_vm10, %v1138_v54, %v1155_v5  ;;  %v1423_v12 = vshrl.u32 %v1422_v7, 23  ;;  %v270_v51 = vpop.permute.xlu0 %269 }
 0x11c   : > { %v1148_v28 = vsel %vm1144_vm10, %v1132_v32, %v1147_v4  ;;  %v1153_v8 = vsel %vm1143_vm9, %v1150_v6, %v1152_v13  ;;  %v1157_v0 = vsel %vm1143_vm9, %v1154_v14, %v1156_v53  ;;  %vm8936_vm11 = vcmp.le.f32.partialorder %v1213_v41, 0.7853982  ;;  %v8969_v6 = vld [vmem:[%s13855_s1] ss:$0 sm:$0xff] }
 0x11d   : > { %v1281_v1 = vclz %v7460_v11  ;;  %v8927_v3 = vmul.u32.u64.low %v1158_v10, %v1157_v0  ;;  %v8928_v57 = vmul.u32.u64.high %v1158_v10, %v1157_v0, %v8927_v3  ;;  %vm1215_vm12 = vcmp.lt.s32.totalorder %v8708_v52, 0 }
 0x11e   : > { %v8930_v38 = vmul.u32.u64.low %v1158_v10, %v1153_v8  ;;  %v8931_v20 = vmul.u32.u64.high %v1158_v10, %v1153_v8, %v8930_v38  ;;  %v7467_v30 = vadd.s32 4294967169, %v1423_v12  ;;  %vm895_vm13 = vcmp.lt.s32.totalorder %v8912_v34, 2  ;;  %v8987_v3 = vld [vmem:[%s13856_s2] ss:$0 sm:$0xff] }
 0x11f   : > { %v7461_v25 = vadd.s32 4294967294, %v1281_v1  ;;  %vm896_vm14 = vcmp.eq.s32.totalorder %v8912_v34, 0  ;;  %vm899_vm15 = vcmp.eq.s32.totalorder %v8912_v34, 2  ;;  %v1149_v16 = vsel %vm1143_vm9, %v1146_v40, %v1148_v28 }
 0x120   : > { %v1269_v31 = vadd.s32 %v8865_v58, %v8863_v44  ;;  %v1419_v41 = vand.u32 2147483647, %v8900_v50  ;;  %v1429_v17 = vadd.s32 1, %v7467_v30  ;;  %v1300_v62 = vsel %vm1215_vm12, %v1299_v46, %v1275_v36 }
 0x121   : > { %vm7462_vm0 = vcmp.lt.s32.totalorder %v7461_v25, 0  ;;  %vm1167_vm1 = vc.u32 %v8928_v57, %v8930_v38  ;;  %v1168_v21 = vadd.s32 1, %v8931_v20  ;;  %v1165_v26 = vmul.u32 %v1158_v10, %v1149_v16 }
 0x122   : > { %v1284_v18 = vsel %vm7462_vm0, 0, %v7461_v25  ;;  %vm1430_vm2 = vcmp.gt.s32.totalorder %v1429_v17, 0  ;;  %v1302_v59 = vsel %vm8936_vm11, 0, %v1300_v62  ;;  %v1426_v33 = vand.u32 8388607, %v1419_v41 }
 0x123   : > { %v8020_v22 = vpop.eup %8019  ;;  %v1285_v42 = vsub.s32 32, %v1284_v18  ;;  %v1289_v2 = vsub.s32 4294967266, %v1284_v18  ;;  %v1286_v58 = vshll.u32 %v8916_v60, %v1284_v18  ;;  %v1169_v23 = vsel %vm1167_vm1, %v1168_v21, %v8931_v20 }
 0x124   : > { %v8022_v24 = vpop.eup %8021  ;;  %v900_v44 = vxor.u32 2147483648, %v8020_v22  ;;  %v1431_v35 = vsel %vm1430_vm2, %v1429_v17, 0  ;;  %v1170_v32 = vadd.s32 %v1169_v23, %v1165_v26  ;;  %vm893_vm3 = vweird.f32 %v8607_v19 }
 0x125   : > { %v897_v27 = vxor.u32 2147483648, %v8022_v24  ;;  %v1287_v29 = vshrl.u32 %v1269_v31, %v1285_v42  ;;  %v1290_v36 = vadd.s32 127, %v1289_v2  ;;  %v1433_v10 = vand.u32 31, %v1431_v35 }
 0x126   : > { %v901_v54 = vsel %vm899_vm15, %v900_v44, %v8022_v24  ;;  %v1171_v61 = vadd.s32 536870912, %v1170_v32  ;;  %v569_v9 = vmul.f32 %v8969_v6, %v270_v51  ;;  %v8975_v46 = vand.u32 3, %v1302_v59 }
 0x127   : > { %v898_v60 = vsel %vm896_vm14, %v8020_v22, %v897_v27  ;;  %v1288_v7 = vor.u32 %v1287_v29, %v1286_v58  ;;  %v1291_v37 = vshll.u32 %v1290_v36, 23  ;;  %v1434_v4 = vsub.s32 32, %v1433_v10 }
 0x128   : > { %v902_v63 = vsel %vm895_vm13, %v898_v60, %v901_v54  ;;  %v8972_v11 = vshrl.u32 %v1171_v61, 30  ;;  %v1427_v40 = vor.u32 8388608, %v1426_v33  ;;  %v1436_v28 = vshll.u32 %v8349_v39, %v1433_v10 }
 0x129   : > { %v903_v14 = vsel %vm893_vm3, nan, %v902_v63  ;;  %v1292_v5 = vor.u32 4788187, %v1291_v37  ;;  %v1437_v19 = vshrl.u32 %v8350_v43, %v1434_v4  ;;  %v1440_v34 = vshrl.u32 %v8351_v45, %v1434_v4 }
 0x12a   : > { %7291 = vst [vmem:[%s8782_s8 + $0x8] sm:$0xff] %v903_v14  ;;  %v1295_v53 = vcvt.s32.f32 %v1288_v7  ;;  %v1173_v12 = vshll.u32 %v8972_v11, 30  ;;  %v1443_v1 = vshrl.u32 %v8352_v47, %v1434_v4  ;;  %v1439_v8 = vshll.u32 %v8350_v43, %v1433_v10 }
 0x12b   : > { %v1293_v13 = vand.u32 2147483647, %v1292_v5  ;;  %v1446_v0 = vshrl.u32 %v8353_v49, %v1434_v4  ;;  %v8990_v20 = vadd.f32 %v8987_v3, %v569_v9  ;;  %v1432_v16 = vshrl.u32 %v1431_v35, 5 }
 0x12c   : > { %v8992_v30 = vsub.s32 %v1170_v32, %v1173_v12  ;;  %v1442_v31 = vshll.u32 %v8351_v45, %v1433_v10  ;;  %v1438_v17 = vor.u32 %v1437_v19, %v1436_v28  ;;  %v1441_v18 = vor.u32 %v1440_v34, %v1439_v8 }
 0x12d   : > { %v1296_v25 = vmul.f32 %v1295_v53, %v1293_v13  ;;  %v1445_v62 = vshll.u32 %v8352_v47, %v1433_v10  ;;  %v1449_v21 = vshrl.u32 %v8354_v56, %v1434_v4  ;;  %v1448_v26 = vshll.u32 %v8353_v49, %v1433_v10 }
 0x12e   : > { %v1176_v42 = vsub.s32 0, %v8992_v30  ;;  %v1444_v2 = vor.u32 %v1443_v1, %v1442_v31  ;;  %v1435_v24 = vshrl.u32 %v8349_v39, %v1434_v4  ;;  %v1467_v58 = vshll.u32 %v1427_v40, 8 }
 0x12f   : > { %v1297_v22 = vxor.u32 2147483648, %v1296_v25  ;;  %v1447_v44 = vor.u32 %v1446_v0, %v1445_v62  ;;  %v1316_v23 = vand.u32 2147483647, %v8990_v20  ;;  %vm1112_vm4 = vcmp.lt.s32.totalorder %v8798_v48, 0 }
 0x130   : > { %v7456_v27 = vmin.u32 %v1176_v42, %v8992_v30  ;;  %v1196_v29 = vsub.s32 4, %v8972_v11  ;;  %v1450_v36 = vor.u32 %v1449_v21, %v1448_v26  ;;  %vm1451_vm5 = vcmp.lt.s32.totalorder %v1432_v16, 1 }
 0x131   : > { %v1298_v35 = vsel %vm1215_vm12, %v1297_v22, %v1296_v25  ;;  %vm1452_vm6 = vcmp.lt.s32.totalorder %v1432_v16, 2  ;;  %vm1454_vm7 = vcmp.lt.s32.totalorder %v1432_v16, 4  ;;  %v1459_v59 = vsel %vm1451_vm5, %v1438_v17, %v1441_v18 }
 0x132   : > { %v1301_v32 = vsel %vm8936_vm11, %v8708_v52, %v1298_v35  ;;  %v1178_v51 = vclz %v7456_v27  ;;  %v1456_v54 = vsel %vm1454_vm7, %v1444_v2, 2102212464  ;;  %vm1453_vm8 = vcmp.lt.s32.totalorder %v1432_v16, 3 }
 0x133   : > { %8023 = vcosq.f32 %v1301_v32  ;;  %v1460_v33 = vsel %vm1454_vm7, %v1447_v44, 920167782  ;;  %v1463_v10 = vsel %vm1451_vm5, %v1441_v18, %v1444_v2  ;;  %v1455_v7 = vsel %vm1451_vm5, %v1435_v24, %v1438_v17 }
 0x134   : > { %8025 = vsinq.f32 %v1301_v32  ;;  %v7457_v60 = vadd.s32 4294967294, %v1178_v51  ;;  %v1461_v37 = vsel %vm1453_vm8, %v1444_v2, %v1460_v33  ;;  %v1464_v61 = vsel %vm1454_vm7, %v1450_v36, 1326507024 }
 0x135   : > { %v1457_v63 = vsel %vm1453_vm8, %v1441_v18, %v1456_v54  ;;  %v1462_v4 = vsel %vm1452_vm6, %v1459_v59, %v1461_v37  ;;  %v1465_v15 = vsel %vm1453_vm8, %v1447_v44, %v1464_v61  ;;  %v1319_v9 = vand.u32 2139095040, %v8990_v20  ;;  %v285_v18 = vpop.permute.xlu1 %284  ;;  %v280_v59 = vpop.permute.xlu0 %279 }
 0x136   : > { %vm7458_vm9 = vcmp.lt.s32.totalorder %v7457_v60, 0  ;;  %v1466_v14 = vsel %vm1452_vm6, %v1463_v10, %v1465_v15  ;;  %v9012_v5 = vmul.u32.u64.low %v1467_v58, %v1462_v4  ;;  %v9013_v40 = vmul.u32.u64.high %v1467_v58, %v1462_v4, %v9012_v5 }
 0x137   : > { %v1181_v19 = vsel %vm7458_vm9, 0, %v7457_v60  ;;  %v9016_v34 = vmul.u32.u64.low %v1467_v58, %v1466_v14  ;;  %v9017_v13 = vmul.u32.u64.high %v1467_v58, %v1466_v14, %v9016_v34  ;;  %v1320_v53 = vshrl.u32 %v1319_v9, 23 }
 0x138   : > { %v1166_v12 = vadd.s32 %v8930_v38, %v8928_v57  ;;  %v1182_v1 = vsub.s32 32, %v1181_v19  ;;  %v1186_v28 = vsub.s32 4294967266, %v1181_v19  ;;  %v1458_v8 = vsel %vm1452_vm6, %v1455_v7, %v1457_v63 }
 0x139   : > { %vm1308_vm10 = vcmp.eq.s32.totalorder %v8975_v46, 0  ;;  %vm9025_vm11 = vcmp.le.f32.partialorder %v1110_v55, 0.7853982  ;;  %v1197_v25 = vsel %vm1112_vm4, %v1196_v29, %v8972_v11  ;;  %v7463_v31 = vadd.s32 4294967169, %v1320_v53 }
 0x13a   : > { %v1183_v17 = vshll.u32 %v8992_v30, %v1181_v19  ;;  %v1184_v57 = vshrl.u32 %v1166_v12, %v1182_v1  ;;  %v1187_v38 = vadd.s32 127, %v1186_v28  ;;  %v1477_v16 = vadd.s32 1, %v9013_v40 }
 0x13b   : > { %v1474_v62 = vmul.u32 %v1467_v58, %v1458_v8  ;;  %vm1476_vm12 = vc.u32 %v9017_v13, %v9012_v5  ;;  %v1323_v55 = vand.u32 8388607, %v1316_v23  ;;  %v1326_v21 = vadd.s32 1, %v7463_v31 }
 0x13c   : > { %vm1311_vm13 = vcmp.eq.s32.totalorder %v8975_v46, 2  ;;  %v1185_v11 = vor.u32 %v1184_v57, %v1183_v17  ;;  %v1188_v42 = vshll.u32 %v1187_v38, 23  ;;  %v1478_v30 = vsel %vm1476_vm12, %v1477_v16, %v9013_v40 }
 0x13d   : > { %v8024_v22 = vpop.eup %8023  ;;  %v1479_v24 = vadd.s32 %v1478_v30, %v1474_v62  ;;  %vm1327_vm14 = vcmp.gt.s32.totalorder %v1326_v21, 0  ;;  %v572_v44 = vmul.f32 %v8969_v6, %v285_v18  ;;  %v1199_v27 = vsel %vm9025_vm11, 0, %v1197_v25 }
 0x13e   : > { %v8026_v2 = vpop.eup %8025  ;;  %v1312_v26 = vxor.u32 2147483648, %v8024_v22  ;;  %v1189_v35 = vor.u32 4788187, %v1188_v42  ;;  %v1328_v29 = vsel %vm1327_vm14, %v1326_v21, 0  ;;  %v1324_v51 = vor.u32 8388608, %v1323_v55 }
 0x13f   : > { %v1309_v58 = vxor.u32 2147483648, %v8026_v2  ;;  %v1480_v32 = vadd.s32 536870912, %v1479_v24  ;;  %v1330_v54 = vand.u32 31, %v1328_v29  ;;  %vm1307_vm15 = vcmp.lt.s32.totalorder %v8975_v46, 2 }
 0x140   : > { %v1313_v36 = vsel %vm1311_vm13, %v1312_v26, %v8026_v2  ;;  %v1190_v10 = vand.u32 2147483647, %v1189_v35  ;;  %v1192_v60 = vcvt.s32.f32 %v1185_v11  ;;  %vm1305_vm0 = vweird.f32 %v8708_v52 }
 0x141   : > { %v1310_v33 = vsel %vm1308_vm10, %v8024_v22, %v1309_v58  ;;  %v9047_v37 = vshrl.u32 %v1480_v32, 30  ;;  %v1331_v61 = vsub.s32 32, %v1330_v54  ;;  %v9049_v15 = vand.u32 3, %v1199_v27 }
 0x142   : > { %v1314_v7 = vsel %vm1307_vm15, %v1310_v33, %v1313_v36  ;;  %v1193_v4 = vmul.f32 %v1192_v60, %v1190_v10  ;;  %v9052_v9 = vmul.f32 %v8969_v6, %v280_v59  ;;  %v9057_v40 = vshll.u32 %v1324_v51, 8 }
 0x143   : > { %v1315_v63 = vsel %vm1305_vm0, nan, %v1314_v7  ;;  %v1482_v14 = vshll.u32 %v9047_v37, 30  ;;  %v1334_v46 = vshrl.u32 %v8350_v43, %v1331_v61  ;;  %v9060_v52 = vadd.f32 %v8987_v3, %v572_v44 }
 0x144   : > { %7295 = vst [vmem:[%s8782_s8 + $0x28] sm:$0xff] %v1315_v63  ;;  %v1194_v19 = vxor.u32 2147483648, %v1193_v4  ;;  %v1333_v34 = vshll.u32 %v8349_v39, %v1330_v54  ;;  %v1337_v53 = vshrl.u32 %v8351_v45, %v1331_v61  ;;  %v1340_v12 = vshrl.u32 %v8352_v47, %v1331_v61 }
 0x145   : > { %v9065_v1 = vsub.s32 %v1479_v24, %v1482_v14  ;;  %v1336_v28 = vshll.u32 %v8350_v43, %v1330_v54  ;;  %v1339_v8 = vshll.u32 %v8351_v45, %v1330_v54  ;;  %v1343_v25 = vshrl.u32 %v8353_v49, %v1331_v61 }
 0x146   : > { %v1195_v31 = vsel %vm1112_vm4, %v1194_v19, %v1193_v4  ;;  %v1329_v17 = vshrl.u32 %v1328_v29, 5  ;;  %v1335_v57 = vor.u32 %v1334_v46, %v1333_v34  ;;  %v1342_v38 = vshll.u32 %v8352_v47, %v1330_v54 }
 0x147   : > { %v1198_v16 = vsel %vm9025_vm11, %v8798_v48, %v1195_v31  ;;  %v1485_v18 = vsub.s32 0, %v9065_v1  ;;  %v1338_v62 = vor.u32 %v1337_v53, %v1336_v28  ;;  %v1341_v55 = vor.u32 %v1340_v12, %v1339_v8 }
 0x148   : > { %8027 = vcosq.f32 %v1198_v16  ;;  %v1344_v21 = vor.u32 %v1343_v25, %v1342_v38  ;;  %v1345_v22 = vshll.u32 %v8353_v49, %v1330_v54  ;;  %v1346_v11 = vshrl.u32 %v8354_v56, %v1331_v61 }
 0x149   : > { %8029 = vsinq.f32 %v1198_v16  ;;  %vm1421_vm1 = vcmp.lt.s32.totalorder %v8900_v50, 0  ;;  %v7468_v42 = vmin.u32 %v1485_v18, %v9065_v1  ;;  %v1505_v30 = vsub.s32 4, %v9047_v37 }
 0x14a   : > { %v1628_v0 = vand.u32 2139095040, %v9060_v52  ;;  %v1332_v2 = vshrl.u32 %v8349_v39, %v1331_v61  ;;  %v1347_v26 = vor.u32 %v1346_v11, %v1345_v22  ;;  %vm1348_vm2 = vcmp.lt.s32.totalorder %v1329_v17, 1 }
 0x14b   : > { %vm1349_vm3 = vcmp.lt.s32.totalorder %v1329_v17, 2  ;;  %v1487_v24 = vclz %v7468_v42  ;;  %vm1350_vm4 = vcmp.lt.s32.totalorder %v1329_v17, 3  ;;  %vm1351_vm5 = vcmp.lt.s32.totalorder %v1329_v17, 4 }
 0x14c   : > { %v1356_v44 = vsel %vm1348_vm2, %v1335_v57, %v1338_v62  ;;  %v1353_v58 = vsel %vm1351_vm5, %v1341_v55, 2102212464  ;;  %v1357_v35 = vsel %vm1351_vm5, %v1344_v21, 920167782  ;;  %v1360_v27 = vsel %vm1348_vm2, %v1338_v62, %v1341_v55 }
 0x14d   : > { %v1361_v29 = vsel %vm1351_vm5, %v1347_v26, 1326507024  ;;  %vm1205_vm6 = vcmp.eq.s32.totalorder %v9049_v15, 0  ;;  %v7469_v36 = vadd.s32 4294967294, %v1487_v24  ;;  %v1352_v32 = vsel %vm1348_vm2, %v1332_v2, %v1335_v57 }
 0x14e   : > { %v1358_v51 = vsel %vm1350_vm4, %v1341_v55, %v1357_v35  ;;  %v1362_v54 = vsel %vm1350_vm4, %v1344_v21, %v1361_v29  ;;  %v1354_v59 = vsel %vm1350_vm4, %v1338_v62, %v1353_v58  ;;  %v1629_v60 = vshrl.u32 %v1628_v0, 23 }
 0x14f   : > { %v1359_v33 = vsel %vm1349_vm3, %v1356_v44, %v1358_v51  ;;  %v1363_v10 = vsel %vm1349_vm3, %v1360_v27, %v1362_v54  ;;  %vm1202_vm7 = vweird.f32 %v8798_v48  ;;  %vm9090_vm8 = vcmp.le.f32.partialorder %v1419_v41, 0.7853982 }
 0x150   : > { %vm7470_vm9 = vcmp.lt.s32.totalorder %v7469_v36, 0  ;;  %v9095_v61 = vmul.u32.u64.low %v9057_v40, %v1363_v10  ;;  %v9096_v63 = vmul.u32.u64.high %v9057_v40, %v1363_v10, %v9095_v61  ;;  %v1625_v4 = vand.u32 2147483647, %v9060_v52 }
 0x151   : > { %v1490_v14 = vsel %vm7470_vm9, 0, %v7469_v36  ;;  %v9100_v46 = vmul.u32.u64.low %v9057_v40, %v1359_v33  ;;  %v9101_v19 = vmul.u32.u64.high %v9057_v40, %v1359_v33, %v9100_v46  ;;  %v7475_v34 = vadd.s32 4294967169, %v1629_v60 }
 0x152   : > { %v1475_v41 = vadd.s32 %v9012_v5, %v9017_v13  ;;  %v1491_v53 = vsub.s32 32, %v1490_v14  ;;  %v1495_v12 = vsub.s32 4294967266, %v1490_v14  ;;  %v1355_v28 = vsel %vm1349_vm3, %v1352_v32, %v1354_v59  ;;  %v8028_v8 = vpop.eup %8027 }
 0x153   : > { %vm1208_vm10 = vcmp.eq.s32.totalorder %v9049_v15, 2  ;;  %v1492_v25 = vshll.u32 %v9065_v1, %v1490_v14  ;;  %v1506_v31 = vsel %vm1421_vm1, %v1505_v30, %v9047_v37  ;;  %v1635_v57 = vadd.s32 1, %v7475_v34  ;;  %v8030_v38 = vpop.eup %8029 }
 0x154   : > { %v1209_v16 = vxor.u32 2147483648, %v8028_v8  ;;  %v1493_v18 = vshrl.u32 %v1475_v41, %v1491_v53  ;;  %v1496_v62 = vadd.s32 127, %v1495_v12  ;;  %v1632_v5 = vand.u32 8388607, %v1625_v4 }
 0x155   : > { %v1206_v13 = vxor.u32 2147483648, %v8030_v38  ;;  %v1371_v17 = vmul.u32 %v9057_v40, %v1355_v28  ;;  %vm1373_vm11 = vc.u32 %v9096_v63, %v9100_v46  ;;  %v1374_v1 = vadd.s32 1, %v9101_v19 }
 0x156   : > { %v1210_v55 = vsel %vm1208_vm10, %v1209_v16, %v8030_v38  ;;  %v1494_v21 = vor.u32 %v1493_v18, %v1492_v25  ;;  %v1497_v37 = vshll.u32 %v1496_v62, 23  ;;  %vm1636_vm12 = vcmp.gt.s32.totalorder %v1635_v57, 0 }
 0x157   : > { %vm1204_vm13 = vcmp.lt.s32.totalorder %v9049_v15, 2  ;;  %v1207_v22 = vsel %vm1205_vm6, %v8028_v8, %v1206_v13  ;;  %v1375_v11 = vsel %vm1373_vm11, %v1374_v1, %v9101_v19  ;;  %v1637_v42 = vsel %vm1636_vm12, %v1635_v57, 0 }
 0x158   : > { %v1211_v30 = vsel %vm1204_vm13, %v1207_v22, %v1210_v55  ;;  %v1498_v40 = vor.u32 4788187, %v1497_v37  ;;  %v1376_v0 = vadd.s32 %v1375_v11, %v1371_v17  ;;  %v1633_v2 = vor.u32 8388608, %v1632_v5 }
 0x159   : > { %v1212_v26 = vsel %vm1202_vm7, nan, %v1211_v30  ;;  %v1508_v24 = vsel %vm9090_vm8, 0, %v1506_v31  ;;  %v1639_v44 = vand.u32 31, %v1637_v42  ;;  %v1501_v35 = vcvt.s32.f32 %v1494_v21 }
 0x15a   : > { %7294 = vst [vmem:[%s8782_s8 + $0x20] sm:$0xff] %v1212_v26  ;;  %v1499_v58 = vand.u32 2147483647, %v1498_v40  ;;  %v1377_v27 = vadd.s32 536870912, %v1376_v0  ;;  %v9129_v29 = vadd.f32 %v8987_v3, %v9052_v9  ;;  %v9131_v32 = vand.u32 3, %v1508_v24 }
 0x15b   : > { %v1640_v15 = vsub.s32 32, %v1639_v44  ;;  %v9135_v48 = vshll.u32 %v1633_v2, 8  ;;  %v1638_v54 = vshrl.u32 %v1637_v42, 5  ;;  %v1642_v9 = vshll.u32 %v8349_v39, %v1639_v44 }
 0x15c   : > { %v1502_v36 = vmul.f32 %v1501_v35, %v1499_v58  ;;  %v9133_v51 = vshrl.u32 %v1377_v27, 30  ;;  %v1645_v19 = vshll.u32 %v8350_v43, %v1639_v44  ;;  %v1648_v34 = vshll.u32 %v8351_v45, %v1639_v44 }
 0x15d   : > { %v1643_v59 = vshrl.u32 %v8350_v43, %v1640_v15  ;;  %v1646_v33 = vshrl.u32 %v8351_v45, %v1640_v15  ;;  %v1649_v10 = vshrl.u32 %v8352_v47, %v1640_v15  ;;  %v1652_v14 = vshrl.u32 %v8353_v49, %v1640_v15 }
 0x15e   : > { %v1503_v60 = vxor.u32 2147483648, %v1502_v36  ;;  %v1379_v61 = vshll.u32 %v9133_v51, 30  ;;  %v1651_v41 = vshll.u32 %v8352_v47, %v1639_v44  ;;  %v1655_v53 = vshrl.u32 %v8354_v56, %v1640_v15 }
 0x15f   : > { %v1644_v8 = vor.u32 %v1643_v59, %v1642_v9  ;;  %v1654_v25 = vshll.u32 %v8353_v49, %v1639_v44  ;;  %v1647_v57 = vor.u32 %v1646_v33, %v1645_v19  ;;  %v1650_v38 = vor.u32 %v1649_v10, %v1648_v34 }
 0x160   : > { %v1504_v12 = vsel %vm1421_vm1, %v1503_v60, %v1502_v36  ;;  %v9149_v28 = vsub.s32 %v1376_v0, %v1379_v61  ;;  %v1653_v16 = vor.u32 %v1652_v14, %v1651_v41  ;;  %v1641_v62 = vshrl.u32 %v8349_v39, %v1640_v15 }
 0x161   : > { %v1507_v31 = vsel %vm9090_vm8, %v8900_v50, %v1504_v12  ;;  %v1656_v5 = vor.u32 %v1655_v53, %v1654_v25  ;;  %vm1657_vm14 = vcmp.lt.s32.totalorder %v1638_v54, 1  ;;  %vm1658_vm15 = vcmp.lt.s32.totalorder %v1638_v54, 2 }
 0x162   : > { %8031 = vcosq.f32 %v1507_v31  ;;  %v1382_v18 = vsub.s32 0, %v9149_v28  ;;  %v1525_v13 = vand.u32 2139095040, %v9129_v29  ;;  %vm1659_vm0 = vcmp.lt.s32.totalorder %v1638_v54, 3 }
 0x163   : > { %8033 = vsinq.f32 %v1507_v31  ;;  %vm1660_vm1 = vcmp.lt.s32.totalorder %v1638_v54, 4  ;;  %v1661_v7 = vsel %vm1657_vm14, %v1641_v62, %v1644_v8  ;;  %v1665_v55 = vsel %vm1657_vm14, %v1644_v8, %v1647_v57 }
 0x164   : > { %v7464_v17 = vmin.u32 %v1382_v18, %v9149_v28  ;;  %v1662_v1 = vsel %vm1660_vm1, %v1650_v38, 2102212464  ;;  %v1666_v21 = vsel %vm1660_vm1, %v1653_v16, 920167782  ;;  %v1669_v37 = vsel %vm1657_vm14, %v1647_v57, %v1650_v38 }
 0x165   : > { %v1663_v11 = vsel %vm1659_vm0, %v1647_v57, %v1662_v1  ;;  %v1667_v42 = vsel %vm1659_vm0, %v1650_v38, %v1666_v21  ;;  %v1670_v30 = vsel %vm1660_vm1, %v1656_v5, 1326507024  ;;  %v1526_v2 = vshrl.u32 %v1525_v13, 23  ;;  %v295_v38 = vpop.permute.xlu1 %294  ;;  %v290_v5 = vpop.permute.xlu0 %289 }
 0x166   : > { %v1384_v22 = vclz %v7464_v17  ;;  %v1668_v40 = vsel %vm1658_vm15, %v1665_v55, %v1667_v42  ;;  %v1671_v0 = vsel %vm1659_vm0, %v1653_v16, %v1670_v30  ;;  %vm1318_vm2 = vcmp.lt.s32.totalorder %v8990_v20, 0 }
 0x167   : > { %v1672_v24 = vsel %vm1658_vm15, %v1669_v37, %v1671_v0  ;;  %v9163_v44 = vmul.u32.u64.low %v9135_v48, %v1668_v40  ;;  %v9164_v58 = vmul.u32.u64.high %v9135_v48, %v1668_v40, %v9163_v44  ;;  %vm1511_vm3 = vweird.f32 %v8900_v50 }
 0x168   : > { %v7465_v26 = vadd.s32 4294967294, %v1384_v22  ;;  %v1664_v35 = vsel %vm1658_vm15, %v1661_v7, %v1663_v11  ;;  %v9170_v27 = vmul.u32.u64.low %v9135_v48, %v1672_v24  ;;  %v9171_v15 = vmul.u32.u64.high %v9135_v48, %v1672_v24, %v9170_v27 }
 0x169   : > { %v7471_v36 = vadd.s32 4294967169, %v1526_v2  ;;  %vm1513_vm4 = vcmp.lt.s32.totalorder %v9131_v32, 2  ;;  %vm1517_vm5 = vcmp.eq.s32.totalorder %v9131_v32, 2  ;;  %v1522_v59 = vand.u32 2147483647, %v9129_v29 }
 0x16a   : > { %vm7466_vm6 = vcmp.lt.s32.totalorder %v7465_v26, 0  ;;  %v1372_v33 = vadd.s32 %v9100_v46, %v9096_v63  ;;  %v1402_v60 = vsub.s32 4, %v9133_v51  ;;  %v1680_v19 = vmul.u32 %v9135_v48, %v1664_v35 }
 0x16b   : > { %v1387_v10 = vsel %vm7466_vm6, 0, %v7465_v26  ;;  %v1532_v54 = vadd.s32 1, %v7471_v36  ;;  %v1683_v34 = vadd.s32 1, %v9164_v58  ;;  %vm1682_vm7 = vc.u32 %v9171_v15, %v9163_v44 }
 0x16c   : > { %v8032_v61 = vpop.eup %8031  ;;  %v1388_v9 = vsub.s32 32, %v1387_v10  ;;  %v1392_v14 = vsub.s32 4294967266, %v1387_v10  ;;  %v1389_v12 = vshll.u32 %v9149_v28, %v1387_v10  ;;  %vm1514_vm9 = vcmp.eq.s32.totalorder %v9131_v32, 0 }
 0x16d   : > { %v8034_v41 = vpop.eup %8033  ;;  %v1518_v53 = vxor.u32 2147483648, %v8032_v61  ;;  %vm1533_vm8 = vcmp.gt.s32.totalorder %v1532_v54, 0  ;;  %v1684_v25 = vsel %vm1682_vm7, %v1683_v34, %v9164_v58  ;;  %v1529_v62 = vand.u32 8388607, %v1522_v59 }
 0x16e   : > { %v1515_v63 = vxor.u32 2147483648, %v8034_v41  ;;  %v1390_v46 = vshrl.u32 %v1372_v33, %v1388_v9  ;;  %v1393_v8 = vadd.s32 127, %v1392_v14  ;;  %v1685_v31 = vadd.s32 %v1684_v25, %v1680_v19 }
 0x16f   : > { %v1519_v48 = vsel %vm1517_vm5, %v1518_v53, %v8034_v41  ;;  %v1534_v57 = vsel %vm1533_vm8, %v1532_v54, 0  ;;  %v1403_v17 = vsel %vm1318_vm2, %v1402_v60, %v9133_v51  ;;  %v574_v37 = vmul.f32 %v8969_v6, %v295_v38 }
 0x170   : > { %v1516_v16 = vsel %vm1514_vm9, %v8032_v61, %v1515_v63  ;;  %v1391_v28 = vor.u32 %v1390_v46, %v1389_v12  ;;  %v1394_v18 = vshll.u32 %v1393_v8, 23  ;;  %v1686_v7 = vadd.s32 536870912, %v1685_v31 }
 0x171   : > { %v1520_v13 = vsel %vm1513_vm4, %v1516_v16, %v1519_v48  ;;  %v1536_v1 = vand.u32 31, %v1534_v57  ;;  %vm9201_vm10 = vcmp.le.f32.partialorder %v1316_v23, 0.7853982  ;;  %v9208_v51 = vmul.f32 %v8969_v6, %v290_v5 }
 0x172   : > { %v1521_v55 = vsel %vm1511_vm3, nan, %v1520_v13  ;;  %v1395_v21 = vor.u32 4788187, %v1394_v18  ;;  %v9205_v32 = vshrl.u32 %v1686_v7, 30  ;;  %v1398_v30 = vcvt.s32.f32 %v1391_v28 }
 0x173   : > { %7297 = vst [vmem:[%s8782_s8 + $0x38] sm:$0xff] %v1521_v55  ;;  %v1537_v11 = vsub.s32 32, %v1536_v1  ;;  %v1405_v50 = vsel %vm9201_vm10, 0, %v1403_v17  ;;  %v1530_v40 = vor.u32 8388608, %v1529_v62  ;;  %v9213_v2 = vshrl.u32 %v1534_v57, 5 }
 0x174   : > { %v1396_v42 = vand.u32 2147483647, %v1395_v21  ;;  %v1688_v0 = vshll.u32 %v9205_v32, 30  ;;  %v1539_v23 = vshll.u32 %v8349_v39, %v1536_v1  ;;  %v1542_v36 = vshll.u32 %v8350_v43, %v1536_v1 }
 0x175   : > { %v1540_v26 = vshrl.u32 %v8350_v43, %v1537_v11  ;;  %v1543_v58 = vshrl.u32 %v8351_v45, %v1537_v11  ;;  %v1546_v6 = vshrl.u32 %v8352_v47, %v1537_v11  ;;  %v1549_v35 = vshrl.u32 %v8353_v49, %v1537_v11 }
 0x176   : > { %v1399_v24 = vmul.f32 %v1398_v30, %v1396_v42  ;;  %v9220_v27 = vsub.s32 %v1685_v31, %v1688_v0  ;;  %v1545_v33 = vshll.u32 %v8351_v45, %v1536_v1  ;;  %v1552_v10 = vshrl.u32 %v8354_v56, %v1537_v11 }
 0x177   : > { %v9225_v54 = vand.u32 3, %v1405_v50  ;;  %v1548_v61 = vshll.u32 %v8352_v47, %v1536_v1  ;;  %v1551_v9 = vshll.u32 %v8353_v49, %v1536_v1  ;;  %v1541_v19 = vor.u32 %v1540_v26, %v1539_v23 }
 0x178   : > { %v1400_v60 = vxor.u32 2147483648, %v1399_v24  ;;  %v1691_v14 = vsub.s32 0, %v9220_v27  ;;  %v1544_v34 = vor.u32 %v1543_v58, %v1542_v36  ;;  %v1547_v41 = vor.u32 %v1546_v6, %v1545_v33 }
 0x179   : > { %v1550_v12 = vor.u32 %v1549_v35, %v1548_v61  ;;  %v1553_v63 = vor.u32 %v1552_v10, %v1551_v9  ;;  %v9233_v46 = vadd.f32 %v8987_v3, %v574_v37  ;;  %vm1627_vm11 = vcmp.lt.s32.totalorder %v9060_v52, 0 }
 0x17a   : > { %v1401_v53 = vsel %vm1318_vm2, %v1400_v60, %v1399_v24  ;;  %v7476_v25 = vmin.u32 %v1691_v14, %v9220_v27  ;;  %vm1554_vm12 = vcmp.lt.s32.totalorder %v9213_v2, 1  ;;  %v1570_v48 = vshll.u32 %v1530_v40, 8 }
 0x17b   : > { %v1404_v8 = vsel %vm9201_vm10, %v8990_v20, %v1401_v53  ;;  %v1711_v31 = vsub.s32 4, %v9205_v32  ;;  %v1538_v57 = vshrl.u32 %v8349_v39, %v1537_v11  ;;  %vm1557_vm13 = vcmp.lt.s32.totalorder %v9213_v2, 4 }
 0x17c   : > { %8035 = vcosq.f32 %v1404_v8  ;;  %v1693_v38 = vclz %v7476_v25  ;;  %v1559_v16 = vsel %vm1557_vm13, %v1547_v41, 2102212464  ;;  %v1562_v28 = vsel %vm1554_vm12, %v1541_v19, %v1544_v34 }
 0x17d   : > { %8037 = vsinq.f32 %v1404_v8  ;;  %vm1556_vm14 = vcmp.lt.s32.totalorder %v9213_v2, 3  ;;  %v1563_v18 = vsel %vm1557_vm13, %v1550_v12, 920167782  ;;  %v1566_v62 = vsel %vm1554_vm12, %v1544_v34, %v1547_v41 }
 0x17e   : > { %v1567_v5 = vsel %vm1557_vm13, %v1553_v63, 1326507024  ;;  %vm9251_vm15 = vcmp.le.f32.partialorder %v1625_v4, 0.7853982  ;;  %v7477_v17 = vadd.s32 4294967294, %v1693_v38  ;;  %vm1555_vm0 = vcmp.lt.s32.totalorder %v9213_v2, 2 }
 0x17f   : > { %v1564_v7 = vsel %vm1556_vm14, %v1547_v41, %v1563_v18  ;;  %v1568_v1 = vsel %vm1556_vm14, %v1550_v12, %v1567_v5  ;;  %v1558_v55 = vsel %vm1554_vm12, %v1538_v57, %v1541_v19  ;;  %v1560_v21 = vsel %vm1556_vm14, %v1544_v34, %v1559_v16 }
 0x180   : > { %v1565_v37 = vsel %vm1555_vm0, %v1562_v28, %v1564_v7  ;;  %v1569_v22 = vsel %vm1555_vm0, %v1566_v62, %v1568_v1  ;;  %vm7478_vm1 = vcmp.lt.s32.totalorder %v7477_v17, 0  ;;  %v1834_v42 = vand.u32 2139095040, %v9233_v46 }
 0x181   : > { %v9262_v4 = vmul.u32.u64.low %v1570_v48, %v1569_v22  ;;  %v9263_v11 = vmul.u32.u64.high %v1570_v48, %v1569_v22, %v9262_v4  ;;  %vm1410_vm2 = vcmp.lt.s32.totalorder %v9225_v54, 2  ;;  %v1696_v30 = vsel %vm7478_vm1, 0, %v7477_v17 }
 0x182   : > { %v9267_v50 = vmul.u32.u64.low %v1570_v48, %v1565_v37  ;;  %v9268_v40 = vmul.u32.u64.high %v1570_v48, %v1565_v37, %v9267_v50  ;;  %vm1408_vm3 = vweird.f32 %v8990_v20  ;;  %v1681_v0 = vadd.s32 %v9163_v44, %v9171_v15 }
 0x183   : > { %v1697_v23 = vsub.s32 32, %v1696_v30  ;;  %v1701_v26 = vsub.s32 4294967266, %v1696_v30  ;;  %v1835_v24 = vshrl.u32 %v1834_v42, 23  ;;  %vm1411_vm4 = vcmp.eq.s32.totalorder %v9225_v54, 0 }
 0x184   : > { %v1712_v58 = vsel %vm1627_vm11, %v1711_v31, %v9205_v32  ;;  %v1561_v6 = vsel %vm1555_vm0, %v1558_v55, %v1560_v21  ;;  %v1831_v35 = vand.u32 2147483647, %v9233_v46  ;;  %v1698_v36 = vshll.u32 %v9220_v27, %v1696_v30 }
 0x185   : > { %v1699_v33 = vshrl.u32 %v1681_v0, %v1697_v23  ;;  %v1702_v10 = vadd.s32 127, %v1701_v26  ;;  %vm1579_vm5 = vc.u32 %v9263_v11, %v9267_v50  ;;  %vm1414_vm6 = vcmp.eq.s32.totalorder %v9225_v54, 2 }
 0x186   : > { %v8036_v44 = vpop.eup %8035  ;;  %v1580_v15 = vadd.s32 1, %v9268_v40  ;;  %v7483_v60 = vadd.s32 4294967169, %v1835_v24  ;;  %v9288_v32 = vadd.f32 %v8987_v3, %v9208_v51  ;;  %v1577_v27 = vmul.u32 %v1570_v48, %v1561_v6 }
 0x187   : > { %v8038_v2 = vpop.eup %8037  ;;  %v1415_v61 = vxor.u32 2147483648, %v8036_v44  ;;  %v1700_v9 = vor.u32 %v1699_v33, %v1698_v36  ;;  %v1703_v14 = vshll.u32 %v1702_v10, 23  ;;  %v1714_v34 = vsel %vm9251_vm15, 0, %v1712_v58 }
 0x188   : > { %v1412_v19 = vxor.u32 2147483648, %v8038_v2  ;;  %v1581_v41 = vsel %vm1579_vm5, %v1580_v15, %v9268_v40  ;;  %v1841_v53 = vadd.s32 1, %v7483_v60  ;;  %v1838_v3 = vand.u32 8388607, %v1831_v35 }
 0x189   : > { %v1416_v12 = vsel %vm1414_vm6, %v1415_v61, %v8038_v2  ;;  %v1704_v63 = vor.u32 4788187, %v1703_v14  ;;  %v1582_v8 = vadd.s32 %v1581_v41, %v1577_v27  ;;  %v1707_v25 = vcvt.s32.f32 %v1700_v9 }
 0x18a   : > { %v1413_v51 = vsel %vm1411_vm4, %v8036_v44, %v1412_v19  ;;  %vm1842_vm7 = vcmp.gt.s32.totalorder %v1841_v53, 0  ;;  %v1731_v48 = vand.u32 2139095040, %v9288_v32  ;;  %v9305_v17 = vand.u32 3, %v1714_v34 }
 0x18b   : > { %v1417_v31 = vsel %vm1410_vm2, %v1413_v51, %v1416_v12  ;;  %v1705_v57 = vand.u32 2147483647, %v1704_v63  ;;  %v1583_v38 = vadd.s32 536870912, %v1582_v8  ;;  %v1843_v16 = vsel %vm1842_vm7, %v1841_v53, 0 }
 0x18c   : > { %v1418_v28 = vsel %vm1408_vm3, nan, %v1417_v31  ;;  %v1845_v18 = vand.u32 31, %v1843_v16  ;;  %v1839_v7 = vor.u32 8388608, %v1838_v3  ;;  %v1732_v37 = vshrl.u32 %v1731_v48, 23 }
 0x18d   : > { %7296 = vst [vmem:[%s8782_s8 + $0x30] sm:$0xff] %v1418_v28  ;;  %v1708_v62 = vmul.f32 %v1707_v25, %v1705_v57  ;;  %v9303_v5 = vshrl.u32 %v1583_v38, 30  ;;  %v1844_v24 = vshrl.u32 %v1843_v16, 5  ;;  %v1578_v2 = vadd.s32 %v9267_v50, %v9263_v11 }
 0x18e   : > { %v1846_v1 = vsub.s32 32, %v1845_v18  ;;  %v1848_v54 = vshll.u32 %v8349_v39, %v1845_v18  ;;  %v1851_v20 = vshll.u32 %v8350_v43, %v1845_v18  ;;  %v1854_v0 = vshll.u32 %v8351_v45, %v1845_v18 }
 0x18f   : > { %v1709_v55 = vxor.u32 2147483648, %v1708_v62  ;;  %v1585_v21 = vshll.u32 %v9303_v5, 30  ;;  %v1857_v6 = vshll.u32 %v8352_v47, %v1845_v18  ;;  %v1860_v15 = vshll.u32 %v8353_v49, %v1845_v18 }
 0x190   : > { %v1849_v22 = vshrl.u32 %v8350_v43, %v1846_v1  ;;  %v1852_v4 = vshrl.u32 %v8351_v45, %v1846_v1  ;;  %v1855_v42 = vshrl.u32 %v8352_v47, %v1846_v1  ;;  %v1858_v23 = vshrl.u32 %v8353_v49, %v1846_v1 }
 0x191   : > { %v1710_v30 = vsel %vm1627_vm11, %v1709_v55, %v1708_v62  ;;  %v9315_v40 = vsub.s32 %v1582_v8, %v1585_v21  ;;  %v1861_v60 = vshrl.u32 %v8354_v56, %v1846_v1  ;;  %v9329_v61 = vshll.u32 %v1839_v7, 8 }
 0x192   : > { %v1713_v26 = vsel %vm9251_vm15, %v9060_v52, %v1710_v30  ;;  %v1850_v58 = vor.u32 %v1849_v22, %v1848_v54  ;;  %v1853_v33 = vor.u32 %v1852_v4, %v1851_v20  ;;  %v1856_v10 = vor.u32 %v1855_v42, %v1854_v0 }
 0x193   : > { %8039 = vcosq.f32 %v1713_v26  ;;  %v1588_v36 = vsub.s32 0, %v9315_v40  ;;  %v1859_v44 = vor.u32 %v1858_v23, %v1857_v6  ;;  %v1728_v9 = vand.u32 2147483647, %v9288_v32 }
 0x194   : > { %8041 = vsinq.f32 %v1713_v26  ;;  %v1847_v14 = vshrl.u32 %v8349_v39, %v1846_v1  ;;  %v1862_v27 = vor.u32 %v1861_v60, %v1860_v15  ;;  %vm1863_vm8 = vcmp.lt.s32.totalorder %v1844_v24, 1 }
 0x195   : > { %v7472_v13 = vmin.u32 %v1588_v36, %v9315_v40  ;;  %v7479_v19 = vadd.s32 4294967169, %v1732_v37  ;;  %vm1723_vm9 = vcmp.eq.s32.totalorder %v9305_v17, 2  ;;  %vm1865_vm10 = vcmp.lt.s32.totalorder %v1844_v24, 3 }
 0x196   : > { %vm1866_vm11 = vcmp.lt.s32.totalorder %v1844_v24, 4  ;;  %v1871_v41 = vsel %vm1863_vm8, %v1850_v58, %v1853_v33  ;;  %vm1720_vm12 = vcmp.eq.s32.totalorder %v9305_v17, 0  ;;  %v1875_v53 = vsel %vm1863_vm8, %v1853_v33, %v1856_v10 }
 0x197   : > { %v1590_v34 = vclz %v7472_v13  ;;  %v1868_v11 = vsel %vm1866_vm11, %v1856_v10, 2102212464  ;;  %v1872_v50 = vsel %vm1866_vm11, %v1859_v44, 920167782  ;;  %v1876_v12 = vsel %vm1866_vm11, %v1862_v27, 1326507024 }
 0x198   : > { %vm1719_vm13 = vcmp.lt.s32.totalorder %v9305_v17, 2  ;;  %vm1864_vm14 = vcmp.lt.s32.totalorder %v1844_v24, 2  ;;  %v1873_v8 = vsel %vm1865_vm10, %v1856_v10, %v1872_v50  ;;  %v1877_v3 = vsel %vm1865_vm10, %v1859_v44, %v1876_v12 }
 0x199   : > { %v7473_v63 = vadd.s32 4294967294, %v1590_v34  ;;  %vm1717_vm15 = vweird.f32 %v9060_v52  ;;  %v1867_v51 = vsel %vm1863_vm8, %v1847_v14, %v1850_v58  ;;  %v1874_v25 = vsel %vm1864_vm14, %v1871_v41, %v1873_v8 }
 0x19a   : > { %v1878_v48 = vsel %vm1864_vm14, %v1875_v53, %v1877_v3  ;;  %v1738_v31 = vadd.s32 1, %v7479_v19  ;;  %v1869_v57 = vsel %vm1865_vm10, %v1853_v33, %v1868_v11  ;;  %v9356_v21 = vand.u32 8388607, %v1728_v9  ;;  %v305_v11 = vpop.permute.xlu1 %304 }
 0x19b   : > { %vm7474_vm0 = vcmp.lt.s32.totalorder %v7473_v63, 0  ;;  %v9346_v38 = vmul.u32.u64.low %v9329_v61, %v1878_v48  ;;  %v9347_v16 = vmul.u32.u64.high %v9329_v61, %v1878_v48, %v9346_v38  ;;  %vm1524_vm2 = vcmp.lt.s32.totalorder %v9129_v29, 0 }
 0x19c   : > { %v1593_v28 = vsel %vm7474_vm0, 0, %v7473_v63  ;;  %v9350_v18 = vmul.u32.u64.low %v9329_v61, %v1874_v25  ;;  %v9351_v62 = vmul.u32.u64.high %v9329_v61, %v1874_v25, %v9350_v18  ;;  %vm1739_vm1 = vcmp.gt.s32.totalorder %v1738_v31, 0 }
 0x19d   : > { %v8040_v7 = vpop.eup %8039  ;;  %v1594_v1 = vsub.s32 32, %v1593_v28  ;;  %v1598_v55 = vsub.s32 4294967266, %v1593_v28  ;;  %v1740_v54 = vsel %vm1739_vm1, %v1738_v31, 0  ;;  %v1608_v20 = vsub.s32 4, %v9303_v5 }
 0x19e   : > { %v8042_v37 = vpop.eup %8041  ;;  %v1724_v22 = vxor.u32 2147483648, %v8040_v7  ;;  %v1870_v4 = vsel %vm1864_vm14, %v1867_v51, %v1869_v57  ;;  %v1742_v42 = vand.u32 31, %v1740_v54  ;;  %v1595_v0 = vshll.u32 %v9315_v40, %v1593_v28  ;;  %v9399_v57 = vld [vmem:[%s13855_s1] ss:$0 sm:$0xff] }
 0x19f   : > { %v1721_v30 = vxor.u32 2147483648, %v8042_v37  ;;  %v1596_v23 = vshrl.u32 %v1578_v2, %v1594_v1  ;;  %v1599_v26 = vadd.s32 127, %v1598_v55  ;;  %vm1888_vm3 = vc.u32 %v9347_v16, %v9350_v18 }
 0x1a0   : > { %v1725_v58 = vsel %vm1723_vm9, %v1724_v22, %v8042_v37  ;;  %v1889_v6 = vadd.s32 1, %v9351_v62  ;;  %v1743_v36 = vsub.s32 32, %v1742_v42  ;;  %vm9371_vm4 = vcmp.le.f32.partialorder %v1522_v59, 0.7853982 }
 0x1a1   : > { %v1722_v24 = vsel %vm1720_vm12, %v8040_v7, %v1721_v30  ;;  %v1597_v40 = vor.u32 %v1596_v23, %v1595_v0  ;;  %v1600_v10 = vshll.u32 %v1599_v26, 23  ;;  %v1886_v44 = vmul.u32 %v9329_v61, %v1870_v4 }
 0x1a2   : > { %v1726_v15 = vsel %vm1719_vm13, %v1722_v24, %v1725_v58  ;;  %v1890_v60 = vsel %vm1888_vm3, %v1889_v6, %v9351_v62  ;;  %v1745_v2 = vshll.u32 %v8349_v39, %v1742_v42  ;;  %v1746_v13 = vshrl.u32 %v8350_v43, %v1743_v36 }
 0x1a3   : > { %v1727_v14 = vsel %vm1717_vm15, nan, %v1726_v15  ;;  %v1601_v59 = vor.u32 4788187, %v1600_v10  ;;  %v1891_v27 = vadd.s32 %v1890_v60, %v1886_v44  ;;  %v9383_v19 = vshrl.u32 %v1740_v54, 5 }
 0x1a4   : > { %7299 = vst [vmem:[%s8782_s8 + $0x48] sm:$0xff] %v1727_v14  ;;  %v1604_v34 = vcvt.s32.f32 %v1597_v40  ;;  %v1747_v41 = vor.u32 %v1746_v13, %v1745_v2  ;;  %v1748_v61 = vshll.u32 %v8350_v43, %v1742_v42  ;;  %v1749_v17 = vshrl.u32 %v8351_v45, %v1743_v36 }
 0x1a5   : > { %v1602_v50 = vand.u32 2147483647, %v1601_v59  ;;  %v1892_v53 = vadd.s32 536870912, %v1891_v27  ;;  %v1751_v12 = vshll.u32 %v8351_v45, %v1742_v42  ;;  %v1752_v63 = vshrl.u32 %v8352_v47, %v1743_v36 }
 0x1a6   : > { %v1750_v52 = vor.u32 %v1749_v17, %v1748_v61  ;;  %v1754_v8 = vshll.u32 %v8352_v47, %v1742_v42  ;;  %v1755_v3 = vshrl.u32 %v8353_v49, %v1743_v36  ;;  %v1758_v51 = vshrl.u32 %v8354_v56, %v1743_v36 }
 0x1a7   : > { %v1605_v25 = vmul.f32 %v1604_v34, %v1602_v50  ;;  %v1609_v48 = vsel %vm1524_vm2, %v1608_v20, %v9303_v5  ;;  %v1893_v31 = vshrl.u32 %v1892_v53, 30  ;;  %v576_v38 = vmul.f32 %v9399_v57, %v305_v11 }
 0x1a8   : > { %v1736_v28 = vor.u32 8388608, %v9356_v21  ;;  %v1753_v62 = vor.u32 %v1752_v63, %v1751_v12  ;;  %v1756_v7 = vor.u32 %v1755_v3, %v1754_v8  ;;  %v1757_v1 = vshll.u32 %v8353_v49, %v1742_v42  ;;  %v9420_v42 = vld [vmem:[%s13856_s2] ss:$0 sm:$0xff] }
 0x1a9   : > { %v1606_v55 = vxor.u32 2147483648, %v1605_v25  ;;  %v1894_v54 = vshll.u32 %v1893_v31, 30  ;;  %vm1760_vm5 = vcmp.lt.s32.totalorder %v9383_v19, 1  ;;  %vm1763_vm6 = vcmp.lt.s32.totalorder %v9383_v19, 4 }
 0x1aa   : > { %v1611_v5 = vsel %vm9371_vm4, 0, %v1609_v48  ;;  %v1759_v37 = vor.u32 %v1758_v51, %v1757_v1  ;;  %v1768_v22 = vsel %vm1760_vm5, %v1747_v41, %v1750_v52  ;;  %v1769_v21 = vsel %vm1763_vm6, %v1756_v7, 920167782 }
 0x1ab   : > { %v1607_v20 = vsel %vm1524_vm2, %v1606_v55, %v1605_v25  ;;  %v9414_v4 = vsub.s32 %v1891_v27, %v1894_v54  ;;  %vm1762_vm7 = vcmp.lt.s32.totalorder %v9383_v19, 3  ;;  %v9423_v30 = vadd.f32 %v9420_v42, %v576_v38 }
 0x1ac   : > { %v1610_v0 = vsel %vm9371_vm4, %v9129_v29, %v1607_v20  ;;  %v1744_v23 = vshrl.u32 %v8349_v39, %v1743_v36  ;;  %vm1761_vm8 = vcmp.lt.s32.totalorder %v9383_v19, 2  ;;  %v1770_v26 = vsel %vm1762_vm7, %v1753_v62, %v1769_v21 }
 0x1ad   : > { %8043 = vcosq.f32 %v1610_v0  ;;  %v1897_v58 = vsub.s32 0, %v9414_v4  ;;  %v1765_v6 = vsel %vm1763_vm6, %v1753_v62, 2102212464  ;;  %v1771_v24 = vsel %vm1761_vm8, %v1768_v22, %v1770_v26 }
 0x1ae   : > { %8045 = vsinq.f32 %v1610_v0  ;;  %v1772_v33 = vsel %vm1760_vm5, %v1750_v52, %v1753_v62  ;;  %v1773_v36 = vsel %vm1763_vm6, %v1759_v37, 1326507024  ;;  %v1776_v40 = vshll.u32 %v1736_v28, 8  ;;  %v300_v62 = vpop.permute.xlu0 %299 }
 0x1af   : > { %v1615_v10 = vand.u32 3, %v1611_v5  ;;  %v7484_v44 = vmin.u32 %v1897_v58, %v9414_v4  ;;  %v1917_v15 = vsub.s32 4, %v1893_v31  ;;  %v1764_v60 = vsel %vm1760_vm5, %v1744_v23, %v1747_v41 }
 0x1b0   : > { %v1766_v2 = vsel %vm1762_vm7, %v1750_v52, %v1765_v6  ;;  %v1774_v13 = vsel %vm1762_vm7, %v1756_v7, %v1773_v36  ;;  %v9448_v14 = vmul.u32.u64.low %v1776_v40, %v1771_v24  ;;  %v9449_v59 = vmul.u32.u64.high %v1776_v40, %v1771_v24, %v9448_v14 }
 0x1b1   : > { %v1899_v27 = vclz %v7484_v44  ;;  %v1775_v34 = vsel %vm1761_vm8, %v1772_v33, %v1774_v13  ;;  %v2040_v61 = vand.u32 2139095040, %v9423_v30  ;;  %vm9456_vm9 = vcmp.le.f32.partialorder %v1831_v35, 0.7853982 }
 0x1b2   : > { %v9460_v41 = vmul.u32.u64.low %v1776_v40, %v1775_v34  ;;  %v9461_v11 = vmul.u32.u64.high %v1776_v40, %v1775_v34, %v9460_v41  ;;  %vm1833_vm10 = vcmp.lt.s32.totalorder %v9233_v46, 0  ;;  %v1767_v53 = vsel %vm1761_vm8, %v1764_v60, %v1766_v2 }
 0x1b3   : > { %v7485_v50 = vadd.s32 4294967294, %v1899_v27  ;;  %v2041_v12 = vshrl.u32 %v2040_v61, 23  ;;  %vm1614_vm11 = vweird.f32 %v9129_v29  ;;  %vm1616_vm12 = vcmp.lt.s32.totalorder %v1615_v10, 2 }
 0x1b4   : > { %v1918_v63 = vsel %vm1833_vm10, %v1917_v15, %v1893_v31  ;;  %v1786_v35 = vadd.s32 1, %v9449_v59  ;;  %v2037_v52 = vand.u32 2147483647, %v9423_v30  ;;  %vm1617_vm13 = vcmp.eq.s32.totalorder %v1615_v10, 0 }
 0x1b5   : > { %vm1620_vm14 = vcmp.eq.s32.totalorder %v1615_v10, 2  ;;  %vm7486_vm15 = vcmp.lt.s32.totalorder %v7485_v50, 0  ;;  %v7491_v8 = vadd.s32 4294967169, %v2041_v12  ;;  %v1887_v3 = vadd.s32 %v9350_v18, %v9347_v16 }
 0x1b6   : > { %v1902_v19 = vsel %vm7486_vm15, 0, %v7485_v50  ;;  %v1783_v51 = vmul.u32 %v1776_v40, %v1767_v53  ;;  %vm1785_vm0 = vc.u32 %v9461_v11, %v9448_v14  ;;  %v1920_v31 = vsel %vm9456_vm9, 0, %v1918_v63 }
 0x1b7   : > { %v8044_v25 = vpop.eup %8043  ;;  %v1903_v48 = vsub.s32 32, %v1902_v19  ;;  %v1907_v38 = vsub.s32 4294967266, %v1902_v19  ;;  %v1787_v28 = vsel %vm1785_vm0, %v1786_v35, %v9449_v59  ;;  %v2044_v54 = vand.u32 8388607, %v2037_v52 }
 0x1b8   : > { %v8046_v7 = vpop.eup %8045  ;;  %v1621_v1 = vxor.u32 2147483648, %v8044_v25  ;;  %v1788_v55 = vadd.s32 %v1787_v28, %v1783_v51  ;;  %v2047_v16 = vadd.s32 1, %v7491_v8  ;;  %v1904_v5 = vshll.u32 %v9414_v4, %v1902_v19 }
 0x1b9   : > { %v1618_v18 = vxor.u32 2147483648, %v8046_v7  ;;  %v1905_v37 = vshrl.u32 %v1887_v3, %v1903_v48  ;;  %v1908_v22 = vadd.s32 127, %v1907_v38  ;;  %v575_v0 = vmul.f32 %v9399_v57, %v300_v62 }
 0x1ba   : > { %v1622_v21 = vsel %vm1620_vm14, %v1621_v1, %v8046_v7  ;;  %v1789_v20 = vadd.s32 536870912, %v1788_v55  ;;  %vm2048_vm1 = vcmp.gt.s32.totalorder %v2047_v16, 0  ;;  %v2045_v36 = vor.u32 8388608, %v2044_v54 }
 0x1bb   : > { %v1619_v23 = vsel %vm1617_vm13, %v8044_v25, %v1618_v18  ;;  %v1906_v26 = vor.u32 %v1905_v37, %v1904_v5  ;;  %v1909_v58 = vshll.u32 %v1908_v22, 23  ;;  %v2049_v6 = vsel %vm2048_vm1, %v2047_v16, 0 }
 0x1bc   : > { %v1623_v24 = vsel %vm1616_vm12, %v1619_v23, %v1622_v21  ;;  %v1790_v33 = vshrl.u32 %v1789_v20, 30  ;;  %v2051_v40 = vand.u32 31, %v2049_v6  ;;  %v9487_v15 = vand.u32 3, %v1920_v31 }
 0x1bd   : > { %v1624_v4 = vsel %vm1614_vm11, nan, %v1623_v24  ;;  %v1910_v44 = vor.u32 4788187, %v1909_v58  ;;  %vm1730_vm2 = vcmp.lt.s32.totalorder %v9288_v32, 0  ;;  %v1913_v59 = vcvt.s32.f32 %v1906_v26 }
 0x1be   : > { %7298 = vst [vmem:[%s8782_s8 + $0x40] sm:$0xff] %v1624_v4  ;;  %v1791_v60 = vshll.u32 %v1790_v33, 30  ;;  %v2052_v2 = vsub.s32 32, %v2051_v40  ;;  %v1784_v27 = vadd.s32 %v9448_v14, %v9461_v11  ;;  %v9492_v10 = vadd.f32 %v9420_v42, %v575_v0 }
 0x1bf   : > { %v1911_v13 = vand.u32 2147483647, %v1910_v44  ;;  %v1814_v61 = vsub.s32 4, %v1790_v33  ;;  %v9497_v41 = vshll.u32 %v2045_v36, 8  ;;  %v2054_v53 = vshll.u32 %v8349_v39, %v2051_v40 }
 0x1c0   : > { %v9494_v34 = vsub.s32 %v1788_v55, %v1791_v60  ;;  %v2055_v29 = vshrl.u32 %v8350_v43, %v2052_v2  ;;  %v2058_v12 = vshrl.u32 %v8351_v45, %v2052_v2  ;;  %v2061_v63 = vshrl.u32 %v8352_v47, %v2052_v2 }
 0x1c1   : > { %v1914_v50 = vmul.f32 %v1913_v59, %v1911_v13  ;;  %v2057_v14 = vshll.u32 %v8350_v43, %v2051_v40  ;;  %v2060_v11 = vshll.u32 %v8351_v45, %v2051_v40  ;;  %v2064_v8 = vshrl.u32 %v8353_v49, %v2052_v2 }
 0x1c2   : > { %v1794_v35 = vsub.s32 0, %v9494_v34  ;;  %v2050_v19 = vshrl.u32 %v2049_v6, 5  ;;  %v2063_v51 = vshll.u32 %v8352_v47, %v2051_v40  ;;  %v1937_v25 = vand.u32 2139095040, %v9492_v10 }
 0x1c3   : > { %v1915_v3 = vxor.u32 2147483648, %v1914_v50  ;;  %v2056_v38 = vor.u32 %v2055_v29, %v2054_v53  ;;  %v2059_v31 = vor.u32 %v2058_v12, %v2057_v14  ;;  %v2062_v28 = vor.u32 %v2061_v63, %v2060_v11 }
 0x1c4   : > { %v7480_v48 = vmin.u32 %v1794_v35, %v9494_v34  ;;  %v2065_v7 = vor.u32 %v2064_v8, %v2063_v51  ;;  %v2066_v1 = vshll.u32 %v8353_v49, %v2051_v40  ;;  %v2067_v55 = vshrl.u32 %v8354_v56, %v2052_v2 }
 0x1c5   : > { %v1916_v62 = vsel %vm1833_vm10, %v1915_v3, %v1914_v50  ;;  %v9518_v18 = vsel %vm1730_vm2, %v1814_v61, %v1790_v33  ;;  %v2053_v5 = vshrl.u32 %v8349_v39, %v2052_v2  ;;  %vm2069_vm3 = vcmp.lt.s32.totalorder %v2050_v19, 1 }
 0x1c6   : > { %v1919_v54 = vsel %vm9456_vm9, %v9233_v46, %v1916_v62  ;;  %v1796_v16 = vclz %v7480_v48  ;;  %v2068_v37 = vor.u32 %v2067_v55, %v2066_v1  ;;  %vm2071_vm4 = vcmp.lt.s32.totalorder %v2050_v19, 3 }
 0x1c7   : > { %8047 = vcosq.f32 %v1919_v54  ;;  %vm2072_vm5 = vcmp.lt.s32.totalorder %v2050_v19, 4  ;;  %v2077_v21 = vsel %vm2069_vm3, %v2056_v38, %v2059_v31  ;;  %v2081_v23 = vsel %vm2069_vm3, %v2059_v31, %v2062_v28 }
 0x1c8   : > { %8049 = vsinq.f32 %v1919_v54  ;;  %v7481_v22 = vadd.s32 4294967294, %v1796_v16  ;;  %v2074_v20 = vsel %vm2072_vm5, %v2062_v28, 2102212464  ;;  %v2078_v0 = vsel %vm2072_vm5, %v2065_v7, 920167782 }
 0x1c9   : > { %v2082_v17 = vsel %vm2072_vm5, %v2068_v37, 1326507024  ;;  %vm2070_vm7 = vcmp.lt.s32.totalorder %v2050_v19, 2  ;;  %v2079_v26 = vsel %vm2071_vm4, %v2062_v28, %v2078_v0  ;;  %v2073_v24 = vsel %vm2069_vm3, %v2053_v5, %v2056_v38 }
 0x1ca   : > { %vm7482_vm6 = vcmp.lt.s32.totalorder %v7481_v22, 0  ;;  %v2083_v58 = vsel %vm2071_vm4, %v2065_v7, %v2082_v17  ;;  %v2080_v33 = vsel %vm2070_vm7, %v2077_v21, %v2079_v26  ;;  %v2075_v44 = vsel %vm2071_vm4, %v2059_v31, %v2074_v20  ;;  %v315_v7 = vpop.permute.xlu1 %314 }
 0x1cb   : > { %v1799_v6 = vsel %vm7482_vm6, 0, %v7481_v22  ;;  %v2084_v36 = vsel %vm2070_vm7, %v2081_v23, %v2083_v58  ;;  %v1938_v60 = vshrl.u32 %v1937_v25, 23  ;;  %vm9538_vm8 = vcmp.le.f32.partialorder %v1728_v9, 0.7853982 }
 0x1cc   : > { %v1800_v40 = vsub.s32 32, %v1799_v6  ;;  %v1804_v4 = vsub.s32 4294967266, %v1799_v6  ;;  %v9527_v2 = vmul.u32.u64.low %v9497_v41, %v2084_v36  ;;  %v9528_v13 = vmul.u32.u64.high %v9497_v41, %v2084_v36, %v9527_v2 }
 0x1cd   : > { %v9531_v59 = vmul.u32.u64.low %v9497_v41, %v2080_v33  ;;  %v9532_v61 = vmul.u32.u64.high %v9497_v41, %v2080_v33, %v9531_v59  ;;  %v1801_v29 = vshll.u32 %v9494_v34, %v1799_v6  ;;  %v7487_v12 = vadd.s32 4294967169, %v1938_v60 }
 0x1ce   : > { %v1802_v50 = vshrl.u32 %v1784_v27, %v1800_v40  ;;  %v1805_v53 = vadd.s32 127, %v1804_v4  ;;  %v2076_v35 = vsel %vm2070_vm7, %v2073_v24, %v2075_v44  ;;  %v1934_v14 = vand.u32 2147483647, %v9492_v10 }
 0x1cf   : > { %vm1926_vm9 = vcmp.eq.s32.totalorder %v9487_v15, 0  ;;  %v1944_v3 = vadd.s32 1, %v7487_v12  ;;  %vm1929_vm10 = vcmp.eq.s32.totalorder %v9487_v15, 2  ;;  %v1817_v27 = vsel %vm9538_vm8, 0, %v9518_v18  ;;  %v310_v18 = vpop.permute.xlu0 %309 }
 0x1d0   : > { %v1803_v11 = vor.u32 %v1802_v50, %v1801_v29  ;;  %v1806_v8 = vshll.u32 %v1805_v53, 23  ;;  %vm2094_vm11 = vc.u32 %v9528_v13, %v9531_v59  ;;  %v2095_v9 = vadd.s32 1, %v9532_v61 }
 0x1d1   : > { %v8048_v51 = vpop.eup %8047  ;;  %v2092_v48 = vmul.u32 %v9497_v41, %v2076_v35  ;;  %vm1945_vm12 = vcmp.gt.s32.totalorder %v1944_v3, 0  ;;  %v1941_v28 = vand.u32 8388607, %v1934_v14  ;;  %vm1923_vm13 = vweird.f32 %v9233_v46 }
 0x1d2   : > { %v8050_v34 = vpop.eup %8049  ;;  %v1930_v19 = vxor.u32 2147483648, %v8048_v51  ;;  %v1807_v25 = vor.u32 4788187, %v1806_v8  ;;  %v2096_v31 = vsel %vm2094_vm11, %v2095_v9, %v9532_v61  ;;  %v1946_v62 = vsel %vm1945_vm12, %v1944_v3, 0 }
 0x1d3   : > { %v1927_v38 = vxor.u32 2147483648, %v8050_v34  ;;  %v1810_v54 = vcvt.s32.f32 %v1803_v11  ;;  %v2097_v16 = vadd.s32 %v2096_v31, %v2092_v48  ;;  %vm1925_vm14 = vcmp.lt.s32.totalorder %v9487_v15, 2 }
 0x1d4   : > { %v1931_v1 = vsel %vm1929_vm10, %v1930_v19, %v8050_v34  ;;  %v1808_v55 = vand.u32 2147483647, %v1807_v25  ;;  %v1948_v5 = vand.u32 31, %v1946_v62  ;;  %v578_v20 = vmul.f32 %v9399_v57, %v315_v7 }
 0x1d5   : > { %v1928_v41 = vsel %vm1926_vm9, %v8048_v51, %v1927_v38  ;;  %v2098_v21 = vadd.s32 536870912, %v2097_v16  ;;  %v9561_v23 = vand.u32 3, %v1817_v27  ;;  %v9564_v26 = vmul.f32 %v9399_v57, %v310_v18 }
 0x1d6   : > { %v1932_v37 = vsel %vm1925_vm14, %v1928_v41, %v1931_v1  ;;  %v1811_v22 = vmul.f32 %v1810_v54, %v1808_v55  ;;  %v1949_v17 = vsub.s32 32, %v1948_v5  ;;  %v1942_v6 = vor.u32 8388608, %v1941_v28 }
 0x1d7   : > { %v1933_v0 = vsel %vm1923_vm13, nan, %v1932_v37  ;;  %v9567_v58 = vshrl.u32 %v2098_v21, 30  ;;  %v1951_v15 = vshll.u32 %v8349_v39, %v1948_v5  ;;  %v1954_v33 = vshll.u32 %v8350_v43, %v1948_v5 }
 0x1d8   : > { %7301 = vst [vmem:[%s8782_s8 + $0x58] sm:$0xff] %v1933_v0  ;;  %v1812_v46 = vxor.u32 2147483648, %v1811_v22  ;;  %v1952_v24 = vshrl.u32 %v8350_v43, %v1949_v17  ;;  %v1955_v36 = vshrl.u32 %v8351_v45, %v1949_v17  ;;  %v1958_v40 = vshrl.u32 %v8352_v47, %v1949_v17 }
 0x1d9   : > { %v2100_v44 = vshll.u32 %v9567_v58, 30  ;;  %v1957_v60 = vshll.u32 %v8351_v45, %v1948_v5  ;;  %v1961_v2 = vshrl.u32 %v8353_v49, %v1949_v17  ;;  %v1947_v29 = vshrl.u32 %v1946_v62, 5 }
 0x1da   : > { %v1813_v4 = vsel %vm1730_vm2, %v1812_v46, %v1811_v22  ;;  %v1953_v50 = vor.u32 %v1952_v24, %v1951_v15  ;;  %v1960_v53 = vshll.u32 %v8352_v47, %v1948_v5  ;;  %v1956_v35 = vor.u32 %v1955_v36, %v1954_v33 }
 0x1db   : > { %v1816_v61 = vsel %vm9538_vm8, %v9288_v32, %v1813_v4  ;;  %v9583_v12 = vsub.s32 %v2097_v16, %v2100_v44  ;;  %v1959_v11 = vor.u32 %v1958_v40, %v1957_v60  ;;  %v1963_v3 = vshll.u32 %v8353_v49, %v1948_v5 }
 0x1dc   : > { %8051 = vcosq.f32 %v1816_v61  ;;  %v1962_v8 = vor.u32 %v1961_v2, %v1960_v53  ;;  %v1964_v51 = vshrl.u32 %v8354_v56, %v1949_v17  ;;  %v1950_v63 = vshrl.u32 %v8349_v39, %v1949_v17 }
 0x1dd   : > { %8053 = vsinq.f32 %v1816_v61  ;;  %v2103_v27 = vsub.s32 0, %v9583_v12  ;;  %v9589_v9 = vshll.u32 %v1942_v6, 8  ;;  %v9592_v34 = vadd.f32 %v9420_v42, %v578_v20 }
 0x1de   : > { %v1965_v19 = vor.u32 %v1964_v51, %v1963_v3  ;;  %vm1966_vm15 = vcmp.lt.s32.totalorder %v1947_v29, 1  ;;  %vm1967_vm0 = vcmp.lt.s32.totalorder %v1947_v29, 2  ;;  %vm1968_vm1 = vcmp.lt.s32.totalorder %v1947_v29, 3 }
 0x1df   : > { %v7492_v25 = vmin.u32 %v2103_v27, %v9583_v12  ;;  %vm1969_vm2 = vcmp.lt.s32.totalorder %v1947_v29, 4  ;;  %v1970_v48 = vsel %vm1966_vm15, %v1950_v63, %v1953_v50  ;;  %v1974_v38 = vsel %vm1966_vm15, %v1953_v50, %v1956_v35  ;;  %v325_v50 = vpop.permute.xlu1 %324 }
 0x1e0   : > { %v1971_v31 = vsel %vm1969_vm2, %v1959_v11, 2102212464  ;;  %v1975_v28 = vsel %vm1969_vm2, %v1962_v8, 920167782  ;;  %v1978_v62 = vsel %vm1966_vm15, %v1956_v35, %v1959_v11  ;;  %v1979_v7 = vsel %vm1969_vm2, %v1965_v19, 1326507024 }
 0x1e1   : > { %vm2039_vm3 = vcmp.lt.s32.totalorder %v9423_v30, 0  ;;  %v2105_v1 = vclz %v7492_v25  ;;  %v1972_v55 = vsel %vm1968_vm1, %v1956_v35, %v1971_v31  ;;  %v1976_v54 = vsel %vm1968_vm1, %v1959_v11, %v1975_v28 }
 0x1e2   : > { %v1980_v16 = vsel %vm1968_vm1, %v1962_v8, %v1979_v7  ;;  %vm1820_vm4 = vweird.f32 %v9288_v32  ;;  %vm1822_vm5 = vcmp.lt.s32.totalorder %v9561_v23, 2  ;;  %v1977_v18 = vsel %vm1967_vm0, %v1974_v38, %v1976_v54 }
 0x1e3   : > { %v1981_v41 = vsel %vm1967_vm0, %v1978_v62, %v1980_v16  ;;  %v2246_v5 = vand.u32 2139095040, %v9592_v34  ;;  %vm1823_vm6 = vcmp.eq.s32.totalorder %v9561_v23, 0  ;;  %v7493_v37 = vadd.s32 4294967294, %v2105_v1 }
 0x1e4   : > { %v9603_v22 = vmul.u32.u64.low %v9589_v9, %v1981_v41  ;;  %v9604_v21 = vmul.u32.u64.high %v9589_v9, %v1981_v41, %v9603_v22  ;;  %v1973_v20 = vsel %vm1967_vm0, %v1970_v48, %v1972_v55  ;;  %vm1826_vm7 = vcmp.eq.s32.totalorder %v9561_v23, 2 }
 0x1e5   : > { %v9608_v0 = vmul.u32.u64.low %v9589_v9, %v1977_v18  ;;  %v9609_v17 = vmul.u32.u64.high %v9589_v9, %v1977_v18, %v9608_v0  ;;  %v2247_v46 = vshrl.u32 %v2246_v5, 23  ;;  %v2093_v15 = vadd.s32 %v9531_v59, %v9528_v13 }
 0x1e6   : > { %v8052_v6 = vpop.eup %8051  ;;  %vm7494_vm8 = vcmp.lt.s32.totalorder %v7493_v37, 0  ;;  %v2243_v24 = vand.u32 2147483647, %v9592_v34  ;;  %v2123_v4 = vsub.s32 4, %v9567_v58  ;;  %v1989_v29 = vmul.u32 %v9589_v9, %v1973_v20 }
 0x1e7   : > { %v8054_v33 = vpop.eup %8053  ;;  %v1827_v36 = vxor.u32 2147483648, %v8052_v6  ;;  %v2108_v40 = vsel %vm7494_vm8, 0, %v7493_v37  ;;  %v7499_v44 = vadd.s32 4294967169, %v2247_v46  ;;  %vm1991_vm9 = vc.u32 %v9604_v21, %v9608_v0 }
 0x1e8   : > { %v1824_v60 = vxor.u32 2147483648, %v8054_v33  ;;  %v2109_v2 = vsub.s32 32, %v2108_v40  ;;  %v2113_v61 = vsub.s32 4294967266, %v2108_v40  ;;  %v2110_v13 = vshll.u32 %v9583_v12, %v2108_v40 }
 0x1e9   : > { %v1828_v53 = vsel %vm1826_vm7, %v1827_v36, %v8054_v33  ;;  %v1992_v59 = vadd.s32 1, %v9609_v17  ;;  %v2253_v3 = vadd.s32 1, %v7499_v44  ;;  %v2124_v27 = vsel %vm2039_vm3, %v2123_v4, %v9567_v58 }
 0x1ea   : > { %v1825_v35 = vsel %vm1823_vm6, %v8052_v6, %v1824_v60  ;;  %v2111_v11 = vshrl.u32 %v2093_v15, %v2109_v2  ;;  %v2114_v8 = vadd.s32 127, %v2113_v61  ;;  %v580_v63 = vmul.f32 %v9399_v57, %v325_v50 }
 0x1eb   : > { %v1829_v51 = vsel %vm1822_vm5, %v1825_v35, %v1828_v53  ;;  %v1993_v12 = vsel %vm1991_vm9, %v1992_v59, %v9609_v17  ;;  %vm9638_vm10 = vcmp.le.f32.partialorder %v2037_v52, 0.7853982  ;;  %v2250_v58 = vand.u32 8388607, %v2243_v24 }
 0x1ec   : > { %v1830_v9 = vsel %vm1820_vm4, nan, %v1829_v51  ;;  %v2112_v19 = vor.u32 %v2111_v11, %v2110_v13  ;;  %v2115_v25 = vshll.u32 %v2114_v8, 23  ;;  %v1994_v48 = vadd.s32 %v1993_v12, %v1989_v29 }
 0x1ed   : > { %7300 = vst [vmem:[%s8782_s8 + $0x50] sm:$0xff] %v1830_v9  ;;  %vm2254_vm11 = vcmp.gt.s32.totalorder %v2253_v3, 0  ;;  %v9646_v38 = vadd.f32 %v9420_v42, %v9564_v26  ;;  %v2126_v31 = vsel %vm9638_vm10, 0, %v2124_v27  ;;  %v9653_v54 = vadd.f32 %v9420_v42, %v580_v63 }
 0x1ee   : > { %v2116_v32 = vor.u32 4788187, %v2115_v25  ;;  %v1995_v28 = vadd.s32 536870912, %v1994_v48  ;;  %v2255_v62 = vsel %vm2254_vm11, %v2253_v3, 0  ;;  %v2119_v52 = vcvt.s32.f32 %v2112_v19 }
 0x1ef   : > { %v2257_v7 = vand.u32 31, %v2255_v62  ;;  %v9655_v16 = vand.u32 3, %v2126_v31  ;;  %v2251_v18 = vor.u32 8388608, %v2250_v58  ;;  %v2140_v26 = vand.u32 2147483647, %v9646_v38 }
 0x1f0   : > { %v2117_v1 = vand.u32 2147483647, %v2116_v32  ;;  %v9650_v55 = vshrl.u32 %v1995_v28, 30  ;;  %v2143_v20 = vand.u32 2139095040, %v9646_v38  ;;  %v2256_v4 = vshrl.u32 %v2255_v62, 5 }
 0x1f1   : > { %v2258_v41 = vsub.s32 32, %v2257_v7  ;;  %v2260_v22 = vshll.u32 %v8349_v39, %v2257_v7  ;;  %v2263_v46 = vshll.u32 %v8350_v43, %v2257_v7  ;;  %v2266_v36 = vshll.u32 %v8351_v45, %v2257_v7 }
 0x1f2   : > { %v2120_v5 = vmul.f32 %v2119_v52, %v2117_v1  ;;  %v1997_v37 = vshll.u32 %v9650_v55, 30  ;;  %v2269_v60 = vshll.u32 %v8352_v47, %v2257_v7  ;;  %v9670_v2 = vshll.u32 %v2251_v18, 8 }
 0x1f3   : > { %v2261_v17 = vshrl.u32 %v8350_v43, %v2258_v41  ;;  %v2264_v42 = vshrl.u32 %v8351_v45, %v2258_v41  ;;  %v2267_v6 = vshrl.u32 %v8352_v47, %v2258_v41  ;;  %v2270_v40 = vshrl.u32 %v8353_v49, %v2258_v41 }
 0x1f4   : > { %v2121_v15 = vxor.u32 2147483648, %v2120_v5  ;;  %v9665_v33 = vsub.s32 %v1994_v48, %v1997_v37  ;;  %v2272_v35 = vshll.u32 %v8353_v49, %v2257_v7  ;;  %v2273_v11 = vshrl.u32 %v8354_v56, %v2258_v41 }
 0x1f5   : > { %v2262_v44 = vor.u32 %v2261_v17, %v2260_v22  ;;  %v2265_v50 = vor.u32 %v2264_v42, %v2263_v46  ;;  %v2268_v53 = vor.u32 %v2267_v6, %v2266_v36  ;;  %v2271_v59 = vor.u32 %v2270_v40, %v2269_v60 }
 0x1f6   : > { %v2122_v61 = vsel %vm2039_vm3, %v2121_v15, %v2120_v5  ;;  %v2000_v29 = vsub.s32 0, %v9665_v33  ;;  %vm1936_vm12 = vcmp.lt.s32.totalorder %v9492_v10, 0  ;;  %v2020_v3 = vsub.s32 4, %v9650_v55 }
 0x1f7   : > { %v2125_v13 = vsel %vm9638_vm10, %v9423_v30, %v2122_v61  ;;  %v2144_v51 = vshrl.u32 %v2143_v20, 23  ;;  %v2259_v27 = vshrl.u32 %v8349_v39, %v2258_v41  ;;  %v2274_v12 = vor.u32 %v2273_v11, %v2272_v35 }
 0x1f8   : > { %8055 = vcosq.f32 %v2125_v13  ;;  %v7488_v8 = vmin.u32 %v2000_v29, %v9665_v33  ;;  %vm2275_vm13 = vcmp.lt.s32.totalorder %v2256_v4, 1  ;;  %vm2276_vm14 = vcmp.lt.s32.totalorder %v2256_v4, 2 }
 0x1f9   : > { %8057 = vsinq.f32 %v2125_v13  ;;  %vm2277_vm15 = vcmp.lt.s32.totalorder %v2256_v4, 3  ;;  %vm2278_vm0 = vcmp.lt.s32.totalorder %v2256_v4, 4  ;;  %v2283_v19 = vsel %vm2275_vm13, %v2262_v44, %v2265_v50 }
 0x1fa   : > { %v2002_v63 = vclz %v7488_v8  ;;  %v2280_v9 = vsel %vm2278_vm0, %v2268_v53, 2102212464  ;;  %v2284_v25 = vsel %vm2278_vm0, %v2271_v59, 920167782  ;;  %v2287_v48 = vsel %vm2275_vm13, %v2265_v50, %v2268_v53 }
 0x1fb   : > { %vm9686_vm1 = vcmp.le.f32.partialorder %v1934_v14, 0.7853982  ;;  %v2279_v32 = vsel %vm2275_vm13, %v2259_v27, %v2262_v44  ;;  %v2285_v31 = vsel %vm2277_vm15, %v2268_v53, %v2284_v25  ;;  %v2288_v28 = vsel %vm2278_vm0, %v2274_v12, 1326507024 }
 0x1fc   : > { %v7489_v58 = vadd.s32 4294967294, %v2002_v63  ;;  %vm2132_vm2 = vcmp.eq.s32.totalorder %v9655_v16, 0  ;;  %v2281_v62 = vsel %vm2277_vm15, %v2265_v50, %v2280_v9  ;;  %v2286_v7 = vsel %vm2276_vm14, %v2283_v19, %v2285_v31 }
 0x1fd   : > { %v2289_v1 = vsel %vm2277_vm15, %v2271_v59, %v2288_v28  ;;  %v7495_v52 = vadd.s32 4294967169, %v2144_v51  ;;  %v9694_v41 = vmul.u32.u64.low %v9670_v2, %v2286_v7  ;;  %v9695_v14 = vmul.u32.u64.high %v9670_v2, %v2286_v7, %v9694_v41 }
 0x1fe   : > { %vm7490_vm3 = vcmp.lt.s32.totalorder %v7489_v58, 0  ;;  %v2290_v18 = vsel %vm2276_vm14, %v2287_v48, %v2289_v1  ;;  %v1990_v5 = vadd.s32 %v9608_v0, %v9604_v21  ;;  %v2282_v42 = vsel %vm2276_vm14, %v2279_v32, %v2281_v62 }
 0x1ff   : > { %v2005_v37 = vsel %vm7490_vm3, 0, %v7489_v58  ;;  %v9701_v22 = vmul.u32.u64.low %v9670_v2, %v2290_v18  ;;  %v9702_v20 = vmul.u32.u64.high %v9670_v2, %v2290_v18, %v9701_v22  ;;  %v2150_v6 = vadd.s32 1, %v7495_v52 }
 0x200   : > { %v2006_v17 = vsub.s32 32, %v2005_v37  ;;  %v2010_v46 = vsub.s32 4294967266, %v2005_v37  ;;  %vm2135_vm4 = vcmp.eq.s32.totalorder %v9655_v16, 2  ;;  %v2007_v15 = vshll.u32 %v9665_v33, %v2005_v37 }
 0x201   : > { %v2021_v36 = vsel %vm1936_vm12, %v2020_v3, %v9650_v55  ;;  %v2147_v21 = vand.u32 8388607, %v2140_v26  ;;  %v2301_v60 = vadd.s32 1, %v9695_v14  ;;  %vm2151_vm5 = vcmp.gt.s32.totalorder %v2150_v6, 0 }
 0x202   : > { %v8056_v0 = vpop.eup %8055  ;;  %v2008_v40 = vshrl.u32 %v1990_v5, %v2006_v17  ;;  %v2011_v44 = vadd.s32 127, %v2010_v46  ;;  %v2298_v29 = vmul.u32 %v9670_v2, %v2282_v42  ;;  %vm2300_vm6 = vc.u32 %v9702_v20, %v9694_v41 }
 0x203   : > { %v8058_v4 = vpop.eup %8057  ;;  %v2136_v61 = vxor.u32 2147483648, %v8056_v0  ;;  %v2152_v33 = vsel %vm2151_vm5, %v2150_v6, 0  ;;  %v2302_v13 = vsel %vm2300_vm6, %v2301_v60, %v9695_v14  ;;  %v2023_v35 = vsel %vm9686_vm1, 0, %v2021_v36 }
 0x204   : > { %v2133_v50 = vxor.u32 2147483648, %v8058_v4  ;;  %v2009_v53 = vor.u32 %v2008_v40, %v2007_v15  ;;  %v2012_v55 = vshll.u32 %v2011_v44, 23  ;;  %v2303_v11 = vadd.s32 %v2302_v13, %v2298_v29 }
 0x205   : > { %v2137_v59 = vsel %vm2135_vm4, %v2136_v61, %v8058_v4  ;;  %v2154_v8 = vand.u32 31, %v2152_v33  ;;  %vm2129_vm7 = vweird.f32 %v9423_v30  ;;  %vm2131_vm8 = vcmp.lt.s32.totalorder %v9655_v16, 2 }
 0x206   : > { %v2134_v2 = vsel %vm2132_vm2, %v8056_v0, %v2133_v50  ;;  %v2013_v3 = vor.u32 4788187, %v2012_v55  ;;  %v2304_v27 = vadd.s32 536870912, %v2303_v11  ;;  %v2148_v12 = vor.u32 8388608, %v2147_v21 }
 0x207   : > { %v2138_v51 = vsel %vm2131_vm8, %v2134_v2, %v2137_v59  ;;  %v2155_v63 = vsub.s32 32, %v2154_v8  ;;  %v2016_v25 = vcvt.s32.f32 %v2009_v53  ;;  %v9725_v48 = vand.u32 3, %v2023_v35 }
 0x208   : > { %v2139_v9 = vsel %vm2129_vm7, nan, %v2138_v51  ;;  %v2014_v19 = vand.u32 2147483647, %v2013_v3  ;;  %v9728_v58 = vshrl.u32 %v2304_v27, 30  ;;  %v2452_v16 = vand.u32 2139095040, %v9653_v54 }
 0x209   : > { %7303 = vst [vmem:[%s8782_s8 + $0x68] sm:$0xff] %v2139_v9  ;;  %v2158_v30 = vshrl.u32 %v8350_v43, %v2155_v63  ;;  %v2161_v32 = vshrl.u32 %v8351_v45, %v2155_v63  ;;  %v2157_v28 = vshll.u32 %v8349_v39, %v2154_v8  ;;  %v2164_v62 = vshrl.u32 %v8352_v47, %v2155_v63 }
 0x20a   : > { %v2017_v31 = vmul.f32 %v2016_v25, %v2014_v19  ;;  %v2167_v7 = vshrl.u32 %v8353_v49, %v2155_v63  ;;  %v2306_v1 = vshll.u32 %v9728_v58, 30  ;;  %v2153_v52 = vshrl.u32 %v2152_v33, 5 }
 0x20b   : > { %v2160_v18 = vshll.u32 %v8350_v43, %v2154_v8  ;;  %v9738_v14 = vshll.u32 %v2148_v12, 8  ;;  %v2159_v37 = vor.u32 %v2158_v30, %v2157_v28  ;;  %v2163_v22 = vshll.u32 %v8351_v45, %v2154_v8 }
 0x20c   : > { %v2018_v5 = vxor.u32 2147483648, %v2017_v31  ;;  %v2166_v17 = vshll.u32 %v8352_v47, %v2154_v8  ;;  %v9742_v46 = vsub.s32 %v2303_v11, %v2306_v1  ;;  %v2169_v6 = vshll.u32 %v8353_v49, %v2154_v8 }
 0x20d   : > { %v2162_v42 = vor.u32 %v2161_v32, %v2160_v18  ;;  %v2170_v15 = vshrl.u32 %v8354_v56, %v2155_v63  ;;  %v2165_v21 = vor.u32 %v2164_v62, %v2163_v22  ;;  %v2453_v40 = vshrl.u32 %v2452_v16, 23 }
 0x20e   : > { %v2019_v36 = vsel %vm1936_vm12, %v2018_v5, %v2017_v31  ;;  %v2168_v0 = vor.u32 %v2167_v7, %v2166_v17  ;;  %v2309_v60 = vsub.s32 0, %v9742_v46  ;;  %v2156_v4 = vshrl.u32 %v8349_v39, %v2155_v63 }
 0x20f   : > { %v2022_v44 = vsel %vm9686_vm1, %v9492_v10, %v2019_v36  ;;  %v2171_v61 = vor.u32 %v2170_v15, %v2169_v6  ;;  %v2329_v29 = vsub.s32 4, %v9728_v58  ;;  %vm2172_vm9 = vcmp.lt.s32.totalorder %v2153_v52, 1 }
 0x210   : > { %8059 = vcosq.f32 %v2022_v44  ;;  %vm2173_vm10 = vcmp.lt.s32.totalorder %v2153_v52, 2  ;;  %v7500_v33 = vmin.u32 %v2309_v60, %v9742_v46  ;;  %vm2175_vm11 = vcmp.lt.s32.totalorder %v2153_v52, 4 }
 0x211   : > { %8061 = vsinq.f32 %v2022_v44  ;;  %v2180_v50 = vsel %vm2172_vm9, %v2159_v37, %v2162_v42  ;;  %vm2174_vm12 = vcmp.lt.s32.totalorder %v2153_v52, 3  ;;  %v2177_v53 = vsel %vm2175_vm11, %v2165_v21, 2102212464 }
 0x212   : > { %v2181_v55 = vsel %vm2175_vm11, %v2168_v0, 920167782  ;;  %v2184_v23 = vsel %vm2172_vm9, %v2162_v42, %v2165_v21  ;;  %v2311_v13 = vclz %v7500_v33  ;;  %v2176_v59 = vsel %vm2172_vm9, %v2156_v4, %v2159_v37 }
 0x213   : > { %v2182_v35 = vsel %vm2174_vm12, %v2165_v21, %v2181_v55  ;;  %v2185_v11 = vsel %vm2175_vm11, %v2171_v61, 1326507024  ;;  %v2178_v8 = vsel %vm2174_vm12, %v2162_v42, %v2177_v53  ;;  %v7507_v51 = vadd.s32 4294967169, %v2453_v40 }
 0x214   : > { %v2183_v2 = vsel %vm2173_vm10, %v2180_v50, %v2182_v35  ;;  %v2186_v3 = vsel %vm2174_vm12, %v2168_v0, %v2185_v11  ;;  %v7501_v27 = vadd.s32 4294967294, %v2311_v13  ;;  %vm9764_vm13 = vcmp.le.f32.partialorder %v2243_v24, 0.7853982 }
 0x215   : > { %v2187_v12 = vsel %vm2173_vm10, %v2184_v23, %v2186_v3  ;;  %v9758_v63 = vmul.u32.u64.low %v9738_v14, %v2183_v2  ;;  %v9759_v9 = vmul.u32.u64.high %v9738_v14, %v2183_v2, %v9758_v63  ;;  %vm2245_vm14 = vcmp.lt.s32.totalorder %v9592_v34, 0 }
 0x216   : > { %v9770_v25 = vmul.u32.u64.low %v9738_v14, %v2187_v12  ;;  %v9771_v30 = vmul.u32.u64.high %v9738_v14, %v2187_v12, %v9770_v25  ;;  %vm7502_vm15 = vcmp.lt.s32.totalorder %v7501_v27, 0  ;;  %v2179_v32 = vsel %vm2173_vm10, %v2176_v59, %v2178_v8 }
 0x217   : > { %v2449_v16 = vand.u32 2147483647, %v9653_v54  ;;  %v2459_v31 = vadd.s32 1, %v7507_v51  ;;  %vm2028_vm0 = vcmp.lt.s32.totalorder %v9725_v48, 2  ;;  %vm2029_vm1 = vcmp.eq.s32.totalorder %v9725_v48, 0 }
 0x218   : > { %v2299_v24 = vadd.s32 %v9694_v41, %v9702_v20  ;;  %v2314_v28 = vsel %vm7502_vm15, 0, %v7501_v27  ;;  %v2330_v1 = vsel %vm2245_vm14, %v2329_v29, %v9728_v58  ;;  %v2198_v52 = vadd.s32 1, %v9759_v9  ;;  %v320_v29 = vpop.permute.xlu0 %319 }
 0x219   : > { %v2315_v62 = vsub.s32 32, %v2314_v28  ;;  %v2319_v7 = vsub.s32 4294967266, %v2314_v28  ;;  %v2316_v5 = vshll.u32 %v9742_v46, %v2314_v28  ;;  %v2195_v37 = vmul.u32 %v9738_v14, %v2179_v32 }
 0x21a   : > { %v8060_v18 = vpop.eup %8059  ;;  %vm2197_vm2 = vc.u32 %v9771_v30, %v9758_v63  ;;  %vm2460_vm3 = vcmp.gt.s32.totalorder %v2459_v31, 0  ;;  %vm2032_vm4 = vcmp.eq.s32.totalorder %v9725_v48, 2  ;;  %v2456_v14 = vand.u32 8388607, %v2449_v16 }
 0x21b   : > { %v8062_v22 = vpop.eup %8061  ;;  %v2033_v41 = vxor.u32 2147483648, %v8060_v18  ;;  %v2317_v20 = vshrl.u32 %v2299_v24, %v2315_v62  ;;  %v2320_v17 = vadd.s32 127, %v2319_v7  ;;  %v2199_v42 = vsel %vm2197_vm2, %v2198_v52, %v9759_v9 }
 0x21c   : > { %v2030_v6 = vxor.u32 2147483648, %v8062_v22  ;;  %v2200_v58 = vadd.s32 %v2199_v42, %v2195_v37  ;;  %v2461_v15 = vsel %vm2460_vm3, %v2459_v31, 0  ;;  %v2332_v40 = vsel %vm9764_vm13, 0, %v2330_v1  ;;  %v9825_v37 = vld [vmem:[%s13856_s2] ss:$0 sm:$0xff] }
 0x21d   : > { %v2034_v36 = vsel %vm2032_vm4, %v2033_v41, %v8062_v22  ;;  %v2318_v46 = vor.u32 %v2317_v20, %v2316_v5  ;;  %v2321_v21 = vshll.u32 %v2320_v17, 23  ;;  %v2463_v60 = vand.u32 31, %v2461_v15 }
 0x21e   : > { %v2031_v0 = vsel %vm2029_vm1, %v8060_v18, %v2030_v6  ;;  %v2201_v44 = vadd.s32 536870912, %v2200_v58  ;;  %vm2026_vm5 = vweird.f32 %v9492_v10  ;;  %v9801_v13 = vand.u32 3, %v2332_v40 }
 0x21f   : > { %v2035_v4 = vsel %vm2028_vm0, %v2031_v0, %v2034_v36  ;;  %v2322_v61 = vor.u32 4788187, %v2321_v21  ;;  %v2464_v53 = vsub.s32 32, %v2463_v60  ;;  %v2325_v23 = vcvt.s32.f32 %v2318_v46 }
 0x220   : > { %v2036_v33 = vsel %vm2026_vm5, nan, %v2035_v4  ;;  %v9798_v50 = vshrl.u32 %v2201_v44, 30  ;;  %v2457_v59 = vor.u32 8388608, %v2456_v14  ;;  %v2466_v11 = vshll.u32 %v8349_v39, %v2463_v60 }
 0x221   : > { %7302 = vst [vmem:[%s8782_s8 + $0x60] sm:$0xff] %v2036_v33  ;;  %v2323_v55 = vand.u32 2147483647, %v2322_v61  ;;  %v2467_v10 = vshrl.u32 %v8350_v43, %v2464_v53  ;;  %v579_v48 = vmul.f32 %v9399_v57, %v320_v29  ;;  %v2470_v2 = vshrl.u32 %v8351_v45, %v2464_v53 }
 0x222   : > { %v2203_v35 = vshll.u32 %v9798_v50, 30  ;;  %v2473_v3 = vshrl.u32 %v8352_v47, %v2464_v53  ;;  %v2476_v51 = vshrl.u32 %v8353_v49, %v2464_v53  ;;  %v2462_v12 = vshrl.u32 %v2461_v15, 5 }
 0x223   : > { %v2326_v8 = vmul.f32 %v2325_v23, %v2323_v55  ;;  %v2469_v9 = vshll.u32 %v8350_v43, %v2463_v60  ;;  %v2472_v25 = vshll.u32 %v8351_v45, %v2463_v60  ;;  %v2468_v31 = vor.u32 %v2467_v10, %v2466_v11 }
 0x224   : > { %v9810_v27 = vsub.s32 %v2200_v58, %v2203_v35  ;;  %v2475_v24 = vshll.u32 %v8352_v47, %v2463_v60  ;;  %v9815_v28 = vshll.u32 %v2457_v59, 8  ;;  %v2479_v1 = vshrl.u32 %v8354_v56, %v2464_v53 }
 0x225   : > { %v2327_v32 = vxor.u32 2147483648, %v2326_v8  ;;  %v2471_v62 = vor.u32 %v2470_v2, %v2469_v9  ;;  %v2474_v7 = vor.u32 %v2473_v3, %v2472_v25  ;;  %v2478_v5 = vshll.u32 %v8353_v49, %v2463_v60 }
 0x226   : > { %v2206_v57 = vsub.s32 0, %v9810_v27  ;;  %v2477_v18 = vor.u32 %v2476_v51, %v2475_v24  ;;  %v9828_v22 = vadd.f32 %v9825_v37, %v579_v48  ;;  %vm2142_vm6 = vcmp.lt.s32.totalorder %v9646_v38, 0 }
 0x227   : > { %v2328_v52 = vsel %vm2245_vm14, %v2327_v32, %v2326_v8  ;;  %v2226_v17 = vsub.s32 4, %v9798_v50  ;;  %vm2481_vm7 = vcmp.lt.s32.totalorder %v2462_v12, 1  ;;  %v2465_v42 = vshrl.u32 %v8349_v39, %v2464_v53  ;;  %v335_v8 = vpop.permute.xlu1 %334 }
 0x228   : > { %v2331_v41 = vsel %vm9764_vm13, %v9592_v34, %v2328_v52  ;;  %v7496_v20 = vmin.u32 %v2206_v57, %v9810_v27  ;;  %v2480_v6 = vor.u32 %v2479_v1, %v2478_v5  ;;  %vm2484_vm8 = vcmp.lt.s32.totalorder %v2462_v12, 4 }
 0x229   : > { %8063 = vcosq.f32 %v2331_v41  ;;  %v2486_v15 = vsel %vm2484_vm8, %v2474_v7, 2102212464  ;;  %v2489_v36 = vsel %vm2481_vm7, %v2468_v31, %v2471_v62  ;;  %vm2483_vm9 = vcmp.lt.s32.totalorder %v2462_v12, 3 }
 0x22a   : > { %8065 = vsinq.f32 %v2331_v41  ;;  %v2208_v58 = vclz %v7496_v20  ;;  %v2490_v19 = vsel %vm2484_vm8, %v2477_v18, 920167782  ;;  %v2493_v46 = vsel %vm2481_vm7, %v2471_v62, %v2474_v7 }
 0x22b   : > { %v2494_v21 = vsel %vm2484_vm8, %v2480_v6, 1326507024  ;;  %vm9841_vm10 = vcmp.le.f32.partialorder %v2140_v26, 0.7853982  ;;  %vm2482_vm11 = vcmp.lt.s32.totalorder %v2462_v12, 2  ;;  %v2491_v40 = vsel %vm2483_vm9, %v2474_v7, %v2490_v19 }
 0x22c   : > { %v7497_v0 = vadd.s32 4294967294, %v2208_v58  ;;  %v2495_v44 = vsel %vm2483_vm9, %v2477_v18, %v2494_v21  ;;  %v2485_v60 = vsel %vm2481_vm7, %v2465_v42, %v2468_v31  ;;  %v2487_v4 = vsel %vm2483_vm9, %v2471_v62, %v2486_v15 }
 0x22d   : > { %v2492_v61 = vsel %vm2482_vm11, %v2489_v36, %v2491_v40  ;;  %v2496_v29 = vsel %vm2482_vm11, %v2493_v46, %v2495_v44  ;;  %v2349_v26 = vand.u32 2139095040, %v9828_v22  ;;  %vm2337_vm13 = vcmp.lt.s32.totalorder %v9801_v13, 2 }
 0x22e   : > { %vm7498_vm12 = vcmp.lt.s32.totalorder %v7497_v0, 0  ;;  %v9849_v33 = vmul.u32.u64.low %v9815_v28, %v2496_v29  ;;  %v9850_v53 = vmul.u32.u64.high %v9815_v28, %v2496_v29, %v9849_v33  ;;  %vm2335_vm14 = vweird.f32 %v9592_v34 }
 0x22f   : > { %v2211_v55 = vsel %vm7498_vm12, 0, %v7497_v0  ;;  %v9855_v23 = vmul.u32.u64.low %v9815_v28, %v2492_v61  ;;  %v9856_v59 = vmul.u32.u64.high %v9815_v28, %v2492_v61, %v9855_v23  ;;  %v2196_v35 = vadd.s32 %v9758_v63, %v9771_v30 }
 0x230   : > { %v2212_v11 = vsub.s32 32, %v2211_v55  ;;  %v2216_v10 = vsub.s32 4294967266, %v2211_v55  ;;  %v2350_v48 = vshrl.u32 %v2349_v26, 23  ;;  %vm2338_vm15 = vcmp.eq.s32.totalorder %v9801_v13, 0 }
 0x231   : > { %v2227_v2 = vsel %vm2142_vm6, %v2226_v17, %v9798_v50  ;;  %v2488_v3 = vsel %vm2482_vm11, %v2485_v60, %v2487_v4  ;;  %v2346_v51 = vand.u32 2147483647, %v9828_v22  ;;  %v2213_v9 = vshll.u32 %v9810_v27, %v2211_v55  ;;  %v9876_v50 = vld [vmem:[%s13855_s1] ss:$0 sm:$0xff] }
 0x232   : > { %v2214_v25 = vshrl.u32 %v2196_v35, %v2212_v11  ;;  %v2217_v32 = vadd.s32 127, %v2216_v10  ;;  %vm2506_vm0 = vc.u32 %v9850_v53, %v9855_v23  ;;  %vm2341_vm1 = vcmp.eq.s32.totalorder %v9801_v13, 2 }
 0x233   : > { %v8064_v63 = vpop.eup %8063  ;;  %v2507_v30 = vadd.s32 1, %v9856_v59  ;;  %v7503_v31 = vadd.s32 4294967169, %v2350_v48  ;;  %v582_v12 = vmul.f32 %v9876_v50, %v335_v8  ;;  %v2504_v7 = vmul.u32 %v9815_v28, %v2488_v3 }
 0x234   : > { %v8066_v24 = vpop.eup %8065  ;;  %v2342_v27 = vxor.u32 2147483648, %v8064_v63  ;;  %v2215_v57 = vor.u32 %v2214_v25, %v2213_v9  ;;  %v2218_v62 = vshll.u32 %v2217_v32, 23  ;;  %v2229_v52 = vsel %vm9841_vm10, 0, %v2227_v2 }
 0x235   : > { %v2339_v1 = vxor.u32 2147483648, %v8066_v24  ;;  %v2508_v18 = vsel %vm2506_vm0, %v2507_v30, %v9856_v59  ;;  %v2356_v5 = vadd.s32 1, %v7503_v31  ;;  %v2353_v42 = vand.u32 8388607, %v2346_v51 }
 0x236   : > { %v2343_v41 = vsel %vm2341_vm1, %v2342_v27, %v8066_v24  ;;  %v2219_v20 = vor.u32 4788187, %v2218_v62  ;;  %v2509_v17 = vadd.s32 %v2508_v18, %v2504_v7  ;;  %v2222_v58 = vcvt.s32.f32 %v2215_v57 }
 0x237   : > { %v2340_v6 = vsel %vm2338_vm15, %v8064_v63, %v2339_v1  ;;  %vm2357_vm2 = vcmp.gt.s32.totalorder %v2356_v5, 0  ;;  %v9888_v28 = vadd.f32 %v9825_v37, %v582_v12  ;;  %v9897_v60 = vand.u32 3, %v2229_v52 }
 0x238   : > { %v2344_v15 = vsel %vm2337_vm13, %v2340_v6, %v2343_v41  ;;  %v2220_v36 = vand.u32 2147483647, %v2219_v20  ;;  %v2510_v19 = vadd.s32 536870912, %v2509_v17  ;;  %v2358_v46 = vsel %vm2357_vm2, %v2356_v5, 0 }
 0x239   : > { %v2345_v21 = vsel %vm2335_vm14, nan, %v2344_v15  ;;  %v2360_v0 = vand.u32 31, %v2358_v46  ;;  %v2354_v4 = vor.u32 8388608, %v2353_v42  ;;  %v2658_v26 = vand.u32 2139095040, %v9888_v28 }
 0x23a   : > { %7305 = vst [vmem:[%s8782_s8 + $0x78] sm:$0xff] %v2345_v21  ;;  %v2223_v40 = vmul.f32 %v2222_v58, %v2220_v36  ;;  %v9895_v44 = vshrl.u32 %v2510_v19, 30  ;;  %v2359_v3 = vshrl.u32 %v2358_v46, 5  ;;  %v2655_v14 = vand.u32 2147483647, %v9888_v28 }
 0x23b   : > { %v2361_v61 = vsub.s32 32, %v2360_v0  ;;  %v2363_v13 = vshll.u32 %v8349_v39, %v2360_v0  ;;  %v2366_v34 = vshll.u32 %v8350_v43, %v2360_v0  ;;  %v2369_v48 = vshll.u32 %v8351_v45, %v2360_v0 }
 0x23c   : > { %v2224_v29 = vxor.u32 2147483648, %v2223_v40  ;;  %v2512_v33 = vshll.u32 %v9895_v44, 30  ;;  %v2372_v25 = vshll.u32 %v8352_v47, %v2360_v0  ;;  %v2375_v12 = vshll.u32 %v8353_v49, %v2360_v0 }
 0x23d   : > { %v2364_v55 = vshrl.u32 %v8350_v43, %v2361_v61  ;;  %v2367_v59 = vshrl.u32 %v8351_v45, %v2361_v61  ;;  %v2370_v35 = vshrl.u32 %v8352_v47, %v2361_v61  ;;  %v2373_v8 = vshrl.u32 %v8353_v49, %v2361_v61 }
 0x23e   : > { %v2225_v11 = vsel %vm2142_vm6, %v2224_v29, %v2223_v40  ;;  %v9908_v10 = vsub.s32 %v2509_v17, %v2512_v33  ;;  %v2376_v24 = vshrl.u32 %v8354_v56, %v2361_v61  ;;  %v9920_v57 = vshll.u32 %v2354_v4, 8 }
 0x23f   : > { %v2228_v2 = vsel %vm9841_vm10, %v9646_v38, %v2225_v11  ;;  %v2365_v9 = vor.u32 %v2364_v55, %v2363_v13  ;;  %v2368_v63 = vor.u32 %v2367_v59, %v2366_v34  ;;  %v2371_v30 = vor.u32 %v2370_v35, %v2369_v48 }
 0x240   : > { %8067 = vcosq.f32 %v2228_v2  ;;  %v2515_v32 = vsub.s32 0, %v9908_v10  ;;  %v2374_v31 = vor.u32 %v2373_v8, %v2372_v25  ;;  %v2362_v62 = vshrl.u32 %v8349_v39, %v2361_v61 }
 0x241   : > { %8069 = vsinq.f32 %v2228_v2  ;;  %v2377_v7 = vor.u32 %v2376_v24, %v2375_v12  ;;  %vm2378_vm3 = vcmp.lt.s32.totalorder %v2359_v3, 1  ;;  %v2659_v1 = vshrl.u32 %v2658_v26, 23 }
 0x242   : > { %v7508_v27 = vmin.u32 %v2515_v32, %v9908_v10  ;;  %vm2238_vm4 = vcmp.eq.s32.totalorder %v9897_v60, 2  ;;  %vm2380_vm5 = vcmp.lt.s32.totalorder %v2359_v3, 3  ;;  %vm2381_vm6 = vcmp.lt.s32.totalorder %v2359_v3, 4 }
 0x243   : > { %v2386_v18 = vsel %vm2378_vm3, %v2365_v9, %v2368_v63  ;;  %vm2235_vm7 = vcmp.eq.s32.totalorder %v9897_v60, 0  ;;  %v2383_v5 = vsel %vm2381_vm6, %v2371_v30, 2102212464  ;;  %v2387_v41 = vsel %vm2381_vm6, %v2374_v31, 920167782 }
 0x244   : > { %v2517_v52 = vclz %v7508_v27  ;;  %v2390_v20 = vsel %vm2378_vm3, %v2368_v63, %v2371_v30  ;;  %v2391_v17 = vsel %vm2381_vm6, %v2377_v7, 1326507024  ;;  %vm2234_vm8 = vcmp.lt.s32.totalorder %v9897_v60, 2 }
 0x245   : > { %vm2379_vm9 = vcmp.lt.s32.totalorder %v2359_v3, 2  ;;  %v2388_v6 = vsel %vm2380_vm5, %v2371_v30, %v2387_v41  ;;  %v2392_v58 = vsel %vm2380_vm5, %v2374_v31, %v2391_v17  ;;  %vm2232_vm10 = vweird.f32 %v9646_v38 }
 0x246   : > { %v7509_v42 = vadd.s32 4294967294, %v2517_v52  ;;  %v2382_v15 = vsel %vm2378_vm3, %v2362_v62, %v2365_v9  ;;  %v2389_v36 = vsel %vm2379_vm9, %v2386_v18, %v2388_v6  ;;  %v2393_v19 = vsel %vm2379_vm9, %v2390_v20, %v2392_v58 }
 0x247   : > { %v7515_v46 = vadd.s32 4294967169, %v2659_v1  ;;  %v2384_v21 = vsel %vm2380_vm5, %v2368_v63, %v2383_v5  ;;  %v9937_v0 = vmul.u32.u64.low %v9920_v57, %v2393_v19  ;;  %v9938_v40 = vmul.u32.u64.high %v9920_v57, %v2393_v19, %v9937_v0 }
 0x248   : > { %vm7510_vm11 = vcmp.lt.s32.totalorder %v7509_v42, 0  ;;  %v9941_v61 = vmul.u32.u64.low %v9920_v57, %v2389_v36  ;;  %v9942_v29 = vmul.u32.u64.high %v9920_v57, %v2389_v36, %v9941_v61  ;;  %v2505_v26 = vadd.s32 %v9855_v23, %v9850_v53 }
 0x249   : > { %v2520_v4 = vsel %vm7510_vm11, 0, %v7509_v42  ;;  %v2665_v33 = vadd.s32 1, %v7515_v46  ;;  %v9949_v59 = vand.u32 8388607, %v2655_v14  ;;  %v2535_v48 = vsub.s32 4, %v9895_v44 }
 0x24a   : > { %v8068_v13 = vpop.eup %8067  ;;  %v2521_v55 = vsub.s32 32, %v2520_v4  ;;  %v2525_v34 = vsub.s32 4294967266, %v2520_v4  ;;  %v2385_v8 = vsel %vm2379_vm9, %v2382_v15, %v2384_v21  ;;  %v2522_v9 = vshll.u32 %v9908_v10, %v2520_v4  ;;  %v330_v10 = vpop.permute.xlu0 %329 }
 0x24b   : > { %v8070_v35 = vpop.eup %8069  ;;  %v2239_v11 = vxor.u32 2147483648, %v8068_v13  ;;  %vm2666_vm12 = vcmp.gt.s32.totalorder %v2665_v33, 0  ;;  %vm2403_vm13 = vc.u32 %v9938_v40, %v9941_v61  ;;  %v2404_v23 = vadd.s32 1, %v9942_v29 }
 0x24c   : > { %v2236_v2 = vxor.u32 2147483648, %v8070_v35  ;;  %v2523_v25 = vshrl.u32 %v2505_v26, %v2521_v55  ;;  %v2526_v32 = vadd.s32 127, %v2525_v34  ;;  %v2667_v63 = vsel %vm2666_vm12, %v2665_v33, 0 }
 0x24d   : > { %v2240_v53 = vsel %vm2238_vm4, %v2239_v11, %v8070_v35  ;;  %v2401_v12 = vmul.u32 %v9920_v57, %v2385_v8  ;;  %vm2451_vm14 = vcmp.lt.s32.totalorder %v9653_v54, 0  ;;  %v2405_v27 = vsel %vm2403_vm13, %v2404_v23, %v9942_v29 }
 0x24e   : > { %v2237_v3 = vsel %vm2235_vm7, %v8068_v13, %v2236_v2  ;;  %v2524_v30 = vor.u32 %v2523_v25, %v2522_v9  ;;  %v2527_v31 = vshll.u32 %v2526_v32, 23  ;;  %v2669_v62 = vand.u32 31, %v2667_v63 }
 0x24f   : > { %v2241_v24 = vsel %vm2234_vm8, %v2237_v3, %v2240_v53  ;;  %v2536_v52 = vsel %vm2451_vm14, %v2535_v48, %v9895_v44  ;;  %v2406_v18 = vadd.s32 %v2405_v27, %v2401_v12  ;;  %vm9974_vm15 = vcmp.le.f32.partialorder %v2449_v16, 0.7853982 }
 0x250   : > { %v2242_v7 = vsel %vm2232_vm10, nan, %v2241_v24  ;;  %v2528_v1 = vor.u32 4788187, %v2527_v31  ;;  %v2670_v57 = vsub.s32 32, %v2669_v62  ;;  %v581_v5 = vmul.f32 %v9876_v50, %v330_v10 }
 0x251   : > { %7304 = vst [vmem:[%s8782_s8 + $0x70] sm:$0xff] %v2242_v7  ;;  %v2531_v20 = vcvt.s32.f32 %v2524_v30  ;;  %v2407_v38 = vadd.s32 536870912, %v2406_v18  ;;  %v2663_v17 = vor.u32 8388608, %v9949_v59  ;;  %v2538_v42 = vsel %vm9974_vm15, 0, %v2536_v52 }
 0x252   : > { %v2529_v41 = vand.u32 2147483647, %v2528_v1  ;;  %v2673_v44 = vshrl.u32 %v8350_v43, %v2670_v57  ;;  %v2676_v6 = vshrl.u32 %v8351_v45, %v2670_v57  ;;  %v2679_v16 = vshrl.u32 %v8352_v47, %v2670_v57 }
 0x253   : > { %v9985_v15 = vshrl.u32 %v2407_v38, 30  ;;  %v2672_v36 = vshll.u32 %v8349_v39, %v2669_v62  ;;  %v2682_v19 = vshrl.u32 %v8353_v49, %v2670_v57  ;;  %v2675_v46 = vshll.u32 %v8350_v43, %v2669_v62 }
 0x254   : > { %v2532_v58 = vmul.f32 %v2531_v20, %v2529_v41  ;;  %v2678_v21 = vshll.u32 %v8351_v45, %v2669_v62  ;;  %v2681_v0 = vshll.u32 %v8352_v47, %v2669_v62  ;;  %v2685_v4 = vshrl.u32 %v8354_v56, %v2670_v57 }
 0x255   : > { %v2409_v33 = vshll.u32 %v9985_v15, 30  ;;  %v2668_v13 = vshrl.u32 %v2667_v63, 5  ;;  %v2684_v26 = vshll.u32 %v8353_v49, %v2669_v62  ;;  %v2674_v55 = vor.u32 %v2673_v44, %v2672_v36 }
 0x256   : > { %v2533_v29 = vxor.u32 2147483648, %v2532_v58  ;;  %v2677_v34 = vor.u32 %v2676_v6, %v2675_v46  ;;  %v2680_v59 = vor.u32 %v2679_v16, %v2678_v21  ;;  %v2683_v35 = vor.u32 %v2682_v19, %v2681_v0 }
 0x257   : > { %v9997_v48 = vand.u32 3, %v2538_v42  ;;  %v9999_v8 = vsub.s32 %v2406_v18, %v2409_v33  ;;  %v10002_v2 = vadd.f32 %v9825_v37, %v581_v5  ;;  %v2671_v25 = vshrl.u32 %v8349_v39, %v2670_v57 }
 0x258   : > { %v2534_v11 = vsel %vm2451_vm14, %v2533_v29, %v2532_v58  ;;  %v2686_v32 = vor.u32 %v2685_v4, %v2684_v26  ;;  %v2703_v53 = vshll.u32 %v2663_v17, 8  ;;  %vm2687_vm0 = vcmp.lt.s32.totalorder %v2668_v13, 1 }
 0x259   : > { %v2537_v9 = vsel %vm9974_vm15, %v9653_v54, %v2534_v11  ;;  %v2412_v23 = vsub.s32 0, %v9999_v8  ;;  %vm2690_vm1 = vcmp.lt.s32.totalorder %v2668_v13, 4  ;;  %v2695_v3 = vsel %vm2687_vm0, %v2674_v55, %v2677_v34 }
 0x25a   : > { %8071 = vcosq.f32 %v2537_v9  ;;  %v2692_v63 = vsel %vm2690_vm1, %v2680_v59, 2102212464  ;;  %v2696_v30 = vsel %vm2690_vm1, %v2683_v35, 920167782  ;;  %vm2688_vm2 = vcmp.lt.s32.totalorder %v2668_v13, 2 }
 0x25b   : > { %8073 = vsinq.f32 %v2537_v9  ;;  %v7504_v31 = vmin.u32 %v2412_v23, %v9999_v8  ;;  %vm2689_vm3 = vcmp.lt.s32.totalorder %v2668_v13, 3  ;;  %v2699_v12 = vsel %vm2687_vm0, %v2677_v34, %v2680_v59 }
 0x25c   : > { %v2691_v10 = vsel %vm2687_vm0, %v2671_v25, %v2674_v55  ;;  %v2697_v24 = vsel %vm2689_vm3, %v2680_v59, %v2696_v30  ;;  %v2700_v27 = vsel %vm2690_vm1, %v2686_v32, 1326507024  ;;  %v2555_v62 = vand.u32 2139095040, %v10002_v2 }
 0x25d   : > { %vm10013_vm4 = vcmp.le.f32.partialorder %v2346_v51, 0.7853982  ;;  %v2414_v1 = vclz %v7504_v31  ;;  %v2693_v52 = vsel %vm2689_vm3, %v2677_v34, %v2692_v63  ;;  %v2698_v18 = vsel %vm2688_vm2, %v2695_v3, %v2697_v24 }
 0x25e   : > { %v2701_v60 = vsel %vm2689_vm3, %v2683_v35, %v2700_v27  ;;  %v10019_v5 = vmul.u32.u64.low %v2703_v53, %v2698_v18  ;;  %v10020_v41 = vmul.u32.u64.high %v2703_v53, %v2698_v18, %v10019_v5  ;;  %v2556_v20 = vshrl.u32 %v2555_v62, 23  ;;  %v345_v35 = vpop.permute.xlu1 %344 }
 0x25f   : > { %v2702_v57 = vsel %vm2688_vm2, %v2699_v12, %v2701_v60  ;;  %v7505_v38 = vadd.s32 4294967294, %v2414_v1  ;;  %v2432_v17 = vsub.s32 4, %v9985_v15  ;;  %vm2541_vm5 = vweird.f32 %v9653_v54 }
 0x260   : > { %v10024_v42 = vmul.u32.u64.low %v2703_v53, %v2702_v57  ;;  %v10025_v51 = vmul.u32.u64.high %v2703_v53, %v2702_v57, %v10024_v42  ;;  %vm2543_vm6 = vcmp.lt.s32.totalorder %v9997_v48, 2  ;;  %vm2348_vm7 = vcmp.lt.s32.totalorder %v9828_v22, 0 }
 0x261   : > { %v2694_v44 = vsel %vm2688_vm2, %v2691_v10, %v2693_v52  ;;  %v7511_v6 = vadd.s32 4294967169, %v2556_v20  ;;  %vm2544_vm8 = vcmp.eq.s32.totalorder %v9997_v48, 0  ;;  %vm2547_vm9 = vcmp.eq.s32.totalorder %v9997_v48, 2 }
 0x262   : > { %vm7506_vm10 = vcmp.lt.s32.totalorder %v7505_v38, 0  ;;  %v2552_v16 = vand.u32 2147483647, %v10002_v2  ;;  %v2402_v58 = vadd.s32 %v9941_v61, %v9938_v40  ;;  %v2713_v19 = vadd.s32 1, %v10020_v41 }
 0x263   : > { %v2417_v36 = vsel %vm7506_vm10, 0, %v7505_v38  ;;  %v2562_v46 = vadd.s32 1, %v7511_v6  ;;  %v2433_v29 = vsel %vm2348_vm7, %v2432_v17, %v9985_v15  ;;  %v2710_v33 = vmul.u32 %v2703_v53, %v2694_v44 }
 0x264   : > { %v8072_v21 = vpop.eup %8071  ;;  %v2418_v0 = vsub.s32 32, %v2417_v36  ;;  %v2422_v4 = vsub.s32 4294967266, %v2417_v36  ;;  %v2419_v55 = vshll.u32 %v9999_v8, %v2417_v36  ;;  %vm2712_vm11 = vc.u32 %v10025_v51, %v10019_v5 }
 0x265   : > { %v8074_v13 = vpop.eup %8073  ;;  %v2548_v26 = vxor.u32 2147483648, %v8072_v21  ;;  %vm2563_vm12 = vcmp.gt.s32.totalorder %v2562_v46, 0  ;;  %v2714_v59 = vsel %vm2712_vm11, %v2713_v19, %v10020_v41  ;;  %v2435_v15 = vsel %vm10013_vm4, 0, %v2433_v29 }
 0x266   : > { %v2545_v40 = vxor.u32 2147483648, %v8074_v13  ;;  %v2420_v61 = vshrl.u32 %v2402_v58, %v2418_v0  ;;  %v2423_v34 = vadd.s32 127, %v2422_v4  ;;  %v2715_v9 = vadd.s32 %v2714_v59, %v2710_v33 }
 0x267   : > { %v2549_v11 = vsel %vm2547_vm9, %v2548_v26, %v8074_v13  ;;  %v2564_v25 = vsel %vm2563_vm12, %v2562_v46, 0  ;;  %v2559_v23 = vand.u32 8388607, %v2552_v16  ;;  %v584_v31 = vmul.f32 %v9876_v50, %v345_v35 }
 0x268   : > { %v2546_v8 = vsel %vm2544_vm8, %v8072_v21, %v2545_v40  ;;  %v2421_v32 = vor.u32 %v2420_v61, %v2419_v55  ;;  %v2424_v53 = vshll.u32 %v2423_v34, 23  ;;  %v2716_v3 = vadd.s32 536870912, %v2715_v9 }
 0x269   : > { %v2550_v63 = vsel %vm2543_vm6, %v2546_v8, %v2549_v11  ;;  %v2566_v30 = vand.u32 31, %v2564_v25  ;;  %v10060_v52 = vand.u32 3, %v2435_v15  ;;  %v2560_v18 = vor.u32 8388608, %v2559_v23 }
 0x26a   : > { %v2551_v12 = vsel %vm2541_vm5, nan, %v2550_v63  ;;  %v2425_v10 = vor.u32 4788187, %v2424_v53  ;;  %v10058_v24 = vshrl.u32 %v2716_v3, 30  ;;  %v2428_v1 = vcvt.s32.f32 %v2421_v32 }
 0x26b   : > { %7307 = vst [vmem:[%s8782_s8 + $0x88] sm:$0xff] %v2551_v12  ;;  %v2567_v27 = vsub.s32 32, %v2566_v30  ;;  %v10063_v60 = vshrl.u32 %v2564_v25, 5  ;;  %v10067_v41 = vadd.f32 %v9825_v37, %v584_v31  ;;  %v2569_v44 = vshll.u32 %v8349_v39, %v2566_v30 }
 0x26c   : > { %v2426_v62 = vand.u32 2147483647, %v2425_v10  ;;  %v2718_v48 = vshll.u32 %v10058_v24, 30  ;;  %v2572_v6 = vshll.u32 %v8350_v43, %v2566_v30  ;;  %v2575_v19 = vshll.u32 %v8351_v45, %v2566_v30 }
 0x26d   : > { %v2570_v57 = vshrl.u32 %v8350_v43, %v2567_v27  ;;  %v2573_v20 = vshrl.u32 %v8351_v45, %v2567_v27  ;;  %v2576_v38 = vshrl.u32 %v8352_v47, %v2567_v27  ;;  %v2579_v17 = vshrl.u32 %v8353_v49, %v2567_v27 }
 0x26e   : > { %v2429_v54 = vmul.f32 %v2428_v1, %v2426_v62  ;;  %v10072_v42 = vsub.s32 %v2715_v9, %v2718_v48  ;;  %v2582_v58 = vshrl.u32 %v8354_v56, %v2567_v27  ;;  %v2578_v46 = vshll.u32 %v8352_v47, %v2566_v30  ;;  %v340_v1 = vpop.permute.xlu0 %339 }
 0x26f   : > { %v2581_v21 = vshll.u32 %v8353_v49, %v2566_v30  ;;  %v2571_v4 = vor.u32 %v2570_v57, %v2569_v44  ;;  %v2574_v29 = vor.u32 %v2573_v20, %v2572_v6  ;;  %v10081_v33 = vshll.u32 %v2560_v18, 8 }
 0x270   : > { %v2430_v36 = vxor.u32 2147483648, %v2429_v54  ;;  %v2721_v0 = vsub.s32 0, %v10072_v42  ;;  %v2577_v26 = vor.u32 %v2576_v38, %v2575_v19  ;;  %v2580_v55 = vor.u32 %v2579_v17, %v2578_v46 }
 0x271   : > { %v2583_v40 = vor.u32 %v2582_v58, %v2581_v21  ;;  %vm2584_vm13 = vcmp.lt.s32.totalorder %v10063_v60, 1  ;;  %v2861_v59 = vand.u32 2147483647, %v10067_v41  ;;  %v2741_v35 = vsub.s32 4, %v10058_v24 }
 0x272   : > { %v2431_v13 = vsel %vm2348_vm7, %v2430_v36, %v2429_v54  ;;  %v7516_v34 = vmin.u32 %v2721_v0, %v10072_v42  ;;  %v2568_v11 = vshrl.u32 %v8349_v39, %v2567_v27  ;;  %vm2586_vm14 = vcmp.lt.s32.totalorder %v10063_v60, 3 }
 0x273   : > { %v2434_v61 = vsel %vm10013_vm4, %v9828_v22, %v2431_v13  ;;  %vm2657_vm15 = vcmp.lt.s32.totalorder %v9888_v28, 0  ;;  %vm2587_vm0 = vcmp.lt.s32.totalorder %v10063_v60, 4  ;;  %v2592_v7 = vsel %vm2584_vm13, %v2571_v4, %v2574_v29 }
 0x274   : > { %8075 = vcosq.f32 %v2434_v61  ;;  %v2723_v15 = vclz %v7516_v34  ;;  %v2589_v9 = vsel %vm2587_vm0, %v2577_v26, 2102212464  ;;  %v2593_v25 = vsel %vm2587_vm0, %v2580_v55, 920167782 }
 0x275   : > { %8077 = vsinq.f32 %v2434_v61  ;;  %v2596_v8 = vsel %vm2584_vm13, %v2574_v29, %v2577_v26  ;;  %v2597_v32 = vsel %vm2587_vm0, %v2583_v40, 1326507024  ;;  %vm2585_vm1 = vcmp.lt.s32.totalorder %v10063_v60, 2 }
 0x276   : > { %v7517_v53 = vadd.s32 4294967294, %v2723_v15  ;;  %v2594_v23 = vsel %vm2586_vm14, %v2577_v26, %v2593_v25  ;;  %v2598_v63 = vsel %vm2586_vm14, %v2580_v55, %v2597_v32  ;;  %vm10107_vm2 = vcmp.le.f32.partialorder %v2655_v14, 0.7853982 }
 0x277   : > { %v2588_v30 = vsel %vm2584_vm13, %v2568_v11, %v2571_v4  ;;  %v2595_v31 = vsel %vm2585_vm1, %v2592_v7, %v2594_v23  ;;  %v2599_v12 = vsel %vm2585_vm1, %v2596_v8, %v2598_v63  ;;  %v2864_v10 = vand.u32 2139095040, %v10067_v41 }
 0x278   : > { %vm7518_vm3 = vcmp.lt.s32.totalorder %v7517_v53, 0  ;;  %v2590_v27 = vsel %vm2586_vm14, %v2574_v29, %v2589_v9  ;;  %v10121_v14 = vmul.u32.u64.low %v10081_v33, %v2599_v12  ;;  %v10122_v62 = vmul.u32.u64.high %v10081_v33, %v2599_v12, %v10121_v14  ;;  %v355_v9 = vpop.permute.xlu1 %354 }
 0x279   : > { %v2726_v18 = vsel %vm7518_vm3, 0, %v7517_v53  ;;  %v10125_v48 = vmul.u32.u64.low %v10081_v33, %v2595_v31  ;;  %v10126_v57 = vmul.u32.u64.high %v10081_v33, %v2595_v31, %v10125_v48  ;;  %v2865_v54 = vshrl.u32 %v2864_v10, 23 }
 0x27a   : > { %vm2438_vm4 = vweird.f32 %v9828_v22  ;;  %vm2440_vm5 = vcmp.lt.s32.totalorder %v10060_v52, 2  ;;  %v2711_v20 = vadd.s32 %v10019_v5, %v10025_v51  ;;  %v2727_v38 = vsub.s32 32, %v2726_v18 }
 0x27b   : > { %v2731_v17 = vsub.s32 4294967266, %v2726_v18  ;;  %vm2441_vm6 = vcmp.eq.s32.totalorder %v10060_v52, 0  ;;  %v2591_v44 = vsel %vm2585_vm1, %v2588_v30, %v2590_v27  ;;  %v7523_v6 = vadd.s32 4294967169, %v2865_v54 }
 0x27c   : > { %v583_v58 = vmul.f32 %v9876_v50, %v340_v1  ;;  %v2728_v36 = vshll.u32 %v10072_v42, %v2726_v18  ;;  %v2729_v19 = vshrl.u32 %v2711_v20, %v2727_v38  ;;  %vm2609_vm7 = vc.u32 %v10122_v62, %v10125_v48 }
 0x27d   : > { %v2732_v46 = vadd.s32 127, %v2731_v17  ;;  %v2742_v5 = vsel %vm2657_vm15, %v2741_v35, %v10058_v24  ;;  %v2610_v51 = vadd.s32 1, %v10126_v57  ;;  %v2868_v60 = vand.u32 8388607, %v2861_v59 }
 0x27e   : > { %v8076_v21 = vpop.eup %8075  ;;  %v2871_v0 = vadd.s32 1, %v7523_v6  ;;  %v2730_v13 = vor.u32 %v2729_v19, %v2728_v36  ;;  %v2607_v26 = vmul.u32 %v10081_v33, %v2591_v44  ;;  %vm2444_vm8 = vcmp.eq.s32.totalorder %v10060_v52, 2 }
 0x27f   : > { %v8078_v4 = vpop.eup %8077  ;;  %v2445_v29 = vxor.u32 2147483648, %v8076_v21  ;;  %v2733_v42 = vshll.u32 %v2732_v46, 23  ;;  %v2611_v40 = vsel %vm2609_vm7, %v2610_v51, %v10126_v57  ;;  %v2744_v34 = vsel %vm10107_vm2, 0, %v2742_v5 }
 0x280   : > { %v2442_v55 = vxor.u32 2147483648, %v8078_v4  ;;  %vm2872_vm9 = vcmp.gt.s32.totalorder %v2871_v0, 0  ;;  %v2612_v35 = vadd.s32 %v2611_v40, %v2607_v26  ;;  %v2869_v15 = vor.u32 8388608, %v2868_v60 }
 0x281   : > { %v2446_v24 = vsel %vm2444_vm8, %v2445_v29, %v8078_v4  ;;  %v2734_v61 = vor.u32 4788187, %v2733_v42  ;;  %v2873_v7 = vsel %vm2872_vm9, %v2871_v0, 0  ;;  %v10154_v33 = vadd.f32 %v9825_v37, %v583_v58 }
 0x282   : > { %v2443_v11 = vsel %vm2441_vm6, %v8076_v21, %v2442_v55  ;;  %v2737_v32 = vcvt.s32.f32 %v2730_v13  ;;  %v2613_v53 = vadd.s32 536870912, %v2612_v35  ;;  %v2875_v63 = vand.u32 31, %v2873_v7 }
 0x283   : > { %v2447_v25 = vsel %vm2440_vm5, %v2443_v11, %v2446_v24  ;;  %v2735_v8 = vand.u32 2147483647, %v2734_v61  ;;  %v10164_v12 = vmul.f32 %v9876_v50, %v355_v9  ;;  %v10166_v10 = vand.u32 3, %v2744_v34 }
 0x284   : > { %v2448_v23 = vsel %vm2438_vm4, nan, %v2447_v25  ;;  %v10161_v31 = vshrl.u32 %v2613_v53, 30  ;;  %v2876_v27 = vsub.s32 32, %v2875_v63  ;;  %v10168_v14 = vshll.u32 %v2869_v15, 8 }
 0x285   : > { %7306 = vst [vmem:[%s8782_s8 + $0x80] sm:$0xff] %v2448_v23  ;;  %v2738_v30 = vmul.f32 %v2737_v32, %v2735_v8  ;;  %v2761_v52 = vand.u32 2139095040, %v10154_v33  ;;  %v10172_v22 = vshrl.u32 %v2873_v7, 5  ;;  %v2878_v57 = vshll.u32 %v8349_v39, %v2875_v63 }
 0x286   : > { %v2615_v18 = vshll.u32 %v10161_v31, 30  ;;  %v2879_v54 = vshrl.u32 %v8350_v43, %v2876_v27  ;;  %v2881_v20 = vshll.u32 %v8350_v43, %v2875_v63  ;;  %v2882_v38 = vshrl.u32 %v8351_v45, %v2876_v27 }
 0x287   : > { %v2739_v1 = vxor.u32 2147483648, %v2738_v30  ;;  %v2885_v17 = vshrl.u32 %v8352_v47, %v2876_v27  ;;  %v2884_v58 = vshll.u32 %v8351_v45, %v2875_v63  ;;  %v2888_v36 = vshrl.u32 %v8353_v49, %v2876_v27 }
 0x288   : > { %v10181_v6 = vsub.s32 %v2612_v35, %v2615_v18  ;;  %v2880_v46 = vor.u32 %v2879_v54, %v2878_v57  ;;  %v2887_v21 = vshll.u32 %v8352_v47, %v2875_v63  ;;  %v2758_v5 = vand.u32 2147483647, %v10154_v33 }
 0x289   : > { %v2740_v44 = vsel %vm2657_vm15, %v2739_v1, %v2738_v30  ;;  %v2883_v60 = vor.u32 %v2882_v38, %v2881_v20  ;;  %v2886_v0 = vor.u32 %v2885_v17, %v2884_v58  ;;  %v2890_v29 = vshll.u32 %v8353_v49, %v2875_v63 }
 0x28a   : > { %v2743_v19 = vsel %vm10107_vm2, %v9888_v28, %v2740_v44  ;;  %v2618_v51 = vsub.s32 0, %v10181_v6  ;;  %v2889_v4 = vor.u32 %v2888_v36, %v2887_v21  ;;  %v2891_v13 = vshrl.u32 %v8354_v56, %v2876_v27 }
 0x28b   : > { %8079 = vcosq.f32 %v2743_v19  ;;  %vm2554_vm10 = vcmp.lt.s32.totalorder %v10002_v2, 0  ;;  %vm2893_vm11 = vcmp.lt.s32.totalorder %v10172_v22, 1  ;;  %vm2894_vm12 = vcmp.lt.s32.totalorder %v10172_v22, 2 }
 0x28c   : > { %8081 = vsinq.f32 %v2743_v19  ;;  %v7512_v3 = vmin.u32 %v2618_v51, %v10181_v6  ;;  %v2762_v42 = vshrl.u32 %v2761_v52, 23  ;;  %v2877_v26 = vshrl.u32 %v8349_v39, %v2876_v27 }
 0x28d   : > { %v2892_v55 = vor.u32 %v2891_v13, %v2890_v29  ;;  %vm2895_vm13 = vcmp.lt.s32.totalorder %v10172_v22, 3  ;;  %vm2896_vm14 = vcmp.lt.s32.totalorder %v10172_v22, 4  ;;  %v2901_v61 = vsel %vm2893_vm11, %v2880_v46, %v2883_v60 }
 0x28e   : > { %v2620_v40 = vclz %v7512_v3  ;;  %v2898_v24 = vsel %vm2896_vm14, %v2886_v0, 2102212464  ;;  %v2902_v34 = vsel %vm2896_vm14, %v2889_v4, 920167782  ;;  %vm2750_vm15 = vcmp.eq.s32.totalorder %v10166_v10, 0 }
 0x28f   : > { %v2638_v35 = vsub.s32 4, %v10161_v31  ;;  %v2903_v11 = vsel %vm2895_vm13, %v2886_v0, %v2902_v34  ;;  %v2905_v15 = vsel %vm2893_vm11, %v2883_v60, %v2886_v0  ;;  %v2906_v7 = vsel %vm2896_vm14, %v2892_v55, 1326507024 }
 0x290   : > { %vm2749_vm0 = vcmp.lt.s32.totalorder %v10166_v10, 2  ;;  %v7513_v9 = vadd.s32 4294967294, %v2620_v40  ;;  %v2897_v25 = vsel %vm2893_vm11, %v2877_v26, %v2880_v46  ;;  %v2904_v8 = vsel %vm2894_vm12, %v2901_v61, %v2903_v11 }
 0x291   : > { %v2907_v32 = vsel %vm2895_vm13, %v2889_v4, %v2906_v7  ;;  %vm2747_vm1 = vweird.f32 %v9888_v28  ;;  %vm10218_vm2 = vcmp.le.f32.partialorder %v2552_v16, 0.7853982  ;;  %v2899_v23 = vsel %vm2895_vm13, %v2883_v60, %v2898_v24  ;;  %v350_v24 = vpop.permute.xlu0 %349 }
 0x292   : > { %v2908_v63 = vsel %vm2894_vm12, %v2905_v15, %v2907_v32  ;;  %v10227_v30 = vmul.u32.u64.low %v10168_v14, %v2904_v8  ;;  %v10228_v27 = vmul.u32.u64.high %v10168_v14, %v2904_v8, %v10227_v30  ;;  %vm7514_vm3 = vcmp.lt.s32.totalorder %v7513_v9, 0 }
 0x293   : > { %v10232_v52 = vmul.u32.u64.low %v10168_v14, %v2908_v63  ;;  %v10233_v1 = vmul.u32.u64.high %v10168_v14, %v2908_v63, %v10232_v52  ;;  %v7519_v16 = vadd.s32 4294967169, %v2762_v42  ;;  %vm2753_vm4 = vcmp.eq.s32.totalorder %v10166_v10, 2 }
 0x294   : > { %v2608_v18 = vadd.s32 %v10125_v48, %v10122_v62  ;;  %v2623_v57 = vsel %vm7514_vm3, 0, %v7513_v9  ;;  %v10240_v54 = vadd.f32 %v9825_v37, %v10164_v12  ;;  %v2900_v44 = vsel %vm2894_vm12, %v2897_v25, %v2899_v23 }
 0x295   : > { %v8080_v20 = vpop.eup %8079  ;;  %v2624_v38 = vsub.s32 32, %v2623_v57  ;;  %v2628_v17 = vsub.s32 4294967266, %v2623_v57  ;;  %v2768_v58 = vadd.s32 1, %v7519_v16  ;;  %v2639_v46 = vsel %vm2554_vm10, %v2638_v35, %v10161_v31 }
 0x296   : > { %v8082_v36 = vpop.eup %8081  ;;  %v2754_v19 = vxor.u32 2147483648, %v8080_v20  ;;  %v2919_v62 = vadd.s32 1, %v10228_v27  ;;  %v2765_v48 = vand.u32 8388607, %v2758_v5  ;;  %v2625_v12 = vshll.u32 %v10181_v6, %v2623_v57 }
 0x297   : > { %v2751_v37 = vxor.u32 2147483648, %v8082_v36  ;;  %v2626_v21 = vshrl.u32 %v2608_v18, %v2624_v38  ;;  %v2629_v51 = vadd.s32 127, %v2628_v17  ;;  %v2916_v60 = vmul.u32 %v10168_v14, %v2900_v44 }
 0x298   : > { %v2755_v22 = vsel %vm2753_vm4, %v2754_v19, %v8082_v36  ;;  %vm2918_vm5 = vc.u32 %v10233_v1, %v10227_v30  ;;  %vm2769_vm6 = vcmp.gt.s32.totalorder %v2768_v58, 0  ;;  %v2766_v3 = vor.u32 8388608, %v2765_v48 }
 0x299   : > { %v2752_v31 = vsel %vm2750_vm15, %v8080_v20, %v2751_v37  ;;  %v2627_v0 = vor.u32 %v2626_v21, %v2625_v12  ;;  %v2630_v4 = vshll.u32 %v2629_v51, 23  ;;  %v2920_v29 = vsel %vm2918_vm5, %v2919_v62, %v10228_v27 }
 0x29a   : > { %v2756_v6 = vsel %vm2749_vm0, %v2752_v31, %v2755_v22  ;;  %v2921_v13 = vadd.s32 %v2920_v29, %v2916_v60  ;;  %v2770_v42 = vsel %vm2769_vm6, %v2768_v58, 0  ;;  %v2641_v55 = vsel %vm10218_vm2, 0, %v2639_v46 }
 0x29b   : > { %v2757_v14 = vsel %vm2747_vm1, nan, %v2756_v6  ;;  %v2631_v26 = vor.u32 4788187, %v2630_v4  ;;  %v3070_v40 = vand.u32 2139095040, %v10240_v54  ;;  %v2772_v34 = vand.u32 31, %v2770_v42 }
 0x29c   : > { %7309 = vst [vmem:[%s8782_s8 + $0x98] sm:$0xff] %v2757_v14  ;;  %v2922_v61 = vadd.s32 536870912, %v2921_v13  ;;  %v2634_v11 = vcvt.s32.f32 %v2627_v0  ;;  %v10267_v10 = vand.u32 3, %v2641_v55  ;;  %v10272_v28 = vmul.f32 %v9876_v50, %v350_v24 }
 0x29d   : > { %v2632_v35 = vand.u32 2147483647, %v2631_v26  ;;  %v2773_v7 = vsub.s32 32, %v2772_v34  ;;  %v10274_v25 = vshrl.u32 %v2770_v42, 5  ;;  %v10276_v8 = vshll.u32 %v2766_v3, 8 }
 0x29e   : > { %v10269_v15 = vshrl.u32 %v2922_v61, 30  ;;  %v3071_v32 = vshrl.u32 %v3070_v40, 23  ;;  %v2775_v63 = vshll.u32 %v8349_v39, %v2772_v34  ;;  %v2778_v52 = vshll.u32 %v8350_v43, %v2772_v34 }
 0x29f   : > { %v2635_v9 = vmul.f32 %v2634_v11, %v2632_v35  ;;  %v2776_v27 = vshrl.u32 %v8350_v43, %v2773_v7  ;;  %v2779_v18 = vshrl.u32 %v8351_v45, %v2773_v7  ;;  %v2782_v50 = vshrl.u32 %v8352_v47, %v2773_v7 }
 0x2a0   : > { %v2924_v23 = vshll.u32 %v10269_v15, 30  ;;  %v2785_v57 = vshrl.u32 %v8353_v49, %v2773_v7  ;;  %v2781_v38 = vshll.u32 %v8351_v45, %v2772_v34  ;;  %v2784_v17 = vshll.u32 %v8352_v47, %v2772_v34 }
 0x2a1   : > { %v2636_v16 = vxor.u32 2147483648, %v2635_v9  ;;  %v2788_v44 = vshrl.u32 %v8354_v56, %v2773_v7  ;;  %v2777_v36 = vor.u32 %v2776_v27, %v2775_v63  ;;  %v2780_v19 = vor.u32 %v2779_v18, %v2778_v52 }
 0x2a2   : > { %v10285_v20 = vsub.s32 %v2921_v13, %v2924_v23  ;;  %v2787_v46 = vshll.u32 %v8353_v49, %v2772_v34  ;;  %v2783_v37 = vor.u32 %v2782_v50, %v2781_v38  ;;  %v2786_v12 = vor.u32 %v2785_v57, %v2784_v17 }
 0x2a3   : > { %v2637_v58 = vsel %vm2554_vm10, %v2636_v16, %v2635_v9  ;;  %v3067_v51 = vand.u32 2147483647, %v10240_v54  ;;  %v7531_v22 = vadd.s32 4294967169, %v3071_v32  ;;  %vm2790_vm7 = vcmp.lt.s32.totalorder %v10274_v25, 1 }
 0x2a4   : > { %v2640_v62 = vsel %vm10218_vm2, %v10002_v2, %v2637_v58  ;;  %v2927_v48 = vsub.s32 0, %v10285_v20  ;;  %v2789_v21 = vor.u32 %v2788_v44, %v2787_v46  ;;  %vm2793_vm8 = vcmp.lt.s32.totalorder %v10274_v25, 4 }
 0x2a5   : > { %8083 = vcosq.f32 %v2640_v62  ;;  %vm2791_vm9 = vcmp.lt.s32.totalorder %v10274_v25, 2  ;;  %vm2792_vm10 = vcmp.lt.s32.totalorder %v10274_v25, 3  ;;  %v2798_v53 = vsel %vm2790_vm7, %v2777_v36, %v2780_v19 }
 0x2a6   : > { %8085 = vsinq.f32 %v2640_v62  ;;  %v7524_v60 = vmin.u32 %v2927_v48, %v10285_v20  ;;  %v2799_v31 = vsel %vm2793_vm8, %v2786_v12, 920167782  ;;  %v2795_v4 = vsel %vm2793_vm8, %v2783_v37, 2102212464 }
 0x2a7   : > { %v2800_v29 = vsel %vm2792_vm10, %v2783_v37, %v2799_v31  ;;  %v2802_v6 = vsel %vm2790_vm7, %v2780_v19, %v2783_v37  ;;  %v2947_v13 = vsub.s32 4, %v10269_v15  ;;  %v2774_v3 = vshrl.u32 %v8349_v39, %v2773_v7 }
 0x2a8   : > { %v2929_v0 = vclz %v7524_v60  ;;  %v2801_v42 = vsel %vm2791_vm9, %v2798_v53, %v2800_v29  ;;  %v2803_v14 = vsel %vm2793_vm8, %v2789_v21, 1326507024  ;;  %vm10322_vm11 = vcmp.le.f32.partialorder %v2861_v59, 0.7853982  ;;  %v10363_v60 = vld [vmem:[%s13856_s2] ss:$0 sm:$0xff] }
 0x2a9   : > { %v2804_v55 = vsel %vm2792_vm10, %v2786_v12, %v2803_v14  ;;  %v10316_v40 = vmul.u32.u64.low %v10276_v8, %v2801_v42  ;;  %v10317_v24 = vmul.u32.u64.high %v10276_v8, %v2801_v42, %v10316_v40  ;;  %v2794_v34 = vsel %vm2790_vm7, %v2774_v3, %v2777_v36 }
 0x2aa   : > { %v7525_v26 = vadd.s32 4294967294, %v2929_v0  ;;  %v2796_v35 = vsel %vm2792_vm10, %v2780_v19, %v2795_v4  ;;  %v2805_v11 = vsel %vm2791_vm9, %v2802_v6, %v2804_v55  ;;  %v3077_v7 = vadd.s32 1, %v7531_v22 }
 0x2ab   : > { %vm2644_vm12 = vweird.f32 %v10002_v2  ;;  %vm2863_vm13 = vcmp.lt.s32.totalorder %v10067_v41, 0  ;;  %v10335_v59 = vmul.u32.u64.low %v10276_v8, %v2805_v11  ;;  %v10336_v9 = vmul.u32.u64.high %v10276_v8, %v2805_v11, %v10335_v59 }
 0x2ac   : > { %vm7526_vm14 = vcmp.lt.s32.totalorder %v7525_v26, 0  ;;  %vm2647_vm15 = vcmp.eq.s32.totalorder %v10267_v10, 0  ;;  %v2917_v32 = vadd.s32 %v10227_v30, %v10233_v1  ;;  %vm3078_vm0 = vcmp.gt.s32.totalorder %v3077_v7, 0 }
 0x2ad   : > { %v2932_v23 = vsel %vm7526_vm14, 0, %v7525_v26  ;;  %v2797_v52 = vsel %vm2791_vm9, %v2794_v34, %v2796_v35  ;;  %v2816_v16 = vadd.s32 1, %v10317_v24  ;;  %vm2650_vm1 = vcmp.eq.s32.totalorder %v10267_v10, 2 }
 0x2ae   : > { %v2933_v63 = vsub.s32 32, %v2932_v23  ;;  %v2937_v27 = vsub.s32 4294967266, %v2932_v23  ;;  %v2948_v50 = vsel %vm2863_vm13, %v2947_v13, %v10269_v15  ;;  %v3074_v57 = vand.u32 8388607, %v3067_v51 }
 0x2af   : > { %v8084_v18 = vpop.eup %8083  ;;  %v3079_v30 = vsel %vm3078_vm0, %v3077_v7, 0  ;;  %v2934_v17 = vshll.u32 %v10285_v20, %v2932_v23  ;;  %v2813_v36 = vmul.u32 %v10276_v8, %v2797_v52  ;;  %vm2815_vm2 = vc.u32 %v10336_v9, %v10316_v40 }
 0x2b0   : > { %v8086_v1 = vpop.eup %8085  ;;  %v2651_v38 = vxor.u32 2147483648, %v8084_v18  ;;  %v2935_v44 = vshrl.u32 %v2917_v32, %v2933_v63  ;;  %v2938_v25 = vadd.s32 127, %v2937_v27  ;;  %v3081_v19 = vand.u32 31, %v3079_v30 }
 0x2b1   : > { %v2648_v58 = vxor.u32 2147483648, %v8086_v1  ;;  %v2817_v48 = vsel %vm2815_vm2, %v2816_v16, %v10317_v24  ;;  %vm2646_vm3 = vcmp.lt.s32.totalorder %v10267_v10, 2  ;;  %v2950_v8 = vsel %vm10322_vm11, 0, %v2948_v50 }
 0x2b2   : > { %v2652_v46 = vsel %vm2650_vm1, %v2651_v38, %v8086_v1  ;;  %v2936_v62 = vor.u32 %v2935_v44, %v2934_v17  ;;  %v2939_v15 = vshll.u32 %v2938_v25, 23  ;;  %v2818_v37 = vadd.s32 %v2817_v48, %v2813_v36 }
 0x2b3   : > { %v2649_v20 = vsel %vm2647_vm15, %v8084_v18, %v2648_v58  ;;  %v3082_v12 = vsub.s32 32, %v3081_v19  ;;  %v10367_v53 = vadd.f32 %v10363_v60, %v10272_v28  ;;  %v3075_v0 = vor.u32 8388608, %v3074_v57 }
 0x2b4   : > { %v2653_v21 = vsel %vm2646_vm3, %v2649_v20, %v2652_v46  ;;  %v2940_v22 = vor.u32 4788187, %v2939_v15  ;;  %v2819_v31 = vadd.s32 536870912, %v2818_v37  ;;  %v2943_v6 = vcvt.s32.f32 %v2936_v62 }
 0x2b5   : > { %v2654_v10 = vsel %vm2644_vm12, nan, %v2653_v21  ;;  %v3085_v4 = vshrl.u32 %v8350_v43, %v3082_v12  ;;  %v3088_v13 = vshrl.u32 %v8351_v45, %v3082_v12  ;;  %v3091_v3 = vshrl.u32 %v8352_v47, %v3082_v12 }
 0x2b6   : > { %7308 = vst [vmem:[%s8782_s8 + $0x90] sm:$0xff] %v2654_v10  ;;  %v2941_v29 = vand.u32 2147483647, %v2940_v22  ;;  %v10375_v42 = vshrl.u32 %v2819_v31, 30  ;;  %v3084_v14 = vshll.u32 %v8349_v39, %v3081_v19  ;;  %v3087_v28 = vshll.u32 %v8350_v43, %v3081_v19 }
 0x2b7   : > { %v3094_v2 = vshrl.u32 %v8353_v49, %v3082_v12  ;;  %v3080_v55 = vshrl.u32 %v3079_v30, 5  ;;  %v3090_v24 = vshll.u32 %v8351_v45, %v3081_v19  ;;  %v3093_v34 = vshll.u32 %v8352_v47, %v3081_v19 }
 0x2b8   : > { %v2944_v26 = vmul.f32 %v2943_v6, %v2941_v29  ;;  %v2821_v35 = vshll.u32 %v10375_v42, 30  ;;  %v3086_v11 = vor.u32 %v3085_v4, %v3084_v14  ;;  %v3089_v7 = vor.u32 %v3088_v13, %v3087_v28 }
 0x2b9   : > { %v3097_v59 = vshrl.u32 %v8354_v56, %v3082_v12  ;;  %v3092_v23 = vor.u32 %v3091_v3, %v3090_v24  ;;  %v3095_v63 = vor.u32 %v3094_v2, %v3093_v34  ;;  %v3096_v27 = vshll.u32 %v8353_v49, %v3081_v19 }
 0x2ba   : > { %v2945_v32 = vxor.u32 2147483648, %v2944_v26  ;;  %v10385_v52 = vand.u32 3, %v2950_v8  ;;  %v10387_v16 = vsub.s32 %v2818_v37, %v2821_v35  ;;  %v3115_v18 = vshll.u32 %v3075_v0, 8 }
 0x2bb   : > { %v3083_v57 = vshrl.u32 %v8349_v39, %v3082_v12  ;;  %v3098_v30 = vor.u32 %v3097_v59, %v3096_v27  ;;  %v2967_v1 = vand.u32 2139095040, %v10367_v53  ;;  %vm3099_vm4 = vcmp.lt.s32.totalorder %v3080_v55, 1 }
 0x2bc   : > { %v2946_v50 = vsel %vm2863_vm13, %v2945_v32, %v2944_v26  ;;  %v2824_v17 = vsub.s32 0, %v10387_v16  ;;  %vm3102_vm5 = vcmp.lt.s32.totalorder %v3080_v55, 4  ;;  %v3107_v25 = vsel %vm3099_vm4, %v3086_v11, %v3089_v7 }
 0x2bd   : > { %v2949_v38 = vsel %vm10322_vm11, %v10067_v41, %v2946_v50  ;;  %v3104_v44 = vsel %vm3102_vm5, %v3092_v23, 2102212464  ;;  %v3108_v58 = vsel %vm3102_vm5, %v3095_v63, 920167782  ;;  %vm3100_vm6 = vcmp.lt.s32.totalorder %v3080_v55, 2 }
 0x2be   : > { %8087 = vcosq.f32 %v2949_v38  ;;  %v7520_v36 = vmin.u32 %v2824_v17, %v10387_v16  ;;  %vm3101_vm7 = vcmp.lt.s32.totalorder %v3080_v55, 3  ;;  %v3103_v19 = vsel %vm3099_vm4, %v3083_v57, %v3086_v11 }
 0x2bf   : > { %8089 = vsinq.f32 %v2949_v38  ;;  %v3109_v46 = vsel %vm3101_vm7, %v3092_v23, %v3108_v58  ;;  %v3111_v62 = vsel %vm3099_vm4, %v3089_v7, %v3092_v23  ;;  %v3112_v15 = vsel %vm3102_vm5, %v3098_v30, 1326507024 }
 0x2c0   : > { %v2826_v48 = vclz %v7520_v36  ;;  %v3105_v61 = vsel %vm3101_vm7, %v3089_v7, %v3104_v44  ;;  %v3110_v20 = vsel %vm3100_vm6, %v3107_v25, %v3109_v46  ;;  %v3113_v37 = vsel %vm3101_vm7, %v3095_v63, %v3112_v15  ;;  %v10441_v44 = vld [vmem:[%s13855_s1] ss:$0 sm:$0xff] }
 0x2c1   : > { %v3114_v12 = vsel %vm3100_vm6, %v3111_v62, %v3113_v37  ;;  %v10400_v21 = vmul.u32.u64.low %v3115_v18, %v3110_v20  ;;  %v10401_v22 = vmul.u32.u64.high %v3115_v18, %v3110_v20, %v10400_v21  ;;  %v2968_v8 = vshrl.u32 %v2967_v1, 23 }
 0x2c2   : > { %v7521_v10 = vadd.s32 4294967294, %v2826_v48  ;;  %v2844_v31 = vsub.s32 4, %v10375_v42  ;;  %v10405_v0 = vmul.u32.u64.low %v3115_v18, %v3114_v12  ;;  %v10406_v4 = vmul.u32.u64.high %v3115_v18, %v3114_v12, %v10405_v0 }
 0x2c3   : > { %vm2955_vm8 = vcmp.lt.s32.totalorder %v10385_v52, 2  ;;  %vm10411_vm9 = vcmp.le.f32.partialorder %v2758_v5, 0.7853982  ;;  %vm2760_vm10 = vcmp.lt.s32.totalorder %v10154_v33, 0  ;;  %v7527_v6 = vadd.s32 4294967169, %v2968_v8 }
 0x2c4   : > { %vm2956_vm11 = vcmp.eq.s32.totalorder %v10385_v52, 0  ;;  %vm2959_vm12 = vcmp.eq.s32.totalorder %v10385_v52, 2  ;;  %vm7522_vm13 = vcmp.lt.s32.totalorder %v7521_v10, 0  ;;  %v3106_v13 = vsel %vm3100_vm6, %v3103_v19, %v3105_v61 }
 0x2c5   : > { %v2829_v3 = vsel %vm7522_vm13, 0, %v7521_v10  ;;  %v3125_v14 = vadd.s32 1, %v10401_v22  ;;  %v2964_v28 = vand.u32 2147483647, %v10367_v53  ;;  %v2974_v2 = vadd.s32 1, %v7527_v6 }
 0x2c6   : > { %v2814_v5 = vadd.s32 %v10316_v40, %v10336_v9  ;;  %v2830_v26 = vsub.s32 32, %v2829_v3  ;;  %v2834_v24 = vsub.s32 4294967266, %v2829_v3  ;;  %v2845_v34 = vsel %vm2760_vm10, %v2844_v31, %v10375_v42  ;;  %v365_v9 = vpop.permute.xlu1 %364 }
 0x2c7   : > { %v2831_v11 = vshll.u32 %v10387_v16, %v2829_v3  ;;  %v3122_v55 = vmul.u32 %v3115_v18, %v3106_v13  ;;  %vm3124_vm14 = vc.u32 %v10406_v4, %v10400_v21  ;;  %vm2975_vm15 = vcmp.gt.s32.totalorder %v2974_v2, 0 }
 0x2c8   : > { %v8088_v35 = vpop.eup %8087  ;;  %v2832_v32 = vshrl.u32 %v2814_v5, %v2830_v26  ;;  %v2835_v23 = vadd.s32 127, %v2834_v24  ;;  %v3126_v40 = vsel %vm3124_vm14, %v3125_v14, %v10401_v22  ;;  %v2971_v42 = vand.u32 8388607, %v2964_v28 }
 0x2c9   : > { %v8090_v7 = vpop.eup %8089  ;;  %v2960_v59 = vxor.u32 2147483648, %v8088_v35  ;;  %v3127_v27 = vadd.s32 %v3126_v40, %v3122_v55  ;;  %v2976_v50 = vsel %vm2975_vm15, %v2974_v2, 0  ;;  %v2847_v30 = vsel %vm10411_vm9, 0, %v2845_v34 }
 0x2ca   : > { %v2957_v63 = vxor.u32 2147483648, %v8090_v7  ;;  %v2833_v18 = vor.u32 %v2832_v32, %v2831_v11  ;;  %v2836_v57 = vshll.u32 %v2835_v23, 23  ;;  %v2978_v17 = vand.u32 31, %v2976_v50 }
 0x2cb   : > { %v2961_v16 = vsel %vm2959_vm12, %v2960_v59, %v8090_v7  ;;  %v3128_v38 = vadd.s32 536870912, %v3127_v27  ;;  %v588_v25 = vmul.f32 %v10441_v44, %v365_v9  ;;  %vm2953_vm0 = vweird.f32 %v10067_v41 }
 0x2cc   : > { %v2958_v1 = vsel %vm2956_vm11, %v8088_v35, %v2957_v63  ;;  %v2837_v36 = vor.u32 4788187, %v2836_v57  ;;  %v2979_v62 = vsub.s32 32, %v2978_v17  ;;  %v2840_v48 = vcvt.s32.f32 %v2833_v18 }
 0x2cd   : > { %v2962_v58 = vsel %vm2955_vm8, %v2958_v1, %v2961_v16  ;;  %v10447_v46 = vshrl.u32 %v3128_v38, 30  ;;  %v10450_v61 = vand.u32 3, %v2847_v30  ;;  %v2972_v20 = vor.u32 8388608, %v2971_v42 }
 0x2ce   : > { %v2963_v19 = vsel %vm2953_vm0, nan, %v2962_v58  ;;  %v2838_v15 = vand.u32 2147483647, %v2837_v36  ;;  %v2981_v12 = vshll.u32 %v8349_v39, %v2978_v17  ;;  %v2982_v41 = vshrl.u32 %v8350_v43, %v2979_v62 }
 0x2cf   : > { %7311 = vst [vmem:[%s8782_s8 + $0xa8] sm:$0xff] %v2963_v19  ;;  %v3130_v37 = vshll.u32 %v10447_v46, 30  ;;  %v10456_v52 = vadd.f32 %v10363_v60, %v588_v25  ;;  %v2985_v8 = vshrl.u32 %v8351_v45, %v2979_v62  ;;  %v2988_v10 = vshrl.u32 %v8352_v47, %v2979_v62 }
 0x2d0   : > { %v2841_v22 = vmul.f32 %v2840_v48, %v2838_v15  ;;  %v2991_v31 = vshrl.u32 %v8353_v49, %v2979_v62  ;;  %v2977_v6 = vshrl.u32 %v2976_v50, 5  ;;  %v2984_v13 = vshll.u32 %v8350_v43, %v2978_v17 }
 0x2d1   : > { %v10461_v0 = vsub.s32 %v3127_v27, %v3130_v37  ;;  %v2987_v3 = vshll.u32 %v8351_v45, %v2978_v17  ;;  %v2983_v2 = vor.u32 %v2982_v41, %v2981_v12  ;;  %v2990_v5 = vshll.u32 %v8352_v47, %v2978_v17 }
 0x2d2   : > { %v2842_v14 = vxor.u32 2147483648, %v2841_v22  ;;  %v10466_v26 = vshll.u32 %v2972_v20, 8  ;;  %v2986_v34 = vor.u32 %v2985_v8, %v2984_v13  ;;  %v2994_v11 = vshrl.u32 %v8354_v56, %v2979_v62 }
 0x2d3   : > { %v3133_v24 = vsub.s32 0, %v10461_v0  ;;  %v2989_v35 = vor.u32 %v2988_v10, %v2987_v3  ;;  %v2992_v7 = vor.u32 %v2991_v31, %v2990_v5  ;;  %v2993_v59 = vshll.u32 %v8353_v49, %v2978_v17  ;;  %v360_v5 = vpop.permute.xlu0 %359 }
 0x2d4   : > { %v2843_v55 = vsel %vm2760_vm10, %v2842_v14, %v2841_v22  ;;  %v3276_v32 = vand.u32 2139095040, %v10456_v52  ;;  %v2980_v9 = vshrl.u32 %v8349_v39, %v2979_v62  ;;  %vm2996_vm1 = vcmp.lt.s32.totalorder %v2977_v6, 1 }
 0x2d5   : > { %v2846_v23 = vsel %vm10411_vm9, %v10154_v33, %v2843_v55  ;;  %v7532_v40 = vmin.u32 %v3133_v24, %v10461_v0  ;;  %v2995_v63 = vor.u32 %v2994_v11, %v2993_v59  ;;  %vm2997_vm2 = vcmp.lt.s32.totalorder %v2977_v6, 2 }
 0x2d6   : > { %8091 = vcosq.f32 %v2846_v23  ;;  %vm2999_vm3 = vcmp.lt.s32.totalorder %v2977_v6, 4  ;;  %vm3069_vm4 = vcmp.lt.s32.totalorder %v10240_v54, 0  ;;  %v3004_v50 = vsel %vm2996_vm1, %v2983_v2, %v2986_v34 }
 0x2d7   : > { %8093 = vsinq.f32 %v2846_v23  ;;  %v3135_v27 = vclz %v7532_v40  ;;  %v3001_v42 = vsel %vm2999_vm3, %v2989_v35, 2102212464  ;;  %vm2998_vm5 = vcmp.lt.s32.totalorder %v2977_v6, 3 }
 0x2d8   : > { %v3005_v16 = vsel %vm2999_vm3, %v2992_v7, 920167782  ;;  %v3008_v18 = vsel %vm2996_vm1, %v2986_v34, %v2989_v35  ;;  %v3009_v29 = vsel %vm2999_vm3, %v2995_v63, 1326507024  ;;  %v3000_v30 = vsel %vm2996_vm1, %v2980_v9, %v2983_v2 }
 0x2d9   : > { %v7533_v57 = vadd.s32 4294967294, %v3135_v27  ;;  %v3006_v1 = vsel %vm2998_vm5, %v2989_v35, %v3005_v16  ;;  %v3010_v38 = vsel %vm2998_vm5, %v2992_v7, %v3009_v29  ;;  %v3002_v17 = vsel %vm2998_vm5, %v2986_v34, %v3001_v42  ;;  %v375_v34 = vpop.permute.xlu1 %374 }
 0x2da   : > { %v3007_v25 = vsel %vm2997_vm2, %v3004_v50, %v3006_v1  ;;  %v3011_v58 = vsel %vm2997_vm2, %v3008_v18, %v3010_v38  ;;  %v3277_v36 = vshrl.u32 %v3276_v32, 23  ;;  %vm10484_vm6 = vcmp.le.f32.partialorder %v3067_v51, 0.7853982 }
 0x2db   : > { %vm7534_vm7 = vcmp.lt.s32.totalorder %v7533_v57, 0  ;;  %v3153_v62 = vsub.s32 4, %v10447_v46  ;;  %v10490_v15 = vmul.u32.u64.low %v10466_v26, %v3011_v58  ;;  %v10491_v48 = vmul.u32.u64.high %v10466_v26, %v3011_v58, %v10490_v15 }
 0x2dc   : > { %vm2852_vm8 = vcmp.lt.s32.totalorder %v10450_v61, 2  ;;  %v3138_v20 = vsel %vm7534_vm7, 0, %v7533_v57  ;;  %v10495_v37 = vmul.u32.u64.low %v10466_v26, %v3007_v25  ;;  %v10496_v12 = vmul.u32.u64.high %v10466_v26, %v3007_v25, %v10495_v37 }
 0x2dd   : > { %v7539_v41 = vadd.s32 4294967169, %v3277_v36  ;;  %vm2850_vm9 = vweird.f32 %v10154_v33  ;;  %v3123_v51 = vadd.s32 %v10400_v21, %v10406_v4  ;;  %v3139_v22 = vsub.s32 32, %v3138_v20 }
 0x2de   : > { %v3143_v8 = vsub.s32 4294967266, %v3138_v20  ;;  %v3003_v10 = vsel %vm2997_vm2, %v3000_v30, %v3002_v17  ;;  %vm2853_vm10 = vcmp.eq.s32.totalorder %v10450_v61, 0  ;;  %vm2856_vm11 = vcmp.eq.s32.totalorder %v10450_v61, 2 }
 0x2df   : > { %v3273_v31 = vand.u32 2147483647, %v10456_v52  ;;  %v3283_v13 = vadd.s32 1, %v7539_v41  ;;  %v3140_v3 = vshll.u32 %v10461_v0, %v3138_v20  ;;  %v3141_v14 = vshrl.u32 %v3123_v51, %v3139_v22 }
 0x2e0   : > { %v3144_v2 = vadd.s32 127, %v3143_v8  ;;  %vm3021_vm12 = vc.u32 %v10491_v48, %v10495_v37  ;;  %v8092_v21 = vpop.eup %8091  ;;  %v3154_v4 = vsel %vm3069_vm4, %v3153_v62, %v10447_v46  ;;  %v3019_v6 = vmul.u32 %v10466_v26, %v3003_v10 }
 0x2e1   : > { %v3022_v24 = vadd.s32 1, %v10496_v12  ;;  %vm3284_vm13 = vcmp.gt.s32.totalorder %v3283_v13, 0  ;;  %v8094_v35 = vpop.eup %8093  ;;  %v2857_v11 = vxor.u32 2147483648, %v8092_v21  ;;  %v3142_v0 = vor.u32 %v3141_v14, %v3140_v3 }
 0x2e2   : > { %v3145_v55 = vshll.u32 %v3144_v2, 23  ;;  %v3285_v7 = vsel %vm3284_vm13, %v3283_v13, 0  ;;  %v2854_v59 = vxor.u32 2147483648, %v8094_v35  ;;  %v587_v40 = vmul.f32 %v10441_v44, %v360_v5 }
 0x2e3   : > { %v3023_v32 = vsel %vm3021_vm12, %v3022_v24, %v10496_v12  ;;  %v3287_v23 = vand.u32 31, %v3285_v7  ;;  %v2858_v46 = vsel %vm2856_vm11, %v2857_v11, %v8094_v35  ;;  %v10519_v63 = vmul.f32 %v10441_v44, %v375_v34 }
 0x2e4   : > { %v3146_v26 = vor.u32 4788187, %v3145_v55  ;;  %v3024_v9 = vadd.s32 %v3023_v32, %v3019_v6  ;;  %v2855_v27 = vsel %vm2853_vm10, %v8092_v21, %v2854_v59  ;;  %v3156_v42 = vsel %vm10484_vm6, 0, %v3154_v4 }
 0x2e5   : > { %v3280_v50 = vand.u32 8388607, %v3273_v31  ;;  %v3288_v16 = vsub.s32 32, %v3287_v23  ;;  %v2859_v18 = vsel %vm2852_vm8, %v2855_v27, %v2858_v46  ;;  %v3149_v57 = vcvt.s32.f32 %v3142_v0 }
 0x2e6   : > { %v3147_v29 = vand.u32 2147483647, %v3146_v26  ;;  %v3025_v30 = vadd.s32 536870912, %v3024_v9  ;;  %v2860_v1 = vsel %vm2850_vm9, nan, %v2859_v18  ;;  %v3290_v38 = vshll.u32 %v8349_v39, %v3287_v23 }
 0x2e7   : > { %v3291_v17 = vshrl.u32 %v8350_v43, %v3288_v16  ;;  %v3294_v25 = vshrl.u32 %v8351_v45, %v3288_v16  ;;  %7310 = vst [vmem:[%s8782_s8 + $0xa0] sm:$0xff] %v2860_v1  ;;  %v3293_v62 = vshll.u32 %v8350_v43, %v3287_v23  ;;  %v3297_v61 = vshrl.u32 %v8352_v47, %v3288_v16 }
 0x2e8   : > { %v3150_v58 = vmul.f32 %v3149_v57, %v3147_v29  ;;  %v10535_v36 = vshrl.u32 %v3025_v30, 30  ;;  %v3286_v15 = vshrl.u32 %v3285_v7, 5  ;;  %v3296_v20 = vshll.u32 %v8351_v45, %v3287_v23 }
 0x2e9   : > { %v3299_v33 = vshll.u32 %v8352_v47, %v3287_v23  ;;  %v3300_v12 = vshrl.u32 %v8353_v49, %v3288_v16  ;;  %v3292_v22 = vor.u32 %v3291_v17, %v3290_v38  ;;  %v3295_v8 = vor.u32 %v3294_v25, %v3293_v62 }
 0x2ea   : > { %v3151_v41 = vxor.u32 2147483648, %v3150_v58  ;;  %v3027_v51 = vshll.u32 %v10535_v36, 30  ;;  %v3298_v10 = vor.u32 %v3297_v61, %v3296_v20  ;;  %v3302_v3 = vshll.u32 %v8353_v49, %v3287_v23 }
 0x2eb   : > { %v3301_v13 = vor.u32 %v3300_v12, %v3299_v33  ;;  %v3303_v14 = vshrl.u32 %v8354_v56, %v3288_v16  ;;  %v10547_v5 = vand.u32 3, %v3156_v42  ;;  %v3281_v4 = vor.u32 8388608, %v3280_v50 }
 0x2ec   : > { %v3152_v2 = vsel %vm3069_vm4, %v3151_v41, %v3150_v58  ;;  %v10549_v21 = vsub.s32 %v3024_v9, %v3027_v51  ;;  %v3289_v24 = vshrl.u32 %v8349_v39, %v3288_v16  ;;  %v10556_v35 = vadd.f32 %v10363_v60, %v587_v40 }
 0x2ed   : > { %v3155_v6 = vsel %vm10484_vm6, %v10240_v54, %v3152_v2  ;;  %v3304_v34 = vor.u32 %v3303_v14, %v3302_v3  ;;  %vm3305_vm14 = vcmp.lt.s32.totalorder %v3286_v15, 1  ;;  %vm3308_vm15 = vcmp.lt.s32.totalorder %v3286_v15, 4 }
 0x2ee   : > { %8095 = vcosq.f32 %v3155_v6  ;;  %v3030_v11 = vsub.s32 0, %v10549_v21  ;;  %v3310_v0 = vsel %vm3308_vm15, %v3298_v10, 2102212464  ;;  %v3313_v55 = vsel %vm3305_vm14, %v3292_v22, %v3295_v8 }
 0x2ef   : > { %8097 = vsinq.f32 %v3155_v6  ;;  %v3314_v7 = vsel %vm3308_vm15, %v3301_v13, 920167782  ;;  %vm3306_vm0 = vcmp.lt.s32.totalorder %v3286_v15, 2  ;;  %vm3307_vm1 = vcmp.lt.s32.totalorder %v3286_v15, 3 }
 0x2f0   : > { %v7528_v59 = vmin.u32 %v3030_v11, %v10549_v21  ;;  %v3321_v19 = vshll.u32 %v3281_v4, 8  ;;  %v3309_v32 = vsel %vm3305_vm14, %v3289_v24, %v3292_v22  ;;  %v3315_v23 = vsel %vm3307_vm1, %v3298_v10, %v3314_v7 }
 0x2f1   : > { %v3317_v46 = vsel %vm3305_vm14, %v3295_v8, %v3298_v10  ;;  %v3318_v26 = vsel %vm3308_vm15, %v3304_v34, 1326507024  ;;  %v3311_v9 = vsel %vm3307_vm1, %v3295_v8, %v3310_v0  ;;  %v3316_v27 = vsel %vm3306_vm0, %v3313_v55, %v3315_v23 }
 0x2f2   : > { %v3032_v40 = vclz %v7528_v59  ;;  %v3319_v42 = vsel %vm3307_vm1, %v3301_v13, %v3318_v26  ;;  %v10562_v16 = vmul.u32.u64.low %v3321_v19, %v3316_v27  ;;  %v10563_v18 = vmul.u32.u64.high %v3321_v19, %v3316_v27, %v10562_v16 }
 0x2f3   : > { %v3320_v50 = vsel %vm3306_vm0, %v3317_v46, %v3319_v42  ;;  %vm2966_vm2 = vcmp.lt.s32.totalorder %v10367_v53, 0  ;;  %vm3159_vm3 = vweird.f32 %v10240_v54  ;;  %vm3161_vm4 = vcmp.lt.s32.totalorder %v10547_v5, 2  ;;  %v370_v46 = vpop.permute.xlu0 %369 }
 0x2f4   : > { %v7529_v29 = vadd.s32 4294967294, %v3032_v40  ;;  %v10567_v57 = vmul.u32.u64.low %v3321_v19, %v3320_v50  ;;  %v10568_v30 = vmul.u32.u64.high %v3321_v19, %v3320_v50, %v10567_v57  ;;  %vm3162_vm5 = vcmp.eq.s32.totalorder %v10547_v5, 0 }
 0x2f5   : > { %v3312_v1 = vsel %vm3306_vm0, %v3309_v32, %v3311_v9  ;;  %v3173_v38 = vand.u32 2139095040, %v10556_v35  ;;  %vm3165_vm6 = vcmp.eq.s32.totalorder %v10547_v5, 2  ;;  %v3020_v17 = vadd.s32 %v10495_v37, %v10491_v48 }
 0x2f6   : > { %vm7530_vm7 = vcmp.lt.s32.totalorder %v7529_v29, 0  ;;  %v10580_v25 = vadd.f32 %v10363_v60, %v10519_v63  ;;  %v3331_v62 = vadd.s32 1, %v10563_v18  ;;  %v3170_v61 = vand.u32 2147483647, %v10556_v35 }
 0x2f7   : > { %v3035_v58 = vsel %vm7530_vm7, 0, %v7529_v29  ;;  %v3174_v20 = vshrl.u32 %v3173_v38, 23  ;;  %v3050_v41 = vsub.s32 4, %v10535_v36  ;;  %v3328_v51 = vmul.u32 %v3321_v19, %v3312_v1 }
 0x2f8   : > { %v8096_v15 = vpop.eup %8095  ;;  %v3036_v33 = vsub.s32 32, %v3035_v58  ;;  %v3040_v12 = vsub.s32 4294967266, %v3035_v58  ;;  %v3037_v48 = vshll.u32 %v10549_v21, %v3035_v58  ;;  %vm3330_vm8 = vc.u32 %v10568_v30, %v10562_v16 }
 0x2f9   : > { %v8098_v22 = vpop.eup %8097  ;;  %v3166_v8 = vxor.u32 2147483648, %v8096_v15  ;;  %v7535_v37 = vadd.s32 4294967169, %v3174_v20  ;;  %v3332_v3 = vsel %vm3330_vm8, %v3331_v62, %v10563_v18  ;;  %v3177_v4 = vand.u32 8388607, %v3170_v61 }
 0x2fa   : > { %v3163_v63 = vxor.u32 2147483648, %v8098_v22  ;;  %v3038_v10 = vshrl.u32 %v3020_v17, %v3036_v33  ;;  %v3041_v13 = vadd.s32 127, %v3040_v12  ;;  %v3333_v2 = vadd.s32 %v3332_v3, %v3328_v51 }
 0x2fb   : > { %v3167_v14 = vsel %vm3165_vm6, %v3166_v8, %v8098_v22  ;;  %v3180_v6 = vadd.s32 1, %v7535_v37  ;;  %v3051_v11 = vsel %vm2966_vm2, %v3050_v41, %v10535_v36  ;;  %vm10602_vm9 = vcmp.le.f32.partialorder %v2964_v28, 0.7853982 }
 0x2fc   : > { %v3164_v21 = vsel %vm3162_vm5, %v8096_v15, %v3163_v63  ;;  %v3039_v24 = vor.u32 %v3038_v10, %v3037_v48  ;;  %v3042_v34 = vshll.u32 %v3041_v13, 23  ;;  %v3334_v7 = vadd.s32 536870912, %v3333_v2 }
 0x2fd   : > { %v3168_v0 = vsel %vm3161_vm4, %v3164_v21, %v3167_v14  ;;  %vm3181_vm10 = vcmp.gt.s32.totalorder %v3180_v6, 0  ;;  %v3482_v23 = vand.u32 2139095040, %v10580_v25  ;;  %v3053_v36 = vsel %vm10602_vm9, 0, %v3051_v11 }
 0x2fe   : > { %v3169_v59 = vsel %vm3159_vm3, nan, %v3168_v0  ;;  %v3043_v19 = vor.u32 4788187, %v3042_v34  ;;  %v3182_v32 = vsel %vm3181_vm10, %v3180_v6, 0  ;;  %v10612_v5 = vshrl.u32 %v3334_v7, 30 }
 0x2ff   : > { %7313 = vst [vmem:[%s8782_s8 + $0xb8] sm:$0xff] %v3169_v59  ;;  %v3178_v28 = vor.u32 8388608, %v3177_v4  ;;  %v3184_v26 = vand.u32 31, %v3182_v32  ;;  %v3046_v9 = vcvt.s32.f32 %v3039_v24  ;;  %v10616_v54 = vmul.f32 %v10441_v44, %v370_v46 }
 0x300   : > { %v3044_v40 = vand.u32 2147483647, %v3043_v19  ;;  %v3336_v27 = vshll.u32 %v10612_v5, 30  ;;  %v10618_v18 = vand.u32 3, %v3053_v36  ;;  %v3479_v29 = vand.u32 2147483647, %v10580_v25 }
 0x301   : > { %v3185_v42 = vsub.s32 32, %v3184_v26  ;;  %v3483_v57 = vshrl.u32 %v3482_v23, 23  ;;  %v3183_v38 = vshrl.u32 %v3182_v32, 5  ;;  %v10624_v58 = vshll.u32 %v3178_v28, 8 }
 0x302   : > { %v3047_v50 = vmul.f32 %v3046_v9, %v3044_v40  ;;  %v10621_v1 = vsub.s32 %v3333_v2, %v3336_v27  ;;  %v3187_v20 = vshll.u32 %v8349_v39, %v3184_v26  ;;  %v3190_v41 = vshll.u32 %v8350_v43, %v3184_v26 }
 0x303   : > { %v3188_v17 = vshrl.u32 %v8350_v43, %v3185_v42  ;;  %v3191_v15 = vshrl.u32 %v8351_v45, %v3185_v42  ;;  %v3194_v33 = vshrl.u32 %v8352_v47, %v3185_v42  ;;  %v3193_v51 = vshll.u32 %v8351_v45, %v3184_v26 }
 0x304   : > { %v3048_v62 = vxor.u32 2147483648, %v3047_v50  ;;  %v3339_v12 = vsub.s32 0, %v10621_v1  ;;  %v3197_v22 = vshrl.u32 %v8353_v49, %v3185_v42  ;;  %v3196_v37 = vshll.u32 %v8352_v47, %v3184_v26 }
 0x305   : > { %v3189_v48 = vor.u32 %v3188_v17, %v3187_v20  ;;  %v7547_v63 = vadd.s32 4294967169, %v3483_v57  ;;  %v3192_v3 = vor.u32 %v3191_v15, %v3190_v41  ;;  %v3195_v14 = vor.u32 %v3194_v33, %v3193_v51 }
 0x306   : > { %v3049_v8 = vsel %vm2966_vm2, %v3048_v62, %v3047_v50  ;;  %v7540_v13 = vmin.u32 %v3339_v12, %v10621_v1  ;;  %v3198_v2 = vor.u32 %v3197_v22, %v3196_v37  ;;  %v3199_v4 = vshll.u32 %v8353_v49, %v3184_v26 }
 0x307   : > { %v3052_v10 = vsel %vm10602_vm9, %v10367_v53, %v3049_v8  ;;  %v3200_v6 = vshrl.u32 %v8354_v56, %v3185_v42  ;;  %v3186_v24 = vshrl.u32 %v8349_v39, %v3185_v42  ;;  %vm3202_vm11 = vcmp.lt.s32.totalorder %v3183_v38, 1 }
 0x308   : > { %8099 = vcosq.f32 %v3052_v10  ;;  %v3341_v21 = vclz %v7540_v13  ;;  %vm3203_vm12 = vcmp.lt.s32.totalorder %v3183_v38, 2  ;;  %vm3204_vm13 = vcmp.lt.s32.totalorder %v3183_v38, 3 }
 0x309   : > { %8101 = vsinq.f32 %v3052_v10  ;;  %v3201_v34 = vor.u32 %v3200_v6, %v3199_v4  ;;  %vm3205_vm14 = vcmp.lt.s32.totalorder %v3183_v38, 4  ;;  %v3210_v55 = vsel %vm3202_vm11, %v3189_v48, %v3192_v3 }
 0x30a   : > { %v7541_v11 = vadd.s32 4294967294, %v3341_v21  ;;  %v3207_v0 = vsel %vm3205_vm14, %v3195_v14, 2102212464  ;;  %v3211_v7 = vsel %vm3205_vm14, %v3198_v2, 920167782  ;;  %vm3275_vm15 = vcmp.lt.s32.totalorder %v10456_v52, 0 }
 0x30b   : > { %v3206_v59 = vsel %vm3202_vm11, %v3186_v24, %v3189_v48  ;;  %v3212_v19 = vsel %vm3204_vm13, %v3195_v14, %v3211_v7  ;;  %v3214_v32 = vsel %vm3202_vm11, %v3192_v3, %v3195_v14  ;;  %v3215_v23 = vsel %vm3205_vm14, %v3201_v34, 1326507024 }
 0x30c   : > { %vm7542_vm0 = vcmp.lt.s32.totalorder %v7541_v11, 0  ;;  %v3208_v46 = vsel %vm3204_vm13, %v3192_v3, %v3207_v0  ;;  %v3213_v36 = vsel %vm3203_vm12, %v3210_v55, %v3212_v19  ;;  %v3216_v28 = vsel %vm3204_vm13, %v3198_v2, %v3215_v23 }
 0x30d   : > { %v3344_v26 = vsel %vm7542_vm0, 0, %v7541_v11  ;;  %v3217_v40 = vsel %vm3203_vm12, %v3214_v32, %v3216_v28  ;;  %v10647_v9 = vmul.u32.u64.low %v10624_v58, %v3213_v36  ;;  %v10648_v27 = vmul.u32.u64.high %v10624_v58, %v3213_v36, %v10647_v9 }
 0x30e   : > { %vm3056_vm1 = vweird.f32 %v10367_v53  ;;  %vm3058_vm2 = vcmp.lt.s32.totalorder %v10618_v18, 2  ;;  %vm10655_vm3 = vcmp.le.f32.partialorder %v3273_v31, 0.7853982  ;;  %v3329_v50 = vadd.s32 %v10562_v16, %v10568_v30 }
 0x30f   : > { %v3345_v57 = vsub.s32 32, %v3344_v26  ;;  %v3349_v17 = vsub.s32 4294967266, %v3344_v26  ;;  %v3359_v62 = vsub.s32 4, %v10612_v5  ;;  %v3489_v33 = vadd.s32 1, %v7547_v63 }
 0x310   : > { %v10663_v20 = vmul.u32.u64.low %v10624_v58, %v3217_v40  ;;  %v10664_v15 = vmul.u32.u64.high %v10624_v58, %v3217_v40, %v10663_v20  ;;  %v3346_v12 = vshll.u32 %v10621_v1, %v3344_v26  ;;  %v3209_v31 = vsel %vm3203_vm12, %v3206_v59, %v3208_v46 }
 0x311   : > { %v3347_v41 = vshrl.u32 %v3329_v50, %v3345_v57  ;;  %v3350_v51 = vadd.s32 127, %v3349_v17  ;;  %vm3059_vm4 = vcmp.eq.s32.totalorder %v10618_v18, 0  ;;  %v3228_v16 = vadd.s32 1, %v10648_v27 }
 0x312   : > { %v8100_v22 = vpop.eup %8099  ;;  %v3486_v30 = vand.u32 8388607, %v3479_v29  ;;  %vm3490_vm5 = vcmp.gt.s32.totalorder %v3489_v33, 0  ;;  %vm3062_vm6 = vcmp.eq.s32.totalorder %v10618_v18, 2  ;;  %v3225_v1 = vmul.u32 %v10624_v58, %v3209_v31 }
 0x313   : > { %v8102_v8 = vpop.eup %8101  ;;  %v3063_v48 = vxor.u32 2147483648, %v8100_v22  ;;  %v3348_v37 = vor.u32 %v3347_v41, %v3346_v12  ;;  %v3351_v10 = vshll.u32 %v3350_v51, 23  ;;  %v3491_v63 = vsel %vm3490_vm5, %v3489_v33, 0 }
 0x314   : > { %v3060_v13 = vxor.u32 2147483648, %v8102_v8  ;;  %vm3227_vm7 = vc.u32 %v10664_v15, %v10647_v9  ;;  %v3360_v14 = vsel %vm3275_vm15, %v3359_v62, %v10612_v5  ;;  %v3487_v21 = vor.u32 8388608, %v3486_v30 }
 0x315   : > { %v3064_v38 = vsel %vm3062_vm6, %v3063_v48, %v8102_v8  ;;  %v3352_v3 = vor.u32 4788187, %v3351_v10  ;;  %v3229_v2 = vsel %vm3227_vm7, %v3228_v16, %v10648_v27  ;;  %v3493_v24 = vand.u32 31, %v3491_v63 }
 0x316   : > { %v3061_v4 = vsel %vm3059_vm4, %v8100_v22, %v3060_v13  ;;  %v3230_v6 = vadd.s32 %v3229_v2, %v3225_v1  ;;  %v3355_v11 = vcvt.s32.f32 %v3348_v37  ;;  %v10686_v0 = vadd.f32 %v10363_v60, %v10616_v54 }
 0x317   : > { %v3065_v58 = vsel %vm3058_vm2, %v3061_v4, %v3064_v38  ;;  %v3353_v34 = vand.u32 2147483647, %v3352_v3  ;;  %v3362_v55 = vsel %vm10655_vm3, 0, %v3360_v14  ;;  %v3494_v59 = vsub.s32 32, %v3493_v24 }
 0x318   : > { %v3066_v5 = vsel %vm3056_vm1, nan, %v3065_v58  ;;  %v3231_v7 = vadd.s32 536870912, %v3230_v6  ;;  %v3492_v32 = vshrl.u32 %v3491_v63, 5  ;;  %v3496_v18 = vshll.u32 %v8349_v39, %v3493_v24 }
 0x319   : > { %7312 = vst [vmem:[%s8782_s8 + $0xb0] sm:$0xff] %v3066_v5  ;;  %v3356_v19 = vmul.f32 %v3355_v11, %v3353_v34  ;;  %v3499_v23 = vshll.u32 %v8350_v43, %v3493_v24  ;;  %v3497_v36 = vshrl.u32 %v8350_v43, %v3494_v59  ;;  %v3500_v60 = vshrl.u32 %v8351_v45, %v3494_v59 }
 0x31a   : > { %v3232_v46 = vshrl.u32 %v3231_v7, 30  ;;  %v3502_v53 = vshll.u32 %v8351_v45, %v3493_v24  ;;  %v3503_v28 = vshrl.u32 %v8352_v47, %v3494_v59  ;;  %v3505_v26 = vshll.u32 %v8352_v47, %v3493_v24 }
 0x31b   : > { %v3357_v54 = vxor.u32 2147483648, %v3356_v19  ;;  %v3506_v40 = vshrl.u32 %v8353_v49, %v3494_v59  ;;  %v3498_v50 = vor.u32 %v3497_v36, %v3496_v18  ;;  %v3501_v57 = vor.u32 %v3500_v60, %v3499_v23 }
 0x31c   : > { %v3233_v27 = vshll.u32 %v3232_v46, 30  ;;  %v3508_v17 = vshll.u32 %v8353_v49, %v3493_v24  ;;  %v3504_v20 = vor.u32 %v3503_v28, %v3502_v53  ;;  %v3509_v12 = vshrl.u32 %v8354_v56, %v3494_v59 }
 0x31d   : > { %v3358_v62 = vsel %vm3275_vm15, %v3357_v54, %v3356_v19  ;;  %v3507_v33 = vor.u32 %v3506_v40, %v3505_v26  ;;  %v10708_v51 = vand.u32 3, %v3362_v55  ;;  %vm3172_vm8 = vcmp.lt.s32.totalorder %v10556_v35, 0 }
 0x31e   : > { %v3361_v41 = vsel %vm10655_vm3, %v10456_v52, %v3358_v62  ;;  %v10711_v31 = vsub.s32 %v3230_v6, %v3233_v27  ;;  %v3510_v22 = vor.u32 %v3509_v12, %v3508_v17  ;;  %v3527_v16 = vshll.u32 %v3487_v21, 8 }
 0x31f   : > { %8103 = vcosq.f32 %v3361_v41  ;;  %v3379_v30 = vand.u32 2139095040, %v10686_v0  ;;  %vm10716_vm9 = vcmp.le.f32.partialorder %v3170_v61, 0.7853982  ;;  %vm3511_vm10 = vcmp.lt.s32.totalorder %v3492_v32, 1 }
 0x320   : > { %8105 = vsinq.f32 %v3361_v41  ;;  %v3236_v42 = vsub.s32 0, %v10711_v31  ;;  %vm3514_vm11 = vcmp.lt.s32.totalorder %v3492_v32, 4  ;;  %v3495_v48 = vshrl.u32 %v8349_v39, %v3494_v59 }
 0x321   : > { %v3516_v37 = vsel %vm3514_vm11, %v3504_v20, 2102212464  ;;  %v3519_v10 = vsel %vm3511_vm10, %v3498_v50, %v3501_v57  ;;  %v3520_v63 = vsel %vm3514_vm11, %v3507_v33, 920167782  ;;  %v3256_v1 = vsub.s32 4, %v3232_v46 }
 0x322   : > { %v7536_v13 = vmin.u32 %v3236_v42, %v10711_v31  ;;  %vm3513_vm12 = vcmp.lt.s32.totalorder %v3492_v32, 3  ;;  %v3523_v38 = vsel %vm3511_vm10, %v3501_v57, %v3504_v20  ;;  %vm3512_vm13 = vcmp.lt.s32.totalorder %v3492_v32, 2  ;;  %v385_v42 = vpop.permute.xlu1 %384 }
 0x323   : > { %v3515_v3 = vsel %vm3511_vm10, %v3495_v48, %v3498_v50  ;;  %v3521_v61 = vsel %vm3513_vm12, %v3504_v20, %v3520_v63  ;;  %v3524_v14 = vsel %vm3514_vm11, %v3510_v22, 1326507024  ;;  %v3517_v4 = vsel %vm3513_vm12, %v3501_v57, %v3516_v37 }
 0x324   : > { %v3238_v2 = vclz %v7536_v13  ;;  %v3522_v6 = vsel %vm3512_vm13, %v3519_v10, %v3521_v61  ;;  %v3525_v21 = vsel %vm3513_vm12, %v3507_v33, %v3524_v14  ;;  %v3380_v11 = vshrl.u32 %v3379_v30, 23 }
 0x325   : > { %v3526_v24 = vsel %vm3512_vm13, %v3523_v38, %v3525_v21  ;;  %v10725_v58 = vmul.u32.u64.low %v3527_v16, %v3522_v6  ;;  %v10726_v34 = vmul.u32.u64.high %v3527_v16, %v3522_v6, %v10725_v58  ;;  %v3257_v55 = vsel %vm3172_vm8, %v3256_v1, %v3232_v46 }
 0x326   : > { %v7537_v5 = vadd.s32 4294967294, %v3238_v2  ;;  %v10731_v7 = vmul.u32.u64.low %v3527_v16, %v3526_v24  ;;  %v10732_v59 = vmul.u32.u64.high %v3527_v16, %v3526_v24, %v10731_v7  ;;  %vm3367_vm14 = vcmp.lt.s32.totalorder %v10708_v51, 2 }
 0x327   : > { %vm3368_vm15 = vcmp.eq.s32.totalorder %v10708_v51, 0  ;;  %v3518_v19 = vsel %vm3512_vm13, %v3515_v3, %v3517_v4  ;;  %v7543_v18 = vadd.s32 4294967169, %v3380_v11  ;;  %vm3371_vm0 = vcmp.eq.s32.totalorder %v10708_v51, 2 }
 0x328   : > { %v3226_v23 = vadd.s32 %v10647_v9, %v10664_v15  ;;  %vm7538_vm1 = vcmp.lt.s32.totalorder %v7537_v5, 0  ;;  %v3376_v36 = vand.u32 2147483647, %v10686_v0  ;;  %v3259_v53 = vsel %vm10716_vm9, 0, %v3257_v55 }
 0x329   : > { %v8104_v60 = vpop.eup %8103  ;;  %v3241_v46 = vsel %vm7538_vm1, 0, %v7537_v5  ;;  %v3537_v54 = vadd.s32 1, %v10726_v34  ;;  %v3386_v28 = vadd.s32 1, %v7543_v18  ;;  %v3534_v50 = vmul.u32 %v3527_v16, %v3518_v19 }
 0x32a   : > { %v8106_v26 = vpop.eup %8105  ;;  %v3372_v32 = vxor.u32 2147483648, %v8104_v60  ;;  %v3242_v40 = vsub.s32 32, %v3241_v46  ;;  %v3246_v27 = vsub.s32 4294967266, %v3241_v46  ;;  %v3243_v17 = vshll.u32 %v10711_v31, %v3241_v46 }
 0x32b   : > { %v3369_v57 = vxor.u32 2147483648, %v8106_v26  ;;  %vm3536_vm2 = vc.u32 %v10732_v59, %v10725_v58  ;;  %vm3387_vm3 = vcmp.gt.s32.totalorder %v3386_v28, 0  ;;  %v3383_v41 = vand.u32 8388607, %v3376_v36 }
 0x32c   : > { %v3373_v9 = vsel %vm3371_vm0, %v3372_v32, %v8106_v26  ;;  %v3244_v15 = vshrl.u32 %v3226_v23, %v3242_v40  ;;  %v3247_v62 = vadd.s32 127, %v3246_v27  ;;  %v3538_v20 = vsel %vm3536_vm2, %v3537_v54, %v10726_v34  ;;  %v10782_v40 = vld [vmem:[%s13856_s2] ss:$0 sm:$0xff] }
 0x32d   : > { %v3370_v33 = vsel %vm3368_vm15, %v8104_v60, %v3369_v57  ;;  %v3539_v12 = vadd.s32 %v3538_v20, %v3534_v50  ;;  %v3388_v31 = vsel %vm3387_vm3, %v3386_v28, 0  ;;  %vm3365_vm4 = vweird.f32 %v10456_v52 }
 0x32e   : > { %v3374_v22 = vsel %vm3367_vm14, %v3370_v33, %v3373_v9  ;;  %v3245_v16 = vor.u32 %v3244_v15, %v3243_v17  ;;  %v3248_v30 = vshll.u32 %v3247_v62, 23  ;;  %v3390_v10 = vand.u32 31, %v3388_v31 }
 0x32f   : > { %v3375_v48 = vsel %vm3365_vm4, nan, %v3374_v22  ;;  %v3540_v37 = vadd.s32 536870912, %v3539_v12  ;;  %v10758_v13 = vand.u32 3, %v3259_v53  ;;  %v3384_v38 = vor.u32 8388608, %v3383_v41 }
 0x330   : > { %7315 = vst [vmem:[%s8782_s8 + $0xc8] sm:$0xff] %v3375_v48  ;;  %v3249_v63 = vor.u32 4788187, %v3248_v30  ;;  %v3391_v3 = vsub.s32 32, %v3390_v10  ;;  %v592_v61 = vmul.f32 %v10441_v44, %v385_v42  ;;  %v3252_v14 = vcvt.s32.f32 %v3245_v16 }
 0x331   : > { %v10760_v1 = vshrl.u32 %v3540_v37, 30  ;;  %v3389_v51 = vshrl.u32 %v3388_v31, 5  ;;  %v3393_v2 = vshll.u32 %v8349_v39, %v3390_v10  ;;  %v3396_v21 = vshll.u32 %v8350_v43, %v3390_v10 }
 0x332   : > { %v3250_v52 = vand.u32 2147483647, %v3249_v63  ;;  %v3394_v6 = vshrl.u32 %v8350_v43, %v3391_v3  ;;  %v3399_v24 = vshll.u32 %v8351_v45, %v3390_v10  ;;  %v3397_v11 = vshrl.u32 %v8351_v45, %v3391_v3 }
 0x333   : > { %v3542_v4 = vshll.u32 %v10760_v1, 30  ;;  %v3400_v5 = vshrl.u32 %v8352_v47, %v3391_v3  ;;  %v3403_v55 = vshrl.u32 %v8353_v49, %v3391_v3  ;;  %v3402_v19 = vshll.u32 %v8352_v47, %v3390_v10 }
 0x334   : > { %v3253_v34 = vmul.f32 %v3252_v14, %v3250_v52  ;;  %v3405_v18 = vshll.u32 %v8353_v49, %v3390_v10  ;;  %v3406_v23 = vshrl.u32 %v8354_v56, %v3391_v3  ;;  %v3395_v46 = vor.u32 %v3394_v6, %v3393_v2 }
 0x335   : > { %v10771_v7 = vsub.s32 %v3539_v12, %v3542_v4  ;;  %v3398_v53 = vor.u32 %v3397_v11, %v3396_v21  ;;  %v3401_v54 = vor.u32 %v3400_v5, %v3399_v24  ;;  %v3404_v26 = vor.u32 %v3403_v55, %v3402_v19 }
 0x336   : > { %v3254_v60 = vxor.u32 2147483648, %v3253_v34  ;;  %v10777_v32 = vshll.u32 %v3384_v38, 8  ;;  %v10785_v27 = vadd.f32 %v10782_v40, %v592_v61  ;;  %v3407_v57 = vor.u32 %v3406_v23, %v3405_v18 }
 0x337   : > { %v3545_v28 = vsub.s32 0, %v10771_v7  ;;  %vm3408_vm5 = vcmp.lt.s32.totalorder %v3389_v51, 1  ;;  %vm3409_vm6 = vcmp.lt.s32.totalorder %v3389_v51, 2  ;;  %v3392_v15 = vshrl.u32 %v8349_v39, %v3391_v3 }
 0x338   : > { %v3255_v50 = vsel %vm3172_vm8, %v3254_v60, %v3253_v34  ;;  %vm3411_vm7 = vcmp.lt.s32.totalorder %v3389_v51, 4  ;;  %vm3410_vm10 = vcmp.lt.s32.totalorder %v3389_v51, 3  ;;  %v3416_v20 = vsel %vm3408_vm5, %v3395_v46, %v3398_v53  ;;  %v380_v34 = vpop.permute.xlu0 %379 }
 0x339   : > { %v3258_v17 = vsel %vm10716_vm9, %v10556_v35, %v3255_v50  ;;  %v7548_v9 = vmin.u32 %v3545_v28, %v10771_v7  ;;  %v3413_v62 = vsel %vm3411_vm7, %v3401_v54, 2102212464  ;;  %v3412_v12 = vsel %vm3408_vm5, %v3392_v15, %v3395_v46 }
 0x33a   : > { %8107 = vcosq.f32 %v3258_v17  ;;  %v3417_v41 = vsel %vm3411_vm7, %v3404_v26, 920167782  ;;  %v3414_v31 = vsel %vm3410_vm10, %v3398_v53, %v3413_v62  ;;  %v3420_v8 = vsel %vm3408_vm5, %v3398_v53, %v3401_v54 }
 0x33b   : > { %8109 = vsinq.f32 %v3258_v17  ;;  %v3547_v33 = vclz %v7548_v9  ;;  %v3418_v22 = vsel %vm3410_vm10, %v3401_v54, %v3417_v41  ;;  %v3421_v16 = vsel %vm3411_vm7, %v3407_v57, 1326507024 }
 0x33c   : > { %vm3481_vm8 = vcmp.lt.s32.totalorder %v10580_v25, 0  ;;  %v3419_v42 = vsel %vm3409_vm6, %v3416_v20, %v3418_v22  ;;  %v3422_v48 = vsel %vm3410_vm10, %v3404_v26, %v3421_v16  ;;  %v3565_v37 = vsub.s32 4, %v10760_v1 }
 0x33d   : > { %v7549_v30 = vadd.s32 4294967294, %v3547_v33  ;;  %v3423_v10 = vsel %vm3409_vm6, %v3420_v8, %v3422_v48  ;;  %v10802_v63 = vmul.u32.u64.low %v10777_v32, %v3419_v42  ;;  %v10803_v38 = vmul.u32.u64.high %v10777_v32, %v3419_v42, %v10802_v63 }
 0x33e   : > { %v3415_v3 = vsel %vm3409_vm6, %v3412_v12, %v3414_v31  ;;  %v10808_v61 = vmul.u32.u64.low %v10777_v32, %v3423_v10  ;;  %v10809_v52 = vmul.u32.u64.high %v10777_v32, %v3423_v10, %v10808_v61  ;;  %vm3264_vm11 = vcmp.lt.s32.totalorder %v10758_v13, 2 }
 0x33f   : > { %vm7550_vm9 = vcmp.lt.s32.totalorder %v7549_v30, 0  ;;  %vm10814_vm12 = vcmp.le.f32.partialorder %v3479_v29, 0.7853982  ;;  %v3688_v4 = vand.u32 2139095040, %v10785_v27  ;;  %vm3262_vm13 = vweird.f32 %v10556_v35 }
 0x340   : > { %v3550_v2 = vsel %vm7550_vm9, 0, %v7549_v30  ;;  %v3535_v51 = vadd.s32 %v10725_v58, %v10732_v59  ;;  %v3685_v24 = vand.u32 2147483647, %v10785_v27  ;;  %v3566_v29 = vsel %vm3481_vm8, %v3565_v37, %v10760_v1 }
 0x341   : > { %v3551_v6 = vsub.s32 32, %v3550_v2  ;;  %v3555_v21 = vsub.s32 4294967266, %v3550_v2  ;;  %v3431_v11 = vmul.u32 %v10777_v32, %v3415_v3  ;;  %v3434_v5 = vadd.s32 1, %v10803_v38 }
 0x342   : > { %v3689_v55 = vshrl.u32 %v3688_v4, 23  ;;  %v3552_v19 = vshll.u32 %v10771_v7, %v3550_v2  ;;  %vm3433_vm14 = vc.u32 %v10809_v52, %v10802_v63  ;;  %vm3265_vm15 = vcmp.eq.s32.totalorder %v10758_v13, 0 }
 0x343   : > { %v3553_v18 = vshrl.u32 %v3535_v51, %v3551_v6  ;;  %v3556_v23 = vadd.s32 127, %v3555_v21  ;;  %v3435_v59 = vsel %vm3433_vm14, %v3434_v5, %v10803_v38  ;;  %v591_v1 = vmul.f32 %v10441_v44, %v380_v34 }
 0x344   : > { %v8108_v58 = vpop.eup %8107  ;;  %v7555_v60 = vadd.s32 4294967169, %v3689_v55  ;;  %v3436_v26 = vadd.s32 %v3435_v59, %v3431_v11  ;;  %vm3268_vm0 = vcmp.eq.s32.totalorder %v10758_v13, 2  ;;  %v3568_v7 = vsel %vm10814_vm12, 0, %v3566_v29 }
 0x345   : > { %v8110_v46 = vpop.eup %8109  ;;  %v3269_v53 = vxor.u32 2147483648, %v8108_v58  ;;  %v3554_v54 = vor.u32 %v3553_v18, %v3552_v19  ;;  %v3557_v28 = vshll.u32 %v3556_v23, 23  ;;  %v3692_v15 = vand.u32 8388607, %v3685_v24 }
 0x346   : > { %v3266_v32 = vxor.u32 2147483648, %v8110_v46  ;;  %v3695_v50 = vadd.s32 1, %v7555_v60  ;;  %v3437_v9 = vadd.s32 536870912, %v3436_v26  ;;  %v10842_v20 = vadd.f32 %v10782_v40, %v591_v1 }
 0x347   : > { %v3270_v57 = vsel %vm3268_vm0, %v3269_v53, %v8110_v46  ;;  %v3558_v17 = vor.u32 4788187, %v3557_v28  ;;  %v3561_v62 = vcvt.s32.f32 %v3554_v54  ;;  %v10852_v42 = vand.u32 3, %v3568_v7 }
 0x348   : > { %v3267_v44 = vsel %vm3265_vm15, %v8108_v58, %v3266_v32  ;;  %vm3696_vm1 = vcmp.gt.s32.totalorder %v3695_v50, 0  ;;  %v10846_v41 = vshrl.u32 %v3437_v9, 30  ;;  %v3693_v13 = vor.u32 8388608, %v3692_v15 }
 0x349   : > { %v3271_v33 = vsel %vm3264_vm11, %v3267_v44, %v3270_v57  ;;  %v3559_v12 = vand.u32 2147483647, %v3558_v17  ;;  %v3697_v31 = vsel %vm3696_vm1, %v3695_v50, 0  ;;  %v3585_v38 = vand.u32 2139095040, %v10842_v20 }
 0x34a   : > { %v3272_v22 = vsel %vm3262_vm13, nan, %v3271_v33  ;;  %v3699_v8 = vand.u32 31, %v3697_v31  ;;  %v3439_v30 = vshll.u32 %v10846_v41, 30  ;;  %v10857_v3 = vshrl.u32 %v3697_v31, 5 }
 0x34b   : > { %7314 = vst [vmem:[%s8782_s8 + $0xc0] sm:$0xff] %v3272_v22  ;;  %v3562_v16 = vmul.f32 %v3561_v62, %v3559_v12  ;;  %v3432_v23 = vadd.s32 %v10802_v63, %v10809_v52  ;;  %v3586_v46 = vshrl.u32 %v3585_v38, 23  ;;  %v3733_v54 = vshll.u32 %v3693_v13, 8 }
 0x34c   : > { %v3700_v48 = vsub.s32 32, %v3699_v8  ;;  %v10854_v10 = vsub.s32 %v3436_v26, %v3439_v30  ;;  %v3702_v61 = vshll.u32 %v8349_v39, %v3699_v8  ;;  %v3705_v6 = vshll.u32 %v8350_v43, %v3699_v8 }
 0x34d   : > { %v3563_v37 = vxor.u32 2147483648, %v3562_v16  ;;  %v3708_v29 = vshll.u32 %v8351_v45, %v3699_v8  ;;  %v3711_v11 = vshll.u32 %v8352_v47, %v3699_v8  ;;  %v3714_v14 = vshll.u32 %v8353_v49, %v3699_v8 }
 0x34e   : > { %v3703_v35 = vshrl.u32 %v8350_v43, %v3700_v48  ;;  %v3706_v2 = vshrl.u32 %v8351_v45, %v3700_v48  ;;  %v3442_v51 = vsub.s32 0, %v10854_v10  ;;  %v3709_v21 = vshrl.u32 %v8352_v47, %v3700_v48 }
 0x34f   : > { %v3564_v4 = vsel %vm3481_vm8, %v3563_v37, %v3562_v16  ;;  %v3712_v5 = vshrl.u32 %v8353_v49, %v3700_v48  ;;  %v3715_v1 = vshrl.u32 %v8354_v56, %v3700_v48  ;;  %v3701_v53 = vshrl.u32 %v8349_v39, %v3700_v48 }
 0x350   : > { %v3567_v34 = vsel %vm10814_vm12, %v10580_v25, %v3564_v4  ;;  %v7544_v55 = vmin.u32 %v3442_v51, %v10854_v10  ;;  %v3704_v19 = vor.u32 %v3703_v35, %v3702_v61  ;;  %v3707_v18 = vor.u32 %v3706_v2, %v3705_v6 }
 0x351   : > { %8111 = vcosq.f32 %v3567_v34  ;;  %v3710_v58 = vor.u32 %v3709_v21, %v3708_v29  ;;  %v3713_v59 = vor.u32 %v3712_v5, %v3711_v11  ;;  %vm3717_vm2 = vcmp.lt.s32.totalorder %v10857_v3, 1 }
 0x352   : > { %8113 = vsinq.f32 %v3567_v34  ;;  %v3444_v60 = vclz %v7544_v55  ;;  %vm3718_vm3 = vcmp.lt.s32.totalorder %v10857_v3, 2  ;;  %v3716_v26 = vor.u32 %v3715_v1, %v3714_v14 }
 0x353   : > { %vm3720_vm4 = vcmp.lt.s32.totalorder %v10857_v3, 4  ;;  %v3725_v63 = vsel %vm3717_vm2, %v3704_v19, %v3707_v18  ;;  %vm3574_vm5 = vcmp.eq.s32.totalorder %v10852_v42, 0  ;;  %vm3719_vm6 = vcmp.lt.s32.totalorder %v10857_v3, 3 }
 0x354   : > { %v7545_v28 = vadd.s32 4294967294, %v3444_v60  ;;  %v3722_v52 = vsel %vm3720_vm4, %v3710_v58, 2102212464  ;;  %v3726_v32 = vsel %vm3720_vm4, %v3713_v59, 920167782  ;;  %v3729_v7 = vsel %vm3717_vm2, %v3707_v18, %v3710_v58 }
 0x355   : > { %vm3573_vm7 = vcmp.lt.s32.totalorder %v10852_v42, 2  ;;  %vm3378_vm10 = vcmp.lt.s32.totalorder %v10686_v0, 0  ;;  %v3727_v50 = vsel %vm3719_vm6, %v3710_v58, %v3726_v32  ;;  %v3730_v57 = vsel %vm3720_vm4, %v3716_v26, 1326507024  ;;  %v10941_v26 = vld [vmem:[%s13855_s1] ss:$0 sm:$0xff] }
 0x356   : > { %vm7546_vm8 = vcmp.lt.s32.totalorder %v7545_v28, 0  ;;  %v7551_v17 = vadd.s32 4294967169, %v3586_v46  ;;  %vm3571_vm9 = vweird.f32 %v10580_v25  ;;  %v3721_v15 = vsel %vm3717_vm2, %v3701_v53, %v3704_v19 }
 0x357   : > { %v3447_v9 = vsel %vm7546_vm8, 0, %v7545_v28  ;;  %v3728_v44 = vsel %vm3718_vm3, %v3725_v63, %v3727_v50  ;;  %v3731_v62 = vsel %vm3719_vm6, %v3713_v59, %v3730_v57  ;;  %v3723_v31 = vsel %vm3719_vm6, %v3707_v18, %v3722_v52 }
 0x358   : > { %v3448_v33 = vsub.s32 32, %v3447_v9  ;;  %v3452_v12 = vsub.s32 4294967266, %v3447_v9  ;;  %v3732_v22 = vsel %vm3718_vm3, %v3729_v7, %v3731_v62  ;;  %v3449_v13 = vshll.u32 %v10854_v10, %v3447_v9 }
 0x359   : > { %v10903_v8 = vmul.u32.u64.low %v3733_v54, %v3732_v22  ;;  %v10904_v16 = vmul.u32.u64.high %v3733_v54, %v3732_v22, %v10903_v8  ;;  %v10906_v30 = vmul.u32.u64.low %v3733_v54, %v3728_v44  ;;  %v10907_v48 = vmul.u32.u64.high %v3733_v54, %v3728_v44, %v10906_v30 }
 0x35a   : > { %v3450_v38 = vshrl.u32 %v3432_v23, %v3448_v33  ;;  %v3453_v61 = vadd.s32 127, %v3452_v12  ;;  %v3592_v35 = vadd.s32 1, %v7551_v17  ;;  %vm3577_vm11 = vcmp.eq.s32.totalorder %v10852_v42, 2  ;;  %v395_v23 = vpop.permute.xlu1 %394 }
 0x35b   : > { %v8112_v37 = vpop.eup %8111  ;;  %v3462_v51 = vsub.s32 4, %v10846_v41  ;;  %v3724_v6 = vsel %vm3718_vm3, %v3721_v15, %v3723_v31  ;;  %vm3742_vm13 = vc.u32 %v10904_v16, %v10906_v30  ;;  %v3743_v10 = vadd.s32 1, %v10907_v48 }
 0x35c   : > { %v8114_v2 = vpop.eup %8113  ;;  %v3578_v4 = vxor.u32 2147483648, %v8112_v37  ;;  %v3451_v34 = vor.u32 %v3450_v38, %v3449_v13  ;;  %v3454_v29 = vshll.u32 %v3453_v61, 23  ;;  %vm3593_vm12 = vcmp.gt.s32.totalorder %v3592_v35, 0 }
 0x35d   : > { %v3575_v21 = vxor.u32 2147483648, %v8114_v2  ;;  %v3582_v5 = vand.u32 2147483647, %v10842_v20  ;;  %v3740_v18 = vmul.u32 %v3733_v54, %v3724_v6  ;;  %v3594_v3 = vsel %vm3593_vm12, %v3592_v35, 0 }
 0x35e   : > { %v3579_v11 = vsel %vm3577_vm11, %v3578_v4, %v8114_v2  ;;  %v3455_v19 = vor.u32 4788187, %v3454_v29  ;;  %v3463_v59 = vsel %vm3378_vm10, %v3462_v51, %v10846_v41  ;;  %v3744_v60 = vsel %vm3742_vm13, %v3743_v10, %v10907_v48 }
 0x35f   : > { %v3576_v55 = vsel %vm3574_vm5, %v8112_v37, %v3575_v21  ;;  %v3596_v14 = vand.u32 31, %v3594_v3  ;;  %v3458_v53 = vcvt.s32.f32 %v3451_v34  ;;  %v3745_v28 = vadd.s32 %v3744_v60, %v3740_v18 }
 0x360   : > { %v3580_v58 = vsel %vm3573_vm7, %v3576_v55, %v3579_v11  ;;  %v3456_v46 = vand.u32 2147483647, %v3455_v19  ;;  %vm10932_vm14 = vcmp.le.f32.partialorder %v3376_v36, 0.7853982  ;;  %v3589_v42 = vand.u32 8388607, %v3582_v5 }
 0x361   : > { %v3581_v1 = vsel %vm3571_vm9, nan, %v3580_v58  ;;  %v3597_v41 = vsub.s32 32, %v3596_v14  ;;  %v594_v25 = vmul.f32 %v10941_v26, %v395_v23  ;;  %v3465_v52 = vsel %vm10932_vm14, 0, %v3463_v59 }
 0x362   : > { %7317 = vst [vmem:[%s8782_s8 + $0xd8] sm:$0xff] %v3581_v1  ;;  %v3459_v63 = vmul.f32 %v3458_v53, %v3456_v46  ;;  %v3746_v32 = vadd.s32 536870912, %v3745_v28  ;;  %v3599_v36 = vshll.u32 %v8349_v39, %v3596_v14  ;;  %v3605_v57 = vshll.u32 %v8351_v45, %v3596_v14  ;;  %v390_v1 = vpop.permute.xlu0 %389 }
 0x363   : > { %v3600_v7 = vshrl.u32 %v8350_v43, %v3597_v41  ;;  %v3603_v50 = vshrl.u32 %v8351_v45, %v3597_v41  ;;  %v3606_v17 = vshrl.u32 %v8352_v47, %v3597_v41  ;;  %v3609_v44 = vshrl.u32 %v8353_v49, %v3597_v41 }
 0x364   : > { %v3460_v9 = vxor.u32 2147483648, %v3459_v63  ;;  %v10951_v15 = vshrl.u32 %v3746_v32, 30  ;;  %v3612_v62 = vshrl.u32 %v8354_v56, %v3597_v41  ;;  %v3595_v33 = vshrl.u32 %v3594_v3, 5 }
 0x365   : > { %v3602_v12 = vshll.u32 %v8350_v43, %v3596_v14  ;;  %v3608_v31 = vshll.u32 %v8352_v47, %v3596_v14  ;;  %v3611_v22 = vshll.u32 %v8353_v49, %v3596_v14  ;;  %v3601_v37 = vor.u32 %v3600_v7, %v3599_v36 }
 0x366   : > { %v3461_v8 = vsel %vm3378_vm10, %v3460_v9, %v3459_v63  ;;  %v3748_v48 = vshll.u32 %v10951_v15, 30  ;;  %v3607_v13 = vor.u32 %v3606_v17, %v3605_v57  ;;  %v3590_v51 = vor.u32 8388608, %v3589_v42 }
 0x367   : > { %v3464_v38 = vsel %vm10932_vm14, %v10686_v0, %v3461_v8  ;;  %v3604_v61 = vor.u32 %v3603_v50, %v3602_v12  ;;  %v3610_v35 = vor.u32 %v3609_v44, %v3608_v31  ;;  %v3613_v2 = vor.u32 %v3612_v62, %v3611_v22 }
 0x368   : > { %8115 = vcosq.f32 %v3464_v38  ;;  %v10964_v4 = vsub.s32 %v3745_v28, %v3748_v48  ;;  %v3469_v6 = vand.u32 3, %v3465_v52  ;;  %vm3617_vm15 = vcmp.lt.s32.totalorder %v3595_v33, 4 }
 0x369   : > { %8117 = vsinq.f32 %v3464_v38  ;;  %v10967_v21 = vadd.f32 %v10782_v40, %v594_v25  ;;  %v3598_v29 = vshrl.u32 %v8349_v39, %v3597_v41  ;;  %vm3614_vm0 = vcmp.lt.s32.totalorder %v3595_v33, 1 }
 0x36a   : > { %v3751_v34 = vsub.s32 0, %v10964_v4  ;;  %v3619_v11 = vsel %vm3617_vm15, %v3607_v13, 2102212464  ;;  %v3622_v10 = vsel %vm3614_vm0, %v3601_v37, %v3604_v61  ;;  %v3623_v55 = vsel %vm3617_vm15, %v3610_v35, 920167782 }
 0x36b   : > { %v3626_v19 = vsel %vm3614_vm0, %v3604_v61, %v3607_v13  ;;  %v3627_v18 = vsel %vm3617_vm15, %v3613_v2, 1326507024  ;;  %vm3615_vm1 = vcmp.lt.s32.totalorder %v3595_v33, 2  ;;  %vm3616_vm2 = vcmp.lt.s32.totalorder %v3595_v33, 3 }
 0x36c   : > { %v7556_v3 = vmin.u32 %v3751_v34, %v10964_v4  ;;  %v3630_v23 = vshll.u32 %v3590_v51, 8  ;;  %v3618_v58 = vsel %vm3614_vm0, %v3598_v29, %v3601_v37  ;;  %v3624_v59 = vsel %vm3616_vm2, %v3607_v13, %v3623_v55 }
 0x36d   : > { %v3628_v60 = vsel %vm3616_vm2, %v3610_v35, %v3627_v18  ;;  %v3894_v14 = vand.u32 2139095040, %v10967_v21  ;;  %v3620_v53 = vsel %vm3616_vm2, %v3604_v61, %v3619_v11  ;;  %v3625_v28 = vsel %vm3615_vm1, %v3622_v10, %v3624_v59 }
 0x36e   : > { %v3753_v46 = vclz %v7556_v3  ;;  %v3629_v54 = vsel %vm3615_vm1, %v3626_v19, %v3628_v60  ;;  %v10978_v25 = vmul.u32.u64.low %v3630_v23, %v3625_v28  ;;  %v10979_v63 = vmul.u32.u64.high %v3630_v23, %v3625_v28, %v10978_v25 }
 0x36f   : > { %v10975_v42 = vmul.u32.u64.low %v3630_v23, %v3629_v54  ;;  %v10976_v41 = vmul.u32.u64.high %v3630_v23, %v3629_v54, %v10975_v42  ;;  %vm3468_vm3 = vweird.f32 %v10686_v0  ;;  %v3895_v32 = vshrl.u32 %v3894_v14, 23 }
 0x370   : > { %v7557_v52 = vadd.s32 4294967294, %v3753_v46  ;;  %v593_v36 = vmul.f32 %v10941_v26, %v390_v1  ;;  %vm3470_vm4 = vcmp.lt.s32.totalorder %v3469_v6, 2  ;;  %vm3471_vm5 = vcmp.eq.s32.totalorder %v3469_v6, 0 }
 0x371   : > { %vm3474_vm6 = vcmp.eq.s32.totalorder %v3469_v6, 2  ;;  %vm3687_vm7 = vcmp.lt.s32.totalorder %v10785_v27, 0  ;;  %v3621_v50 = vsel %vm3615_vm1, %v3618_v58, %v3620_v53  ;;  %v3891_v57 = vand.u32 2147483647, %v10967_v21 }
 0x372   : > { %v8116_v7 = vpop.eup %8115  ;;  %vm7558_vm10 = vcmp.lt.s32.totalorder %v7557_v52, 0  ;;  %v7563_v17 = vadd.s32 4294967169, %v3895_v32  ;;  %v3741_v62 = vadd.s32 %v10906_v30, %v10904_v16  ;;  %v3771_v31 = vsub.s32 4, %v10951_v15 }
 0x373   : > { %v8118_v9 = vpop.eup %8117  ;;  %v3475_v44 = vxor.u32 2147483648, %v8116_v7  ;;  %v3756_v12 = vsel %vm7558_vm10, 0, %v7557_v52  ;;  %vm3639_vm8 = vc.u32 %v10976_v41, %v10978_v25  ;;  %v3637_v37 = vmul.u32 %v3630_v23, %v3621_v50  ;;  %v405_v23 = vpop.permute.xlu1 %404 }
 0x374   : > { %v3472_v22 = vxor.u32 2147483648, %v8118_v9  ;;  %v3757_v8 = vsub.s32 32, %v3756_v12  ;;  %v3761_v48 = vsub.s32 4294967266, %v3756_v12  ;;  %v3640_v13 = vadd.s32 1, %v10979_v63 }
 0x375   : > { %v3476_v33 = vsel %vm3474_vm6, %v3475_v44, %v8118_v9  ;;  %v3901_v38 = vadd.s32 1, %v7563_v17  ;;  %v3758_v16 = vshll.u32 %v10964_v4, %v3756_v12  ;;  %v3772_v51 = vsel %vm3687_vm7, %v3771_v31, %v10951_v15 }
 0x376   : > { %v3473_v61 = vsel %vm3471_vm5, %v8116_v7, %v3472_v22  ;;  %v3759_v30 = vshrl.u32 %v3741_v62, %v3757_v8  ;;  %v3762_v35 = vadd.s32 127, %v3761_v48  ;;  %v3641_v34 = vsel %vm3639_vm8, %v3640_v13, %v10979_v63 }
 0x377   : > { %v3477_v2 = vsel %vm3470_vm4, %v3473_v61, %v3476_v33  ;;  %vm3902_vm9 = vcmp.gt.s32.totalorder %v3901_v38, 0  ;;  %v3642_v55 = vadd.s32 %v3641_v34, %v3637_v37  ;;  %vm11006_vm11 = vcmp.le.f32.partialorder %v3685_v24, 0.7853982 }
 0x378   : > { %v3478_v29 = vsel %vm3468_vm3, nan, %v3477_v2  ;;  %v3760_v11 = vor.u32 %v3759_v30, %v3758_v16  ;;  %v3763_v10 = vshll.u32 %v3762_v35, 23  ;;  %v3898_v6 = vand.u32 8388607, %v3891_v57 }
 0x379   : > { %7316 = vst [vmem:[%s8782_s8 + $0xd0] sm:$0xff] %v3478_v29  ;;  %v3903_v15 = vsel %vm3902_vm9, %v3901_v38, 0  ;;  %v3774_v18 = vsel %vm11006_vm11, 0, %v3772_v51  ;;  %v3643_v0 = vadd.s32 536870912, %v3642_v55  ;;  %v11015_v3 = vadd.f32 %v10782_v40, %v593_v36 }
 0x37a   : > { %v3764_v19 = vor.u32 4788187, %v3763_v10  ;;  %v3905_v58 = vand.u32 31, %v3903_v15  ;;  %v3767_v60 = vcvt.s32.f32 %v3760_v11  ;;  %v11019_v14 = vand.u32 3, %v3774_v18 }
 0x37b   : > { %v11017_v24 = vshrl.u32 %v3643_v0, 30  ;;  %v3899_v1 = vor.u32 8388608, %v3898_v6  ;;  %v11022_v53 = vmul.f32 %v10941_v26, %v405_v23  ;;  %v3791_v63 = vand.u32 2139095040, %v11015_v3 }
 0x37c   : > { %v3765_v59 = vand.u32 2147483647, %v3764_v19  ;;  %v3906_v46 = vsub.s32 32, %v3905_v58  ;;  %v3908_v42 = vshll.u32 %v8349_v39, %v3905_v58  ;;  %v3911_v32 = vshll.u32 %v8350_v43, %v3905_v58 }
 0x37d   : > { %v3645_v54 = vshll.u32 %v11017_v24, 30  ;;  %v3914_v9 = vshll.u32 %v8351_v45, %v3905_v58  ;;  %v3904_v62 = vshrl.u32 %v3903_v15, 5  ;;  %v3917_v31 = vshll.u32 %v8352_v47, %v3905_v58 }
 0x37e   : > { %v3768_v28 = vmul.f32 %v3767_v60, %v3765_v59  ;;  %v3909_v52 = vshrl.u32 %v8350_v43, %v3906_v46  ;;  %v3912_v36 = vshrl.u32 %v8351_v45, %v3906_v46  ;;  %v3915_v7 = vshrl.u32 %v8352_v47, %v3906_v46 }
 0x37f   : > { %v11031_v17 = vsub.s32 %v3642_v55, %v3645_v54  ;;  %v3918_v44 = vshrl.u32 %v8353_v49, %v3906_v46  ;;  %v11036_v22 = vshll.u32 %v3899_v1, 8  ;;  %v3920_v61 = vshll.u32 %v8353_v49, %v3905_v58 }
 0x380   : > { %v3769_v50 = vxor.u32 2147483648, %v3768_v28  ;;  %v3910_v12 = vor.u32 %v3909_v52, %v3908_v42  ;;  %v3913_v33 = vor.u32 %v3912_v36, %v3911_v32  ;;  %v3916_v37 = vor.u32 %v3915_v7, %v3914_v9 }
 0x381   : > { %v3648_v48 = vsub.s32 0, %v11031_v17  ;;  %v3919_v38 = vor.u32 %v3918_v44, %v3917_v31  ;;  %v3921_v16 = vshrl.u32 %v8354_v56, %v3906_v46  ;;  %v3788_v35 = vand.u32 2147483647, %v11015_v3 }
 0x382   : > { %v3770_v8 = vsel %vm3687_vm7, %v3769_v50, %v3768_v28  ;;  %v3792_v2 = vshrl.u32 %v3791_v63, 23  ;;  %v3907_v51 = vshrl.u32 %v8349_v39, %v3906_v46  ;;  %vm3923_vm12 = vcmp.lt.s32.totalorder %v3904_v62, 1 }
 0x383   : > { %v3773_v13 = vsel %vm11006_vm11, %v10785_v27, %v3770_v8  ;;  %v7552_v30 = vmin.u32 %v3648_v48, %v11031_v17  ;;  %v3922_v34 = vor.u32 %v3921_v16, %v3920_v61  ;;  %vm3925_vm13 = vcmp.lt.s32.totalorder %v3904_v62, 3 }
 0x384   : > { %8119 = vcosq.f32 %v3773_v13  ;;  %vm3926_vm14 = vcmp.lt.s32.totalorder %v3904_v62, 4  ;;  %v3931_v11 = vsel %vm3923_vm12, %v3910_v12, %v3913_v33  ;;  %v3935_v4 = vsel %vm3923_vm12, %v3913_v33, %v3916_v37 }
 0x385   : > { %8121 = vsinq.f32 %v3773_v13  ;;  %v3650_v29 = vclz %v7552_v30  ;;  %v3928_v10 = vsel %vm3926_vm14, %v3916_v37, 2102212464  ;;  %v3932_v55 = vsel %vm3926_vm14, %v3919_v38, 920167782 }
 0x386   : > { %v3936_v6 = vsel %vm3926_vm14, %v3922_v34, 1326507024  ;;  %vm3924_vm15 = vcmp.lt.s32.totalorder %v3904_v62, 2  ;;  %v3933_v19 = vsel %vm3925_vm13, %v3916_v37, %v3932_v55  ;;  %vm3780_vm0 = vcmp.eq.s32.totalorder %v11019_v14, 0 }
 0x387   : > { %v7553_v15 = vadd.s32 4294967294, %v3650_v29  ;;  %v3937_v18 = vsel %vm3925_vm13, %v3919_v38, %v3936_v6  ;;  %v3927_v0 = vsel %vm3923_vm12, %v3907_v51, %v3910_v12  ;;  %v3934_v23 = vsel %vm3924_vm15, %v3931_v11, %v3933_v19 }
 0x388   : > { %v3938_v58 = vsel %vm3924_vm15, %v3935_v4, %v3937_v18  ;;  %v7559_v59 = vadd.s32 4294967169, %v3792_v2  ;;  %vm3779_vm1 = vcmp.lt.s32.totalorder %v11019_v14, 2  ;;  %vm3584_vm2 = vcmp.lt.s32.totalorder %v10842_v20, 0 }
 0x389   : > { %vm7554_vm3 = vcmp.lt.s32.totalorder %v7553_v15, 0  ;;  %v3929_v60 = vsel %vm3925_vm13, %v3913_v33, %v3928_v10  ;;  %v11058_v1 = vmul.u32.u64.low %v11036_v22, %v3938_v58  ;;  %v11059_v46 = vmul.u32.u64.high %v11036_v22, %v3938_v58, %v11058_v1 }
 0x38a   : > { %vm3777_vm4 = vweird.f32 %v10785_v27  ;;  %v3653_v28 = vsel %vm7554_vm3, 0, %v7553_v15  ;;  %v11063_v54 = vmul.u32.u64.low %v11036_v22, %v3934_v23  ;;  %v11064_v42 = vmul.u32.u64.high %v11036_v22, %v3934_v23, %v11063_v54 }
 0x38b   : > { %v3798_v63 = vadd.s32 1, %v7559_v59  ;;  %vm3783_vm5 = vcmp.eq.s32.totalorder %v11019_v14, 2  ;;  %v3638_v52 = vadd.s32 %v10978_v25, %v10976_v41  ;;  %v3654_v32 = vsub.s32 32, %v3653_v28 }
 0x38c   : > { %v3658_v36 = vsub.s32 4294967266, %v3653_v28  ;;  %v3930_v7 = vsel %vm3924_vm15, %v3927_v0, %v3929_v60  ;;  %v3795_v50 = vand.u32 8388607, %v3788_v35  ;;  %v11075_v9 = vadd.f32 %v10782_v40, %v11022_v53 }
 0x38d   : > { %vm3799_vm6 = vcmp.gt.s32.totalorder %v3798_v63, 0  ;;  %vm11079_vm7 = vcmp.le.f32.partialorder %v3582_v5, 0.7853982  ;;  %v3655_v41 = vshll.u32 %v11031_v17, %v3653_v28  ;;  %v3656_v25 = vshrl.u32 %v3638_v52, %v3654_v32 }
 0x38e   : > { %v8120_v44 = vpop.eup %8119  ;;  %v3659_v62 = vadd.s32 127, %v3658_v36  ;;  %vm3948_vm10 = vc.u32 %v11059_v46, %v11063_v54  ;;  %v3668_v48 = vsub.s32 4, %v11017_v24  ;;  %v3949_v40 = vadd.s32 1, %v11064_v42 }
 0x38f   : > { %v8122_v31 = vpop.eup %8121  ;;  %v3784_v8 = vxor.u32 2147483648, %v8120_v44  ;;  %v3800_v53 = vsel %vm3799_vm6, %v3798_v63, 0  ;;  %v3657_v37 = vor.u32 %v3656_v25, %v3655_v41  ;;  %v3946_v13 = vmul.u32 %v11036_v22, %v3930_v7 }
 0x390   : > { %v3781_v33 = vxor.u32 2147483648, %v8122_v31  ;;  %v3660_v5 = vshll.u32 %v3659_v62, 23  ;;  %v3950_v38 = vsel %vm3948_vm10, %v3949_v40, %v11064_v42  ;;  %v3796_v61 = vor.u32 8388608, %v3795_v50 }
 0x391   : > { %v3785_v17 = vsel %vm3783_vm5, %v3784_v8, %v8122_v31  ;;  %v3802_v16 = vand.u32 31, %v3800_v53  ;;  %v3951_v51 = vadd.s32 %v3950_v38, %v3946_v13  ;;  %v4097_v34 = vand.u32 2147483647, %v11075_v9 }
 0x392   : > { %v3782_v30 = vsel %vm3780_vm0, %v8120_v44, %v3781_v33  ;;  %v3661_v2 = vor.u32 4788187, %v3660_v5  ;;  %v3669_v22 = vsel %vm3584_vm2, %v3668_v48, %v11017_v24  ;;  %v4100_v10 = vand.u32 2139095040, %v11075_v9 }
 0x393   : > { %v3786_v29 = vsel %vm3779_vm1, %v3782_v30, %v3785_v17  ;;  %v3803_v11 = vsub.s32 32, %v3802_v16  ;;  %v3664_v6 = vcvt.s32.f32 %v3657_v37  ;;  %v3952_v15 = vadd.s32 536870912, %v3951_v51 }
 0x394   : > { %v3787_v55 = vsel %vm3777_vm4, nan, %v3786_v29  ;;  %v3662_v4 = vand.u32 2147483647, %v3661_v2  ;;  %v3805_v19 = vshll.u32 %v8349_v39, %v3802_v16  ;;  %v3808_v58 = vshll.u32 %v8350_v43, %v3802_v16 }
 0x395   : > { %7319 = vst [vmem:[%s8782_s8 + $0xe8] sm:$0xff] %v3787_v55  ;;  %v3806_v18 = vshrl.u32 %v8350_v43, %v3803_v11  ;;  %v3809_v14 = vshrl.u32 %v8351_v45, %v3803_v11  ;;  %v3812_v0 = vshrl.u32 %v8352_v47, %v3803_v11  ;;  %v11108_v24 = vshrl.u32 %v3952_v15, 30 }
 0x396   : > { %v3665_v23 = vmul.f32 %v3664_v6, %v3662_v4  ;;  %v3815_v27 = vshrl.u32 %v8353_v49, %v3803_v11  ;;  %v3671_v59 = vsel %vm11079_vm7, 0, %v3669_v22  ;;  %v3801_v60 = vshrl.u32 %v3800_v53, 5 }
 0x397   : > { %v3811_v1 = vshll.u32 %v8351_v45, %v3802_v16  ;;  %v3814_v28 = vshll.u32 %v8352_v47, %v3802_v16  ;;  %v3954_v63 = vshll.u32 %v11108_v24, 30  ;;  %v3807_v52 = vor.u32 %v3806_v18, %v3805_v19 }
 0x398   : > { %v3666_v42 = vxor.u32 2147483648, %v3665_v23  ;;  %v3810_v32 = vor.u32 %v3809_v14, %v3808_v58  ;;  %v3817_v50 = vshll.u32 %v8353_v49, %v3802_v16  ;;  %v3818_v44 = vshrl.u32 %v8354_v56, %v3803_v11 }
 0x399   : > { %v3813_v36 = vor.u32 %v3812_v0, %v3811_v1  ;;  %v3816_v7 = vor.u32 %v3815_v27, %v3814_v28  ;;  %v11121_v25 = vand.u32 3, %v3671_v59  ;;  %v11123_v62 = vsub.s32 %v3951_v51, %v3954_v63 }
 0x39a   : > { %v3667_v41 = vsel %vm3584_vm2, %v3666_v42, %v3665_v23  ;;  %v4101_v31 = vshrl.u32 %v4100_v10, 23  ;;  %v3804_v48 = vshrl.u32 %v8349_v39, %v3803_v11  ;;  %v3819_v40 = vor.u32 %v3818_v44, %v3817_v50  ;;  %v400_v11 = vpop.permute.xlu0 %399 }
 0x39b   : > { %v3670_v8 = vsel %vm11079_vm7, %v10842_v20, %v3667_v41  ;;  %v3836_v53 = vshll.u32 %v3796_v61, 8  ;;  %v3957_v33 = vsub.s32 0, %v11123_v62  ;;  %vm3820_vm8 = vcmp.lt.s32.totalorder %v3801_v60, 1 }
 0x39c   : > { %8123 = vcosq.f32 %v3670_v8  ;;  %vm3823_vm9 = vcmp.lt.s32.totalorder %v3801_v60, 4  ;;  %v3828_v5 = vsel %vm3820_vm8, %v3807_v52, %v3810_v32  ;;  %vm3821_vm11 = vcmp.lt.s32.totalorder %v3801_v60, 2 }
 0x39d   : > { %8125 = vsinq.f32 %v3670_v8  ;;  %v3825_v37 = vsel %vm3823_vm9, %v3813_v36, 2102212464  ;;  %v3829_v13 = vsel %vm3823_vm9, %v3816_v7, 920167782  ;;  %v7564_v17 = vmin.u32 %v3957_v33, %v11123_v62 }
 0x39e   : > { %vm3822_vm12 = vcmp.lt.s32.totalorder %v3801_v60, 3  ;;  %v7571_v38 = vadd.s32 4294967169, %v4101_v31  ;;  %v3824_v12 = vsel %vm3820_vm8, %v3804_v48, %v3807_v52  ;;  %v3832_v30 = vsel %vm3820_vm8, %v3810_v32, %v3813_v36 }
 0x39f   : > { %v3830_v16 = vsel %vm3822_vm12, %v3813_v36, %v3829_v13  ;;  %v3833_v2 = vsel %vm3823_vm9, %v3819_v40, 1326507024  ;;  %v3959_v51 = vclz %v7564_v17  ;;  %v3826_v61 = vsel %vm3822_vm12, %v3810_v32, %v3825_v37 }
 0x3a0   : > { %v3831_v29 = vsel %vm3821_vm11, %v3828_v5, %v3830_v16  ;;  %v3834_v22 = vsel %vm3822_vm12, %v3816_v7, %v3833_v2  ;;  %v4107_v18 = vadd.s32 1, %v7571_v38  ;;  %vm3674_vm13 = vweird.f32 %v10842_v20 }
 0x3a1   : > { %v3835_v10 = vsel %vm3821_vm11, %v3832_v30, %v3834_v22  ;;  %v11133_v55 = vmul.u32.u64.low %v3836_v53, %v3831_v29  ;;  %v11134_v4 = vmul.u32.u64.high %v3836_v53, %v3831_v29, %v11133_v55  ;;  %v7565_v6 = vadd.s32 4294967294, %v3959_v51  ;;  %v415_v22 = vpop.permute.xlu1 %414 }
 0x3a2   : > { %v11137_v15 = vmul.u32.u64.low %v3836_v53, %v3835_v10  ;;  %v11138_v19 = vmul.u32.u64.high %v3836_v53, %v3835_v10, %v11137_v15  ;;  %vm3893_vm14 = vcmp.lt.s32.totalorder %v10967_v21, 0  ;;  %v3827_v14 = vsel %vm3821_vm11, %v3824_v12, %v3826_v61 }
 0x3a3   : > { %v11144_v0 = vmul.f32 %v10941_v26, %v400_v11  ;;  %vm3680_vm15 = vcmp.eq.s32.totalorder %v11121_v25, 2  ;;  %vm7566_vm0 = vcmp.lt.s32.totalorder %v7565_v6, 0  ;;  %v4104_v23 = vand.u32 8388607, %v4097_v34 }
 0x3a4   : > { %vm4108_vm1 = vcmp.gt.s32.totalorder %v4107_v18, 0  ;;  %v3947_v58 = vadd.s32 %v11063_v54, %v11059_v46  ;;  %v3962_v27 = vsel %vm7566_vm0, 0, %v7565_v6  ;;  %v3846_v59 = vadd.s32 1, %v11134_v4 }
 0x3a5   : > { %v4109_v1 = vsel %vm4108_vm1, %v4107_v18, 0  ;;  %v3963_v60 = vsub.s32 32, %v3962_v27  ;;  %v3967_v42 = vsub.s32 4294967266, %v3962_v27  ;;  %v3977_v63 = vsub.s32 4, %v11108_v24 }
 0x3a6   : > { %v8124_v28 = vpop.eup %8123  ;;  %v3843_v52 = vmul.u32 %v3836_v53, %v3827_v14  ;;  %v3964_v7 = vshll.u32 %v11123_v62, %v3962_v27  ;;  %vm3845_vm2 = vc.u32 %v11138_v19, %v11133_v55  ;;  %v4111_v50 = vand.u32 31, %v4109_v1 }
 0x3a7   : > { %v8126_v32 = vpop.eup %8125  ;;  %v3681_v36 = vxor.u32 2147483648, %v8124_v28  ;;  %vm11158_vm3 = vcmp.le.f32.partialorder %v3891_v57, 0.7853982  ;;  %v3965_v54 = vshrl.u32 %v3947_v58, %v3963_v60  ;;  %v3968_v41 = vadd.s32 127, %v3967_v42 }
 0x3a8   : > { %v3678_v44 = vxor.u32 2147483648, %v8126_v32  ;;  %v3847_v31 = vsel %vm3845_vm2, %v3846_v59, %v11134_v4  ;;  %vm3677_vm4 = vcmp.eq.s32.totalorder %v11121_v25, 0  ;;  %v4112_v48 = vsub.s32 32, %v4111_v50 }
 0x3a9   : > { %v3682_v62 = vsel %vm3680_vm15, %v3681_v36, %v8126_v32  ;;  %v3848_v8 = vadd.s32 %v3847_v31, %v3843_v52  ;;  %vm3676_vm5 = vcmp.lt.s32.totalorder %v11121_v25, 2  ;;  %v3966_v53 = vor.u32 %v3965_v54, %v3964_v7 }
 0x3aa   : > { %v3679_v40 = vsel %vm3677_vm4, %v8124_v28, %v3678_v44  ;;  %v3969_v57 = vshll.u32 %v3968_v41, 23  ;;  %v3978_v37 = vsel %vm3893_vm14, %v3977_v63, %v11108_v24  ;;  %v4115_v13 = vshrl.u32 %v8350_v43, %v4112_v48  ;;  %v11196_v63 = vld [vmem:[%s13856_s2] ss:$0 sm:$0xff] }
 0x3ab   : > { %v3683_v33 = vsel %vm3676_vm5, %v3679_v40, %v3682_v62  ;;  %v3849_v5 = vadd.s32 536870912, %v3848_v8  ;;  %v4105_v12 = vor.u32 8388608, %v4104_v23  ;;  %v4118_v16 = vshrl.u32 %v8351_v45, %v4112_v48 }
 0x3ac   : > { %v3684_v17 = vsel %vm3674_vm13, nan, %v3683_v33  ;;  %v3970_v38 = vor.u32 4788187, %v3969_v57  ;;  %v4114_v30 = vshll.u32 %v8349_v39, %v4111_v50  ;;  %v4117_v2 = vshll.u32 %v8350_v43, %v4111_v50 }
 0x3ad   : > { %7318 = vst [vmem:[%s8782_s8 + $0xe0] sm:$0xff] %v3684_v17  ;;  %v11175_v25 = vshrl.u32 %v3849_v5, 30  ;;  %v4121_v51 = vshrl.u32 %v8352_v47, %v4112_v48  ;;  %v3973_v61 = vcvt.s32.f32 %v3966_v53  ;;  %v4123_v29 = vshll.u32 %v8352_v47, %v4111_v50 }
 0x3ae   : > { %v3971_v24 = vand.u32 2147483647, %v3970_v38  ;;  %v4124_v20 = vshrl.u32 %v8353_v49, %v4112_v48  ;;  %v4110_v10 = vshrl.u32 %v4109_v1, 5  ;;  %v4116_v4 = vor.u32 %v4115_v13, %v4114_v30 }
 0x3af   : > { %v3851_v11 = vshll.u32 %v11175_v25, 30  ;;  %v4120_v6 = vshll.u32 %v8351_v45, %v4111_v50  ;;  %v4119_v18 = vor.u32 %v4118_v16, %v4117_v2  ;;  %v4127_v23 = vshrl.u32 %v8354_v56, %v4112_v48 }
 0x3b0   : > { %v3974_v15 = vmul.f32 %v3973_v61, %v3971_v24  ;;  %v4125_v14 = vor.u32 %v4124_v20, %v4123_v29  ;;  %v3980_v58 = vsel %vm11158_vm3, 0, %v3978_v37  ;;  %v598_v28 = vmul.f32 %v10941_v26, %v415_v22 }
 0x3b1   : > { %v11187_v27 = vsub.s32 %v3848_v8, %v3851_v11  ;;  %v4122_v59 = vor.u32 %v4121_v51, %v4120_v6  ;;  %v4126_v42 = vshll.u32 %v8353_v49, %v4111_v50  ;;  %v11191_v1 = vshll.u32 %v4105_v12, 8 }
 0x3b2   : > { %v3975_v60 = vxor.u32 2147483648, %v3974_v15  ;;  %v11200_v52 = vadd.f32 %v11196_v63, %v11144_v0  ;;  %v4113_v36 = vshrl.u32 %v8349_v39, %v4112_v48  ;;  %vm4129_vm6 = vcmp.lt.s32.totalorder %v4110_v10, 1 }
 0x3b3   : > { %v3854_v32 = vsub.s32 0, %v11187_v27  ;;  %vm4132_vm7 = vcmp.lt.s32.totalorder %v4110_v10, 4  ;;  %v4128_v50 = vor.u32 %v4127_v23, %v4126_v42  ;;  %v4137_v44 = vsel %vm4129_vm6, %v4116_v4, %v4119_v18 }
 0x3b4   : > { %v3976_v7 = vsel %vm3893_vm14, %v3975_v60, %v3974_v15  ;;  %v4138_v54 = vsel %vm4132_vm7, %v4125_v14, 920167782  ;;  %vm4131_vm10 = vcmp.lt.s32.totalorder %v4110_v10, 3  ;;  %v4134_v31 = vsel %vm4132_vm7, %v4122_v59, 2102212464 }
 0x3b5   : > { %v3979_v41 = vsel %vm11158_vm3, %v10967_v21, %v3976_v7  ;;  %v7560_v0 = vmin.u32 %v3854_v32, %v11187_v27  ;;  %vm4130_vm8 = vcmp.lt.s32.totalorder %v4110_v10, 2  ;;  %v4133_v62 = vsel %vm4129_vm6, %v4113_v36, %v4116_v4 }
 0x3b6   : > { %8127 = vcosq.f32 %v3979_v41  ;;  %v4139_v8 = vsel %vm4131_vm10, %v4122_v59, %v4138_v54  ;;  %v4141_v53 = vsel %vm4129_vm6, %v4119_v18, %v4122_v59  ;;  %v4135_v46 = vsel %vm4131_vm10, %v4119_v18, %v4134_v31 }
 0x3b7   : > { %8129 = vsinq.f32 %v3979_v41  ;;  %v3856_v48 = vclz %v7560_v0  ;;  %v4140_v40 = vsel %vm4130_vm8, %v4137_v44, %v4139_v8  ;;  %v4142_v57 = vsel %vm4132_vm7, %v4128_v50, 1326507024 }
 0x3b8   : > { %v11220_v33 = vmul.u32.u64.low %v11191_v1, %v4140_v40  ;;  %v11221_v37 = vmul.u32.u64.high %v11191_v1, %v4140_v40, %v11220_v33  ;;  %v3984_v5 = vand.u32 3, %v3980_v58  ;;  %vm3790_vm9 = vcmp.lt.s32.totalorder %v11015_v3, 0 }
 0x3b9   : > { %v7561_v13 = vadd.s32 4294967294, %v3856_v48  ;;  %v4143_v17 = vsel %vm4131_vm10, %v4125_v14, %v4142_v57  ;;  %vm11228_vm11 = vcmp.le.f32.partialorder %v3788_v35, 0.7853982  ;;  %v3874_v12 = vsub.s32 4, %v11175_v25  ;;  %v410_v48 = vpop.permute.xlu0 %409 }
 0x3ba   : > { %v4144_v16 = vsel %vm4130_vm8, %v4141_v53, %v4143_v17  ;;  %v3997_v30 = vand.u32 2139095040, %v11200_v52  ;;  %v11236_v2 = vadd.f32 %v11196_v63, %v598_v28  ;;  %v4136_v51 = vsel %vm4130_vm8, %v4133_v62, %v4135_v46 }
 0x3bb   : > { %vm7562_vm12 = vcmp.lt.s32.totalorder %v7561_v13, 0  ;;  %v11240_v24 = vmul.u32.u64.low %v11191_v1, %v4144_v16  ;;  %v11241_v61 = vmul.u32.u64.high %v11191_v1, %v4144_v16, %v11240_v24  ;;  %v4155_v29 = vadd.s32 1, %v11221_v37 }
 0x3bc   : > { %v3859_v35 = vsel %vm7562_vm12, 0, %v7561_v13  ;;  %v3994_v20 = vand.u32 2147483647, %v11200_v52  ;;  %v3998_v22 = vshrl.u32 %v3997_v30, 23  ;;  %vm3983_vm13 = vweird.f32 %v10967_v21 }
 0x3bd   : > { %vm3985_vm14 = vcmp.lt.s32.totalorder %v3984_v5, 2  ;;  %v3844_v11 = vadd.s32 %v11133_v55, %v11138_v19  ;;  %v3860_v4 = vsub.s32 32, %v3859_v35  ;;  %v3864_v6 = vsub.s32 4294967266, %v3859_v35 }
 0x3be   : > { %v3875_v10 = vsel %vm3790_vm9, %v3874_v12, %v11175_v25  ;;  %v4152_v15 = vmul.u32 %v11191_v1, %v4136_v51  ;;  %v7567_v18 = vadd.s32 4294967169, %v3998_v22  ;;  %v4306_v14 = vand.u32 2139095040, %v11236_v2 }
 0x3bf   : > { %v3861_v23 = vshll.u32 %v11187_v27, %v3859_v35  ;;  %v3862_v58 = vshrl.u32 %v3844_v11, %v3860_v4  ;;  %v3865_v59 = vadd.s32 127, %v3864_v6  ;;  %vm4154_vm15 = vc.u32 %v11241_v61, %v11220_v33 }
 0x3c0   : > { %v8128_v28 = vpop.eup %8127  ;;  %v4156_v55 = vsel %vm4154_vm15, %v4155_v29, %v11221_v37  ;;  %v4001_v19 = vand.u32 8388607, %v3994_v20  ;;  %v4004_v60 = vadd.s32 1, %v7567_v18  ;;  %v4307_v25 = vshrl.u32 %v4306_v14, 23 }
 0x3c1   : > { %v8130_v42 = vpop.eup %8129  ;;  %v3990_v1 = vxor.u32 2147483648, %v8128_v28  ;;  %v3863_v32 = vor.u32 %v3862_v58, %v3861_v23  ;;  %v3866_v36 = vshll.u32 %v3865_v59, 23  ;;  %v4157_v7 = vadd.s32 %v4156_v55, %v4152_v15 }
 0x3c2   : > { %vm3986_vm0 = vcmp.eq.s32.totalorder %v3984_v5, 0  ;;  %v3987_v27 = vxor.u32 2147483648, %v8130_v42  ;;  %vm3989_vm1 = vcmp.eq.s32.totalorder %v3984_v5, 2  ;;  %vm4005_vm2 = vcmp.gt.s32.totalorder %v4004_v60, 0 }
 0x3c3   : > { %v3991_v50 = vsel %vm3989_vm1, %v3990_v1, %v8130_v42  ;;  %v3867_v44 = vor.u32 4788187, %v3866_v36  ;;  %v3877_v54 = vsel %vm11228_vm11, 0, %v3875_v10  ;;  %v4158_v41 = vadd.s32 536870912, %v4157_v7 }
 0x3c4   : > { %v3988_v0 = vsel %vm3986_vm0, %v8128_v28, %v3987_v27  ;;  %v4002_v31 = vor.u32 8388608, %v4001_v19  ;;  %v4006_v62 = vsel %vm4005_vm2, %v4004_v60, 0  ;;  %v7579_v8 = vadd.s32 4294967169, %v4307_v25 }
 0x3c5   : > { %v3992_v40 = vsel %vm3985_vm14, %v3988_v0, %v3991_v50  ;;  %v3868_v53 = vand.u32 2147483647, %v3867_v44  ;;  %v3870_v46 = vcvt.s32.f32 %v3863_v32  ;;  %v11262_v57 = vshrl.u32 %v4158_v41, 30 }
 0x3c6   : > { %v3993_v37 = vsel %vm3983_vm13, nan, %v3992_v40  ;;  %v4008_v13 = vand.u32 31, %v4006_v62  ;;  %v11267_v12 = vand.u32 3, %v3877_v54  ;;  %v11271_v30 = vmul.f32 %v10941_v26, %v410_v48 }
 0x3c7   : > { %7321 = vst [vmem:[%s8782_s8 + $0xf8] sm:$0xff] %v3993_v37  ;;  %v3871_v17 = vmul.f32 %v3870_v46, %v3868_v53  ;;  %v4160_v16 = vshll.u32 %v11262_v57, 30  ;;  %v11273_v5 = vshll.u32 %v4002_v31, 8  ;;  %v4303_v24 = vand.u32 2147483647, %v11236_v2 }
 0x3c8   : > { %v4009_v51 = vsub.s32 32, %v4008_v13  ;;  %v4313_v35 = vadd.s32 1, %v7579_v8  ;;  %v4007_v21 = vshrl.u32 %v4006_v62, 5  ;;  %v4011_v11 = vshll.u32 %v8349_v39, %v4008_v13 }
 0x3c9   : > { %v3872_v29 = vxor.u32 2147483648, %v3871_v17  ;;  %v11276_v22 = vsub.s32 %v4157_v7, %v4160_v16  ;;  %v4014_v6 = vshll.u32 %v8350_v43, %v4008_v13  ;;  %v4017_v26 = vshll.u32 %v8351_v45, %v4008_v13 }
 0x3ca   : > { %v4012_v4 = vshrl.u32 %v8350_v43, %v4009_v51  ;;  %v4015_v10 = vshrl.u32 %v8351_v45, %v4009_v51  ;;  %v4018_v14 = vshrl.u32 %v8352_v47, %v4009_v51  ;;  %v4020_v23 = vshll.u32 %v8352_v47, %v4008_v13 }
 0x3cb   : > { %v3873_v15 = vsel %vm3790_vm9, %v3872_v29, %v3871_v17  ;;  %v4163_v18 = vsub.s32 0, %v11276_v22  ;;  %v4021_v55 = vshrl.u32 %v8353_v49, %v4009_v51  ;;  %v11295_v60 = vand.u32 8388607, %v4303_v24 }
 0x3cc   : > { %v3876_v58 = vsel %vm11228_vm11, %v11015_v3, %v3873_v15  ;;  %v4013_v59 = vor.u32 %v4012_v4, %v4011_v11  ;;  %v4016_v28 = vor.u32 %v4015_v10, %v4014_v6  ;;  %vm4314_vm3 = vcmp.gt.s32.totalorder %v4313_v35, 0 }
 0x3cd   : > { %8131 = vcosq.f32 %v3876_v58  ;;  %v7572_v19 = vmin.u32 %v4163_v18, %v11276_v22  ;;  %v4019_v25 = vor.u32 %v4018_v14, %v4017_v26  ;;  %v4022_v42 = vor.u32 %v4021_v55, %v4020_v23 }
 0x3ce   : > { %8133 = vsinq.f32 %v3876_v58  ;;  %vm4026_vm4 = vcmp.lt.s32.totalorder %v4007_v21, 1  ;;  %v4010_v38 = vshrl.u32 %v8349_v39, %v4009_v51  ;;  %v4023_v32 = vshll.u32 %v8353_v49, %v4008_v13 }
 0x3cf   : > { %v4165_v1 = vclz %v7572_v19  ;;  %v4024_v36 = vshrl.u32 %v8354_v56, %v4009_v51  ;;  %vm4027_vm5 = vcmp.lt.s32.totalorder %v4007_v21, 2  ;;  %vm4028_vm6 = vcmp.lt.s32.totalorder %v4007_v21, 3 }
 0x3d0   : > { %vm4029_vm7 = vcmp.lt.s32.totalorder %v4007_v21, 4  ;;  %v4034_v7 = vsel %vm4026_vm4, %v4013_v59, %v4016_v28  ;;  %vm3883_vm10 = vcmp.eq.s32.totalorder %v11267_v12, 0  ;;  %v4030_v41 = vsel %vm4026_vm4, %v4010_v38, %v4013_v59 }
 0x3d1   : > { %v7573_v27 = vadd.s32 4294967294, %v4165_v1  ;;  %v4025_v50 = vor.u32 %v4024_v36, %v4023_v32  ;;  %v4031_v44 = vsel %vm4029_vm7, %v4019_v25, 2102212464  ;;  %v4035_v54 = vsel %vm4029_vm7, %v4022_v42, 920167782 }
 0x3d2   : > { %v4032_v0 = vsel %vm4028_vm6, %v4016_v28, %v4031_v44  ;;  %v4036_v31 = vsel %vm4028_vm6, %v4019_v25, %v4035_v54  ;;  %v4038_v62 = vsel %vm4026_vm4, %v4016_v28, %v4019_v25  ;;  %vm3882_vm8 = vcmp.lt.s32.totalorder %v11267_v12, 2 }
 0x3d3   : > { %vm7574_vm9 = vcmp.lt.s32.totalorder %v7573_v27, 0  ;;  %v4037_v8 = vsel %vm4027_vm5, %v4034_v7, %v4036_v31  ;;  %v4039_v48 = vsel %vm4029_vm7, %v4025_v50, 1326507024  ;;  %v4315_v40 = vsel %vm4314_vm3, %v4313_v35, 0 }
 0x3d4   : > { %vm3880_vm11 = vweird.f32 %v11015_v3  ;;  %v4168_v53 = vsel %vm7574_vm9, 0, %v7573_v27  ;;  %v4040_v46 = vsel %vm4028_vm6, %v4022_v42, %v4039_v48  ;;  %v4153_v17 = vadd.s32 %v11220_v33, %v11241_v61 }
 0x3d5   : > { %v11312_v37 = vmul.u32.u64.low %v11273_v5, %v4037_v8  ;;  %v11313_v13 = vmul.u32.u64.high %v11273_v5, %v4037_v8, %v11312_v37  ;;  %v4169_v16 = vsub.s32 32, %v4168_v53  ;;  %v4173_v51 = vsub.s32 4294967266, %v4168_v53 }
 0x3d6   : > { %v4041_v29 = vsel %vm4027_vm5, %v4038_v62, %v4040_v46  ;;  %vm3886_vm12 = vcmp.eq.s32.totalorder %v11267_v12, 2  ;;  %v4033_v35 = vsel %vm4027_vm5, %v4030_v41, %v4032_v0  ;;  %vm4099_vm13 = vcmp.lt.s32.totalorder %v11075_v9, 0 }
 0x3d7   : > { %v11322_v11 = vmul.u32.u64.low %v11273_v5, %v4041_v29  ;;  %v11323_v4 = vmul.u32.u64.high %v11273_v5, %v4041_v29, %v11322_v11  ;;  %v8132_v6 = vpop.eup %8131  ;;  %v4170_v10 = vshll.u32 %v11276_v22, %v4168_v53  ;;  %v4171_v26 = vshrl.u32 %v4153_v17, %v4169_v16 }
 0x3d8   : > { %v4174_v15 = vadd.s32 127, %v4173_v51  ;;  %v4317_v33 = vand.u32 31, %v4315_v40  ;;  %v8134_v61 = vpop.eup %8133  ;;  %v3887_v18 = vxor.u32 2147483648, %v8132_v6  ;;  %v4183_v14 = vsub.s32 4, %v11262_v57 }
 0x3d9   : > { %v4052_v23 = vadd.s32 1, %v11313_v13  ;;  %v4311_v21 = vor.u32 8388608, %v11295_v60  ;;  %v3884_v58 = vxor.u32 2147483648, %v8134_v61  ;;  %v4172_v59 = vor.u32 %v4171_v26, %v4170_v10 }
 0x3da   : > { %v4175_v28 = vshll.u32 %v4174_v15, 23  ;;  %v4318_v55 = vsub.s32 32, %v4317_v33  ;;  %v3888_v19 = vsel %vm3886_vm12, %v3887_v18, %v8134_v61  ;;  %v4049_v22 = vmul.u32 %v11273_v5, %v4033_v35 }
 0x3db   : > { %vm4051_vm14 = vc.u32 %v11323_v4, %v11312_v37  ;;  %v11335_v25 = vshrl.u32 %v4315_v40, 5  ;;  %v3885_v42 = vsel %vm3883_vm10, %v8132_v6, %v3884_v58  ;;  %vm11341_vm15 = vcmp.le.f32.partialorder %v4097_v34, 0.7853982 }
 0x3dc   : > { %v4176_v1 = vor.u32 4788187, %v4175_v28  ;;  %v4053_v38 = vsel %vm4051_vm14, %v4052_v23, %v11313_v13  ;;  %v4320_v5 = vshll.u32 %v8349_v39, %v4317_v33  ;;  %v3889_v32 = vsel %vm3882_vm8, %v3885_v42, %v3888_v19 }
 0x3dd   : > { %v4179_v36 = vcvt.s32.f32 %v4172_v59  ;;  %v4054_v7 = vadd.s32 %v4053_v38, %v4049_v22  ;;  %v4321_v27 = vshrl.u32 %v8350_v43, %v4318_v55  ;;  %v3890_v50 = vsel %vm3880_vm11, nan, %v3889_v32  ;;  %v425_v22 = vpop.permute.xlu1 %424 }
 0x3de   : > { %v4177_v44 = vand.u32 2147483647, %v4176_v1  ;;  %v4323_v34 = vshll.u32 %v8350_v43, %v4317_v33  ;;  %v4324_v54 = vshrl.u32 %v8351_v45, %v4318_v55  ;;  %7320 = vst [vmem:[%s8782_s8 + $0xf0] sm:$0xff] %v3890_v50  ;;  %v4326_v31 = vshll.u32 %v8351_v45, %v4317_v33  ;;  %v11424_v50 = vld [vmem:[%s13855_s1] ss:$0 sm:$0xff] }
 0x3df   : > { %v4055_v41 = vadd.s32 536870912, %v4054_v7  ;;  %v4322_v0 = vor.u32 %v4321_v27, %v4320_v5  ;;  %v4327_v12 = vshrl.u32 %v8352_v47, %v4318_v55  ;;  %v4329_v48 = vshll.u32 %v8352_v47, %v4317_v33 }
 0x3e0   : > { %v4180_v62 = vmul.f32 %v4179_v36, %v4177_v44  ;;  %v4325_v8 = vor.u32 %v4324_v54, %v4323_v34  ;;  %v4330_v40 = vshrl.u32 %v8353_v49, %v4318_v55  ;;  %v4184_v3 = vsel %vm4099_vm13, %v4183_v14, %v11262_v57 }
 0x3e1   : > { %v11362_v53 = vshrl.u32 %v4055_v41, 30  ;;  %v4333_v46 = vshrl.u32 %v8354_v56, %v4318_v55  ;;  %v11367_v13 = vadd.f32 %v11196_v63, %v11271_v30  ;;  %v4328_v16 = vor.u32 %v4327_v12, %v4326_v31 }
 0x3e2   : > { %v4181_v17 = vxor.u32 2147483648, %v4180_v62  ;;  %v4331_v51 = vor.u32 %v4330_v40, %v4329_v48  ;;  %v4332_v29 = vshll.u32 %v8353_v49, %v4317_v33  ;;  %vm4335_vm0 = vcmp.lt.s32.totalorder %v11335_v25, 1 }
 0x3e3   : > { %v4057_v35 = vshll.u32 %v11362_v53, 30  ;;  %vm4338_vm1 = vcmp.lt.s32.totalorder %v11335_v25, 4  ;;  %v11373_v57 = vshll.u32 %v4311_v21, 8  ;;  %v4343_v30 = vsel %vm4335_vm0, %v4322_v0, %v4325_v8 }
 0x3e4   : > { %v4182_v11 = vsel %vm4099_vm13, %v4181_v17, %v4180_v62  ;;  %v4334_v6 = vor.u32 %v4333_v46, %v4332_v29  ;;  %v4344_v10 = vsel %vm4338_vm1, %v4331_v51, 920167782  ;;  %v4186_v15 = vsel %vm11341_vm15, 0, %v4184_v3 }
 0x3e5   : > { %v4185_v26 = vsel %vm11341_vm15, %v11075_v9, %v4182_v11  ;;  %v11386_v33 = vsub.s32 %v4054_v7, %v4057_v35  ;;  %vm4337_vm2 = vcmp.lt.s32.totalorder %v11335_v25, 3  ;;  %v4319_v61 = vshrl.u32 %v8349_v39, %v4318_v55 }
 0x3e6   : > { %8135 = vcosq.f32 %v4185_v26  ;;  %vm4336_vm3 = vcmp.lt.s32.totalorder %v11335_v25, 2  ;;  %v4345_v18 = vsel %vm4337_vm2, %v4328_v16, %v4344_v10  ;;  %v4340_v23 = vsel %vm4338_vm1, %v4328_v16, 2102212464 }
 0x3e7   : > { %8137 = vsinq.f32 %v4185_v26  ;;  %v4060_v14 = vsub.s32 0, %v11386_v33  ;;  %v4346_v21 = vsel %vm4336_vm3, %v4343_v30, %v4345_v18  ;;  %v4347_v58 = vsel %vm4335_vm0, %v4325_v8, %v4328_v16 }
 0x3e8   : > { %v4348_v59 = vsel %vm4338_vm1, %v4334_v6, 1326507024  ;;  %v11403_v28 = vmul.u32.u64.low %v11373_v57, %v4346_v21  ;;  %v11404_v55 = vmul.u32.u64.high %v11373_v57, %v4346_v21, %v11403_v28  ;;  %v4190_v42 = vand.u32 3, %v4186_v15 }
 0x3e9   : > { %v7568_v19 = vmin.u32 %v4060_v14, %v11386_v33  ;;  %v4339_v60 = vsel %vm4335_vm0, %v4319_v61, %v4322_v0  ;;  %v4341_v1 = vsel %vm4337_vm2, %v4325_v8, %v4340_v23  ;;  %v4349_v38 = vsel %vm4337_vm2, %v4331_v51, %v4348_v59 }
 0x3ea   : > { %v4350_v32 = vsel %vm4336_vm3, %v4347_v58, %v4349_v38  ;;  %v4203_v36 = vand.u32 2139095040, %v11367_v13  ;;  %v600_v44 = vmul.f32 %v11424_v50, %v425_v22  ;;  %vm4189_vm4 = vweird.f32 %v11075_v9 }
 0x3eb   : > { %v4062_v5 = vclz %v7568_v19  ;;  %v11418_v7 = vmul.u32.u64.low %v11373_v57, %v4350_v32  ;;  %v11419_v27 = vmul.u32.u64.high %v11373_v57, %v4350_v32, %v11418_v7  ;;  %v4342_v54 = vsel %vm4336_vm3, %v4339_v60, %v4341_v1 }
 0x3ec   : > { %v4200_v41 = vand.u32 2147483647, %v11367_v13  ;;  %v4204_v0 = vshrl.u32 %v4203_v36, 23  ;;  %vm4191_vm5 = vcmp.lt.s32.totalorder %v4190_v42, 2  ;;  %vm4192_vm6 = vcmp.eq.s32.totalorder %v4190_v42, 0 }
 0x3ed   : > { %v7569_v34 = vadd.s32 4294967294, %v4062_v5  ;;  %vm3996_vm7 = vcmp.lt.s32.totalorder %v11200_v52, 0  ;;  %v4361_v31 = vadd.s32 1, %v11404_v55  ;;  %vm4195_vm10 = vcmp.eq.s32.totalorder %v4190_v42, 2 }
 0x3ee   : > { %v4050_v12 = vadd.s32 %v11312_v37, %v11323_v4  ;;  %v7575_v62 = vadd.s32 4294967169, %v4204_v0  ;;  %v4080_v25 = vsub.s32 4, %v11362_v53  ;;  %v4358_v40 = vmul.u32 %v11373_v57, %v4342_v54 }
 0x3ef   : > { %vm7570_vm8 = vcmp.lt.s32.totalorder %v7569_v34, 0  ;;  %vm4360_vm9 = vc.u32 %v11419_v27, %v11403_v28  ;;  %v4207_v51 = vand.u32 8388607, %v4200_v41  ;;  %v11449_v15 = vadd.f32 %v11196_v63, %v600_v44 }
 0x3f0   : > { %v8136_v8 = vpop.eup %8135  ;;  %v4065_v48 = vsel %vm7570_vm8, 0, %v7569_v34  ;;  %v4362_v4 = vsel %vm4360_vm9, %v4361_v31, %v11404_v55  ;;  %v4210_v35 = vadd.s32 1, %v7575_v62  ;;  %v4081_v26 = vsel %vm3996_vm7, %v4080_v25, %v11362_v53 }
 0x3f1   : > { %v8138_v3 = vpop.eup %8137  ;;  %v4196_v46 = vxor.u32 2147483648, %v8136_v8  ;;  %v4066_v17 = vsub.s32 32, %v4065_v48  ;;  %v4070_v16 = vsub.s32 4294967266, %v4065_v48  ;;  %v4067_v37 = vshll.u32 %v11386_v33, %v4065_v48 }
 0x3f2   : > { %v4193_v29 = vxor.u32 2147483648, %v8138_v3  ;;  %v4363_v30 = vadd.s32 %v4362_v4, %v4358_v40  ;;  %vm4211_vm11 = vcmp.gt.s32.totalorder %v4210_v35, 0  ;;  %vm11456_vm12 = vcmp.le.f32.partialorder %v3994_v20, 0.7853982 }
 0x3f3   : > { %v4197_v11 = vsel %vm4195_vm10, %v4196_v46, %v8138_v3  ;;  %v4068_v57 = vshrl.u32 %v4050_v12, %v4066_v17  ;;  %v4071_v6 = vadd.s32 127, %v4070_v16  ;;  %v4208_v58 = vor.u32 8388608, %v4207_v51 }
 0x3f4   : > { %v4194_v10 = vsel %vm4192_vm6, %v8136_v8, %v4193_v29  ;;  %v4364_v14 = vadd.s32 536870912, %v4363_v30  ;;  %v4212_v53 = vsel %vm4211_vm11, %v4210_v35, 0  ;;  %v4083_v55 = vsel %vm11456_vm12, 0, %v4081_v26 }
 0x3f5   : > { %v4198_v33 = vsel %vm4191_vm5, %v4194_v10, %v4197_v11  ;;  %v4069_v61 = vor.u32 %v4068_v57, %v4067_v37  ;;  %v4072_v18 = vshll.u32 %v4071_v6, 23  ;;  %v4214_v22 = vand.u32 31, %v4212_v53 }
 0x3f6   : > { %v4199_v23 = vsel %vm4189_vm4, nan, %v4198_v33  ;;  %v11463_v19 = vshrl.u32 %v4364_v14, 30  ;;  %v4512_v42 = vand.u32 2139095040, %v11449_v15  ;;  %v11467_v20 = vand.u32 3, %v4083_v55 }
 0x3f7   : > { %7323 = vst [vmem:[%s8782_s8 + $0x108] sm:$0xff] %v4199_v23  ;;  %v4073_v59 = vor.u32 4788187, %v4072_v18  ;;  %v4076_v60 = vcvt.s32.f32 %v4069_v61  ;;  %v4215_v38 = vsub.s32 32, %v4214_v22  ;;  %v11469_v5 = vshll.u32 %v4208_v58, 8 }
 0x3f8   : > { %v4366_v1 = vshll.u32 %v11463_v19, 30  ;;  %v4359_v36 = vadd.s32 %v11403_v28, %v11419_v27  ;;  %v4509_v44 = vand.u32 2147483647, %v11449_v15  ;;  %v4217_v34 = vshll.u32 %v8349_v39, %v4214_v22 }
 0x3f9   : > { %v4074_v9 = vand.u32 2147483647, %v4073_v59  ;;  %v4218_v54 = vshrl.u32 %v8350_v43, %v4215_v38  ;;  %v4221_v0 = vshrl.u32 %v8351_v45, %v4215_v38  ;;  %v4513_v31 = vshrl.u32 %v4512_v42, 23 }
 0x3fa   : > { %v11473_v7 = vsub.s32 %v4363_v30, %v4366_v1  ;;  %v4220_v8 = vshll.u32 %v8350_v43, %v4214_v22  ;;  %v4224_v48 = vshrl.u32 %v8352_v47, %v4215_v38  ;;  %v4213_v25 = vshrl.u32 %v4212_v53, 5 }
 0x3fb   : > { %v4077_v32 = vmul.f32 %v4076_v60, %v4074_v9  ;;  %v4223_v28 = vshll.u32 %v8351_v45, %v4214_v22  ;;  %v4226_v27 = vshll.u32 %v8352_v47, %v4214_v22  ;;  %v4227_v40 = vshrl.u32 %v8353_v49, %v4215_v38 }
 0x3fc   : > { %v4369_v62 = vsub.s32 0, %v11473_v7  ;;  %v4219_v17 = vor.u32 %v4218_v54, %v4217_v34  ;;  %v4222_v16 = vor.u32 %v4221_v0, %v4220_v8  ;;  %v7587_v4 = vadd.s32 4294967169, %v4513_v31 }
 0x3fd   : > { %v4078_v12 = vxor.u32 2147483648, %v4077_v32  ;;  %v4225_v29 = vor.u32 %v4224_v48, %v4223_v28  ;;  %v4228_v37 = vor.u32 %v4227_v40, %v4226_v27  ;;  %v4229_v11 = vshll.u32 %v8353_v49, %v4214_v22 }
 0x3fe   : > { %v7580_v46 = vmin.u32 %v4369_v62, %v11473_v7  ;;  %v4230_v57 = vshrl.u32 %v8354_v56, %v4215_v38  ;;  %v4216_v6 = vshrl.u32 %v8349_v39, %v4215_v38  ;;  %vm4232_vm13 = vcmp.lt.s32.totalorder %v4213_v25, 1 }
 0x3ff   : > { %v4079_v3 = vsel %vm3996_vm7, %v4078_v12, %v4077_v32  ;;  %vm4233_vm14 = vcmp.lt.s32.totalorder %v4213_v25, 2  ;;  %vm4235_vm15 = vcmp.lt.s32.totalorder %v4213_v25, 4  ;;  %v4240_v26 = vsel %vm4232_vm13, %v4219_v17, %v4222_v16 }
 0x400   : > { %v4082_v51 = vsel %vm11456_vm12, %v11200_v52, %v4079_v3  ;;  %v4371_v35 = vclz %v7580_v46  ;;  %v4231_v10 = vor.u32 %v4230_v57, %v4229_v11  ;;  %vm4234_vm0 = vcmp.lt.s32.totalorder %v4213_v25, 3  ;;  %v420_v3 = vpop.permute.xlu0 %419 }
 0x401   : > { %8139 = vcosq.f32 %v4082_v51  ;;  %v4237_v33 = vsel %vm4235_vm15, %v4225_v29, 2102212464  ;;  %v4241_v61 = vsel %vm4235_vm15, %v4228_v37, 920167782  ;;  %v4244_v18 = vsel %vm4232_vm13, %v4222_v16, %v4225_v29 }
 0x402   : > { %8141 = vsinq.f32 %v4082_v51  ;;  %v7581_v30 = vadd.s32 4294967294, %v4371_v35  ;;  %v4242_v14 = vsel %vm4234_vm0, %v4225_v29, %v4241_v61  ;;  %v4245_v23 = vsel %vm4235_vm15, %v4231_v10, 1326507024 }
 0x403   : > { %v4519_v21 = vadd.s32 1, %v7587_v4  ;;  %v4236_v53 = vsel %vm4232_vm13, %v4216_v6, %v4219_v17  ;;  %v4243_v59 = vsel %vm4233_vm14, %v4240_v26, %v4242_v14  ;;  %v4246_v55 = vsel %vm4234_vm0, %v4228_v37, %v4245_v23 }
 0x404   : > { %vm7582_vm1 = vcmp.lt.s32.totalorder %v7581_v30, 0  ;;  %vm4088_vm2 = vcmp.lt.s32.totalorder %v11467_v20, 2  ;;  %vm4305_vm3 = vcmp.lt.s32.totalorder %v11236_v2, 0  ;;  %v4238_v9 = vsel %vm4234_vm0, %v4222_v16, %v4237_v33 }
 0x405   : > { %v4374_v58 = vsel %vm7582_vm1, 0, %v7581_v30  ;;  %v4247_v60 = vsel %vm4233_vm14, %v4244_v18, %v4246_v55  ;;  %vm4086_vm4 = vweird.f32 %v11200_v52  ;;  %vm4520_vm5 = vcmp.gt.s32.totalorder %v4519_v21, 0  ;;  %v435_v52 = vpop.permute.xlu1 %434 }
 0x406   : > { %v4375_v22 = vsub.s32 32, %v4374_v58  ;;  %v4379_v42 = vsub.s32 4294967266, %v4374_v58  ;;  %v11503_v1 = vmul.u32.u64.low %v11469_v5, %v4247_v60  ;;  %v11504_v38 = vmul.u32.u64.high %v11469_v5, %v4247_v60, %v11503_v1 }
 0x407   : > { %v11507_v32 = vmul.u32.u64.low %v11469_v5, %v4243_v59  ;;  %v11508_v34 = vmul.u32.u64.high %v11469_v5, %v4243_v59, %v11507_v32  ;;  %v4376_v54 = vshll.u32 %v11473_v7, %v4374_v58  ;;  %vm4089_vm6 = vcmp.eq.s32.totalorder %v11467_v20, 0 }
 0x408   : > { %v4377_v0 = vshrl.u32 %v4359_v36, %v4375_v22  ;;  %v4380_v31 = vadd.s32 127, %v4379_v42  ;;  %v4239_v12 = vsel %vm4233_vm14, %v4236_v53, %v4238_v9  ;;  %v4516_v62 = vand.u32 8388607, %v4509_v44 }
 0x409   : > { %v4521_v8 = vsel %vm4520_vm5, %v4519_v21, 0  ;;  %vm4092_vm7 = vcmp.eq.s32.totalorder %v11467_v20, 2  ;;  %v4389_v36 = vsub.s32 4, %v11463_v19  ;;  %vm4257_vm10 = vc.u32 %v11504_v38, %v11507_v32 }
 0x40a   : > { %v4378_v28 = vor.u32 %v4377_v0, %v4376_v54  ;;  %v4381_v27 = vshll.u32 %v4380_v31, 23  ;;  %v4523_v40 = vand.u32 31, %v4521_v8  ;;  %v4258_v25 = vadd.s32 1, %v11508_v34 }
 0x40b   : > { %v8140_v48 = vpop.eup %8139  ;;  %vm11523_vm8 = vcmp.le.f32.partialorder %v4303_v24, 0.7853982  ;;  %v4255_v29 = vmul.u32 %v11469_v5, %v4239_v12  ;;  %v4517_v11 = vor.u32 8388608, %v4516_v62  ;;  %v599_v57 = vmul.f32 %v11424_v50, %v420_v3 }
 0x40c   : > { %v8142_v46 = vpop.eup %8141  ;;  %v4093_v7 = vxor.u32 2147483648, %v8140_v48  ;;  %v4382_v51 = vor.u32 4788187, %v4381_v27  ;;  %v4524_v37 = vsub.s32 32, %v4523_v40  ;;  %v4259_v35 = vsel %vm4257_vm10, %v4258_v25, %v11508_v34 }
 0x40d   : > { %v4090_v17 = vxor.u32 2147483648, %v8142_v46  ;;  %v4385_v10 = vcvt.s32.f32 %v4378_v28  ;;  %v4260_v24 = vadd.s32 %v4259_v35, %v4255_v29  ;;  %v4390_v5 = vsel %vm4305_vm3, %v4389_v36, %v11463_v19 }
 0x40e   : > { %v4094_v4 = vsel %vm4092_vm7, %v4093_v7, %v8142_v46  ;;  %v4383_v30 = vand.u32 2147483647, %v4382_v51  ;;  %v4527_v33 = vshrl.u32 %v8350_v43, %v4524_v37  ;;  %v4530_v61 = vshrl.u32 %v8351_v45, %v4524_v37 }
 0x40f   : > { %v4091_v6 = vsel %vm4089_vm6, %v8140_v48, %v4090_v17  ;;  %v4261_v23 = vadd.s32 536870912, %v4260_v24  ;;  %v4533_v21 = vshrl.u32 %v8352_v47, %v4524_v37  ;;  %v4522_v58 = vshrl.u32 %v4521_v8, 5 }
 0x410   : > { %v4095_v26 = vsel %vm4088_vm2, %v4091_v6, %v4094_v4  ;;  %v4386_v14 = vmul.f32 %v4385_v10, %v4383_v30  ;;  %v4526_v20 = vshll.u32 %v8349_v39, %v4523_v40  ;;  %v4529_v53 = vshll.u32 %v8350_v43, %v4523_v40 }
 0x411   : > { %v4096_v18 = vsel %vm4086_vm4, nan, %v4095_v26  ;;  %v4536_v59 = vshrl.u32 %v8353_v49, %v4524_v37  ;;  %v4262_v55 = vshrl.u32 %v4261_v23, 30  ;;  %v4532_v22 = vshll.u32 %v8351_v45, %v4523_v40 }
 0x412   : > { %7322 = vst [vmem:[%s8782_s8 + $0x100] sm:$0xff] %v4096_v18  ;;  %v4387_v19 = vxor.u32 2147483648, %v4386_v14  ;;  %v4535_v42 = vshll.u32 %v8352_v47, %v4523_v40  ;;  %v4528_v9 = vor.u32 %v4527_v33, %v4526_v20  ;;  %v4531_v60 = vor.u32 %v4530_v61, %v4529_v53 }
 0x413   : > { %v4538_v1 = vshll.u32 %v8353_v49, %v4523_v40  ;;  %v4539_v34 = vshrl.u32 %v8354_v56, %v4524_v37  ;;  %v4263_v0 = vshll.u32 %v4262_v55, 30  ;;  %v4534_v31 = vor.u32 %v4533_v21, %v4532_v22 }
 0x414   : > { %v4388_v54 = vsel %vm4305_vm3, %v4387_v19, %v4386_v14  ;;  %v4537_v12 = vor.u32 %v4536_v59, %v4535_v42  ;;  %v11555_v48 = vshll.u32 %v4517_v11, 8  ;;  %v602_v28 = vmul.f32 %v11424_v50, %v435_v52 }
 0x415   : > { %v4391_v62 = vsel %vm11523_vm8, %v11236_v2, %v4388_v54  ;;  %v4540_v8 = vor.u32 %v4539_v34, %v4538_v1  ;;  %v4392_v27 = vsel %vm11523_vm8, 0, %v4390_v5  ;;  %v11560_v40 = vsub.s32 %v4260_v24, %v4263_v0 }
 0x416   : > { %8143 = vcosq.f32 %v4391_v62  ;;  %v11563_v3 = vadd.f32 %v11196_v63, %v599_v57  ;;  %vm4541_vm9 = vcmp.lt.s32.totalorder %v4522_v58, 1  ;;  %vm4543_vm11 = vcmp.lt.s32.totalorder %v4522_v58, 3 }
 0x417   : > { %8145 = vsinq.f32 %v4391_v62  ;;  %vm4544_vm12 = vcmp.lt.s32.totalorder %v4522_v58, 4  ;;  %v4266_v46 = vsub.s32 0, %v11560_v40  ;;  %v4549_v36 = vsel %vm4541_vm9, %v4528_v9, %v4531_v60 }
 0x418   : > { %v4546_v7 = vsel %vm4544_vm12, %v4534_v31, 2102212464  ;;  %v4550_v25 = vsel %vm4544_vm12, %v4537_v12, 920167782  ;;  %v4525_v17 = vshrl.u32 %v8349_v39, %v4524_v37  ;;  %v4553_v51 = vsel %vm4541_vm9, %v4531_v60, %v4534_v31 }
 0x419   : > { %v4551_v16 = vsel %vm4543_vm11, %v4534_v31, %v4550_v25  ;;  %v4554_v29 = vsel %vm4544_vm12, %v4540_v8, 1326507024  ;;  %v4396_v4 = vand.u32 3, %v4392_v27  ;;  %v7576_v35 = vmin.u32 %v4266_v46, %v11560_v40  ;;  %v445_v27 = vpop.permute.xlu1 %444 }
 0x41a   : > { %v4286_v11 = vsub.s32 4, %v4262_v55  ;;  %vm4542_vm13 = vcmp.lt.s32.totalorder %v4522_v58, 2  ;;  %v4545_v57 = vsel %vm4541_vm9, %v4525_v17, %v4528_v9  ;;  %v4547_v6 = vsel %vm4543_vm11, %v4531_v60, %v4546_v7 }
 0x41b   : > { %v4552_v30 = vsel %vm4542_vm13, %v4549_v36, %v4551_v16  ;;  %v4555_v10 = vsel %vm4543_vm11, %v4537_v12, %v4554_v29  ;;  %v4268_v24 = vclz %v7576_v35  ;;  %vm4395_vm14 = vweird.f32 %v11236_v2 }
 0x41c   : > { %v4556_v26 = vsel %vm4542_vm13, %v4553_v51, %v4555_v10  ;;  %v11572_v5 = vmul.u32.u64.low %v11555_v48, %v4552_v30  ;;  %v11573_v37 = vmul.u32.u64.high %v11555_v48, %v4552_v30, %v11572_v5  ;;  %vm4202_vm15 = vcmp.lt.s32.totalorder %v11367_v13, 0 }
 0x41d   : > { %v11579_v33 = vmul.u32.u64.low %v11555_v48, %v4556_v26  ;;  %v11580_v61 = vmul.u32.u64.high %v11555_v48, %v4556_v26, %v11579_v33  ;;  %v4409_v18 = vand.u32 2139095040, %v11563_v3  ;;  %vm4397_vm0 = vcmp.lt.s32.totalorder %v4396_v4, 2 }
 0x41e   : > { %vm11585_vm1 = vcmp.le.f32.partialorder %v4200_v41, 0.7853982  ;;  %v7577_v23 = vadd.s32 4294967294, %v4268_v24  ;;  %v4548_v21 = vsel %vm4542_vm13, %v4545_v57, %v4547_v6  ;;  %v4406_v58 = vand.u32 2147483647, %v11563_v3 }
 0x41f   : > { %vm4398_vm2 = vcmp.eq.s32.totalorder %v4396_v4, 0  ;;  %vm4401_vm3 = vcmp.eq.s32.totalorder %v4396_v4, 2  ;;  %v4410_v20 = vshrl.u32 %v4409_v18, 23  ;;  %v11591_v53 = vadd.f32 %v11196_v63, %v602_v28 }
 0x420   : > { %v8144_v59 = vpop.eup %8143  ;;  %v4256_v19 = vadd.s32 %v11507_v32, %v11504_v38  ;;  %vm7578_vm4 = vcmp.lt.s32.totalorder %v7577_v23, 0  ;;  %v4287_v41 = vsel %vm4202_vm15, %v4286_v11, %v4262_v55  ;;  %v4567_v22 = vadd.s32 1, %v11573_v37  ;;  %v430_v32 = vpop.permute.xlu0 %429 }
 0x421   : > { %v8146_v42 = vpop.eup %8145  ;;  %v4402_v52 = vxor.u32 2147483648, %v8144_v59  ;;  %v4271_v9 = vsel %vm7578_vm4, 0, %v7577_v23  ;;  %v4564_v60 = vmul.u32 %v11555_v48, %v4548_v21  ;;  %vm4566_vm5 = vc.u32 %v11580_v61, %v11572_v5 }
 0x422   : > { %v4399_v1 = vxor.u32 2147483648, %v8146_v42  ;;  %v4272_v34 = vsub.s32 32, %v4271_v9  ;;  %v4276_v54 = vsub.s32 4294967266, %v4271_v9  ;;  %v4413_v38 = vand.u32 8388607, %v4406_v58 }
 0x423   : > { %v4403_v0 = vsel %vm4401_vm3, %v4402_v52, %v8146_v42  ;;  %v4273_v55 = vshll.u32 %v11560_v40, %v4271_v9  ;;  %v4568_v31 = vsel %vm4566_vm5, %v4567_v22, %v11573_v37  ;;  %v7583_v12 = vadd.s32 4294967169, %v4410_v20 }
 0x424   : > { %v4400_v62 = vsel %vm4398_vm2, %v8144_v59, %v4399_v1  ;;  %v4274_v8 = vshrl.u32 %v4256_v19, %v4272_v34  ;;  %v4277_v48 = vadd.s32 127, %v4276_v54  ;;  %v4569_v28 = vadd.s32 %v4568_v31, %v4564_v60 }
 0x425   : > { %v4404_v46 = vsel %vm4397_vm0, %v4400_v62, %v4403_v0  ;;  %v4416_v7 = vadd.s32 1, %v7583_v12  ;;  %v4718_v36 = vand.u32 2139095040, %v11591_v53  ;;  %v601_v25 = vmul.f32 %v11424_v50, %v430_v32 }
 0x426   : > { %v4405_v40 = vsel %vm4395_vm14, nan, %v4404_v46  ;;  %v4275_v17 = vor.u32 %v4274_v8, %v4273_v55  ;;  %v4278_v16 = vshll.u32 %v4277_v48, 23  ;;  %v4570_v51 = vadd.s32 536870912, %v4569_v28 }
 0x427   : > { %7325 = vst [vmem:[%s8782_s8 + $0x118] sm:$0xff] %v4405_v40  ;;  %v4289_v29 = vsel %vm11585_vm1, 0, %v4287_v41  ;;  %vm4417_vm6 = vcmp.gt.s32.totalorder %v4416_v7, 0  ;;  %v604_v35 = vmul.f32 %v11424_v50, %v445_v27  ;;  %v4414_v57 = vor.u32 8388608, %v4413_v38 }
 0x428   : > { %v4279_v4 = vor.u32 4788187, %v4278_v16  ;;  %v11616_v11 = vshrl.u32 %v4570_v51, 30  ;;  %v4418_v6 = vsel %vm4417_vm6, %v4416_v7, 0  ;;  %v4719_v10 = vshrl.u32 %v4718_v36, 23 }
 0x429   : > { %v4420_v30 = vand.u32 31, %v4418_v6  ;;  %v4282_v2 = vcvt.s32.f32 %v4275_v17  ;;  %v11620_v37 = vadd.f32 %v11196_v63, %v601_v25  ;;  %v11622_v33 = vand.u32 3, %v4289_v29 }
 0x42a   : > { %v4280_v24 = vand.u32 2147483647, %v4279_v4  ;;  %v4572_v26 = vshll.u32 %v11616_v11, 30  ;;  %v4715_v23 = vand.u32 2147483647, %v11591_v53  ;;  %v11626_v21 = vadd.f32 %v11196_v63, %v604_v35 }
 0x42b   : > { %v4421_v18 = vsub.s32 32, %v4420_v30  ;;  %v4565_v59 = vadd.s32 %v11572_v5, %v11580_v61  ;;  %v11632_v41 = vshll.u32 %v4414_v57, 8  ;;  %v4419_v22 = vshrl.u32 %v4418_v6, 5 }
 0x42c   : > { %v4283_v20 = vmul.f32 %v4282_v2, %v4280_v24  ;;  %v11630_v19 = vsub.s32 %v4569_v28, %v4572_v26  ;;  %v7595_v9 = vadd.s32 4294967169, %v4719_v10  ;;  %v4423_v63 = vshll.u32 %v8349_v39, %v4420_v30 }
 0x42d   : > { %v4424_v42 = vshrl.u32 %v8350_v43, %v4421_v18  ;;  %v4427_v52 = vshrl.u32 %v8351_v45, %v4421_v18  ;;  %v4430_v34 = vshrl.u32 %v8352_v47, %v4421_v18  ;;  %v4426_v54 = vshll.u32 %v8350_v43, %v4420_v30 }
 0x42e   : > { %v4284_v60 = vxor.u32 2147483648, %v4283_v20  ;;  %v4575_v1 = vsub.s32 0, %v11630_v19  ;;  %v4429_v5 = vshll.u32 %v8351_v45, %v4420_v30  ;;  %v4432_v61 = vshll.u32 %v8352_v47, %v4420_v30 }
 0x42f   : > { %v4433_v38 = vshrl.u32 %v8353_v49, %v4421_v18  ;;  %v4425_v55 = vor.u32 %v4424_v42, %v4423_v63  ;;  %v11648_v31 = vand.u32 8388607, %v4715_v23  ;;  %v4428_v62 = vor.u32 %v4427_v52, %v4426_v54 }
 0x430   : > { %v4285_v32 = vsel %vm4202_vm15, %v4284_v60, %v4283_v20  ;;  %v7588_v0 = vmin.u32 %v4575_v1, %v11630_v19  ;;  %v4431_v8 = vor.u32 %v4430_v34, %v4429_v5  ;;  %v4435_v27 = vshll.u32 %v8353_v49, %v4420_v30 }
 0x431   : > { %v4288_v12 = vsel %vm11585_vm1, %v11367_v13, %v4285_v32  ;;  %v4434_v48 = vor.u32 %v4433_v38, %v4432_v61  ;;  %v4436_v46 = vshrl.u32 %v8354_v56, %v4421_v18  ;;  %v4422_v7 = vshrl.u32 %v8349_v39, %v4421_v18 }
 0x432   : > { %8147 = vcosq.f32 %v4288_v12  ;;  %v4577_v28 = vclz %v7588_v0  ;;  %vm4438_vm7 = vcmp.lt.s32.totalorder %v4419_v22, 1  ;;  %v4725_v36 = vadd.s32 1, %v7595_v9 }
 0x433   : > { %8149 = vsinq.f32 %v4288_v12  ;;  %v4437_v40 = vor.u32 %v4436_v46, %v4435_v27  ;;  %vm4440_vm10 = vcmp.lt.s32.totalorder %v4419_v22, 3  ;;  %vm4441_vm8 = vcmp.lt.s32.totalorder %v4419_v22, 4 }
 0x434   : > { %v7589_v25 = vadd.s32 4294967294, %v4577_v28  ;;  %v4443_v14 = vsel %vm4441_vm8, %v4431_v8, 2102212464  ;;  %v4446_v17 = vsel %vm4438_vm7, %v4425_v55, %v4428_v62  ;;  %v4447_v16 = vsel %vm4441_vm8, %v4434_v48, 920167782 }
 0x435   : > { %v4450_v51 = vsel %vm4438_vm7, %v4428_v62, %v4431_v8  ;;  %vm4439_vm11 = vcmp.lt.s32.totalorder %v4419_v22, 2  ;;  %v4448_v29 = vsel %vm4440_vm10, %v4431_v8, %v4447_v16  ;;  %v4451_v35 = vsel %vm4441_vm8, %v4437_v40, 1326507024 }
 0x436   : > { %vm7590_vm9 = vcmp.lt.s32.totalorder %v7589_v25, 0  ;;  %v4442_v57 = vsel %vm4438_vm7, %v4422_v7, %v4425_v55  ;;  %v4449_v6 = vsel %vm4439_vm11, %v4446_v17, %v4448_v29  ;;  %v4452_v30 = vsel %vm4440_vm10, %v4434_v48, %v4451_v35 }
 0x437   : > { %v4580_v4 = vsel %vm7590_vm9, 0, %v7589_v25  ;;  %vm4294_vm12 = vcmp.lt.s32.totalorder %v11622_v33, 2  ;;  %vm4511_vm13 = vcmp.lt.s32.totalorder %v11449_v15, 0  ;;  %v4444_v2 = vsel %vm4440_vm10, %v4428_v62, %v4443_v14 }
 0x438   : > { %v4581_v10 = vsub.s32 32, %v4580_v4  ;;  %v4585_v24 = vsub.s32 4294967266, %v4580_v4  ;;  %v4453_v26 = vsel %vm4439_vm11, %v4450_v51, %v4452_v30  ;;  %vm4292_vm14 = vweird.f32 %v11367_v13 }
 0x439   : > { %v11665_v18 = vmul.u32.u64.low %v11632_v41, %v4453_v26  ;;  %v11666_v20 = vmul.u32.u64.high %v11632_v41, %v4453_v26, %v11665_v18  ;;  %v11669_v42 = vmul.u32.u64.low %v11632_v41, %v4449_v6  ;;  %v11670_v52 = vmul.u32.u64.high %v11632_v41, %v4449_v6, %v11669_v42 }
 0x43a   : > { %v4582_v9 = vshll.u32 %v11630_v19, %v4580_v4  ;;  %v4583_v60 = vshrl.u32 %v4565_v59, %v4581_v10  ;;  %v4586_v1 = vadd.s32 127, %v4585_v24  ;;  %vm4726_vm15 = vcmp.gt.s32.totalorder %v4725_v36, 0 }
 0x43b   : > { %vm4295_vm0 = vcmp.eq.s32.totalorder %v11622_v33, 0  ;;  %v4445_v63 = vsel %vm4439_vm11, %v4442_v57, %v4444_v2  ;;  %v4723_v34 = vor.u32 8388608, %v11648_v31  ;;  %v4727_v54 = vsel %vm4726_vm15, %v4725_v36, 0 }
 0x43c   : > { %v8148_v5 = vpop.eup %8147  ;;  %vm4298_vm1 = vcmp.eq.s32.totalorder %v11622_v33, 2  ;;  %v4584_v61 = vor.u32 %v4583_v60, %v4582_v9  ;;  %v4587_v38 = vshll.u32 %v4586_v1, 23  ;;  %v4729_v32 = vand.u32 31, %v4727_v54 }
 0x43d   : > { %v8150_v0 = vpop.eup %8149  ;;  %v4299_v55 = vxor.u32 2147483648, %v8148_v5  ;;  %v4595_v19 = vsub.s32 4, %v11616_v11  ;;  %vm4463_vm2 = vc.u32 %v11666_v20, %v11669_v42  ;;  %v4464_v59 = vadd.s32 1, %v11670_v52 }
 0x43e   : > { %v4296_v22 = vxor.u32 2147483648, %v8150_v0  ;;  %vm11684_vm3 = vcmp.le.f32.partialorder %v4509_v44, 0.7853982  ;;  %v4588_v12 = vor.u32 4788187, %v4587_v38  ;;  %v4461_v62 = vmul.u32 %v11632_v41, %v4445_v63 }
 0x43f   : > { %v4730_v8 = vsub.s32 32, %v4729_v32  ;;  %v4300_v48 = vsel %vm4298_vm1, %v4299_v55, %v8150_v0  ;;  %v4465_v28 = vsel %vm4463_vm2, %v4464_v59, %v11670_v52  ;;  %v11690_v27 = vshll.u32 %v4723_v34, 8 }
 0x440   : > { %v4612_v46 = vand.u32 2147483647, %v11620_v37  ;;  %v4297_v7 = vsel %vm4295_vm0, %v8148_v5, %v4296_v22  ;;  %v4589_v36 = vand.u32 2147483647, %v4588_v12  ;;  %v4591_v44 = vcvt.s32.f32 %v4584_v61 }
 0x441   : > { %v4466_v25 = vadd.s32 %v4465_v28, %v4461_v62  ;;  %v4301_v40 = vsel %vm4294_vm12, %v4297_v7, %v4300_v48  ;;  %v4596_v41 = vsel %vm4511_vm13, %v4595_v19, %v11616_v11  ;;  %v4733_v14 = vshrl.u32 %v8350_v43, %v4730_v8 }
 0x442   : > { %v4736_v17 = vshrl.u32 %v8351_v45, %v4730_v8  ;;  %v4302_v16 = vsel %vm4292_vm14, nan, %v4301_v40  ;;  %v4592_v51 = vmul.f32 %v4591_v44, %v4589_v36  ;;  %v4739_v35 = vshrl.u32 %v8352_v47, %v4730_v8 }
 0x443   : > { %v4467_v29 = vadd.s32 536870912, %v4466_v25  ;;  %7324 = vst [vmem:[%s8782_s8 + $0x110] sm:$0xff] %v4302_v16  ;;  %v4728_v4 = vshrl.u32 %v4727_v54, 5  ;;  %v4732_v33 = vshll.u32 %v8349_v39, %v4729_v32  ;;  %v4738_v57 = vshll.u32 %v8351_v45, %v4729_v32 }
 0x444   : > { %v4742_v6 = vshrl.u32 %v8353_v49, %v4730_v8  ;;  %v4593_v11 = vxor.u32 2147483648, %v4592_v51  ;;  %vm4408_vm4 = vcmp.lt.s32.totalorder %v11563_v3, 0  ;;  %v4735_v10 = vshll.u32 %v8350_v43, %v4729_v32 }
 0x445   : > { %v4468_v30 = vshrl.u32 %v4467_v29, 30  ;;  %v4741_v13 = vshll.u32 %v8352_v47, %v4729_v32  ;;  %v4734_v24 = vor.u32 %v4733_v14, %v4732_v33  ;;  %v4740_v2 = vor.u32 %v4739_v35, %v4738_v57 }
 0x446   : > { %v4744_v26 = vshll.u32 %v8353_v49, %v4729_v32  ;;  %v4745_v18 = vshrl.u32 %v8354_v56, %v4730_v8  ;;  %v4594_v52 = vsel %vm4511_vm13, %v4593_v11, %v4592_v51  ;;  %v4737_v60 = vor.u32 %v4736_v17, %v4735_v10 }
 0x447   : > { %v4469_v9 = vshll.u32 %v4468_v30, 30  ;;  %v4743_v1 = vor.u32 %v4742_v6, %v4741_v13  ;;  %v4597_v63 = vsel %vm11684_vm3, %v11449_v15, %v4594_v52  ;;  %v4598_v34 = vsel %vm11684_vm3, 0, %v4596_v41 }
 0x448   : > { %v4746_v54 = vor.u32 %v4745_v18, %v4744_v26  ;;  %v4615_v5 = vand.u32 2139095040, %v11620_v37  ;;  %8151 = vcosq.f32 %v4597_v63  ;;  %v4731_v38 = vshrl.u32 %v8349_v39, %v4730_v8 }
 0x449   : > { %v11722_v61 = vsub.s32 %v4466_v25, %v4469_v9  ;;  %vm4750_vm5 = vcmp.lt.s32.totalorder %v4728_v4, 4  ;;  %8153 = vsinq.f32 %v4597_v63  ;;  %vm11727_vm6 = vcmp.le.f32.partialorder %v4406_v58, 0.7853982 }
 0x44a   : > { %v4492_v0 = vsub.s32 4, %v4468_v30  ;;  %vm4747_vm7 = vcmp.lt.s32.totalorder %v4728_v4, 1  ;;  %v4752_v55 = vsel %vm4750_vm5, %v4740_v2, 2102212464  ;;  %vm4749_vm10 = vcmp.lt.s32.totalorder %v4728_v4, 3 }
 0x44b   : > { %v4472_v19 = vsub.s32 0, %v11722_v61  ;;  %v4755_v59 = vsel %vm4747_vm7, %v4734_v24, %v4737_v60  ;;  %v4756_v22 = vsel %vm4750_vm5, %v4743_v1, 920167782  ;;  %v4602_v31 = vand.u32 3, %v4598_v34 }
 0x44c   : > { %v4757_v12 = vsel %vm4749_vm10, %v4740_v2, %v4756_v22  ;;  %v4759_v62 = vsel %vm4747_vm7, %v4737_v60, %v4740_v2  ;;  %v4760_v8 = vsel %vm4750_vm5, %v4746_v54, 1326507024  ;;  %vm4748_vm8 = vcmp.lt.s32.totalorder %v4728_v4, 2 }
 0x44d   : > { %v7584_v48 = vmin.u32 %v4472_v19, %v11722_v61  ;;  %v4751_v28 = vsel %vm4747_vm7, %v4731_v38, %v4734_v24  ;;  %v4753_v58 = vsel %vm4749_vm10, %v4737_v60, %v4752_v55  ;;  %v4493_v7 = vsel %vm4408_vm4, %v4492_v0, %v4468_v30 }
 0x44e   : > { %v4758_v36 = vsel %vm4748_vm8, %v4755_v59, %v4757_v12  ;;  %v4761_v44 = vsel %vm4749_vm10, %v4743_v1, %v4760_v8  ;;  %v4616_v25 = vshrl.u32 %v4615_v5, 23  ;;  %v4754_v16 = vsel %vm4748_vm8, %v4751_v28, %v4753_v58  ;;  %v455_v8 = vpop.permute.xlu1 %454 }
 0x44f   : > { %v4474_v40 = vclz %v7584_v48  ;;  %v4762_v41 = vsel %vm4748_vm8, %v4759_v62, %v4761_v44  ;;  %v11736_v14 = vmul.u32.u64.low %v11690_v27, %v4758_v36  ;;  %v11737_v17 = vmul.u32.u64.high %v11690_v27, %v4758_v36, %v11736_v14 }
 0x450   : > { %v11740_v51 = vmul.u32.u64.low %v11690_v27, %v4762_v41  ;;  %v11741_v29 = vmul.u32.u64.high %v11690_v27, %v4762_v41, %v11740_v51  ;;  %v7591_v35 = vadd.s32 4294967169, %v4616_v25  ;;  %vm4603_vm9 = vcmp.lt.s32.totalorder %v4602_v31, 2 }
 0x451   : > { %v7585_v4 = vadd.s32 4294967294, %v4474_v40  ;;  %v4619_v33 = vand.u32 8388607, %v4612_v46  ;;  %v4924_v57 = vand.u32 2139095040, %v11626_v21  ;;  %vm4604_vm11 = vcmp.eq.s32.totalorder %v4602_v31, 0 }
 0x452   : > { %vm4607_vm12 = vcmp.eq.s32.totalorder %v4602_v31, 2  ;;  %v4462_v6 = vadd.s32 %v11669_v42, %v11666_v20  ;;  %v4622_v11 = vadd.s32 1, %v7591_v35  ;;  %v8152_v30 = vpop.eup %8151  ;;  %v4495_v10 = vsel %vm11727_vm6, 0, %v4493_v7 }
 0x453   : > { %vm7586_vm13 = vcmp.lt.s32.totalorder %v7585_v4, 0  ;;  %v4770_v13 = vmul.u32 %v11690_v27, %v4754_v16  ;;  %v4773_v24 = vadd.s32 1, %v11737_v17  ;;  %v8154_v2 = vpop.eup %8153  ;;  %v4608_v26 = vxor.u32 2147483648, %v8152_v30 }
 0x454   : > { %v4477_v18 = vsel %vm7586_vm13, 0, %v7585_v4  ;;  %vm4772_vm14 = vc.u32 %v11741_v29, %v11736_v14  ;;  %v4925_v52 = vshrl.u32 %v4924_v57, 23  ;;  %v4605_v9 = vxor.u32 2147483648, %v8154_v2 }
 0x455   : > { %v4478_v60 = vsub.s32 32, %v4477_v18  ;;  %v4482_v1 = vsub.s32 4294967266, %v4477_v18  ;;  %v4620_v20 = vor.u32 8388608, %v4619_v33  ;;  %v4609_v42 = vsel %vm4607_vm12, %v4608_v26, %v8154_v2 }
 0x456   : > { %v4479_v63 = vshll.u32 %v11722_v61, %v4477_v18  ;;  %v4774_v34 = vsel %vm4772_vm14, %v4773_v24, %v11737_v17  ;;  %vm4623_vm15 = vcmp.gt.s32.totalorder %v4622_v11, 0  ;;  %v4606_v27 = vsel %vm4604_vm11, %v8152_v30, %v4605_v9  ;;  %v440_v61 = vpop.permute.xlu0 %439 }
 0x457   : > { %v4480_v54 = vshrl.u32 %v4462_v6, %v4478_v60  ;;  %v4483_v5 = vadd.s32 127, %v4482_v1  ;;  %v4775_v38 = vadd.s32 %v4774_v34, %v4770_v13  ;;  %vm4601_vm0 = vweird.f32 %v11449_v15 }
 0x458   : > { %v4610_v0 = vsel %vm4603_vm9, %v4606_v27, %v4609_v42  ;;  %v4624_v55 = vsel %vm4623_vm15, %v4622_v11, 0  ;;  %v7603_v19 = vadd.s32 4294967169, %v4925_v52  ;;  %v11760_v48 = vand.u32 3, %v4495_v10 }
 0x459   : > { %v4611_v59 = vsel %vm4601_vm0, nan, %v4610_v0  ;;  %v4481_v22 = vor.u32 %v4480_v54, %v4479_v63  ;;  %v4484_v12 = vshll.u32 %v4483_v5, 23  ;;  %v4776_v62 = vadd.s32 536870912, %v4775_v38 }
 0x45a   : > { %7327 = vst [vmem:[%s8782_s8 + $0x128] sm:$0xff] %v4611_v59  ;;  %v4626_v28 = vand.u32 31, %v4624_v55  ;;  %v11764_v36 = vshll.u32 %v4620_v20, 8  ;;  %v4921_v15 = vand.u32 2147483647, %v11626_v21  ;;  %v4931_v44 = vadd.s32 1, %v7603_v19 }
 0x45b   : > { %v4485_v58 = vor.u32 4788187, %v4484_v12  ;;  %v11762_v7 = vshrl.u32 %v4776_v62, 30  ;;  %v11768_v25 = vmul.f32 %v11424_v50, %v440_v61  ;;  %v11771_v40 = vmul.f32 %v11424_v50, %v455_v8 }
 0x45c   : > { %v4627_v31 = vsub.s32 32, %v4626_v28  ;;  %v4488_v17 = vcvt.s32.f32 %v4481_v22  ;;  %v11774_v16 = vadd.s32 %v11736_v14, %v11741_v29  ;;  %v4629_v35 = vshll.u32 %v8349_v39, %v4626_v28 }
 0x45d   : > { %v4486_v41 = vand.u32 2147483647, %v4485_v58  ;;  %v4778_v51 = vshll.u32 %v11762_v7, 30  ;;  %v4632_v50 = vshll.u32 %v8350_v43, %v4626_v28  ;;  %v4625_v10 = vshrl.u32 %v4624_v55, 5 }
 0x45e   : > { %v4630_v4 = vshrl.u32 %v8350_v43, %v4627_v31  ;;  %v4633_v33 = vshrl.u32 %v8351_v45, %v4627_v31  ;;  %v4636_v57 = vshrl.u32 %v8352_v47, %v4627_v31  ;;  %v4639_v30 = vshrl.u32 %v8353_v49, %v4627_v31 }
 0x45f   : > { %v4489_v6 = vmul.f32 %v4488_v17, %v4486_v41  ;;  %v11781_v11 = vsub.s32 %v4775_v38, %v4778_v51  ;;  %v4635_v14 = vshll.u32 %v8351_v45, %v4626_v28  ;;  %v4638_v29 = vshll.u32 %v8352_v47, %v4626_v28 }
 0x460   : > { %vm4932_vm1 = vcmp.gt.s32.totalorder %v4931_v44, 0  ;;  %v4631_v2 = vor.u32 %v4630_v4, %v4629_v35  ;;  %v4634_v26 = vor.u32 %v4633_v33, %v4632_v50  ;;  %v4641_v9 = vshll.u32 %v8353_v49, %v4626_v28 }
 0x461   : > { %v4490_v13 = vxor.u32 2147483648, %v4489_v6  ;;  %v4781_v24 = vsub.s32 0, %v11781_v11  ;;  %v4637_v18 = vor.u32 %v4636_v57, %v4635_v14  ;;  %v4640_v52 = vor.u32 %v4639_v30, %v4638_v29 }
 0x462   : > { %v4642_v60 = vshrl.u32 %v8354_v56, %v4627_v31  ;;  %v11795_v42 = vand.u32 8388607, %v4921_v15  ;;  %v4933_v63 = vsel %vm4932_vm1, %v4931_v44, 0  ;;  %v4628_v27 = vshrl.u32 %v8349_v39, %v4627_v31 }
 0x463   : > { %v4491_v1 = vsel %vm4408_vm4, %v4490_v13, %v4489_v6  ;;  %v7596_v20 = vmin.u32 %v4781_v24, %v11781_v11  ;;  %vm4644_vm2 = vcmp.lt.s32.totalorder %v4625_v10, 1  ;;  %vm4646_vm3 = vcmp.lt.s32.totalorder %v4625_v10, 3 }
 0x464   : > { %v4494_v34 = vsel %vm11727_vm6, %v11563_v3, %v4491_v1  ;;  %v4643_v54 = vor.u32 %v4642_v60, %v4641_v9  ;;  %vm4647_vm5 = vcmp.lt.s32.totalorder %v4625_v10, 4  ;;  %v4652_v0 = vsel %vm4644_vm2, %v4631_v2, %v4634_v26 }
 0x465   : > { %8155 = vcosq.f32 %v4494_v34  ;;  %v4783_v5 = vclz %v7596_v20  ;;  %v4649_v38 = vsel %vm4647_vm5, %v4637_v18, 2102212464  ;;  %v4653_v55 = vsel %vm4647_vm5, %v4640_v52, 920167782 }
 0x466   : > { %8157 = vsinq.f32 %v4494_v34  ;;  %vm4645_vm4 = vcmp.lt.s32.totalorder %v4625_v10, 2  ;;  %v4654_v59 = vsel %vm4646_vm3, %v4637_v18, %v4653_v55  ;;  %v4656_v22 = vsel %vm4644_vm2, %v4634_v26, %v4637_v18 }
 0x467   : > { %v7597_v19 = vadd.s32 4294967294, %v4783_v5  ;;  %v4648_v12 = vsel %vm4644_vm2, %v4628_v27, %v4631_v2  ;;  %v4650_v32 = vsel %vm4646_vm3, %v4634_v26, %v4649_v38  ;;  %v4655_v62 = vsel %vm4645_vm4, %v4652_v0, %v4654_v59 }
 0x468   : > { %v4657_v61 = vsel %vm4647_vm5, %v4643_v54, 1326507024  ;;  %vm4504_vm6 = vcmp.eq.s32.totalorder %v11760_v48, 2  ;;  %v11807_v28 = vmul.u32.u64.low %v11764_v36, %v4655_v62  ;;  %v11808_v58 = vmul.u32.u64.high %v11764_v36, %v4655_v62, %v11807_v28 }
 0x469   : > { %vm7598_vm7 = vcmp.lt.s32.totalorder %v7597_v19, 0  ;;  %v4658_v8 = vsel %vm4646_vm3, %v4640_v52, %v4657_v61  ;;  %vm4501_vm10 = vcmp.eq.s32.totalorder %v11760_v48, 0  ;;  %v4929_v41 = vor.u32 8388608, %v11795_v42 }
 0x46a   : > { %v4786_v31 = vsel %vm7598_vm7, 0, %v7597_v19  ;;  %v4659_v44 = vsel %vm4645_vm4, %v4656_v22, %v4658_v8  ;;  %v4935_v17 = vand.u32 31, %v4933_v63  ;;  %vm4500_vm8 = vcmp.lt.s32.totalorder %v11760_v48, 2 }
 0x46b   : > { %v4787_v51 = vsub.s32 32, %v4786_v31  ;;  %v4791_v35 = vsub.s32 4294967266, %v4786_v31  ;;  %v4801_v4 = vsub.s32 4, %v11762_v7  ;;  %v4651_v33 = vsel %vm4645_vm4, %v4648_v12, %v4650_v32 }
 0x46c   : > { %vm4498_vm9 = vweird.f32 %v11563_v3  ;;  %vm4717_vm11 = vcmp.lt.s32.totalorder %v11591_v53, 0  ;;  %v11820_v57 = vmul.u32.u64.low %v11764_v36, %v4659_v44  ;;  %v11821_v6 = vmul.u32.u64.high %v11764_v36, %v4659_v44, %v11820_v57 }
 0x46d   : > { %v11823_v50 = vshrl.u32 %v4933_v63, 5  ;;  %v4936_v30 = vsub.s32 32, %v4935_v17  ;;  %v4788_v14 = vshll.u32 %v11781_v11, %v4786_v31  ;;  %v4789_v29 = vshrl.u32 %v11774_v16, %v4787_v51 }
 0x46e   : > { %v4792_v13 = vadd.s32 127, %v4791_v35  ;;  %v4670_v24 = vadd.s32 1, %v11808_v58  ;;  %v4667_v10 = vmul.u32 %v11764_v36, %v4651_v33  ;;  %v4938_v2 = vshll.u32 %v8349_v39, %v4935_v17 }
 0x46f   : > { %v4939_v26 = vshrl.u32 %v8350_v43, %v4936_v30  ;;  %v4942_v18 = vshrl.u32 %v8351_v45, %v4936_v30  ;;  %v8156_v52 = vpop.eup %8155  ;;  %vm11834_vm12 = vcmp.le.f32.partialorder %v4715_v23, 0.7853982  ;;  %v4790_v11 = vor.u32 %v4789_v29, %v4788_v14 }
 0x470   : > { %v4793_v16 = vshll.u32 %v4792_v13, 23  ;;  %v4941_v60 = vshll.u32 %v8350_v43, %v4935_v17  ;;  %v4945_v1 = vshrl.u32 %v8352_v47, %v4936_v30  ;;  %v8158_v36 = vpop.eup %8157  ;;  %v4505_v20 = vxor.u32 2147483648, %v8156_v52 }
 0x471   : > { %vm4669_vm13 = vc.u32 %v11821_v6, %v11807_v28  ;;  %v4944_v63 = vshll.u32 %v8351_v45, %v4935_v17  ;;  %v4947_v34 = vshll.u32 %v8352_v47, %v4935_v17  ;;  %v4502_v27 = vxor.u32 2147483648, %v8158_v36 }
 0x472   : > { %v4794_v23 = vor.u32 4788187, %v4793_v16  ;;  %v4671_v54 = vsel %vm4669_vm13, %v4670_v24, %v11808_v58  ;;  %v4940_v5 = vor.u32 %v4939_v26, %v4938_v2  ;;  %v4506_v38 = vsel %vm4504_vm6, %v4505_v20, %v8158_v36 }
 0x473   : > { %v4797_v0 = vcvt.s32.f32 %v4790_v11  ;;  %v4672_v55 = vadd.s32 %v4671_v54, %v4667_v10  ;;  %v4943_v19 = vor.u32 %v4942_v18, %v4941_v60  ;;  %v4503_v59 = vsel %vm4501_vm10, %v8156_v52, %v4502_v27 }
 0x474   : > { %v4795_v22 = vand.u32 2147483647, %v4794_v23  ;;  %v4946_v12 = vor.u32 %v4945_v1, %v4944_v63  ;;  %v4948_v32 = vshrl.u32 %v8353_v49, %v4936_v30  ;;  %v4507_v62 = vsel %vm4500_vm8, %v4503_v59, %v4506_v38 }
 0x475   : > { %v4673_v61 = vadd.s32 536870912, %v4672_v55  ;;  %v4950_v8 = vshll.u32 %v8353_v49, %v4935_v17  ;;  %v4951_v58 = vshrl.u32 %v8354_v56, %v4936_v30  ;;  %v4508_v31 = vsel %vm4498_vm9, nan, %v4507_v62 }
 0x476   : > { %v4798_v44 = vmul.f32 %v4797_v0, %v4795_v22  ;;  %v4802_v51 = vsel %vm4717_vm11, %v4801_v4, %v11762_v7  ;;  %v4949_v35 = vor.u32 %v4948_v32, %v4947_v34  ;;  %7326 = vst [vmem:[%s8782_s8 + $0x120] sm:$0xff] %v4508_v31  ;;  %vm4953_vm14 = vcmp.lt.s32.totalorder %v11823_v50, 1 }
 0x477   : > { %v11860_v33 = vshrl.u32 %v4673_v61, 30  ;;  %v4952_v57 = vor.u32 %v4951_v58, %v4950_v8  ;;  %vm4956_vm15 = vcmp.lt.s32.totalorder %v11823_v50, 4  ;;  %vm4955_vm0 = vcmp.lt.s32.totalorder %v11823_v50, 3 }
 0x478   : > { %v4799_v48 = vxor.u32 2147483648, %v4798_v44  ;;  %v4961_v3 = vsel %vm4953_vm14, %v4940_v5, %v4943_v19  ;;  %v4962_v17 = vsel %vm4956_vm15, %v4949_v35, 920167782  ;;  %v4804_v7 = vsel %vm11834_vm12, 0, %v4802_v51 }
 0x479   : > { %v4675_v4 = vshll.u32 %v11860_v33, 30  ;;  %v4937_v14 = vshrl.u32 %v8349_v39, %v4936_v30  ;;  %v4963_v29 = vsel %vm4955_vm0, %v4946_v12, %v4962_v17  ;;  %vm4954_vm1 = vcmp.lt.s32.totalorder %v11823_v50, 2 }
 0x47a   : > { %v4800_v13 = vsel %vm4717_vm11, %v4799_v48, %v4798_v44  ;;  %v4958_v24 = vsel %vm4956_vm15, %v4946_v12, 2102212464  ;;  %v4965_v10 = vsel %vm4953_vm14, %v4943_v19, %v4946_v12  ;;  %v4964_v30 = vsel %vm4954_vm1, %v4961_v3, %v4963_v29 }
 0x47b   : > { %v4803_v2 = vsel %vm11834_vm12, %v11591_v53, %v4800_v13  ;;  %v4676_v26 = vsub.s32 %v4672_v55, %v4675_v4  ;;  %v4966_v18 = vsel %vm4956_vm15, %v4952_v57, 1326507024  ;;  %v4957_v52 = vsel %vm4953_vm14, %v4937_v14, %v4940_v5 }
 0x47c   : > { %8159 = vcosq.f32 %v4803_v2  ;;  %v4967_v11 = vsel %vm4955_vm0, %v4949_v35, %v4966_v18  ;;  %v4969_v16 = vshll.u32 %v4929_v41, 8  ;;  %v4959_v60 = vsel %vm4955_vm0, %v4943_v19, %v4958_v24  ;;  %v11911_v41 = vld [vmem:[%s13856_s2] ss:$0 sm:$0xff] }
 0x47d   : > { %8161 = vsinq.f32 %v4803_v2  ;;  %v4678_v9 = vsub.s32 0, %v4676_v26  ;;  %v4968_v1 = vsel %vm4954_vm1, %v4965_v10, %v4967_v11  ;;  %v4808_v23 = vand.u32 3, %v4804_v7 }
 0x47e   : > { %v11899_v36 = vmul.u32.u64.low %v4969_v16, %v4968_v1  ;;  %v11900_v20 = vmul.u32.u64.high %v4969_v16, %v4968_v1, %v11899_v36  ;;  %v11902_v63 = vmul.u32.u64.low %v4969_v16, %v4964_v30  ;;  %v11903_v34 = vmul.u32.u64.high %v4969_v16, %v4964_v30, %v11902_v63 }
 0x47f   : > { %v7592_v27 = vmin.u32 %v4678_v9, %v4676_v26  ;;  %v4960_v42 = vsel %vm4954_vm1, %v4957_v52, %v4959_v60  ;;  %v11915_v54 = vadd.f32 %v11911_v41, %v11768_v25  ;;  %v11922_v0 = vadd.f32 %v11911_v41, %v11771_v40 }
 0x480   : > { %vm4978_vm2 = vc.u32 %v11900_v20, %v11902_v63  ;;  %v4979_v38 = vadd.s32 1, %v11903_v34  ;;  %vm4807_vm3 = vweird.f32 %v11591_v53  ;;  %v4698_v55 = vsub.s32 4, %v11860_v33 }
 0x481   : > { %v4680_v5 = vclz %v7592_v27  ;;  %v4976_v19 = vmul.u32 %v4969_v16, %v4960_v42  ;;  %v4821_v59 = vand.u32 2139095040, %v11915_v54  ;;  %vm4809_vm5 = vcmp.lt.s32.totalorder %v4808_v23, 2 }
 0x482   : > { %vm4614_vm4 = vcmp.lt.s32.totalorder %v11620_v37, 0  ;;  %v4980_v25 = vsel %vm4978_vm2, %v4979_v38, %v11903_v34  ;;  %v4818_v22 = vand.u32 2147483647, %v11915_v54  ;;  %vm4810_vm6 = vcmp.eq.s32.totalorder %v4808_v23, 0 }
 0x483   : > { %v7593_v50 = vadd.s32 4294967294, %v4680_v5  ;;  %v4981_v12 = vadd.s32 %v4980_v25, %v4976_v19  ;;  %v4822_v40 = vshrl.u32 %v4821_v59, 23  ;;  %vm4813_vm10 = vcmp.eq.s32.totalorder %v4808_v23, 2 }
 0x484   : > { %v4668_v62 = vadd.s32 %v11807_v28, %v11821_v6  ;;  %v5130_v8 = vand.u32 2139095040, %v11922_v0  ;;  %v4699_v35 = vsel %vm4614_vm4, %v4698_v55, %v11860_v33  ;;  %v4825_v17 = vand.u32 8388607, %v4818_v22 }
 0x485   : > { %vm7594_vm7 = vcmp.lt.s32.totalorder %v7593_v50, 0  ;;  %v4982_v48 = vadd.s32 536870912, %v4981_v12  ;;  %v7599_v3 = vadd.s32 4294967169, %v4822_v40  ;;  %vm11944_vm8 = vcmp.le.f32.partialorder %v4612_v46, 0.7853982 }
 0x486   : > { %v8160_v32 = vpop.eup %8159  ;;  %v4683_v61 = vsel %vm7594_vm7, 0, %v7593_v50  ;;  %v5131_v24 = vshrl.u32 %v5130_v8, 23  ;;  %v4701_v18 = vsel %vm11944_vm8, 0, %v4699_v35  ;;  %v4826_v16 = vor.u32 8388608, %v4825_v17 }
 0x487   : > { %v8162_v58 = vpop.eup %8161  ;;  %v4814_v31 = vxor.u32 2147483648, %v8160_v32  ;;  %v4684_v44 = vsub.s32 32, %v4683_v61  ;;  %v4688_v51 = vsub.s32 4294967266, %v4683_v61  ;;  %v4685_v28 = vshll.u32 %v4676_v26, %v4683_v61 }
 0x488   : > { %v4811_v57 = vxor.u32 2147483648, %v8162_v58  ;;  %v11939_v29 = vshrl.u32 %v4982_v48, 30  ;;  %v4828_v13 = vadd.s32 1, %v7599_v3  ;;  %v7611_v1 = vadd.s32 4294967169, %v5131_v24 }
 0x489   : > { %v4815_v7 = vsel %vm4813_vm10, %v4814_v31, %v8162_v58  ;;  %v4686_v6 = vshrl.u32 %v4668_v62, %v4684_v44  ;;  %v4689_v4 = vadd.s32 127, %v4688_v51  ;;  %v11956_v27 = vand.u32 3, %v4701_v18 }
 0x48a   : > { %v4812_v14 = vsel %vm4810_vm6, %v8160_v32, %v4811_v57  ;;  %v4984_v52 = vshll.u32 %v11939_v29, 30  ;;  %vm4829_vm9 = vcmp.gt.s32.totalorder %v4828_v13, 0  ;;  %v4977_v53 = vadd.s32 %v11902_v63, %v11900_v20 }
 0x48b   : > { %v4816_v10 = vsel %vm4809_vm5, %v4812_v14, %v4815_v7  ;;  %v4687_v2 = vor.u32 %v4686_v6, %v4685_v28  ;;  %v4690_v30 = vshll.u32 %v4689_v4, 23  ;;  %v4830_v9 = vsel %vm4829_vm9, %v4828_v13, 0 }
 0x48c   : > { %v4817_v26 = vsel %vm4807_vm3, nan, %v4816_v10  ;;  %v11954_v60 = vsub.s32 %v4981_v12, %v4984_v52  ;;  %v4832_v46 = vand.u32 31, %v4830_v9  ;;  %v5127_v5 = vand.u32 2147483647, %v11922_v0 }
 0x48d   : > { %7329 = vst [vmem:[%s8782_s8 + $0x138] sm:$0xff] %v4817_v26  ;;  %v4691_v11 = vor.u32 4788187, %v4690_v30  ;;  %v4694_v34 = vcvt.s32.f32 %v4687_v2  ;;  %v5007_v50 = vsub.s32 4, %v11939_v29  ;;  %v11963_v55 = vshrl.u32 %v4830_v9, 5 }
 0x48e   : > { %v4987_v23 = vsub.s32 0, %v11954_v60  ;;  %v4833_v42 = vsub.s32 32, %v4832_v46  ;;  %v11965_v19 = vshll.u32 %v4826_v16, 8  ;;  %v4835_v25 = vshll.u32 %v8349_v39, %v4832_v46 }
 0x48f   : > { %v4692_v36 = vand.u32 2147483647, %v4691_v11  ;;  %v4838_v12 = vshll.u32 %v8350_v43, %v4832_v46  ;;  %v5137_v40 = vadd.s32 1, %v7611_v1  ;;  %v4841_v62 = vshll.u32 %v8351_v45, %v4832_v46 }
 0x490   : > { %v7604_v59 = vmin.u32 %v4987_v23, %v11954_v60  ;;  %v4836_v63 = vshrl.u32 %v8350_v43, %v4833_v42  ;;  %v4839_v32 = vshrl.u32 %v8351_v45, %v4833_v42  ;;  %v4842_v8 = vshrl.u32 %v8352_v47, %v4833_v42 }
 0x491   : > { %v4695_v38 = vmul.f32 %v4694_v34, %v4692_v36  ;;  %v4844_v58 = vshll.u32 %v8352_v47, %v4832_v46  ;;  %v4845_v31 = vshrl.u32 %v8353_v49, %v4833_v42  ;;  %v4847_v35 = vshll.u32 %v8353_v49, %v4832_v46 }
 0x492   : > { %v4989_v61 = vclz %v7604_v59  ;;  %v4837_v51 = vor.u32 %v4836_v63, %v4835_v25  ;;  %v4848_v57 = vshrl.u32 %v8354_v56, %v4833_v42  ;;  %v4840_v17 = vor.u32 %v4839_v32, %v4838_v12  ;;  %v465_v59 = vpop.permute.xlu1 %464 }
 0x493   : > { %v4696_v20 = vxor.u32 2147483648, %v4695_v38  ;;  %v4843_v7 = vor.u32 %v4842_v8, %v4841_v62  ;;  %v4834_v28 = vshrl.u32 %v8349_v39, %v4833_v42  ;;  %v4846_v6 = vor.u32 %v4845_v31, %v4844_v58 }
 0x494   : > { %v7605_v3 = vadd.s32 4294967294, %v4989_v61  ;;  %v4849_v4 = vor.u32 %v4848_v57, %v4847_v35  ;;  %vm4923_vm11 = vcmp.lt.s32.totalorder %v11626_v21, 0  ;;  %vm4850_vm13 = vcmp.lt.s32.totalorder %v11963_v55, 1 }
 0x495   : > { %v4697_v44 = vsel %vm4614_vm4, %v4696_v20, %v4695_v38  ;;  %vm4851_vm14 = vcmp.lt.s32.totalorder %v11963_v55, 2  ;;  %vm4852_vm15 = vcmp.lt.s32.totalorder %v11963_v55, 3  ;;  %vm4853_vm0 = vcmp.lt.s32.totalorder %v11963_v55, 4  ;;  %v450_v38 = vpop.permute.xlu0 %449 }
 0x496   : > { %v4700_v48 = vsel %vm11944_vm8, %v11620_v37, %v4697_v44  ;;  %vm7606_vm12 = vcmp.lt.s32.totalorder %v7605_v3, 0  ;;  %v4854_v13 = vsel %vm4850_vm13, %v4834_v28, %v4837_v51  ;;  %v4855_v33 = vsel %vm4853_vm0, %v4843_v7, 2102212464 }
 0x497   : > { %8163 = vcosq.f32 %v4700_v48  ;;  %v4992_v14 = vsel %vm7606_vm12, 0, %v7605_v3  ;;  %v4858_v2 = vsel %vm4850_vm13, %v4837_v51, %v4840_v17  ;;  %v4859_v26 = vsel %vm4853_vm0, %v4846_v6, 920167782 }
 0x498   : > { %8165 = vsinq.f32 %v4700_v48  ;;  %v4993_v24 = vsub.s32 32, %v4992_v14  ;;  %v4997_v10 = vsub.s32 4294967266, %v4992_v14  ;;  %v4994_v30 = vshll.u32 %v11954_v60, %v4992_v14 }
 0x499   : > { %v4862_v18 = vsel %vm4850_vm13, %v4840_v17, %v4843_v7  ;;  %v4863_v52 = vsel %vm4853_vm0, %v4849_v4, 1326507024  ;;  %v4860_v9 = vsel %vm4852_vm15, %v4843_v7, %v4859_v26  ;;  %vm4706_vm1 = vcmp.lt.s32.totalorder %v11956_v27, 2 }
 0x49a   : > { %v4995_v11 = vshrl.u32 %v4977_v53, %v4993_v24  ;;  %v4998_v16 = vadd.s32 127, %v4997_v10  ;;  %v4864_v46 = vsel %vm4852_vm15, %v4846_v6, %v4863_v52  ;;  %v4856_v1 = vsel %vm4852_vm15, %v4840_v17, %v4855_v33 }
 0x49b   : > { %v4861_v36 = vsel %vm4851_vm14, %v4858_v2, %v4860_v9  ;;  %v4865_v60 = vsel %vm4851_vm14, %v4862_v18, %v4864_v46  ;;  %vm5138_vm2 = vcmp.gt.s32.totalorder %v5137_v40, 0  ;;  %vm4704_vm3 = vweird.f32 %v11620_v37 }
 0x49c   : > { %v4996_v34 = vor.u32 %v4995_v11, %v4994_v30  ;;  %v4999_v53 = vshll.u32 %v4998_v16, 23  ;;  %v12003_v23 = vmul.u32.u64.low %v11965_v19, %v4865_v60  ;;  %v12004_v42 = vmul.u32.u64.high %v11965_v19, %v4865_v60, %v12003_v23 }
 0x49d   : > { %vm4707_vm5 = vcmp.eq.s32.totalorder %v11956_v27, 0  ;;  %v12008_v25 = vmul.u32.u64.low %v11965_v19, %v4861_v36  ;;  %v12009_v12 = vmul.u32.u64.high %v11965_v19, %v4861_v36, %v12008_v25  ;;  %v5139_v20 = vsel %vm5138_vm2, %v5137_v40, 0 }
 0x49e   : > { %vm4710_vm4 = vcmp.eq.s32.totalorder %v11956_v27, 2  ;;  %vm12015_vm6 = vcmp.le.f32.partialorder %v4921_v15, 0.7853982  ;;  %v5000_v32 = vor.u32 4788187, %v4999_v53  ;;  %v4857_v62 = vsel %vm4851_vm14, %v4854_v13, %v4856_v1 }
 0x49f   : > { %v5141_v61 = vand.u32 31, %v5139_v20  ;;  %v5008_v40 = vsel %vm4923_vm11, %v5007_v50, %v11939_v29  ;;  %v5134_v58 = vand.u32 8388607, %v5127_v5  ;;  %v12031_v15 = vld [vmem:[%s13855_s1] ss:$0 sm:$0xff]  ;;  %v5003_v57 = vcvt.s32.f32 %v4996_v34 }
 0x4a0   : > { %v12034_v31 = vmul.f32 %v12031_v15, %v450_v38  ;;  %v12037_v55 = vmul.f32 %v12031_v15, %v465_v59  ;;  %v5001_v35 = vand.u32 2147483647, %v5000_v32  ;;  %vm4875_vm7 = vc.u32 %v12004_v42, %v12008_v25 }
 0x4a1   : > { %v8164_v8 = vpop.eup %8163  ;;  %v4873_v50 = vmul.u32 %v11965_v19, %v4857_v62  ;;  %v4876_v48 = vadd.s32 1, %v12009_v12  ;;  %v5142_v3 = vsub.s32 32, %v5141_v61  ;;  %v12045_v28 = vshrl.u32 %v5139_v20, 5 }
 0x4a2   : > { %v8166_v44 = vpop.eup %8165  ;;  %v4711_v51 = vxor.u32 2147483648, %v8164_v8  ;;  %v5004_v7 = vmul.f32 %v5003_v57, %v5001_v35  ;;  %v5144_v6 = vshll.u32 %v8349_v39, %v5141_v61  ;;  %v5147_v19 = vshll.u32 %v8350_v43, %v5141_v61 }
 0x4a3   : > { %v4708_v29 = vxor.u32 2147483648, %v8166_v44  ;;  %v4877_v14 = vsel %vm4875_vm7, %v4876_v48, %v12009_v12  ;;  %v5145_v13 = vshrl.u32 %v8350_v43, %v5142_v3  ;;  %v5148_v2 = vshrl.u32 %v8351_v45, %v5142_v3 }
 0x4a4   : > { %v4712_v17 = vsel %vm4710_vm4, %v4711_v51, %v8166_v44  ;;  %v5005_v10 = vxor.u32 2147483648, %v5004_v7  ;;  %v4878_v33 = vadd.s32 %v4877_v14, %v4873_v50  ;;  %v5150_v18 = vshll.u32 %v8351_v45, %v5141_v61 }
 0x4a5   : > { %v4709_v4 = vsel %vm4707_vm5, %v8164_v8, %v4708_v29  ;;  %v5146_v26 = vor.u32 %v5145_v13, %v5144_v6  ;;  %v5151_v52 = vshrl.u32 %v8352_v47, %v5142_v3  ;;  %v5153_v27 = vshll.u32 %v8352_v47, %v5141_v61 }
 0x4a6   : > { %v4713_v24 = vsel %vm4706_vm1, %v4709_v4, %v4712_v17  ;;  %v5006_v11 = vsel %vm4923_vm11, %v5005_v10, %v5004_v7  ;;  %v4879_v16 = vadd.s32 536870912, %v4878_v33  ;;  %v5154_v9 = vshrl.u32 %v8353_v49, %v5142_v3 }
 0x4a7   : > { %v4714_v30 = vsel %vm4704_vm3, nan, %v4713_v24  ;;  %v5009_v46 = vsel %vm12015_vm6, %v11626_v21, %v5006_v11  ;;  %v5149_v37 = vor.u32 %v5148_v2, %v5147_v19  ;;  %v5156_v1 = vshll.u32 %v8353_v49, %v5141_v61 }
 0x4a8   : > { %7328 = vst [vmem:[%s8782_s8 + $0x130] sm:$0xff] %v4714_v30  ;;  %v5157_v36 = vshrl.u32 %v8354_v56, %v5142_v3  ;;  %8167 = vcosq.f32 %v5009_v46  ;;  %v12070_v60 = vshrl.u32 %v4879_v16, 30  ;;  %v5152_v34 = vor.u32 %v5151_v52, %v5150_v18 }
 0x4a9   : > { %v5155_v53 = vor.u32 %v5154_v9, %v5153_v27  ;;  %v5010_v23 = vsel %vm12015_vm6, 0, %v5008_v40  ;;  %8169 = vsinq.f32 %v5009_v46  ;;  %v5135_v38 = vor.u32 8388608, %v5134_v58 }
 0x4aa   : > { %v5158_v59 = vor.u32 %v5157_v36, %v5156_v1  ;;  %v4881_v12 = vshll.u32 %v12070_v60, 30  ;;  %v5143_v20 = vshrl.u32 %v8349_v39, %v5142_v3  ;;  %vm5159_vm10 = vcmp.lt.s32.totalorder %v12045_v28, 1 }
 0x4ab   : > { %vm5162_vm8 = vcmp.lt.s32.totalorder %v12045_v28, 4  ;;  %vm5160_vm9 = vcmp.lt.s32.totalorder %v12045_v28, 2  ;;  %vm5161_vm11 = vcmp.lt.s32.totalorder %v12045_v28, 3  ;;  %v5167_v32 = vsel %vm5159_vm10, %v5146_v26, %v5149_v37 }
 0x4ac   : > { %v5168_v62 = vsel %vm5162_vm8, %v5155_v53, 920167782  ;;  %v12080_v61 = vsub.s32 %v4878_v33, %v4881_v12  ;;  %v5164_v63 = vsel %vm5162_vm8, %v5152_v34, 2102212464  ;;  %v5171_v40 = vsel %vm5159_vm10, %v5149_v37, %v5152_v34 }
 0x4ad   : > { %v5169_v8 = vsel %vm5161_vm11, %v5152_v34, %v5168_v62  ;;  %v5014_v58 = vand.u32 3, %v5010_v23  ;;  %v5172_v51 = vsel %vm5162_vm8, %v5158_v59, 1326507024  ;;  %v5175_v35 = vshll.u32 %v5135_v38, 8 }
 0x4ae   : > { %v5170_v44 = vsel %vm5160_vm9, %v5167_v32, %v5169_v8  ;;  %v4884_v57 = vsub.s32 0, %v12080_v61  ;;  %v5163_v29 = vsel %vm5159_vm10, %v5143_v20, %v5146_v26  ;;  %v5173_v50 = vsel %vm5161_vm11, %v5155_v53, %v5172_v51 }
 0x4af   : > { %v12087_v48 = vadd.f32 %v11911_v41, %v12034_v31  ;;  %v5165_v3 = vsel %vm5161_vm11, %v5149_v37, %v5164_v63  ;;  %v5174_v17 = vsel %vm5160_vm9, %v5171_v40, %v5173_v50  ;;  %vm5013_vm12 = vweird.f32 %v11626_v21 }
 0x4b0   : > { %v12091_v7 = vmul.u32.u64.low %v5175_v35, %v5170_v44  ;;  %v12092_v6 = vmul.u32.u64.high %v5175_v35, %v5170_v44, %v12091_v7  ;;  %vm4820_vm13 = vcmp.lt.s32.totalorder %v11915_v54, 0  ;;  %v7600_v4 = vmin.u32 %v4884_v57, %v12080_v61 }
 0x4b1   : > { %vm5015_vm14 = vcmp.lt.s32.totalorder %v5014_v58, 2  ;;  %vm5016_vm15 = vcmp.eq.s32.totalorder %v5014_v58, 0  ;;  %v12098_v14 = vmul.u32.u64.low %v5175_v35, %v5174_v17  ;;  %v12099_v13 = vmul.u32.u64.high %v5175_v35, %v5174_v17, %v12098_v14 }
 0x4b2   : > { %v8168_v31 = vpop.eup %8167  ;;  %vm5019_vm0 = vcmp.eq.s32.totalorder %v5014_v58, 2  ;;  %v4886_v19 = vclz %v7600_v4  ;;  %v5166_v24 = vsel %vm5160_vm9, %v5163_v29, %v5165_v3  ;;  %v5027_v10 = vand.u32 2139095040, %v12087_v48  ;;  %v460_v58 = vpop.permute.xlu0 %459 }
 0x4b3   : > { %v8170_v33 = vpop.eup %8169  ;;  %v5020_v2 = vxor.u32 2147483648, %v8168_v31  ;;  %v4904_v30 = vsub.s32 4, %v12070_v60  ;;  %v5185_v26 = vadd.s32 1, %v12092_v6  ;;  %v12108_v18 = vadd.f32 %v11911_v41, %v12037_v55 }
 0x4b4   : > { %v5017_v52 = vxor.u32 2147483648, %v8170_v33  ;;  %v7601_v11 = vadd.s32 4294967294, %v4886_v19  ;;  %v5024_v16 = vand.u32 2147483647, %v12087_v48  ;;  %v5028_v27 = vshrl.u32 %v5027_v10, 23 }
 0x4b5   : > { %v5021_v9 = vsel %vm5019_vm0, %v5020_v2, %v8170_v33  ;;  %v4874_v28 = vadd.s32 %v12008_v25, %v12004_v42  ;;  %v5182_v46 = vmul.u32 %v5175_v35, %v5166_v24  ;;  %vm5184_vm1 = vc.u32 %v12099_v13, %v12091_v7 }
 0x4b6   : > { %v5018_v37 = vsel %vm5016_vm15, %v8168_v31, %v5017_v52  ;;  %vm7602_vm2 = vcmp.lt.s32.totalorder %v7601_v11, 0  ;;  %v5186_v55 = vsel %vm5184_vm1, %v5185_v26, %v12092_v6  ;;  %v7607_v1 = vadd.s32 4294967169, %v5028_v27 }
 0x4b7   : > { %v5022_v36 = vsel %vm5015_vm14, %v5018_v37, %v5021_v9  ;;  %v4889_v34 = vsel %vm7602_vm2, 0, %v7601_v11  ;;  %v4905_v53 = vsel %vm4820_vm13, %v4904_v30, %v12070_v60  ;;  %v5187_v23 = vadd.s32 %v5186_v55, %v5182_v46 }
 0x4b8   : > { %v5023_v42 = vsel %vm5013_vm12, nan, %v5022_v36  ;;  %v4890_v25 = vsub.s32 32, %v4889_v34  ;;  %v4894_v38 = vsub.s32 4294967266, %v4889_v34  ;;  %v5031_v59 = vand.u32 8388607, %v5024_v16 }
 0x4b9   : > { %7331 = vst [vmem:[%s8782_s8 + $0x148] sm:$0xff] %v5023_v42  ;;  %v5188_v12 = vadd.s32 536870912, %v5187_v23  ;;  %v5034_v20 = vadd.s32 1, %v7607_v1  ;;  %vm12128_vm3 = vcmp.le.f32.partialorder %v4818_v22, 0.7853982  ;;  %v4891_v60 = vshll.u32 %v12080_v61, %v4889_v34 }
 0x4ba   : > { %v4892_v62 = vshrl.u32 %v4874_v28, %v4890_v25  ;;  %v4895_v63 = vadd.s32 127, %v4894_v38  ;;  %v4907_v21 = vsel %vm12128_vm3, 0, %v4905_v53  ;;  %v5336_v40 = vand.u32 2139095040, %v12108_v18 }
 0x4bb   : > { %v12135_v8 = vshrl.u32 %v5188_v12, 30  ;;  %vm5035_vm5 = vcmp.gt.s32.totalorder %v5034_v20, 0  ;;  %v5032_v35 = vor.u32 8388608, %v5031_v59  ;;  %v12139_v61 = vand.u32 3, %v4907_v21 }
 0x4bc   : > { %v4893_v44 = vor.u32 %v4892_v62, %v4891_v60  ;;  %v4896_v51 = vshll.u32 %v4895_v63, 23  ;;  %v5036_v22 = vsel %vm5035_vm5, %v5034_v20, 0  ;;  %v12142_v3 = vmul.f32 %v12031_v15, %v460_v58 }
 0x4bd   : > { %v5190_v57 = vshll.u32 %v12135_v8, 30  ;;  %v5038_v29 = vand.u32 31, %v5036_v22  ;;  %v5333_v4 = vand.u32 2147483647, %v12108_v18  ;;  %v5337_v14 = vshrl.u32 %v5336_v40, 23 }
 0x4be   : > { %v4897_v50 = vor.u32 4788187, %v4896_v51  ;;  %v4900_v19 = vcvt.s32.f32 %v4893_v44  ;;  %v5183_v24 = vadd.s32 %v12091_v7, %v12099_v13  ;;  %v12149_v10 = vshll.u32 %v5032_v35, 8 }
 0x4bf   : > { %v12144_v17 = vsub.s32 %v5187_v23, %v5190_v57  ;;  %v5039_v6 = vsub.s32 32, %v5038_v29  ;;  %v5037_v2 = vshrl.u32 %v5036_v22, 5  ;;  %v5041_v30 = vshll.u32 %v8349_v39, %v5038_v29 }
 0x4c0   : > { %v4898_v31 = vand.u32 2147483647, %v4897_v50  ;;  %v5044_v11 = vshll.u32 %v8350_v43, %v5038_v29  ;;  %v5213_v7 = vsub.s32 4, %v12135_v8  ;;  %v5047_v13 = vshll.u32 %v8351_v45, %v5038_v29 }
 0x4c1   : > { %v5193_v33 = vsub.s32 0, %v12144_v17  ;;  %v5042_v26 = vshrl.u32 %v8350_v43, %v5039_v6  ;;  %v5045_v27 = vshrl.u32 %v8351_v45, %v5039_v6  ;;  %v5048_v9 = vshrl.u32 %v8352_v47, %v5039_v6 }
 0x4c2   : > { %v4901_v52 = vmul.f32 %v4900_v19, %v4898_v31  ;;  %v7619_v46 = vadd.s32 4294967169, %v5337_v14  ;;  %v5050_v36 = vshll.u32 %v8352_v47, %v5038_v29  ;;  %v5051_v23 = vshrl.u32 %v8353_v49, %v5039_v6 }
 0x4c3   : > { %v7612_v28 = vmin.u32 %v5193_v33, %v12144_v17  ;;  %v5043_v55 = vor.u32 %v5042_v26, %v5041_v30  ;;  %v5046_v1 = vor.u32 %v5045_v27, %v5044_v11  ;;  %v5049_v53 = vor.u32 %v5048_v9, %v5047_v13 }
 0x4c4   : > { %v4902_v37 = vxor.u32 2147483648, %v4901_v52  ;;  %v5054_v42 = vshrl.u32 %v8354_v56, %v5039_v6  ;;  %v5040_v38 = vshrl.u32 %v8349_v39, %v5039_v6  ;;  %v5053_v59 = vshll.u32 %v8353_v49, %v5038_v29 }
 0x4c5   : > { %v5195_v34 = vclz %v7612_v28  ;;  %vm5056_vm4 = vcmp.lt.s32.totalorder %v5037_v2, 1  ;;  %v5052_v60 = vor.u32 %v5051_v23, %v5050_v36  ;;  %vm5058_vm6 = vcmp.lt.s32.totalorder %v5037_v2, 3 }
 0x4c6   : > { %v4903_v25 = vsel %vm4820_vm13, %v4902_v37, %v4901_v52  ;;  %v5055_v62 = vor.u32 %v5054_v42, %v5053_v59  ;;  %vm5059_vm7 = vcmp.lt.s32.totalorder %v5037_v2, 4  ;;  %v5064_v63 = vsel %vm5056_vm4, %v5043_v55, %v5046_v1 }
 0x4c7   : > { %v4906_v12 = vsel %vm12128_vm3, %v11915_v54, %v4903_v25  ;;  %v7613_v20 = vadd.s32 4294967294, %v5195_v34  ;;  %v5061_v21 = vsel %vm5059_vm7, %v5049_v53, 2102212464  ;;  %v5065_v40 = vsel %vm5059_vm7, %v5052_v60, 920167782 }
 0x4c8   : > { %8171 = vcosq.f32 %v4906_v12  ;;  %v5060_v44 = vsel %vm5056_vm4, %v5040_v38, %v5043_v55  ;;  %v5062_v32 = vsel %vm5058_vm6, %v5046_v1, %v5061_v21  ;;  %v5066_v51 = vsel %vm5058_vm6, %v5049_v53, %v5065_v40 }
 0x4c9   : > { %8173 = vsinq.f32 %v4906_v12  ;;  %vm7614_vm10 = vcmp.lt.s32.totalorder %v7613_v20, 0  ;;  %vm5057_vm8 = vcmp.lt.s32.totalorder %v5037_v2, 2  ;;  %v5068_v57 = vsel %vm5056_vm4, %v5046_v1, %v5049_v53 }
 0x4ca   : > { %v5198_v58 = vsel %vm7614_vm10, 0, %v7613_v20  ;;  %v5067_v50 = vsel %vm5057_vm8, %v5064_v63, %v5066_v51  ;;  %v5069_v6 = vsel %vm5059_vm7, %v5055_v62, 1326507024  ;;  %v5343_v14 = vadd.s32 1, %v7619_v46 }
 0x4cb   : > { %v5199_v35 = vsub.s32 32, %v5198_v58  ;;  %v5203_v22 = vsub.s32 4294967266, %v5198_v58  ;;  %v5200_v29 = vshll.u32 %v12144_v17, %v5198_v58  ;;  %v5063_v33 = vsel %vm5057_vm8, %v5060_v44, %v5062_v32 }
 0x4cc   : > { %v5070_v30 = vsel %vm5058_vm6, %v5052_v60, %v5069_v6  ;;  %v12181_v52 = vmul.u32.u64.low %v12149_v10, %v5067_v50  ;;  %v12182_v11 = vmul.u32.u64.high %v12149_v10, %v5067_v50, %v12181_v52  ;;  %vm5344_vm9 = vcmp.gt.s32.totalorder %v5343_v14, 0 }
 0x4cd   : > { %v5201_v31 = vshrl.u32 %v5183_v24, %v5199_v35  ;;  %v5204_v19 = vadd.s32 127, %v5203_v22  ;;  %v5071_v26 = vsel %vm5057_vm8, %v5068_v57, %v5070_v30  ;;  %vm4910_vm11 = vweird.f32 %v11915_v54 }
 0x4ce   : > { %v12187_v9 = vmul.u32.u64.low %v12149_v10, %v5071_v26  ;;  %v12188_v28 = vmul.u32.u64.high %v12149_v10, %v5071_v26, %v12187_v9  ;;  %vm4912_vm12 = vcmp.lt.s32.totalorder %v12139_v61, 2  ;;  %vm5129_vm13 = vcmp.lt.s32.totalorder %v11922_v0, 0 }
 0x4cf   : > { %v5202_v27 = vor.u32 %v5201_v31, %v5200_v29  ;;  %v5205_v17 = vshll.u32 %v5204_v19, 23  ;;  %v5345_v24 = vsel %vm5344_vm9, %v5343_v14, 0  ;;  %v12194_v2 = vadd.f32 %v11911_v41, %v12142_v3  ;;  %v475_v14 = vpop.permute.xlu1 %474 }
 0x4d0   : > { %vm4913_vm14 = vcmp.eq.s32.totalorder %v12139_v61, 0  ;;  %vm4916_vm15 = vcmp.eq.s32.totalorder %v12139_v61, 2  ;;  %vm12200_vm0 = vcmp.le.f32.partialorder %v5127_v5, 0.7853982  ;;  %v5347_v37 = vand.u32 31, %v5345_v24 }
 0x4d1   : > { %v5206_v46 = vor.u32 4788187, %v5205_v17  ;;  %v12209_v3 = vsel %vm5129_vm13, %v5213_v7, %v12135_v8  ;;  %v5079_v1 = vmul.u32 %v12149_v10, %v5063_v33  ;;  %v5082_v36 = vadd.s32 1, %v12182_v11 }
 0x4d2   : > { %v8172_v55 = vpop.eup %8171  ;;  %v5340_v5 = vand.u32 8388607, %v5333_v4  ;;  %v5209_v42 = vcvt.s32.f32 %v5202_v27  ;;  %vm5081_vm1 = vc.u32 %v12188_v28, %v12181_v52  ;;  %v5348_v59 = vsub.s32 32, %v5347_v37 }
 0x4d3   : > { %v8174_v34 = vpop.eup %8173  ;;  %v4917_v53 = vxor.u32 2147483648, %v8172_v55  ;;  %v5207_v23 = vand.u32 2147483647, %v5206_v46  ;;  %v5083_v38 = vsel %vm5081_vm1, %v5082_v36, %v12182_v11  ;;  %v5233_v8 = vand.u32 2139095040, %v12194_v2 }
 0x4d4   : > { %v4914_v25 = vxor.u32 2147483648, %v8174_v34  ;;  %v5084_v12 = vadd.s32 %v5083_v38, %v5079_v1  ;;  %v12221_v20 = vshrl.u32 %v5345_v24, 5  ;;  %v5350_v62 = vshll.u32 %v8349_v39, %v5347_v37 }
 0x4d5   : > { %v4918_v10 = vsel %vm4916_vm15, %v4917_v53, %v8174_v34  ;;  %v5210_v7 = vmul.f32 %v5209_v42, %v5207_v23  ;;  %v5351_v63 = vshrl.u32 %v8350_v43, %v5348_v59  ;;  %v5354_v21 = vshrl.u32 %v8351_v45, %v5348_v59 }
 0x4d6   : > { %v4915_v60 = vsel %vm4913_vm14, %v8172_v55, %v4914_v25  ;;  %v5085_v44 = vadd.s32 536870912, %v5084_v12  ;;  %v5353_v32 = vshll.u32 %v8350_v43, %v5347_v37  ;;  %v5356_v22 = vshll.u32 %v8351_v45, %v5347_v37 }
 0x4d7   : > { %v4919_v40 = vsel %vm4912_vm12, %v4915_v60, %v4918_v10  ;;  %v5211_v58 = vxor.u32 2147483648, %v5210_v7  ;;  %v5352_v35 = vor.u32 %v5351_v63, %v5350_v62  ;;  %v5357_v57 = vshrl.u32 %v8352_v47, %v5348_v59 }
 0x4d8   : > { %v4920_v51 = vsel %vm4910_vm11, nan, %v4919_v40  ;;  %v12238_v50 = vshrl.u32 %v5085_v44, 30  ;;  %v5359_v61 = vshll.u32 %v8352_v47, %v5347_v37  ;;  %v5360_v6 = vshrl.u32 %v8353_v49, %v5348_v59 }
 0x4d9   : > { %7330 = vst [vmem:[%s8782_s8 + $0x140] sm:$0xff] %v4920_v51  ;;  %v5212_v29 = vsel %vm5129_vm13, %v5211_v58, %v5210_v7  ;;  %v5355_v31 = vor.u32 %v5354_v21, %v5353_v32  ;;  %v5362_v19 = vshll.u32 %v8353_v49, %v5347_v37  ;;  %v5363_v33 = vshrl.u32 %v8354_v56, %v5348_v59 }
 0x4da   : > { %v5215_v54 = vsel %vm12200_vm0, %v11922_v0, %v5212_v29  ;;  %v5087_v30 = vshll.u32 %v12238_v50, 30  ;;  %v5358_v26 = vor.u32 %v5357_v57, %v5356_v22  ;;  %v5361_v11 = vor.u32 %v5360_v6, %v5359_v61 }
 0x4db   : > { %8175 = vcosq.f32 %v5215_v54  ;;  %v5341_v27 = vor.u32 8388608, %v5340_v5  ;;  %v5364_v17 = vor.u32 %v5363_v33, %v5362_v19  ;;  %v12249_v9 = vmul.f32 %v12031_v15, %v475_v14 }
 0x4dc   : > { %8177 = vsinq.f32 %v5215_v54  ;;  %v5216_v24 = vsel %vm12200_vm0, 0, %v12209_v3  ;;  %v12254_v46 = vsub.s32 %v5084_v12, %v5087_v30  ;;  %v5230_v37 = vand.u32 2147483647, %v12194_v2 }
 0x4dd   : > { %v5234_v55 = vshrl.u32 %v5233_v8, 23  ;;  %v5349_v1 = vshrl.u32 %v8349_v39, %v5348_v59  ;;  %vm5365_vm2 = vcmp.lt.s32.totalorder %v12221_v20, 1  ;;  %vm5367_vm3 = vcmp.lt.s32.totalorder %v12221_v20, 3 }
 0x4de   : > { %vm5368_vm5 = vcmp.lt.s32.totalorder %v12221_v20, 4  ;;  %v5090_v36 = vsub.s32 0, %v12254_v46  ;;  %v5373_v34 = vsel %vm5365_vm2, %v5352_v35, %v5355_v31  ;;  %v5377_v3 = vsel %vm5365_vm2, %v5355_v31, %v5358_v26 }
 0x4df   : > { %v5370_v5 = vsel %vm5368_vm5, %v5358_v26, 2102212464  ;;  %v5374_v53 = vsel %vm5368_vm5, %v5361_v11, 920167782  ;;  %v5378_v23 = vsel %vm5368_vm5, %v5364_v17, 1326507024  ;;  %v5369_v59 = vsel %vm5365_vm2, %v5349_v1, %v5352_v35 }
 0x4e0   : > { %v5375_v13 = vsel %vm5367_vm3, %v5358_v26, %v5374_v53  ;;  %v5381_v42 = vshll.u32 %v5341_v27, 8  ;;  %v5220_v25 = vand.u32 3, %v5216_v24  ;;  %v7608_v38 = vmin.u32 %v5090_v36, %v12254_v46 }
 0x4e1   : > { %vm5366_vm4 = vcmp.lt.s32.totalorder %v12221_v20, 2  ;;  %v5371_v8 = vsel %vm5367_vm3, %v5355_v31, %v5370_v5  ;;  %v5379_v7 = vsel %vm5367_vm3, %v5361_v11, %v5378_v23  ;;  %v7615_v12 = vadd.s32 4294967169, %v5234_v55 }
 0x4e2   : > { %v5376_v10 = vsel %vm5366_vm4, %v5373_v34, %v5375_v13  ;;  %v5092_v60 = vclz %v7608_v38  ;;  %v5380_v62 = vsel %vm5366_vm4, %v5377_v3, %v5379_v7  ;;  %vm5219_vm6 = vweird.f32 %v11922_v0 }
 0x4e3   : > { %v12274_v63 = vmul.u32.u64.low %v5381_v42, %v5376_v10  ;;  %v12275_v21 = vmul.u32.u64.high %v5381_v42, %v5376_v10, %v12274_v63  ;;  %v12279_v40 = vmul.u32.u64.low %v5381_v42, %v5380_v62  ;;  %v12280_v58 = vmul.u32.u64.high %v5381_v42, %v5380_v62, %v12279_v40 }
 0x4e4   : > { %v5240_v44 = vadd.s32 1, %v7615_v12  ;;  %vm5221_vm7 = vcmp.lt.s32.totalorder %v5220_v25, 2  ;;  %vm5222_vm10 = vcmp.eq.s32.totalorder %v5220_v25, 0  ;;  %vm5225_vm8 = vcmp.eq.s32.totalorder %v5220_v25, 2 }
 0x4e5   : > { %v8176_v32 = vpop.eup %8175  ;;  %v7609_v51 = vadd.s32 4294967294, %v5092_v60  ;;  %v5372_v57 = vsel %vm5366_vm4, %v5369_v59, %v5371_v8  ;;  %v5237_v29 = vand.u32 8388607, %v5230_v37  ;;  %v5391_v6 = vadd.s32 1, %v12275_v21 }
 0x4e6   : > { %v8178_v35 = vpop.eup %8177  ;;  %v5226_v22 = vxor.u32 2147483648, %v8176_v32  ;;  %vm5241_vm9 = vcmp.gt.s32.totalorder %v5240_v44, 0  ;;  %v5080_v31 = vadd.s32 %v12181_v52, %v12188_v28  ;;  %vm5390_vm12 = vc.u32 %v12280_v58, %v12274_v63 }
 0x4e7   : > { %v5223_v61 = vxor.u32 2147483648, %v8178_v35  ;;  %vm7610_vm11 = vcmp.lt.s32.totalorder %v7609_v51, 0  ;;  %v5242_v14 = vsel %vm5241_vm9, %v5240_v44, 0  ;;  %v5388_v26 = vmul.u32 %v5381_v42, %v5372_v57 }
 0x4e8   : > { %v5227_v54 = vsel %vm5225_vm8, %v5226_v22, %v8178_v35  ;;  %v5095_v19 = vsel %vm7610_vm11, 0, %v7609_v51  ;;  %v5392_v17 = vsel %vm5390_vm12, %v5391_v6, %v12275_v21  ;;  %v5244_v24 = vand.u32 31, %v5242_v14 }
 0x4e9   : > { %v5224_v20 = vsel %vm5222_vm10, %v8176_v32, %v5223_v61  ;;  %v5096_v33 = vsub.s32 32, %v5095_v19  ;;  %v5100_v30 = vsub.s32 4294967266, %v5095_v19  ;;  %v5097_v27 = vshll.u32 %v12254_v46, %v5095_v19 }
 0x4ea   : > { %v5228_v11 = vsel %vm5221_vm7, %v5224_v20, %v5227_v54  ;;  %v5393_v1 = vadd.s32 %v5392_v17, %v5388_v26  ;;  %vm5026_vm13 = vcmp.lt.s32.totalorder %v12087_v48, 0  ;;  %v5238_v36 = vor.u32 8388608, %v5237_v29 }
 0x4eb   : > { %v5229_v55 = vsel %vm5219_vm6, nan, %v5228_v11  ;;  %v5098_v52 = vshrl.u32 %v5080_v31, %v5096_v33  ;;  %v5101_v28 = vadd.s32 127, %v5100_v30  ;;  %v5245_v5 = vsub.s32 32, %v5244_v24 }
 0x4ec   : > { %7333 = vst [vmem:[%s8782_s8 + $0x158] sm:$0xff] %v5229_v55  ;;  %v12301_v34 = vadd.f32 %v11911_v41, %v12249_v9  ;;  %v5110_v13 = vsub.s32 4, %v12238_v50  ;;  %v5394_v3 = vadd.s32 536870912, %v5393_v1  ;;  %v5247_v0 = vshll.u32 %v8349_v39, %v5244_v24 }
 0x4ed   : > { %v5099_v53 = vor.u32 %v5098_v52, %v5097_v27  ;;  %v5102_v46 = vshll.u32 %v5101_v28, 23  ;;  %v5248_v23 = vshrl.u32 %v8350_v43, %v5245_v5  ;;  %v5251_v42 = vshrl.u32 %v8351_v45, %v5245_v5 }
 0x4ee   : > { %v5254_v25 = vshrl.u32 %v8352_v47, %v5245_v5  ;;  %vm12310_vm14 = vcmp.le.f32.partialorder %v5024_v16, 0.7853982  ;;  %v12314_v9 = vshrl.u32 %v5394_v3, 30  ;;  %v5253_v59 = vshll.u32 %v8351_v45, %v5244_v24 }
 0x4ef   : > { %v5103_v41 = vor.u32 4788187, %v5102_v46  ;;  %v5257_v8 = vshrl.u32 %v8353_v49, %v5245_v5  ;;  %v5106_v10 = vcvt.s32.f32 %v5099_v53  ;;  %v5243_v7 = vshrl.u32 %v5242_v14, 5 }
 0x4f0   : > { %v5250_v12 = vshll.u32 %v8350_v43, %v5244_v24  ;;  %v5256_v60 = vshll.u32 %v8352_v47, %v5244_v24  ;;  %v5396_v21 = vshll.u32 %v12314_v9, 30  ;;  %v5249_v16 = vor.u32 %v5248_v23, %v5247_v0 }
 0x4f1   : > { %v5104_v62 = vand.u32 2147483647, %v5103_v41  ;;  %v5255_v40 = vor.u32 %v5254_v25, %v5253_v59  ;;  %v5259_v51 = vshll.u32 %v8353_v49, %v5244_v24  ;;  %v5260_v35 = vshrl.u32 %v8354_v56, %v5245_v5 }
 0x4f2   : > { %v5252_v44 = vor.u32 %v5251_v42, %v5250_v12  ;;  %v5258_v32 = vor.u32 %v5257_v8, %v5256_v60  ;;  %v5111_v57 = vsel %vm5026_vm13, %v5110_v13, %v12238_v50  ;;  %v12326_v29 = vsub.s32 %v5393_v1, %v5396_v21 }
 0x4f3   : > { %v5107_v22 = vmul.f32 %v5106_v10, %v5104_v62  ;;  %v5278_v61 = vshll.u32 %v5238_v36, 8  ;;  %v5246_v6 = vshrl.u32 %v8349_v39, %v5245_v5  ;;  %v5261_v14 = vor.u32 %v5260_v35, %v5259_v51 }
 0x4f4   : > { %vm5265_vm15 = vcmp.lt.s32.totalorder %v5243_v7, 4  ;;  %v5542_v54 = vand.u32 2139095040, %v12301_v34  ;;  %v5399_v19 = vsub.s32 0, %v12326_v29  ;;  %vm5262_vm0 = vcmp.lt.s32.totalorder %v5243_v7, 1 }
 0x4f5   : > { %v5108_v31 = vxor.u32 2147483648, %v5107_v22  ;;  %v5267_v20 = vsel %vm5265_vm15, %v5255_v40, 2102212464  ;;  %vm5263_vm1 = vcmp.lt.s32.totalorder %v5243_v7, 2  ;;  %vm5264_vm2 = vcmp.lt.s32.totalorder %v5243_v7, 3 }
 0x4f6   : > { %v5270_v33 = vsel %vm5262_vm0, %v5249_v16, %v5252_v44  ;;  %v5271_v50 = vsel %vm5265_vm15, %v5258_v32, 920167782  ;;  %v7620_v26 = vmin.u32 %v5399_v19, %v12326_v29  ;;  %v5266_v11 = vsel %vm5262_vm0, %v5246_v6, %v5249_v16 }
 0x4f7   : > { %v5109_v30 = vsel %vm5026_vm13, %v5108_v31, %v5107_v22  ;;  %v5274_v27 = vsel %vm5262_vm0, %v5252_v44, %v5255_v40  ;;  %v5268_v24 = vsel %vm5264_vm2, %v5252_v44, %v5267_v20  ;;  %v5272_v55 = vsel %vm5264_vm2, %v5255_v40, %v5271_v50 }
 0x4f8   : > { %v5112_v17 = vsel %vm12310_vm14, %v12087_v48, %v5109_v30  ;;  %v5275_v52 = vsel %vm5265_vm15, %v5261_v14, 1326507024  ;;  %v5401_v28 = vclz %v7620_v26  ;;  %v5273_v1 = vsel %vm5263_vm1, %v5270_v33, %v5272_v55  ;;  %v470_v14 = vpop.permute.xlu0 %469 }
 0x4f9   : > { %8179 = vcosq.f32 %v5112_v17  ;;  %v5276_v36 = vsel %vm5264_vm2, %v5258_v32, %v5275_v52  ;;  %v12342_v53 = vmul.u32.u64.low %v5278_v61, %v5273_v1  ;;  %v12343_v46 = vmul.u32.u64.high %v5278_v61, %v5273_v1, %v12342_v53 }
 0x4fa   : > { %8181 = vsinq.f32 %v5112_v17  ;;  %v5277_v5 = vsel %vm5263_vm1, %v5274_v27, %v5276_v36  ;;  %v7621_v13 = vadd.s32 4294967294, %v5401_v28  ;;  %v5113_v23 = vsel %vm12310_vm14, 0, %v5111_v57 }
 0x4fb   : > { %v12346_v3 = vmul.u32.u64.low %v5278_v61, %v5277_v5  ;;  %v12347_v0 = vmul.u32.u64.high %v5278_v61, %v5277_v5, %v12346_v3  ;;  %v5539_v42 = vand.u32 2147483647, %v12301_v34  ;;  %v5543_v25 = vshrl.u32 %v5542_v54, 23 }
 0x4fc   : > { %vm5335_vm3 = vcmp.lt.s32.totalorder %v12108_v18, 0  ;;  %vm7622_vm5 = vcmp.lt.s32.totalorder %v7621_v13, 0  ;;  %v5269_v41 = vsel %vm5263_vm1, %v5266_v11, %v5268_v24  ;;  %v5419_v8 = vsub.s32 4, %v12314_v9 }
 0x4fd   : > { %v5404_v59 = vsel %vm7622_vm5, 0, %v7621_v13  ;;  %v5288_v10 = vadd.s32 1, %v12343_v46  ;;  %v7627_v12 = vadd.s32 4294967169, %v5543_v25  ;;  %v5117_v60 = vand.u32 3, %v5113_v23 }
 0x4fe   : > { %v5389_v62 = vadd.s32 %v12274_v63, %v12280_v58  ;;  %v5405_v38 = vsub.s32 32, %v5404_v59  ;;  %v5409_v21 = vsub.s32 4294967266, %v5404_v59  ;;  %vm5116_vm4 = vweird.f32 %v12087_v48 }
 0x4ff   : > { %v5285_v16 = vmul.u32 %v5278_v61, %v5269_v41  ;;  %vm5287_vm6 = vc.u32 %v12347_v0, %v12342_v53  ;;  %v5546_v7 = vand.u32 8388607, %v5539_v42  ;;  %v5549_v40 = vadd.s32 1, %v7627_v12 }
 0x500   : > { %v5406_v44 = vshll.u32 %v12326_v29, %v5404_v59  ;;  %v5407_v32 = vshrl.u32 %v5389_v62, %v5405_v38  ;;  %v5410_v51 = vadd.s32 127, %v5409_v21  ;;  %v5289_v35 = vsel %vm5287_vm6, %v5288_v10, %v12343_v46  ;;  %v12397_v59 = vld [vmem:[%s13856_s2] ss:$0 sm:$0xff] }
 0x501   : > { %vm12367_vm7 = vcmp.le.f32.partialorder %v5333_v4, 0.7853982  ;;  %v5420_v58 = vsel %vm5335_vm3, %v5419_v8, %v12314_v9  ;;  %v5290_v22 = vadd.s32 %v5289_v35, %v5285_v16  ;;  %vm5550_vm10 = vcmp.gt.s32.totalorder %v5549_v40, 0 }
 0x502   : > { %vm5119_vm8 = vcmp.eq.s32.totalorder %v5117_v60, 0  ;;  %v5408_v61 = vor.u32 %v5407_v32, %v5406_v44  ;;  %v5411_v29 = vshll.u32 %v5410_v51, 23  ;;  %v5551_v6 = vsel %vm5550_vm10, %v5549_v40, 0 }
 0x503   : > { %v8180_v57 = vpop.eup %8179  ;;  %v5291_v19 = vadd.s32 536870912, %v5290_v22  ;;  %v5547_v20 = vor.u32 8388608, %v5546_v7  ;;  %v5553_v4 = vand.u32 31, %v5551_v6  ;;  %vm5122_vm9 = vcmp.eq.s32.totalorder %v5117_v60, 2 }
 0x504   : > { %v8182_v54 = vpop.eup %8181  ;;  %v5123_v31 = vxor.u32 2147483648, %v8180_v57  ;;  %v5412_v50 = vor.u32 4788187, %v5411_v29  ;;  %v5422_v30 = vsel %vm12367_vm7, 0, %v5420_v58  ;;  %v609_v27 = vmul.f32 %v12031_v15, %v470_v14 }
 0x505   : > { %v5120_v33 = vxor.u32 2147483648, %v8182_v54  ;;  %v12376_v26 = vshrl.u32 %v5291_v19, 30  ;;  %v5554_v11 = vsub.s32 32, %v5553_v4  ;;  %vm5118_vm11 = vcmp.lt.s32.totalorder %v5117_v60, 2 }
 0x506   : > { %v5124_v9 = vsel %vm5122_vm9, %v5123_v31, %v8182_v54  ;;  %v5413_v24 = vand.u32 2147483647, %v5412_v50  ;;  %v5415_v55 = vcvt.s32.f32 %v5408_v61  ;;  %v12380_v28 = vand.u32 3, %v5422_v30 }
 0x507   : > { %v5121_v17 = vsel %vm5119_vm8, %v8180_v57, %v5120_v33  ;;  %v5293_v1 = vshll.u32 %v12376_v26, 30  ;;  %v12383_v36 = vshll.u32 %v5547_v20, 8  ;;  %v5557_v13 = vshrl.u32 %v8350_v43, %v5554_v11 }
 0x508   : > { %v5125_v52 = vsel %vm5118_vm11, %v5121_v17, %v5124_v9  ;;  %v5416_v46 = vmul.f32 %v5415_v55, %v5413_v24  ;;  %v5560_v3 = vshrl.u32 %v8351_v45, %v5554_v11  ;;  %v5556_v25 = vshll.u32 %v8349_v39, %v5553_v4  ;;  %v480_v24 = vpop.permute.xlu0 %479 }
 0x509   : > { %v5126_v5 = vsel %vm5116_vm4, nan, %v5125_v52  ;;  %v12390_v23 = vsub.s32 %v5290_v22, %v5293_v1  ;;  %v5563_v41 = vshrl.u32 %v8352_v47, %v5554_v11  ;;  %v12400_v48 = vadd.f32 %v12397_v59, %v609_v27 }
 0x50a   : > { %7332 = vst [vmem:[%s8782_s8 + $0x150] sm:$0xff] %v5126_v5  ;;  %v5417_v8 = vxor.u32 2147483648, %v5416_v46  ;;  %v12402_v10 = vshrl.u32 %v5551_v6, 5  ;;  %v5559_v12 = vshll.u32 %v8350_v43, %v5553_v4  ;;  %v5562_v60 = vshll.u32 %v8351_v45, %v5553_v4 }
 0x50b   : > { %v5296_v62 = vsub.s32 0, %v12390_v23  ;;  %v5558_v38 = vor.u32 %v5557_v13, %v5556_v25  ;;  %v5565_v21 = vshll.u32 %v8352_v47, %v5553_v4  ;;  %v5566_v16 = vshrl.u32 %v8353_v49, %v5554_v11 }
 0x50c   : > { %v5418_v7 = vsel %vm5335_vm3, %v5417_v8, %v5416_v46  ;;  %v5561_v40 = vor.u32 %v5560_v3, %v5559_v12  ;;  %v5568_v44 = vshll.u32 %v8353_v49, %v5553_v4  ;;  %v5569_v32 = vshrl.u32 %v8354_v56, %v5554_v11 }
 0x50d   : > { %v5421_v51 = vsel %vm12367_vm7, %v12108_v18, %v5418_v7  ;;  %v7616_v35 = vmin.u32 %v5296_v62, %v12390_v23  ;;  %v5564_v58 = vor.u32 %v5563_v41, %v5562_v60  ;;  %v5439_v22 = vand.u32 2139095040, %v12400_v48 }
 0x50e   : > { %8183 = vcosq.f32 %v5421_v51  ;;  %v5316_v57 = vsub.s32 4, %v12376_v26  ;;  %v5567_v61 = vor.u32 %v5566_v16, %v5565_v21  ;;  %v5570_v29 = vor.u32 %v5569_v32, %v5568_v44 }
 0x50f   : > { %8185 = vsinq.f32 %v5421_v51  ;;  %vm5232_vm12 = vcmp.lt.s32.totalorder %v12194_v2, 0  ;;  %v5298_v6 = vclz %v7616_v35  ;;  %v5555_v14 = vshrl.u32 %v8349_v39, %v5554_v11  ;;  %v485_v11 = vpop.permute.xlu1 %484 }
 0x510   : > { %vm5571_vm13 = vcmp.lt.s32.totalorder %v12402_v10, 1  ;;  %vm5572_vm14 = vcmp.lt.s32.totalorder %v12402_v10, 2  ;;  %vm5573_vm15 = vcmp.lt.s32.totalorder %v12402_v10, 3  ;;  %vm5574_vm0 = vcmp.lt.s32.totalorder %v12402_v10, 4 }
 0x511   : > { %v5579_v63 = vsel %vm5571_vm13, %v5558_v38, %v5561_v40  ;;  %v7617_v54 = vadd.s32 4294967294, %v5298_v6  ;;  %v5576_v31 = vsel %vm5574_vm0, %v5564_v58, 2102212464  ;;  %v5580_v19 = vsel %vm5574_vm0, %v5567_v61, 920167782 }
 0x512   : > { %v5583_v20 = vsel %vm5571_vm13, %v5561_v40, %v5564_v58  ;;  %vm5431_vm1 = vcmp.eq.s32.totalorder %v12380_v28, 2  ;;  %vm12428_vm2 = vcmp.le.f32.partialorder %v5230_v37, 0.7853982  ;;  %v5575_v33 = vsel %vm5571_vm13, %v5555_v14, %v5558_v38 }
 0x513   : > { %v5581_v50 = vsel %vm5573_vm15, %v5564_v58, %v5580_v19  ;;  %v5584_v30 = vsel %vm5574_vm0, %v5570_v29, 1326507024  ;;  %v5440_v9 = vshrl.u32 %v5439_v22, 23  ;;  %vm5428_vm3 = vcmp.eq.s32.totalorder %v12380_v28, 0 }
 0x514   : > { %vm7618_vm5 = vcmp.lt.s32.totalorder %v7617_v54, 0  ;;  %v5577_v27 = vsel %vm5573_vm15, %v5561_v40, %v5576_v31  ;;  %v5582_v17 = vsel %vm5572_vm14, %v5579_v63, %v5581_v50  ;;  %v5585_v37 = vsel %vm5573_vm15, %v5567_v61, %v5584_v30 }
 0x515   : > { %vm5427_vm4 = vcmp.lt.s32.totalorder %v12380_v28, 2  ;;  %v5301_v55 = vsel %vm7618_vm5, 0, %v7617_v54  ;;  %v5586_v52 = vsel %vm5572_vm14, %v5583_v20, %v5585_v37  ;;  %vm5425_vm6 = vweird.f32 %v12108_v18 }
 0x516   : > { %v12445_v1 = vmul.u32.u64.low %v12383_v36, %v5582_v17  ;;  %v12446_v5 = vmul.u32.u64.high %v12383_v36, %v5582_v17, %v12445_v1  ;;  %v5286_v46 = vadd.s32 %v12342_v53, %v12347_v0  ;;  %v5302_v13 = vsub.s32 32, %v5301_v55 }
 0x517   : > { %v5306_v3 = vsub.s32 4294967266, %v5301_v55  ;;  %v612_v25 = vmul.f32 %v12031_v15, %v485_v11  ;;  %v12454_v41 = vmul.u32.u64.low %v12383_v36, %v5586_v52  ;;  %v12455_v8 = vmul.u32.u64.high %v12383_v36, %v5586_v52, %v12454_v41 }
 0x518   : > { %v7623_v12 = vadd.s32 4294967169, %v5440_v9  ;;  %v611_v60 = vmul.f32 %v12031_v15, %v480_v24  ;;  %v5303_v62 = vshll.u32 %v12390_v23, %v5301_v55  ;;  %v5304_v38 = vshrl.u32 %v5286_v46, %v5302_v13  ;;  %v8184_v7 = vpop.eup %8183 }
 0x519   : > { %v5307_v21 = vadd.s32 127, %v5306_v3  ;;  %v5578_v16 = vsel %vm5572_vm14, %v5575_v33, %v5577_v27  ;;  %v5317_v53 = vsel %vm5232_vm12, %v5316_v57, %v12376_v26  ;;  %v5597_v0 = vadd.s32 1, %v12446_v5  ;;  %v8186_v32 = vpop.eup %8185 }
 0x51a   : > { %v5436_v40 = vand.u32 2147483647, %v12400_v48  ;;  %v5446_v44 = vadd.s32 1, %v7623_v12  ;;  %v5432_v51 = vxor.u32 2147483648, %v8184_v7  ;;  %v5305_v15 = vor.u32 %v5304_v38, %v5303_v62 }
 0x51b   : > { %v5308_v35 = vshll.u32 %v5307_v21, 23  ;;  %v12467_v23 = vadd.f32 %v12397_v59, %v612_v25  ;;  %v5429_v58 = vxor.u32 2147483648, %v8186_v32  ;;  %v5594_v10 = vmul.u32 %v12383_v36, %v5578_v16 }
 0x51c   : > { %vm5596_vm7 = vc.u32 %v12455_v8, %v12445_v1  ;;  %vm5447_vm10 = vcmp.gt.s32.totalorder %v5446_v44, 0  ;;  %v5433_v26 = vsel %vm5431_vm1, %v5432_v51, %v8186_v32  ;;  %v5319_v57 = vsel %vm12428_vm2, 0, %v5317_v53 }
 0x51d   : > { %v5309_v22 = vor.u32 4788187, %v5308_v35  ;;  %v5598_v61 = vsel %vm5596_vm7, %v5597_v0, %v12446_v5  ;;  %v5430_v29 = vsel %vm5428_vm3, %v8184_v7, %v5429_v58  ;;  %v5443_v36 = vand.u32 8388607, %v5436_v40 }
 0x51e   : > { %v5599_v6 = vadd.s32 %v5598_v61, %v5594_v10  ;;  %v5448_v14 = vsel %vm5447_vm10, %v5446_v44, 0  ;;  %v5434_v63 = vsel %vm5427_vm4, %v5430_v29, %v5433_v26  ;;  %v5312_v31 = vcvt.s32.f32 %v5305_v15 }
 0x51f   : > { %v5310_v54 = vand.u32 2147483647, %v5309_v22  ;;  %v5450_v19 = vand.u32 31, %v5448_v14  ;;  %v5435_v20 = vsel %vm5425_vm6, nan, %v5434_v63  ;;  %v12486_v30 = vand.u32 3, %v5319_v57 }
 0x520   : > { %v5600_v33 = vadd.s32 536870912, %v5599_v6  ;;  %7335 = vst [vmem:[%s8782_s8 + $0x168] sm:$0xff] %v5435_v20  ;;  %v12489_v11 = vadd.f32 %v12397_v59, %v611_v60  ;;  %v5444_v17 = vor.u32 8388608, %v5443_v36  ;;  %v5449_v28 = vshrl.u32 %v5448_v14, 5 }
 0x521   : > { %v5313_v50 = vmul.f32 %v5312_v31, %v5310_v54  ;;  %v5451_v9 = vsub.s32 32, %v5450_v19  ;;  %v5748_v37 = vand.u32 2139095040, %v12467_v23  ;;  %v5453_v55 = vshll.u32 %v8349_v39, %v5450_v19 }
 0x522   : > { %v12491_v27 = vshrl.u32 %v5600_v33, 30  ;;  %v5456_v46 = vshll.u32 %v8350_v43, %v5450_v19  ;;  %v5459_v41 = vshll.u32 %v8351_v45, %v5450_v19  ;;  %v5462_v12 = vshll.u32 %v8352_v47, %v5450_v19 }
 0x523   : > { %v5314_v24 = vxor.u32 2147483648, %v5313_v50  ;;  %v5454_v18 = vshrl.u32 %v8350_v43, %v5451_v9  ;;  %v5457_v52 = vshrl.u32 %v8351_v45, %v5451_v9  ;;  %v5460_v13 = vshrl.u32 %v8352_v47, %v5451_v9 }
 0x524   : > { %v5602_v5 = vshll.u32 %v12491_v27, 30  ;;  %v5463_v3 = vshrl.u32 %v8353_v49, %v5451_v9  ;;  %v5466_v60 = vshrl.u32 %v8354_v56, %v5451_v9  ;;  %v5465_v16 = vshll.u32 %v8353_v49, %v5450_v19 }
 0x525   : > { %v5315_v25 = vsel %vm5232_vm12, %v5314_v24, %v5313_v50  ;;  %v5455_v21 = vor.u32 %v5454_v18, %v5453_v55  ;;  %v5458_v7 = vor.u32 %v5457_v52, %v5456_v46  ;;  %v5461_v53 = vor.u32 %v5460_v13, %v5459_v41 }
 0x526   : > { %v5318_v62 = vsel %vm12428_vm2, %v12194_v2, %v5315_v25  ;;  %v12509_v38 = vsub.s32 %v5599_v6, %v5602_v5  ;;  %v5464_v0 = vor.u32 %v5463_v3, %v5462_v12  ;;  %v5452_v32 = vshrl.u32 %v8349_v39, %v5451_v9 }
 0x527   : > { %8187 = vcosq.f32 %v5318_v62  ;;  %v5467_v51 = vor.u32 %v5466_v60, %v5465_v16  ;;  %vm5468_vm8 = vcmp.lt.s32.totalorder %v5449_v28, 1  ;;  %vm5469_vm9 = vcmp.lt.s32.totalorder %v5449_v28, 2 }
 0x528   : > { %8189 = vsinq.f32 %v5318_v62  ;;  %v5605_v44 = vsub.s32 0, %v12509_v38  ;;  %v5484_v15 = vshll.u32 %v5444_v17, 8  ;;  %v5749_v4 = vshrl.u32 %v5748_v37, 23 }
 0x529   : > { %vm5470_vm11 = vcmp.lt.s32.totalorder %v5449_v28, 3  ;;  %vm5471_vm12 = vcmp.lt.s32.totalorder %v5449_v28, 4  ;;  %v5472_v58 = vsel %vm5468_vm8, %v5452_v32, %v5455_v21  ;;  %v5476_v26 = vsel %vm5468_vm8, %v5455_v21, %v5458_v7 }
 0x52a   : > { %v7628_v35 = vmin.u32 %v5605_v44, %v12509_v38  ;;  %v5473_v10 = vsel %vm5471_vm12, %v5461_v53, 2102212464  ;;  %v5477_v22 = vsel %vm5471_vm12, %v5464_v0, 920167782  ;;  %v5480_v57 = vsel %vm5468_vm8, %v5458_v7, %v5461_v53 }
 0x52b   : > { %vm5541_vm13 = vcmp.lt.s32.totalorder %v12301_v34, 0  ;;  %v5474_v29 = vsel %vm5470_vm11, %v5458_v7, %v5473_v10  ;;  %v5478_v6 = vsel %vm5470_vm11, %v5461_v53, %v5477_v22  ;;  %v5481_v36 = vsel %vm5471_vm12, %v5467_v51, 1326507024 }
 0x52c   : > { %v5607_v61 = vclz %v7628_v35  ;;  %v5479_v14 = vsel %vm5469_vm9, %v5476_v26, %v5478_v6  ;;  %v5482_v63 = vsel %vm5470_vm11, %v5464_v0, %v5481_v36  ;;  %v5745_v54 = vand.u32 2147483647, %v12467_v23 }
 0x52d   : > { %v7635_v31 = vadd.s32 4294967169, %v5749_v4  ;;  %vm5322_vm14 = vweird.f32 %v12194_v2  ;;  %v5483_v20 = vsel %vm5469_vm9, %v5480_v57, %v5482_v63  ;;  %vm5324_vm15 = vcmp.lt.s32.totalorder %v12486_v30, 2  ;;  %v12567_v2 = vld [vmem:[%s13855_s1] ss:$0 sm:$0xff] }
 0x52e   : > { %v7629_v19 = vadd.s32 4294967294, %v5607_v61  ;;  %v12520_v33 = vmul.u32.u64.low %v5484_v15, %v5479_v14  ;;  %v12521_v50 = vmul.u32.u64.high %v5484_v15, %v5479_v14, %v12520_v33  ;;  %v5475_v9 = vsel %vm5469_vm9, %v5472_v58, %v5474_v29 }
 0x52f   : > { %v12526_v17 = vmul.u32.u64.low %v5484_v15, %v5483_v20  ;;  %v12527_v37 = vmul.u32.u64.high %v5484_v15, %v5483_v20, %v12526_v17  ;;  %vm5325_vm0 = vcmp.eq.s32.totalorder %v12486_v30, 0  ;;  %vm5328_vm1 = vcmp.eq.s32.totalorder %v12486_v30, 2 }
 0x530   : > { %vm7630_vm2 = vcmp.lt.s32.totalorder %v7629_v19, 0  ;;  %v5755_v24 = vadd.s32 1, %v7635_v31  ;;  %v5595_v18 = vadd.s32 %v12445_v1, %v12455_v8  ;;  %v5625_v5 = vsub.s32 4, %v12491_v27 }
 0x531   : > { %v8188_v55 = vpop.eup %8187  ;;  %v5610_v52 = vsel %vm7630_vm2, 0, %v7629_v19  ;;  %v5752_v28 = vand.u32 8388607, %v5745_v54  ;;  %v5491_v41 = vmul.u32 %v5484_v15, %v5475_v9  ;;  %vm5493_vm3 = vc.u32 %v12527_v37, %v12520_v33  ;;  %v495_v15 = vpop.permute.xlu1 %494 }
 0x532   : > { %v8190_v46 = vpop.eup %8189  ;;  %v5329_v13 = vxor.u32 2147483648, %v8188_v55  ;;  %v5611_v3 = vsub.s32 32, %v5610_v52  ;;  %v5615_v25 = vsub.s32 4294967266, %v5610_v52  ;;  %v5612_v60 = vshll.u32 %v12509_v38, %v5610_v52 }
 0x533   : > { %v5326_v12 = vxor.u32 2147483648, %v8190_v46  ;;  %v5494_v62 = vadd.s32 1, %v12521_v50  ;;  %vm5756_vm5 = vcmp.gt.s32.totalorder %v5755_v24, 0  ;;  %v12547_v7 = vsel %vm5541_vm13, %v5625_v5, %v12491_v27 }
 0x534   : > { %v5330_v1 = vsel %vm5328_vm1, %v5329_v13, %v8190_v46  ;;  %v5613_v8 = vshrl.u32 %v5595_v18, %v5611_v3  ;;  %v5616_v21 = vadd.s32 127, %v5615_v25  ;;  %v5757_v53 = vsel %vm5756_vm5, %v5755_v24, 0 }
 0x535   : > { %v5327_v16 = vsel %vm5325_vm0, %v8188_v55, %v5326_v12  ;;  %v5495_v38 = vsel %vm5493_vm3, %v5494_v62, %v12521_v50  ;;  %v5759_v35 = vand.u32 31, %v5757_v53  ;;  %vm12557_vm4 = vcmp.le.f32.partialorder %v5539_v42, 0.7853982 }
 0x536   : > { %v5331_v0 = vsel %vm5324_vm15, %v5327_v16, %v5330_v1  ;;  %v5614_v44 = vor.u32 %v5613_v8, %v5612_v60  ;;  %v5617_v32 = vshll.u32 %v5616_v21, 23  ;;  %v5496_v51 = vadd.s32 %v5495_v38, %v5491_v41 }
 0x537   : > { %v5332_v4 = vsel %vm5322_vm14, nan, %v5331_v0  ;;  %v5628_v30 = vsel %vm12557_vm4, 0, %v12547_v7  ;;  %v5753_v26 = vor.u32 8388608, %v5752_v28  ;;  %v5760_v22 = vsub.s32 32, %v5759_v35 }
 0x538   : > { %7334 = vst [vmem:[%s8782_s8 + $0x160] sm:$0xff] %v5332_v4  ;;  %v5618_v58 = vor.u32 4788187, %v5617_v32  ;;  %v5497_v10 = vadd.s32 536870912, %v5496_v51  ;;  %v12570_v57 = vmul.f32 %v12567_v2, %v495_v15  ;;  %v5621_v61 = vcvt.s32.f32 %v5614_v44 }
 0x539   : > { %v5645_v6 = vand.u32 2139095040, %v12489_v11  ;;  %v5762_v36 = vshll.u32 %v8349_v39, %v5759_v35  ;;  %v5763_v14 = vshrl.u32 %v8350_v43, %v5760_v22  ;;  %v5766_v63 = vshrl.u32 %v8351_v45, %v5760_v22 }
 0x53a   : > { %v5619_v42 = vand.u32 2147483647, %v5618_v58  ;;  %v12572_v29 = vshrl.u32 %v5497_v10, 30  ;;  %v5769_v31 = vshrl.u32 %v8352_v47, %v5760_v22  ;;  %v5765_v50 = vshll.u32 %v8350_v43, %v5759_v35 }
 0x53b   : > { %v5772_v9 = vshrl.u32 %v8353_v49, %v5760_v22  ;;  %v5758_v17 = vshrl.u32 %v5757_v53, 5  ;;  %v5768_v24 = vshll.u32 %v8351_v45, %v5759_v35  ;;  %v5771_v55 = vshll.u32 %v8352_v47, %v5759_v35 }
 0x53c   : > { %v5622_v19 = vmul.f32 %v5621_v61, %v5619_v42  ;;  %v5499_v20 = vshll.u32 %v12572_v29, 30  ;;  %v5775_v18 = vshrl.u32 %v8354_v56, %v5760_v22  ;;  %v5764_v28 = vor.u32 %v5763_v14, %v5762_v36 }
 0x53d   : > { %v5767_v46 = vor.u32 %v5766_v63, %v5765_v50  ;;  %v5770_v13 = vor.u32 %v5769_v31, %v5768_v24  ;;  %v5773_v3 = vor.u32 %v5772_v9, %v5771_v55  ;;  %v5774_v25 = vshll.u32 %v8353_v49, %v5759_v35 }
 0x53e   : > { %v5623_v52 = vxor.u32 2147483648, %v5622_v19  ;;  %v12585_v5 = vsub.s32 %v5496_v51, %v5499_v20  ;;  %v12588_v41 = vshll.u32 %v5753_v26, 8  ;;  %v5761_v62 = vshrl.u32 %v8349_v39, %v5760_v22 }
 0x53f   : > { %v5646_v1 = vshrl.u32 %v5645_v6, 23  ;;  %v5776_v21 = vor.u32 %v5775_v18, %v5774_v25  ;;  %vm5777_vm6 = vcmp.lt.s32.totalorder %v5758_v17, 1  ;;  %vm5778_vm7 = vcmp.lt.s32.totalorder %v5758_v17, 2 }
 0x540   : > { %v5624_v12 = vsel %vm5541_vm13, %v5623_v52, %v5622_v19  ;;  %v5502_v60 = vsub.s32 0, %v12585_v5  ;;  %vm5780_vm10 = vcmp.lt.s32.totalorder %v5758_v17, 4  ;;  %v5785_v7 = vsel %vm5777_vm6, %v5764_v28, %v5767_v46 }
 0x541   : > { %v5627_v8 = vsel %vm12557_vm4, %v12301_v34, %v5624_v12  ;;  %vm5779_vm8 = vcmp.lt.s32.totalorder %v5758_v17, 3  ;;  %v5782_v38 = vsel %vm5780_vm10, %v5770_v13, 2102212464  ;;  %v5786_v53 = vsel %vm5780_vm10, %v5773_v3, 920167782 }
 0x542   : > { %8191 = vcosq.f32 %v5627_v8  ;;  %v7624_v16 = vmin.u32 %v5502_v60, %v12585_v5  ;;  %vm5438_vm9 = vcmp.lt.s32.totalorder %v12400_v48, 0  ;;  %v5781_v44 = vsel %vm5777_vm6, %v5761_v62, %v5764_v28 }
 0x543   : > { %8193 = vsinq.f32 %v5627_v8  ;;  %v5787_v32 = vsel %vm5779_vm8, %v5770_v13, %v5786_v53  ;;  %v5789_v51 = vsel %vm5777_vm6, %v5767_v46, %v5770_v13  ;;  %v5783_v15 = vsel %vm5779_vm8, %v5767_v46, %v5782_v38 }
 0x544   : > { %v5504_v0 = vclz %v7624_v16  ;;  %v5788_v4 = vsel %vm5778_vm7, %v5785_v7, %v5787_v32  ;;  %v5790_v35 = vsel %vm5780_vm10, %v5776_v21, 1326507024  ;;  %v7631_v27 = vadd.s32 4294967169, %v5646_v1 }
 0x545   : > { %v5791_v10 = vsel %vm5779_vm8, %v5773_v3, %v5790_v35  ;;  %v12601_v26 = vmul.u32.u64.low %v12588_v41, %v5788_v4  ;;  %v12602_v22 = vmul.u32.u64.high %v12588_v41, %v5788_v4, %v12601_v26  ;;  %v5632_v42 = vand.u32 3, %v5628_v30 }
 0x546   : > { %v7625_v58 = vadd.s32 4294967294, %v5504_v0  ;;  %v5792_v61 = vsel %vm5778_vm7, %v5789_v51, %v5791_v10  ;;  %v5642_v6 = vand.u32 2147483647, %v12489_v11  ;;  %v5652_v36 = vadd.s32 1, %v7631_v27 }
 0x547   : > { %v5784_v14 = vsel %vm5778_vm7, %v5781_v44, %v5783_v15  ;;  %v12609_v63 = vmul.u32.u64.low %v12588_v41, %v5792_v61  ;;  %v12610_v31 = vmul.u32.u64.high %v12588_v41, %v5792_v61, %v12609_v63  ;;  %vm5631_vm12 = vweird.f32 %v12301_v34 }
 0x548   : > { %vm7626_vm11 = vcmp.lt.s32.totalorder %v7625_v58, 0  ;;  %vm12615_vm13 = vcmp.le.f32.partialorder %v5436_v40, 0.7853982  ;;  %v5522_v20 = vsub.s32 4, %v12572_v29  ;;  %vm5653_vm14 = vcmp.gt.s32.totalorder %v5652_v36, 0 }
 0x549   : > { %v5507_v30 = vsel %vm7626_vm11, 0, %v7625_v58  ;;  %v5492_v50 = vadd.s32 %v12520_v33, %v12527_v37  ;;  %v5803_v24 = vadd.s32 1, %v12602_v22  ;;  %vm5637_vm15 = vcmp.eq.s32.totalorder %v5632_v42, 2 }
 0x54a   : > { %v5508_v9 = vsub.s32 32, %v5507_v30  ;;  %v5512_v17 = vsub.s32 4294967266, %v5507_v30  ;;  %v5800_v55 = vmul.u32 %v12588_v41, %v5784_v14  ;;  %v5649_v40 = vand.u32 8388607, %v5642_v6 }
 0x54b   : > { %v5654_v18 = vsel %vm5653_vm14, %v5652_v36, 0  ;;  %v5509_v28 = vshll.u32 %v12585_v5, %v5507_v30  ;;  %vm5802_vm0 = vc.u32 %v12610_v31, %v12601_v26  ;;  %v5523_v3 = vsel %vm5438_vm9, %v5522_v20, %v12572_v29 }
 0x54c   : > { %v8192_v52 = vpop.eup %8191  ;;  %v5510_v46 = vshrl.u32 %v5492_v50, %v5508_v9  ;;  %v5513_v13 = vadd.s32 127, %v5512_v17  ;;  %v5804_v25 = vsel %vm5802_vm0, %v5803_v24, %v12602_v22  ;;  %v5656_v41 = vand.u32 31, %v5654_v18 }
 0x54d   : > { %v8194_v33 = vpop.eup %8193  ;;  %v5638_v37 = vxor.u32 2147483648, %v8192_v52  ;;  %v5805_v1 = vadd.s32 %v5804_v25, %v5800_v55  ;;  %vm5633_vm1 = vcmp.lt.s32.totalorder %v5632_v42, 2  ;;  %vm5634_vm2 = vcmp.eq.s32.totalorder %v5632_v42, 0 }
 0x54e   : > { %v5635_v12 = vxor.u32 2147483648, %v8194_v33  ;;  %v5511_v60 = vor.u32 %v5510_v46, %v5509_v28  ;;  %v5514_v62 = vshll.u32 %v5513_v13, 23  ;;  %v5657_v8 = vsub.s32 32, %v5656_v41 }
 0x54f   : > { %v5639_v5 = vsel %vm5637_vm15, %v5638_v37, %v8194_v33  ;;  %v5525_v7 = vsel %vm12615_vm13, 0, %v5523_v3  ;;  %v5806_v38 = vadd.s32 536870912, %v5805_v1  ;;  %v5650_v0 = vor.u32 8388608, %v5649_v40 }
 0x550   : > { %v5636_v21 = vsel %vm5634_vm2, %v8192_v52, %v5635_v12  ;;  %v5515_v16 = vor.u32 4788187, %v5514_v62  ;;  %v5518_v53 = vcvt.s32.f32 %v5511_v60  ;;  %v5660_v44 = vshrl.u32 %v8350_v43, %v5657_v8  ;;  %v490_v62 = vpop.permute.xlu0 %489 }
 0x551   : > { %v5640_v29 = vsel %vm5633_vm1, %v5636_v21, %v5639_v5  ;;  %v12639_v15 = vshrl.u32 %v5806_v38, 30  ;;  %v5663_v4 = vshrl.u32 %v8351_v45, %v5657_v8  ;;  %v5659_v35 = vshll.u32 %v8349_v39, %v5656_v41 }
 0x552   : > { %v5641_v32 = vsel %vm5631_vm12, nan, %v5640_v29  ;;  %v5516_v51 = vand.u32 2147483647, %v5515_v16  ;;  %v5662_v27 = vshll.u32 %v8350_v43, %v5656_v41  ;;  %v5666_v58 = vshrl.u32 %v8352_v47, %v5657_v8 }
 0x553   : > { %7337 = vst [vmem:[%s8782_s8 + $0x178] sm:$0xff] %v5641_v32  ;;  %v12648_v10 = vadd.f32 %v12397_v59, %v12570_v57  ;;  %v5808_v34 = vshll.u32 %v12639_v15, 30  ;;  %v5665_v42 = vshll.u32 %v8351_v45, %v5656_v41  ;;  %v5669_v61 = vshrl.u32 %v8353_v49, %v5657_v8 }
 0x554   : > { %v5519_v22 = vmul.f32 %v5518_v53, %v5516_v51  ;;  %v5655_v36 = vshrl.u32 %v5654_v18, 5  ;;  %v5661_v14 = vor.u32 %v5660_v44, %v5659_v35  ;;  %v5668_v63 = vshll.u32 %v8352_v47, %v5656_v41 }
 0x555   : > { %v5672_v30 = vshrl.u32 %v8354_v56, %v5657_v8  ;;  %v12655_v50 = vsub.s32 %v5805_v1, %v5808_v34  ;;  %v5664_v9 = vor.u32 %v5663_v4, %v5662_v27  ;;  %v5667_v17 = vor.u32 %v5666_v58, %v5665_v42 }
 0x556   : > { %v5520_v20 = vxor.u32 2147483648, %v5519_v22  ;;  %v12657_v57 = vand.u32 3, %v5525_v7  ;;  %v5670_v24 = vor.u32 %v5669_v61, %v5668_v63  ;;  %v5671_v55 = vshll.u32 %v8353_v49, %v5656_v41 }
 0x557   : > { %v5811_v18 = vsub.s32 0, %v12655_v50  ;;  %v5690_v52 = vshll.u32 %v5650_v0, 8  ;;  %v5954_v28 = vand.u32 2139095040, %v12648_v10  ;;  %vm5674_vm3 = vcmp.lt.s32.totalorder %v5655_v36, 1 }
 0x558   : > { %v5521_v40 = vsel %vm5438_vm9, %v5520_v20, %v5519_v22  ;;  %v5673_v13 = vor.u32 %v5672_v30, %v5671_v55  ;;  %vm5677_vm5 = vcmp.lt.s32.totalorder %v5655_v36, 4  ;;  %v5682_v3 = vsel %vm5674_vm3, %v5661_v14, %v5664_v9 }
 0x559   : > { %v5524_v46 = vsel %vm12615_vm13, %v12400_v48, %v5521_v40  ;;  %v7636_v33 = vmin.u32 %v5811_v18, %v12655_v50  ;;  %v5679_v37 = vsel %vm5677_vm5, %v5667_v17, 2102212464  ;;  %v5658_v25 = vshrl.u32 %v8349_v39, %v5657_v8 }
 0x55a   : > { %8195 = vcosq.f32 %v5524_v46  ;;  %vm5676_vm4 = vcmp.lt.s32.totalorder %v5655_v36, 3  ;;  %v5683_v41 = vsel %vm5677_vm5, %v5670_v24, 920167782  ;;  %vm5675_vm6 = vcmp.lt.s32.totalorder %v5655_v36, 2 }
 0x55b   : > { %8197 = vsinq.f32 %v5524_v46  ;;  %v5813_v12 = vclz %v7636_v33  ;;  %v5684_v60 = vsel %vm5676_vm4, %v5667_v17, %v5683_v41  ;;  %v5686_v19 = vsel %vm5674_vm3, %v5664_v9, %v5667_v17 }
 0x55c   : > { %v5678_v1 = vsel %vm5674_vm3, %v5658_v25, %v5661_v14  ;;  %v5680_v5 = vsel %vm5676_vm4, %v5664_v9, %v5679_v37  ;;  %v5685_v21 = vsel %vm5675_vm6, %v5682_v3, %v5684_v60  ;;  %v5687_v16 = vsel %vm5677_vm5, %v5673_v13, 1326507024 }
 0x55d   : > { %v7637_v7 = vadd.s32 4294967294, %v5813_v12  ;;  %v5688_v38 = vsel %vm5676_vm4, %v5670_v24, %v5687_v16  ;;  %v12673_v29 = vmul.u32.u64.low %v5690_v52, %v5685_v21  ;;  %v12674_v53 = vmul.u32.u64.high %v5690_v52, %v5685_v21, %v12673_v29 }
 0x55e   : > { %vm5747_vm7 = vcmp.lt.s32.totalorder %v12467_v23, 0  ;;  %v5689_v8 = vsel %vm5675_vm6, %v5686_v19, %v5688_v38  ;;  %v5955_v0 = vshrl.u32 %v5954_v28, 23  ;;  %v613_v44 = vmul.f32 %v12567_v2, %v490_v62 }
 0x55f   : > { %vm7638_vm10 = vcmp.lt.s32.totalorder %v7637_v7, 0  ;;  %v5681_v32 = vsel %vm5675_vm6, %v5678_v1, %v5680_v5  ;;  %v12681_v51 = vmul.u32.u64.low %v5690_v52, %v5689_v8  ;;  %v12682_v4 = vmul.u32.u64.high %v5690_v52, %v5689_v8, %v12681_v51 }
 0x560   : > { %vm5530_vm8 = vcmp.lt.s32.totalorder %v12657_v57, 2  ;;  %vm5531_vm9 = vcmp.eq.s32.totalorder %v12657_v57, 0  ;;  %v5816_v35 = vsel %vm7638_vm10, 0, %v7637_v7  ;;  %v7643_v27 = vadd.s32 4294967169, %v5955_v0 }
 0x561   : > { %v5801_v58 = vadd.s32 %v12601_v26, %v12610_v31  ;;  %v5817_v22 = vsub.s32 32, %v5816_v35  ;;  %v5821_v34 = vsub.s32 4294967266, %v5816_v35  ;;  %v5700_v42 = vadd.s32 1, %v12674_v53 }
 0x562   : > { %v5831_v61 = vsub.s32 4, %v12639_v15  ;;  %v5697_v36 = vmul.u32 %v5690_v52, %v5681_v32  ;;  %v5951_v14 = vand.u32 2147483647, %v12648_v10  ;;  %v5961_v63 = vadd.s32 1, %v7643_v27 }
 0x563   : > { %v5818_v20 = vshll.u32 %v12655_v50, %v5816_v35  ;;  %v5819_v9 = vshrl.u32 %v5801_v58, %v5817_v22  ;;  %v5822_v17 = vadd.s32 127, %v5821_v34  ;;  %vm5699_vm11 = vc.u32 %v12682_v4, %v12673_v29 }
 0x564   : > { %v8196_v30 = vpop.eup %8195  ;;  %vm5534_vm12 = vcmp.eq.s32.totalorder %v12657_v57, 2  ;;  %v5701_v31 = vsel %vm5699_vm11, %v5700_v42, %v12674_v53  ;;  %vm5962_vm13 = vcmp.gt.s32.totalorder %v5961_v63, 0  ;;  %v5832_v50 = vsel %vm5747_vm7, %v5831_v61, %v12639_v15 }
 0x565   : > { %v8198_v24 = vpop.eup %8197  ;;  %v5535_v26 = vxor.u32 2147483648, %v8196_v30  ;;  %v5820_v40 = vor.u32 %v5819_v9, %v5818_v20  ;;  %v5823_v18 = vshll.u32 %v5822_v17, 23  ;;  %v5702_v52 = vadd.s32 %v5701_v31, %v5697_v36 }
 0x566   : > { %v5532_v55 = vxor.u32 2147483648, %v8198_v24  ;;  %v5958_v46 = vand.u32 8388607, %v5951_v14  ;;  %v5963_v13 = vsel %vm5962_vm13, %v5961_v63, 0  ;;  %v12704_v25 = vadd.f32 %v12397_v59, %v613_v44 }
 0x567   : > { %v5536_v28 = vsel %vm5534_vm12, %v5535_v26, %v8198_v24  ;;  %v5824_v37 = vor.u32 4788187, %v5823_v18  ;;  %v5703_v3 = vadd.s32 536870912, %v5702_v52  ;;  %vm5528_vm14 = vweird.f32 %v12400_v48 }
 0x568   : > { %v5533_v33 = vsel %vm5531_vm9, %v8196_v30, %v5532_v55  ;;  %vm12711_vm15 = vcmp.le.f32.partialorder %v5745_v54, 0.7853982  ;;  %v5965_v12 = vand.u32 31, %v5963_v13  ;;  %v5827_v62 = vcvt.s32.f32 %v5820_v40 }
 0x569   : > { %v5537_v41 = vsel %vm5530_vm8, %v5533_v33, %v5536_v28  ;;  %v5825_v19 = vand.u32 2147483647, %v5824_v37  ;;  %v12715_v1 = vshrl.u32 %v5703_v3, 30  ;;  %v5834_v59 = vsel %vm12711_vm15, 0, %v5832_v50 }
 0x56a   : > { %v5538_v60 = vsel %vm5528_vm14, nan, %v5537_v41  ;;  %v5959_v48 = vor.u32 8388608, %v5958_v46  ;;  %v5966_v5 = vsub.s32 32, %v5965_v12  ;;  %v5968_v54 = vshll.u32 %v8349_v39, %v5965_v12 }
 0x56b   : > { %7336 = vst [vmem:[%s8782_s8 + $0x170] sm:$0xff] %v5538_v60  ;;  %v5828_v57 = vmul.f32 %v5827_v62, %v5825_v19  ;;  %v5705_v21 = vshll.u32 %v12715_v1, 30  ;;  %v5851_v16 = vand.u32 2139095040, %v12704_v25  ;;  %v5971_v38 = vshll.u32 %v8350_v43, %v5965_v12 }
 0x56c   : > { %v5969_v7 = vshrl.u32 %v8350_v43, %v5966_v5  ;;  %v5972_v53 = vshrl.u32 %v8351_v45, %v5966_v5  ;;  %v5975_v8 = vshrl.u32 %v8352_v47, %v5966_v5  ;;  %v5974_v32 = vshll.u32 %v8351_v45, %v5965_v12 }
 0x56d   : > { %v5829_v0 = vxor.u32 2147483648, %v5828_v57  ;;  %v12727_v44 = vsub.s32 %v5702_v52, %v5705_v21  ;;  %v5978_v51 = vshrl.u32 %v8353_v49, %v5966_v5  ;;  %v12731_v35 = vand.u32 3, %v5834_v59 }
 0x56e   : > { %v5964_v27 = vshrl.u32 %v5963_v13, 5  ;;  %v5970_v58 = vor.u32 %v5969_v7, %v5968_v54  ;;  %v5977_v22 = vshll.u32 %v8352_v47, %v5965_v12  ;;  %v5973_v61 = vor.u32 %v5972_v53, %v5971_v38 }
 0x56f   : > { %v5830_v34 = vsel %vm5747_vm7, %v5829_v0, %v5828_v57  ;;  %v5708_v42 = vsub.s32 0, %v12727_v44  ;;  %v5976_v36 = vor.u32 %v5975_v8, %v5974_v32  ;;  %v5980_v20 = vshll.u32 %v8353_v49, %v5965_v12 }
 0x570   : > { %v5833_v63 = vsel %vm12711_vm15, %v12467_v23, %v5830_v34  ;;  %v5979_v30 = vor.u32 %v5978_v51, %v5977_v22  ;;  %v5981_v9 = vshrl.u32 %v8354_v56, %v5966_v5  ;;  %v5999_v24 = vshll.u32 %v5959_v48, 8 }
 0x571   : > { %8199 = vcosq.f32 %v5833_v63  ;;  %v7632_v17 = vmin.u32 %v5708_v42, %v12727_v44  ;;  %v5852_v26 = vshrl.u32 %v5851_v16, 23  ;;  %v5967_v31 = vshrl.u32 %v8349_v39, %v5966_v5 }
 0x572   : > { %8201 = vsinq.f32 %v5833_v63  ;;  %v5982_v55 = vor.u32 %v5981_v9, %v5980_v20  ;;  %vm5983_vm0 = vcmp.lt.s32.totalorder %v5964_v27, 1  ;;  %vm5984_vm1 = vcmp.lt.s32.totalorder %v5964_v27, 2 }
 0x573   : > { %v5710_v40 = vclz %v7632_v17  ;;  %vm5985_vm2 = vcmp.lt.s32.totalorder %v5964_v27, 3  ;;  %vm5986_vm3 = vcmp.lt.s32.totalorder %v5964_v27, 4  ;;  %v5991_v52 = vsel %vm5983_vm0, %v5970_v58, %v5973_v61 }
 0x574   : > { %v5988_v18 = vsel %vm5986_vm3, %v5976_v36, 2102212464  ;;  %v5992_v28 = vsel %vm5986_vm3, %v5979_v30, 920167782  ;;  %v5995_v50 = vsel %vm5983_vm0, %v5973_v61, %v5976_v36  ;;  %v5987_v13 = vsel %vm5983_vm0, %v5967_v31, %v5970_v58 }
 0x575   : > { %v7633_v46 = vadd.s32 4294967294, %v5710_v40  ;;  %v5993_v33 = vsel %vm5985_vm2, %v5976_v36, %v5992_v28  ;;  %v5996_v37 = vsel %vm5986_vm3, %v5982_v55, 1326507024  ;;  %vm5840_vm5 = vcmp.eq.s32.totalorder %v12731_v35, 0  ;;  %v505_v36 = vpop.permute.xlu1 %504 }
 0x576   : > { %v5989_v3 = vsel %vm5985_vm2, %v5973_v61, %v5988_v18  ;;  %v5994_v41 = vsel %vm5984_vm1, %v5991_v52, %v5993_v33  ;;  %v5997_v15 = vsel %vm5985_vm2, %v5979_v30, %v5996_v37  ;;  %v7639_v12 = vadd.s32 4294967169, %v5852_v26 }
 0x577   : > { %vm7634_vm4 = vcmp.lt.s32.totalorder %v7633_v46, 0  ;;  %v5998_v60 = vsel %vm5984_vm1, %v5995_v50, %v5997_v15  ;;  %v12747_v19 = vmul.u32.u64.low %v5999_v24, %v5994_v41  ;;  %v12748_v62 = vmul.u32.u64.high %v5999_v24, %v5994_v41, %v12747_v19 }
 0x578   : > { %vm5837_vm6 = vweird.f32 %v12467_v23  ;;  %vm5644_vm7 = vcmp.lt.s32.totalorder %v12489_v11, 0  ;;  %v5698_v59 = vadd.s32 %v12673_v29, %v12682_v4  ;;  %v5713_v48 = vsel %vm7634_vm4, 0, %v7633_v46 }
 0x579   : > { %v12755_v5 = vmul.u32.u64.low %v5999_v24, %v5998_v60  ;;  %v12756_v57 = vmul.u32.u64.high %v5999_v24, %v5998_v60, %v12755_v5  ;;  %v5714_v21 = vsub.s32 32, %v5713_v48  ;;  %v5718_v54 = vsub.s32 4294967266, %v5713_v48 }
 0x57a   : > { %v5990_v16 = vsel %vm5984_vm1, %v5987_v13, %v5989_v3  ;;  %v5858_v7 = vadd.s32 1, %v7639_v12  ;;  %vm5843_vm10 = vcmp.eq.s32.totalorder %v12731_v35, 2  ;;  %v5715_v38 = vshll.u32 %v12727_v44, %v5713_v48 }
 0x57b   : > { %v5728_v53 = vsub.s32 4, %v12715_v1  ;;  %v5848_v8 = vand.u32 2147483647, %v12704_v25  ;;  %v8200_v0 = vpop.eup %8199  ;;  %v5716_v32 = vshrl.u32 %v5698_v59, %v5714_v21  ;;  %v5719_v29 = vadd.s32 127, %v5718_v54 }
 0x57c   : > { %v6009_v4 = vadd.s32 1, %v12748_v62  ;;  %vm5859_vm8 = vcmp.gt.s32.totalorder %v5858_v7, 0  ;;  %v8202_v51 = vpop.eup %8201  ;;  %v5844_v58 = vxor.u32 2147483648, %v8200_v0  ;;  %v6006_v22 = vmul.u32 %v5999_v24, %v5990_v16 }
 0x57d   : > { %vm6008_vm9 = vc.u32 %v12756_v57, %v12747_v19  ;;  %v5860_v27 = vsel %vm5859_vm8, %v5858_v7, 0  ;;  %v5841_v34 = vxor.u32 2147483648, %v8202_v51  ;;  %v5717_v42 = vor.u32 %v5716_v32, %v5715_v38 }
 0x57e   : > { %v5720_v44 = vshll.u32 %v5719_v29, 23  ;;  %v6010_v61 = vsel %vm6008_vm9, %v6009_v4, %v12748_v62  ;;  %v5845_v63 = vsel %vm5843_vm10, %v5844_v58, %v8202_v51  ;;  %v5855_v20 = vand.u32 8388607, %v5848_v8 }
 0x57f   : > { %v6011_v30 = vadd.s32 %v6010_v61, %v6006_v22  ;;  %v5862_v9 = vand.u32 31, %v5860_v27  ;;  %vm5839_vm11 = vcmp.lt.s32.totalorder %v12731_v35, 2  ;;  %v5842_v17 = vsel %vm5840_vm5, %v8200_v0, %v5841_v34 }
 0x580   : > { %vm12776_vm12 = vcmp.le.f32.partialorder %v5642_v6, 0.7853982  ;;  %v5721_v26 = vor.u32 4788187, %v5720_v44  ;;  %v5846_v31 = vsel %vm5839_vm11, %v5842_v17, %v5845_v63  ;;  %v616_v18 = vmul.f32 %v12567_v2, %v505_v36 }
 0x581   : > { %v6012_v55 = vadd.s32 536870912, %v6011_v30  ;;  %v5863_v40 = vsub.s32 32, %v5862_v9  ;;  %v5847_v52 = vsel %vm5837_vm6, nan, %v5846_v31  ;;  %v5724_v50 = vcvt.s32.f32 %v5717_v42 }
 0x582   : > { %v5722_v28 = vand.u32 2147483647, %v5721_v26  ;;  %v5729_v35 = vsel %vm5644_vm7, %v5728_v53, %v12715_v1  ;;  %7339 = vst [vmem:[%s8782_s8 + $0x188] sm:$0xff] %v5847_v52  ;;  %v5856_v46 = vor.u32 8388608, %v5855_v20  ;;  %v5865_v3 = vshll.u32 %v8349_v39, %v5862_v9 }
 0x583   : > { %v12787_v6 = vshrl.u32 %v6012_v55, 30  ;;  %v5866_v13 = vshrl.u32 %v8350_v43, %v5863_v40  ;;  %v5869_v33 = vshrl.u32 %v8351_v45, %v5863_v40  ;;  %v5872_v23 = vshrl.u32 %v8352_v47, %v5863_v40 }
 0x584   : > { %v5725_v37 = vmul.f32 %v5724_v50, %v5722_v28  ;;  %v5875_v41 = vshrl.u32 %v8353_v49, %v5863_v40  ;;  %v5731_v15 = vsel %vm12776_vm12, 0, %v5729_v35  ;;  %v5861_v12 = vshrl.u32 %v5860_v27, 5  ;;  %v12816_v27 = vld [vmem:[%s13856_s2] ss:$0 sm:$0xff]  ;;  %v500_v28 = vpop.permute.xlu0 %499 }
 0x585   : > { %v6014_v1 = vshll.u32 %v12787_v6, 30  ;;  %v5868_v60 = vshll.u32 %v8350_v43, %v5862_v9  ;;  %v5867_v59 = vor.u32 %v5866_v13, %v5865_v3  ;;  %v5871_v48 = vshll.u32 %v8351_v45, %v5862_v9 }
 0x586   : > { %v5726_v62 = vxor.u32 2147483648, %v5725_v37  ;;  %v5874_v5 = vshll.u32 %v8352_v47, %v5862_v9  ;;  %v5877_v16 = vshll.u32 %v8353_v49, %v5862_v9  ;;  %v5878_v7 = vshrl.u32 %v8354_v56, %v5863_v40 }
 0x587   : > { %v12800_v21 = vsub.s32 %v6011_v30, %v6014_v1  ;;  %v5870_v54 = vor.u32 %v5869_v33, %v5868_v60  ;;  %v12806_v53 = vand.u32 3, %v5731_v15  ;;  %v5873_v0 = vor.u32 %v5872_v23, %v5871_v48 }
 0x588   : > { %v5727_v38 = vsel %vm5644_vm7, %v5726_v62, %v5725_v37  ;;  %v5876_v32 = vor.u32 %v5875_v41, %v5874_v5  ;;  %v5879_v51 = vor.u32 %v5878_v7, %v5877_v16  ;;  %v5896_v58 = vshll.u32 %v5856_v46, 8 }
 0x589   : > { %v5730_v29 = vsel %vm12776_vm12, %v12489_v11, %v5727_v38  ;;  %v6017_v4 = vsub.s32 0, %v12800_v21  ;;  %v5864_v22 = vshrl.u32 %v8349_v39, %v5863_v40  ;;  %vm5880_vm13 = vcmp.lt.s32.totalorder %v5861_v12, 1 }
 0x58a   : > { %8203 = vcosq.f32 %v5730_v29  ;;  %v12819_v34 = vadd.f32 %v12816_v27, %v616_v18  ;;  %vm5883_vm14 = vcmp.lt.s32.totalorder %v5861_v12, 4  ;;  %v5888_v44 = vsel %vm5880_vm13, %v5867_v59, %v5870_v54 }
 0x58b   : > { %8205 = vsinq.f32 %v5730_v29  ;;  %v7644_v42 = vmin.u32 %v6017_v4, %v12800_v21  ;;  %vm5882_vm15 = vcmp.lt.s32.totalorder %v5861_v12, 3  ;;  %v5885_v61 = vsel %vm5883_vm14, %v5873_v0, 2102212464 }
 0x58c   : > { %v5889_v36 = vsel %vm5883_vm14, %v5876_v32, 920167782  ;;  %v5892_v63 = vsel %vm5880_vm13, %v5870_v54, %v5873_v0  ;;  %vm5953_vm0 = vcmp.lt.s32.totalorder %v12648_v10, 0  ;;  %vm5881_vm1 = vcmp.lt.s32.totalorder %v5861_v12, 2 }
 0x58d   : > { %v6019_v30 = vclz %v7644_v42  ;;  %v5890_v20 = vsel %vm5882_vm15, %v5873_v0, %v5889_v36  ;;  %v5893_v9 = vsel %vm5883_vm14, %v5879_v51, 1326507024  ;;  %v5884_v17 = vsel %vm5880_vm13, %v5864_v22, %v5867_v59 }
 0x58e   : > { %v5886_v24 = vsel %vm5882_vm15, %v5870_v54, %v5885_v61  ;;  %v5891_v26 = vsel %vm5881_vm1, %v5888_v44, %v5890_v20  ;;  %v5894_v31 = vsel %vm5882_vm15, %v5876_v32, %v5893_v9  ;;  %vm5737_vm2 = vcmp.eq.s32.totalorder %v12806_v53, 0 }
 0x58f   : > { %v7645_v55 = vadd.s32 4294967294, %v6019_v30  ;;  %v5895_v40 = vsel %vm5881_vm1, %v5892_v63, %v5894_v31  ;;  %v12828_v18 = vmul.u32.u64.low %v5896_v58, %v5891_v26  ;;  %v12829_v52 = vmul.u32.u64.high %v5896_v58, %v5891_v26, %v12828_v18 }
 0x590   : > { %vm12834_vm3 = vcmp.le.f32.partialorder %v5951_v14, 0.7853982  ;;  %v12838_v35 = vmul.u32.u64.low %v5896_v58, %v5895_v40  ;;  %v12839_v46 = vmul.u32.u64.high %v5896_v58, %v5895_v40, %v12838_v35  ;;  %vm5740_vm5 = vcmp.eq.s32.totalorder %v12806_v53, 2 }
 0x591   : > { %vm7646_vm4 = vcmp.lt.s32.totalorder %v7645_v55, 0  ;;  %v5887_v13 = vsel %vm5881_vm1, %v5884_v17, %v5886_v24  ;;  %v6160_v33 = vand.u32 2139095040, %v12819_v34  ;;  %v6007_v37 = vadd.s32 %v12747_v19, %v12756_v57 }
 0x592   : > { %v6022_v3 = vsel %vm7646_vm4, 0, %v7645_v55  ;;  %v6037_v23 = vsub.s32 4, %v12787_v6  ;;  %v615_v14 = vmul.f32 %v12567_v2, %v500_v28  ;;  %v5906_v1 = vadd.s32 1, %v12829_v52 }
 0x593   : > { %v6023_v41 = vsub.s32 32, %v6022_v3  ;;  %v6027_v15 = vsub.s32 4294967266, %v6022_v3  ;;  %v6157_v60 = vand.u32 2147483647, %v12819_v34  ;;  %v6024_v12 = vshll.u32 %v12800_v21, %v6022_v3 }
 0x594   : > { %v8204_v62 = vpop.eup %8203  ;;  %v5903_v59 = vmul.u32 %v5896_v58, %v5887_v13  ;;  %vm5905_vm6 = vc.u32 %v12839_v46, %v12828_v18  ;;  %v6161_v48 = vshrl.u32 %v6160_v33, 23  ;;  %v6038_v38 = vsel %vm5953_vm0, %v6037_v23, %v12787_v6 }
 0x595   : > { %v8206_v5 = vpop.eup %8205  ;;  %v5741_v19 = vxor.u32 2147483648, %v8204_v62  ;;  %v6025_v57 = vshrl.u32 %v6007_v37, %v6023_v41  ;;  %v6028_v54 = vadd.s32 127, %v6027_v15  ;;  %v5907_v16 = vsel %vm5905_vm6, %v5906_v1, %v12829_v52 }
 0x596   : > { %v5738_v7 = vxor.u32 2147483648, %v8206_v5  ;;  %v5908_v0 = vadd.s32 %v5907_v16, %v5903_v59  ;;  %v7651_v32 = vadd.s32 4294967169, %v6161_v48  ;;  %v6164_v51 = vand.u32 8388607, %v6157_v60 }
 0x597   : > { %v5742_v21 = vsel %vm5740_vm5, %v5741_v19, %v8206_v5  ;;  %v6026_v29 = vor.u32 %v6025_v57, %v6024_v12  ;;  %v6029_v4 = vshll.u32 %v6028_v54, 23  ;;  %vm5736_vm7 = vcmp.lt.s32.totalorder %v12806_v53, 2 }
 0x598   : > { %v5739_v58 = vsel %vm5737_vm2, %v8204_v62, %v5738_v7  ;;  %v5909_v22 = vadd.s32 536870912, %v5908_v0  ;;  %v6167_v42 = vadd.s32 1, %v7651_v32  ;;  %vm5734_vm10 = vweird.f32 %v12489_v11 }
 0x599   : > { %v5743_v6 = vsel %vm5736_vm7, %v5739_v58, %v5742_v21  ;;  %v6030_v44 = vor.u32 4788187, %v6029_v4  ;;  %v6040_v61 = vsel %vm12834_vm3, 0, %v6038_v38  ;;  %v12869_v30 = vadd.f32 %v12816_v27, %v615_v14 }
 0x59a   : > { %v5744_v36 = vsel %vm5734_vm10, nan, %v5743_v6  ;;  %v12866_v63 = vshrl.u32 %v5909_v22, 30  ;;  %vm6168_vm8 = vcmp.gt.s32.totalorder %v6167_v42, 0  ;;  %v6033_v53 = vcvt.s32.f32 %v6026_v29 }
 0x59b   : > { %7338 = vst [vmem:[%s8782_s8 + $0x180] sm:$0xff] %v5744_v36  ;;  %v6031_v20 = vand.u32 2147483647, %v6030_v44  ;;  %v6165_v9 = vor.u32 8388608, %v6164_v51  ;;  %v6169_v17 = vsel %vm6168_vm8, %v6167_v42, 0  ;;  %v12873_v31 = vand.u32 3, %v6040_v61 }
 0x59c   : > { %v5911_v24 = vshll.u32 %v12866_v63, 30  ;;  %v6171_v11 = vand.u32 31, %v6169_v17  ;;  %v5904_v55 = vadd.s32 %v12828_v18, %v12839_v46  ;;  %v6054_v13 = vand.u32 2147483647, %v12869_v30 }
 0x59d   : > { %v6034_v26 = vmul.f32 %v6033_v53, %v6031_v20  ;;  %v12878_v35 = vshll.u32 %v6165_v9, 8  ;;  %v6057_v33 = vand.u32 2139095040, %v12869_v30  ;;  %v5934_v3 = vsub.s32 4, %v12866_v63 }
 0x59e   : > { %v12876_v40 = vsub.s32 %v5908_v0, %v5911_v24  ;;  %v6172_v52 = vsub.s32 32, %v6171_v11  ;;  %v6174_v23 = vshll.u32 %v8349_v39, %v6171_v11  ;;  %v6177_v46 = vshll.u32 %v8350_v43, %v6171_v11 }
 0x59f   : > { %v6035_v28 = vxor.u32 2147483648, %v6034_v26  ;;  %v6170_v12 = vshrl.u32 %v6169_v17, 5  ;;  %v6180_v59 = vshll.u32 %v8351_v45, %v6171_v11  ;;  %v6183_v19 = vshll.u32 %v8352_v47, %v6171_v11 }
 0x5a0   : > { %v5914_v37 = vsub.s32 0, %v12876_v40  ;;  %v6175_v14 = vshrl.u32 %v8350_v43, %v6172_v52  ;;  %v6178_v41 = vshrl.u32 %v8351_v45, %v6172_v52  ;;  %v6181_v15 = vshrl.u32 %v8352_v47, %v6172_v52 }
 0x5a1   : > { %v6036_v18 = vsel %vm5953_vm0, %v6035_v28, %v6034_v26  ;;  %v6184_v16 = vshrl.u32 %v8353_v49, %v6172_v52  ;;  %v6173_v7 = vshrl.u32 %v8349_v39, %v6172_v52  ;;  %v6186_v50 = vshll.u32 %v8353_v49, %v6171_v11 }
 0x5a2   : > { %v6039_v1 = vsel %vm12834_vm3, %v12648_v10, %v6036_v18  ;;  %v7640_v62 = vmin.u32 %v5914_v37, %v12876_v40  ;;  %v6176_v48 = vor.u32 %v6175_v14, %v6174_v23  ;;  %v6179_v5 = vor.u32 %v6178_v41, %v6177_v46  ;;  %v515_v23 = vpop.permute.xlu1 %514 }
 0x5a3   : > { %8207 = vcosq.f32 %v6039_v1  ;;  %v6182_v54 = vor.u32 %v6181_v15, %v6180_v59  ;;  %v6187_v38 = vshrl.u32 %v8354_v56, %v6172_v52  ;;  %v6058_v0 = vshrl.u32 %v6057_v33, 23 }
 0x5a4   : > { %8209 = vsinq.f32 %v6039_v1  ;;  %v5916_v57 = vclz %v7640_v62  ;;  %v6185_v21 = vor.u32 %v6184_v16, %v6183_v19  ;;  %vm6189_vm9 = vcmp.lt.s32.totalorder %v6170_v12, 1 }
 0x5a5   : > { %vm6192_vm11 = vcmp.lt.s32.totalorder %v6170_v12, 4  ;;  %vm5850_vm12 = vcmp.lt.s32.totalorder %v12704_v25, 0  ;;  %v6188_v29 = vor.u32 %v6187_v38, %v6186_v50  ;;  %vm6190_vm13 = vcmp.lt.s32.totalorder %v6170_v12, 2 }
 0x5a6   : > { %v7641_v32 = vadd.s32 4294967294, %v5916_v57  ;;  %v6194_v4 = vsel %vm6192_vm11, %v6182_v54, 2102212464  ;;  %v6197_v51 = vsel %vm6189_vm9, %v6176_v48, %v6179_v5  ;;  %vm6046_vm14 = vcmp.eq.s32.totalorder %v12873_v31, 0 }
 0x5a7   : > { %vm6191_vm0 = vcmp.lt.s32.totalorder %v6170_v12, 3  ;;  %v6193_v58 = vsel %vm6189_vm9, %v6173_v7, %v6176_v48  ;;  %v6198_v22 = vsel %vm6192_vm11, %v6185_v21, 920167782  ;;  %vm6045_vm1 = vcmp.lt.s32.totalorder %v12873_v31, 2 }
 0x5a8   : > { %vm7642_vm15 = vcmp.lt.s32.totalorder %v7641_v32, 0  ;;  %v6199_v6 = vsel %vm6191_vm0, %v6182_v54, %v6198_v22  ;;  %v6201_v44 = vsel %vm6189_vm9, %v6179_v5, %v6182_v54  ;;  %v6202_v61 = vsel %vm6192_vm11, %v6188_v29, 1326507024 }
 0x5a9   : > { %v5919_v42 = vsel %vm7642_vm15, 0, %v7641_v32  ;;  %vm6043_vm2 = vweird.f32 %v12648_v10  ;;  %v6195_v53 = vsel %vm6191_vm0, %v6179_v5, %v6194_v4  ;;  %v6200_v9 = vsel %vm6190_vm13, %v6197_v51, %v6199_v6 }
 0x5aa   : > { %v5920_v36 = vsub.s32 32, %v5919_v42  ;;  %v5924_v20 = vsub.s32 4294967266, %v5919_v42  ;;  %v5921_v17 = vshll.u32 %v12876_v40, %v5919_v42  ;;  %v6203_v24 = vsel %vm6191_vm0, %v6185_v21, %v6202_v61 }
 0x5ab   : > { %v12908_v11 = vmul.u32.u64.low %v12878_v35, %v6200_v9  ;;  %v12909_v26 = vmul.u32.u64.high %v12878_v35, %v6200_v9, %v12908_v11  ;;  %v6204_v33 = vsel %vm6190_vm13, %v6201_v44, %v6203_v24  ;;  %v7647_v37 = vadd.s32 4294967169, %v6058_v0 }
 0x5ac   : > { %v5922_v52 = vshrl.u32 %v5904_v55, %v5920_v36  ;;  %v5925_v28 = vadd.s32 127, %v5924_v20  ;;  %vm6049_vm3 = vcmp.eq.s32.totalorder %v12873_v31, 2  ;;  %v6196_v18 = vsel %vm6190_vm13, %v6193_v58, %v6195_v53 }
 0x5ad   : > { %v8208_v14 = vpop.eup %8207  ;;  %v12916_v46 = vmul.u32.u64.low %v12878_v35, %v6204_v33  ;;  %v12917_v40 = vmul.u32.u64.high %v12878_v35, %v6204_v33, %v12916_v46  ;;  %v6064_v59 = vadd.s32 1, %v7647_v37  ;;  %v6215_v48 = vadd.s32 1, %v12909_v26 }
 0x5ae   : > { %v8210_v41 = vpop.eup %8209  ;;  %v6050_v15 = vxor.u32 2147483648, %v8208_v14  ;;  %v5923_v1 = vor.u32 %v5922_v52, %v5921_v17  ;;  %v5926_v62 = vshll.u32 %v5925_v28, 23  ;;  %v12922_v5 = vand.u32 8388607, %v6054_v13 }
 0x5af   : > { %v6047_v55 = vxor.u32 2147483648, %v8210_v41  ;;  %v618_v19 = vmul.f32 %v12567_v2, %v515_v23  ;;  %v5935_v54 = vsel %vm5850_vm12, %v5934_v3, %v12866_v63  ;;  %vm6065_vm5 = vcmp.gt.s32.totalorder %v6064_v59, 0 }
 0x5b0   : > { %v6051_v12 = vsel %vm6049_vm3, %v6050_v15, %v8210_v41  ;;  %v5927_v57 = vor.u32 4788187, %v5926_v62  ;;  %v6212_v7 = vmul.u32 %v12878_v35, %v6196_v18  ;;  %vm6214_vm4 = vc.u32 %v12917_v40, %v12908_v11 }
 0x5b1   : > { %v6048_v16 = vsel %vm6046_vm14, %v8208_v14, %v6047_v55  ;;  %v6066_v50 = vsel %vm6065_vm5, %v6064_v59, 0  ;;  %v5930_v0 = vcvt.s32.f32 %v5923_v1  ;;  %v6216_v32 = vsel %vm6214_vm4, %v6215_v48, %v12909_v26 }
 0x5b2   : > { %v6052_v2 = vsel %vm6045_vm1, %v6048_v16, %v6051_v12  ;;  %v5928_v38 = vand.u32 2147483647, %v5927_v57  ;;  %v6217_v3 = vadd.s32 %v6216_v32, %v6212_v7  ;;  %v6068_v21 = vand.u32 31, %v6066_v50  ;;  %v510_v32 = vpop.permute.xlu0 %509 }
 0x5b3   : > { %v6053_v63 = vsel %vm6043_vm2, nan, %v6052_v2  ;;  %vm12943_vm6 = vcmp.le.f32.partialorder %v5848_v8, 0.7853982  ;;  %v6062_v31 = vor.u32 8388608, %v12922_v5  ;;  %v12949_v4 = vadd.f32 %v12816_v27, %v618_v19 }
 0x5b4   : > { %7341 = vst [vmem:[%s8782_s8 + $0x198] sm:$0xff] %v6053_v63  ;;  %v5931_v29 = vmul.f32 %v5930_v0, %v5928_v38  ;;  %v5937_v51 = vsel %vm12943_vm6, 0, %v5935_v54  ;;  %v6218_v10 = vadd.s32 536870912, %v6217_v3  ;;  %v12953_v58 = vshrl.u32 %v6066_v50, 5 }
 0x5b5   : > { %v6069_v22 = vsub.s32 32, %v6068_v21  ;;  %v6071_v6 = vshll.u32 %v8349_v39, %v6068_v21  ;;  %v6074_v8 = vshll.u32 %v8350_v43, %v6068_v21  ;;  %v6077_v44 = vshll.u32 %v8351_v45, %v6068_v21 }
 0x5b6   : > { %v5932_v42 = vxor.u32 2147483648, %v5931_v29  ;;  %v12958_v61 = vshrl.u32 %v6218_v10, 30  ;;  %v6080_v53 = vshll.u32 %v8352_v47, %v6068_v21  ;;  %v6083_v37 = vshll.u32 %v8353_v49, %v6068_v21 }
 0x5b7   : > { %v6072_v36 = vshrl.u32 %v8350_v43, %v6069_v22  ;;  %v6075_v20 = vshrl.u32 %v8351_v45, %v6069_v22  ;;  %v6078_v17 = vshrl.u32 %v8352_v47, %v6069_v22  ;;  %v6081_v24 = vshrl.u32 %v8353_v49, %v6069_v22 }
 0x5b8   : > { %v5933_v9 = vsel %vm5850_vm12, %v5932_v42, %v5931_v29  ;;  %v6084_v26 = vshrl.u32 %v8354_v56, %v6069_v22  ;;  %v6220_v28 = vshll.u32 %v12958_v61, 30  ;;  %v6366_v15 = vand.u32 2139095040, %v12949_v4 }
 0x5b9   : > { %v5936_v52 = vsel %vm12943_vm6, %v12704_v25, %v5933_v9  ;;  %v6073_v33 = vor.u32 %v6072_v36, %v6071_v6  ;;  %v6076_v23 = vor.u32 %v6075_v20, %v6074_v8  ;;  %v6079_v14 = vor.u32 %v6078_v17, %v6077_v44 }
 0x5ba   : > { %8211 = vcosq.f32 %v5936_v52  ;;  %v6082_v18 = vor.u32 %v6081_v24, %v6080_v53  ;;  %v12973_v46 = vsub.s32 %v6217_v3, %v6220_v28  ;;  %v6085_v41 = vor.u32 %v6084_v26, %v6083_v37 }
 0x5bb   : > { %8213 = vsinq.f32 %v5936_v52  ;;  %v6070_v1 = vshrl.u32 %v8349_v39, %v6069_v22  ;;  %vm6086_vm7 = vcmp.lt.s32.totalorder %v12953_v58, 1  ;;  %vm6088_vm10 = vcmp.lt.s32.totalorder %v12953_v58, 3  ;;  %v13004_v22 = vld [vmem:[%s13855_s1] ss:$0 sm:$0xff] }
 0x5bc   : > { %vm6089_vm8 = vcmp.lt.s32.totalorder %v12953_v58, 4  ;;  %v6223_v62 = vsub.s32 0, %v12973_v46  ;;  %v6094_v55 = vsel %vm6086_vm7, %v6073_v33, %v6076_v23  ;;  %v5941_v5 = vand.u32 3, %v5937_v51 }
 0x5bd   : > { %v6091_v59 = vsel %vm6089_vm8, %v6079_v14, 2102212464  ;;  %v6095_v48 = vsel %vm6089_vm8, %v6082_v18, 920167782  ;;  %v6098_v12 = vsel %vm6086_vm7, %v6076_v23, %v6079_v14  ;;  %v6099_v57 = vsel %vm6089_vm8, %v6085_v41, 1326507024 }
 0x5be   : > { %v6096_v19 = vsel %vm6088_vm10, %v6079_v14, %v6095_v48  ;;  %v7652_v54 = vmin.u32 %v6223_v62, %v12973_v46  ;;  %vm6087_vm9 = vcmp.lt.s32.totalorder %v12953_v58, 2  ;;  %v6090_v16 = vsel %vm6086_vm7, %v6070_v1, %v6073_v33 }
 0x5bf   : > { %v6102_v7 = vshll.u32 %v6062_v31, 8  ;;  %v6092_v50 = vsel %vm6088_vm10, %v6076_v23, %v6091_v59  ;;  %v6097_v2 = vsel %vm6087_vm9, %v6094_v55, %v6096_v19  ;;  %v6100_v38 = vsel %vm6088_vm10, %v6082_v18, %v6099_v57 }
 0x5c0   : > { %v6367_v0 = vshrl.u32 %v6366_v15, 23  ;;  %v6225_v63 = vclz %v7652_v54  ;;  %v6101_v3 = vsel %vm6087_vm9, %v6098_v12, %v6100_v38  ;;  %vm5940_vm11 = vweird.f32 %v12704_v25 }
 0x5c1   : > { %v12993_v21 = vmul.u32.u64.low %v6102_v7, %v6097_v2  ;;  %v12994_v35 = vmul.u32.u64.high %v6102_v7, %v6097_v2, %v12993_v21  ;;  %v12997_v29 = vmul.u32.u64.low %v6102_v7, %v6101_v3  ;;  %v12998_v31 = vmul.u32.u64.high %v6102_v7, %v6101_v3, %v12997_v29 }
 0x5c2   : > { %v7659_v51 = vadd.s32 4294967169, %v6367_v0  ;;  %vm5942_vm12 = vcmp.lt.s32.totalorder %v5941_v5, 2  ;;  %v7653_v10 = vadd.s32 4294967294, %v6225_v63  ;;  %v617_v42 = vmul.f32 %v13004_v22, %v510_v32 }
 0x5c3   : > { %vm5943_vm13 = vcmp.eq.s32.totalorder %v5941_v5, 0  ;;  %vm5946_vm14 = vcmp.eq.s32.totalorder %v5941_v5, 2  ;;  %v6093_v8 = vsel %vm6087_vm9, %v6090_v16, %v6092_v50  ;;  %v6112_v53 = vadd.s32 1, %v12994_v35 }
 0x5c4   : > { %v8212_v6 = vpop.eup %8211  ;;  %v6373_v44 = vadd.s32 1, %v7659_v51  ;;  %vm7654_vm15 = vcmp.lt.s32.totalorder %v7653_v10, 0  ;;  %v6363_v9 = vand.u32 2147483647, %v12949_v4  ;;  %v6213_v24 = vadd.s32 %v12908_v11, %v12917_v40 }
 0x5c5   : > { %v8214_v36 = vpop.eup %8213  ;;  %v5947_v20 = vxor.u32 2147483648, %v8212_v6  ;;  %v6228_v26 = vsel %vm7654_vm15, 0, %v7653_v10  ;;  %vm6111_vm0 = vc.u32 %v12998_v31, %v12993_v21  ;;  %v6109_v33 = vmul.u32 %v6102_v7, %v6093_v8 }
 0x5c6   : > { %v5944_v17 = vxor.u32 2147483648, %v8214_v36  ;;  %v6229_v58 = vsub.s32 32, %v6228_v26  ;;  %v6233_v28 = vsub.s32 4294967266, %v6228_v26  ;;  %v6230_v23 = vshll.u32 %v12973_v46, %v6228_v26 }
 0x5c7   : > { %v5948_v52 = vsel %vm5946_vm14, %v5947_v20, %v8214_v36  ;;  %v6113_v14 = vsel %vm6111_vm0, %v6112_v53, %v12994_v35  ;;  %vm6374_vm1 = vcmp.gt.s32.totalorder %v6373_v44, 0  ;;  %v6243_v1 = vsub.s32 4, %v12958_v61 }
 0x5c8   : > { %v5945_v37 = vsel %vm5943_vm13, %v8212_v6, %v5944_v17  ;;  %v6231_v41 = vshrl.u32 %v6213_v24, %v6229_v58  ;;  %v6234_v11 = vadd.s32 127, %v6233_v28  ;;  %v6114_v40 = vadd.s32 %v6113_v14, %v6109_v33 }
 0x5c9   : > { %v5949_v18 = vsel %vm5942_vm12, %v5945_v37, %v5948_v52  ;;  %v6370_v62 = vand.u32 8388607, %v6363_v9  ;;  %v6375_v59 = vsel %vm6374_vm1, %v6373_v44, 0  ;;  %vm13027_vm2 = vcmp.le.f32.partialorder %v6157_v60, 0.7853982 }
 0x5ca   : > { %v5950_v15 = vsel %vm5940_vm11, nan, %v5949_v18  ;;  %v6232_v55 = vor.u32 %v6231_v41, %v6230_v23  ;;  %v6235_v46 = vshll.u32 %v6234_v11, 23  ;;  %v6115_v48 = vadd.s32 536870912, %v6114_v40 }
 0x5cb   : > { %7340 = vst [vmem:[%s8782_s8 + $0x190] sm:$0xff] %v5950_v15  ;;  %v6377_v19 = vand.u32 31, %v6375_v59  ;;  %vm6159_vm3 = vcmp.lt.s32.totalorder %v12819_v34, 0  ;;  %v6371_v54 = vor.u32 8388608, %v6370_v62  ;;  %v13038_v7 = vadd.f32 %v12816_v27, %v617_v42 }
 0x5cc   : > { %v6236_v25 = vor.u32 4788187, %v6235_v46  ;;  %v13032_v12 = vshrl.u32 %v6115_v48, 30  ;;  %v6244_v57 = vsel %vm6159_vm3, %v6243_v1, %v12958_v61  ;;  %v6239_v2 = vcvt.s32.f32 %v6232_v55 }
 0x5cd   : > { %v6378_v16 = vsub.s32 32, %v6377_v19  ;;  %v6376_v38 = vshrl.u32 %v6375_v59, 5  ;;  %v6380_v0 = vshll.u32 %v8349_v39, %v6377_v19  ;;  %v6386_v29 = vshll.u32 %v8351_v45, %v6377_v19 }
 0x5ce   : > { %v6237_v50 = vand.u32 2147483647, %v6236_v25  ;;  %v6117_v60 = vshll.u32 %v13032_v12, 30  ;;  %v6246_v10 = vsel %vm13027_vm2, 0, %v6244_v57  ;;  %v6383_v42 = vshll.u32 %v8350_v43, %v6377_v19 }
 0x5cf   : > { %v6381_v32 = vshrl.u32 %v8350_v43, %v6378_v16  ;;  %v6384_v63 = vshrl.u32 %v8351_v45, %v6378_v16  ;;  %v6387_v3 = vshrl.u32 %v8352_v47, %v6378_v16  ;;  %v6390_v51 = vshrl.u32 %v8353_v49, %v6378_v16 }
 0x5d0   : > { %v6240_v35 = vmul.f32 %v6239_v2, %v6237_v50  ;;  %v13045_v61 = vsub.s32 %v6114_v40, %v6117_v60  ;;  %v6389_v6 = vshll.u32 %v8352_v47, %v6377_v19  ;;  %v13053_v8 = vshll.u32 %v6371_v54, 8 }
 0x5d1   : > { %v6382_v20 = vor.u32 %v6381_v32, %v6380_v0  ;;  %v6388_v53 = vor.u32 %v6387_v3, %v6386_v29  ;;  %v6385_v17 = vor.u32 %v6384_v63, %v6383_v42  ;;  %v6392_v26 = vshll.u32 %v8353_v49, %v6377_v19 }
 0x5d2   : > { %v6241_v44 = vxor.u32 2147483648, %v6240_v35  ;;  %v6120_v36 = vsub.s32 0, %v13045_v61  ;;  %v6391_v24 = vor.u32 %v6390_v51, %v6389_v6  ;;  %v6393_v52 = vshrl.u32 %v8354_v56, %v6378_v16 }
 0x5d3   : > { %vm6395_vm5 = vcmp.lt.s32.totalorder %v6376_v38, 1  ;;  %v6263_v33 = vand.u32 2139095040, %v13038_v7  ;;  %v6379_v23 = vshrl.u32 %v8349_v39, %v6378_v16  ;;  %vm6398_vm4 = vcmp.lt.s32.totalorder %v6376_v38, 4 }
 0x5d4   : > { %v6242_v58 = vsel %vm6159_vm3, %v6241_v44, %v6240_v35  ;;  %v7648_v28 = vmin.u32 %v6120_v36, %v13045_v61  ;;  %v6394_v14 = vor.u32 %v6393_v52, %v6392_v26  ;;  %vm6396_vm6 = vcmp.lt.s32.totalorder %v6376_v38, 2 }
 0x5d5   : > { %v6245_v37 = vsel %vm13027_vm2, %v12819_v34, %v6242_v58  ;;  %v6400_v41 = vsel %vm6398_vm4, %v6388_v53, 2102212464  ;;  %vm6397_vm7 = vcmp.lt.s32.totalorder %v6376_v38, 3  ;;  %v6403_v11 = vsel %vm6395_vm5, %v6382_v20, %v6385_v17 }
 0x5d6   : > { %8215 = vcosq.f32 %v6245_v37  ;;  %v6122_v18 = vclz %v7648_v28  ;;  %v6404_v40 = vsel %vm6398_vm4, %v6391_v24, 920167782  ;;  %v6399_v1 = vsel %vm6395_vm5, %v6379_v23, %v6382_v20 }
 0x5d7   : > { %8217 = vsinq.f32 %v6245_v37  ;;  %v6405_v62 = vsel %vm6397_vm7, %v6388_v53, %v6404_v40  ;;  %v6407_v59 = vsel %vm6395_vm5, %v6385_v17, %v6388_v53  ;;  %v6401_v55 = vsel %vm6397_vm7, %v6385_v17, %v6400_v41 }
 0x5d8   : > { %v7649_v15 = vadd.s32 4294967294, %v6122_v18  ;;  %v6406_v46 = vsel %vm6396_vm6, %v6403_v11, %v6405_v62  ;;  %v6408_v48 = vsel %vm6398_vm4, %v6394_v14, 1326507024  ;;  %v6264_v19 = vshrl.u32 %v6263_v33, 23 }
 0x5d9   : > { %vm6056_vm10 = vcmp.lt.s32.totalorder %v12869_v30, 0  ;;  %v6409_v5 = vsel %vm6397_vm7, %v6391_v24, %v6408_v48  ;;  %v13072_v25 = vmul.u32.u64.low %v13053_v8, %v6406_v46  ;;  %v13073_v57 = vmul.u32.u64.high %v13053_v8, %v6406_v46, %v13072_v25 }
 0x5da   : > { %vm7650_vm8 = vcmp.lt.s32.totalorder %v7649_v15, 0  ;;  %v6250_v54 = vand.u32 3, %v6246_v10  ;;  %v6410_v50 = vsel %vm6396_vm6, %v6407_v59, %v6409_v5  ;;  %v7655_v2 = vadd.s32 4294967169, %v6264_v19  ;;  %v520_v19 = vpop.permute.xlu0 %519 }
 0x5db   : > { %v6125_v16 = vsel %vm7650_vm8, 0, %v7649_v15  ;;  %v6110_v60 = vadd.s32 %v12993_v21, %v12998_v31  ;;  %v6260_v63 = vand.u32 2147483647, %v13038_v7  ;;  %vm6249_vm9 = vweird.f32 %v12819_v34  ;;  %v525_v31 = vpop.permute.xlu1 %524 }
 0x5dc   : > { %v6126_v0 = vsub.s32 32, %v6125_v16  ;;  %v6130_v32 = vsub.s32 4294967266, %v6125_v16  ;;  %v6402_v3 = vsel %vm6396_vm6, %v6399_v1, %v6401_v55  ;;  %v6270_v51 = vadd.s32 1, %v7655_v2 }
 0x5dd   : > { %v13083_v35 = vmul.u32.u64.low %v13053_v8, %v6410_v50  ;;  %v13084_v29 = vmul.u32.u64.high %v13053_v8, %v6410_v50, %v13083_v35  ;;  %v6127_v10 = vshll.u32 %v13045_v61, %v6125_v16  ;;  %v6421_v44 = vadd.s32 1, %v13073_v57 }
 0x5de   : > { %v6128_v42 = vshrl.u32 %v6110_v60, %v6126_v0  ;;  %v6131_v6 = vadd.s32 127, %v6130_v32  ;;  %vm6251_vm11 = vcmp.lt.s32.totalorder %v6250_v54, 2  ;;  %vm6252_vm12 = vcmp.eq.s32.totalorder %v6250_v54, 0 }
 0x5df   : > { %v6140_v21 = vsub.s32 4, %v13032_v12  ;;  %vm6271_vm13 = vcmp.gt.s32.totalorder %v6270_v51, 0  ;;  %vm13091_vm14 = vcmp.le.f32.partialorder %v6054_v13, 0.7853982  ;;  %v6267_v61 = vand.u32 8388607, %v6260_v63 }
 0x5e0   : > { %v8216_v36 = vpop.eup %8215  ;;  %v6129_v20 = vor.u32 %v6128_v42, %v6127_v10  ;;  %v6132_v53 = vshll.u32 %v6131_v6, 23  ;;  %v6272_v17 = vsel %vm6271_vm13, %v6270_v51, 0  ;;  %vm6255_vm15 = vcmp.eq.s32.totalorder %v6250_v54, 2 }
 0x5e1   : > { %v8218_v24 = vpop.eup %8217  ;;  %v6256_v26 = vxor.u32 2147483648, %v8216_v36  ;;  %v6418_v52 = vmul.u32 %v13053_v8, %v6402_v3  ;;  %vm6420_vm0 = vc.u32 %v13084_v29, %v13072_v25  ;;  %v620_v33 = vmul.f32 %v13004_v22, %v525_v31 }
 0x5e2   : > { %v6253_v58 = vxor.u32 2147483648, %v8218_v24  ;;  %v6133_v28 = vor.u32 4788187, %v6132_v53  ;;  %v6422_v13 = vsel %vm6420_vm0, %v6421_v44, %v13073_v57  ;;  %v6141_v23 = vsel %vm6056_vm10, %v6140_v21, %v13032_v12 }
 0x5e3   : > { %v6257_v37 = vsel %vm6255_vm15, %v6256_v26, %v8218_v24  ;;  %v6423_v14 = vadd.s32 %v6422_v13, %v6418_v52  ;;  %v6274_v18 = vand.u32 31, %v6272_v17  ;;  %v6136_v11 = vcvt.s32.f32 %v6129_v20 }
 0x5e4   : > { %v6254_v41 = vsel %vm6252_vm12, %v8216_v36, %v6253_v58  ;;  %v6134_v8 = vand.u32 2147483647, %v6133_v28  ;;  %v6268_v40 = vor.u32 8388608, %v6267_v61  ;;  %v13107_v62 = vshrl.u32 %v6272_v17, 5 }
 0x5e5   : > { %v6258_v15 = vsel %vm6251_vm11, %v6254_v41, %v6257_v37  ;;  %v6424_v1 = vadd.s32 536870912, %v6423_v14  ;;  %v6275_v59 = vsub.s32 32, %v6274_v18  ;;  %v6277_v12 = vshll.u32 %v8349_v39, %v6274_v18 }
 0x5e6   : > { %v6259_v55 = vsel %vm6249_vm9, nan, %v6258_v15  ;;  %v6137_v46 = vmul.f32 %v6136_v11, %v6134_v8  ;;  %v6280_v48 = vshll.u32 %v8350_v43, %v6274_v18  ;;  %v6283_v16 = vshll.u32 %v8351_v45, %v6274_v18 }
 0x5e7   : > { %7343 = vst [vmem:[%s8782_s8 + $0x1a8] sm:$0xff] %v6259_v55  ;;  %v13114_v5 = vshrl.u32 %v6424_v1, 30  ;;  %v6278_v57 = vshrl.u32 %v8350_v43, %v6275_v59  ;;  %v6281_v54 = vshrl.u32 %v8351_v45, %v6275_v59  ;;  %v6284_v2 = vshrl.u32 %v8352_v47, %v6275_v59 }
 0x5e8   : > { %v6138_v50 = vxor.u32 2147483648, %v6137_v46  ;;  %v6286_v34 = vshll.u32 %v8352_v47, %v6274_v18  ;;  %v6287_v60 = vshrl.u32 %v8353_v49, %v6275_v59  ;;  %v6143_v0 = vsel %vm13091_vm14, 0, %v6141_v23 }
 0x5e9   : > { %v6426_v32 = vshll.u32 %v13114_v5, 30  ;;  %v6279_v3 = vor.u32 %v6278_v57, %v6277_v12  ;;  %v619_v35 = vmul.f32 %v13004_v22, %v520_v19  ;;  %v6282_v10 = vor.u32 %v6281_v54, %v6280_v48 }
 0x5ea   : > { %v6139_v51 = vsel %vm6056_vm10, %v6138_v50, %v6137_v46  ;;  %v6285_v42 = vor.u32 %v6284_v2, %v6283_v16  ;;  %v6288_v6 = vor.u32 %v6287_v60, %v6286_v34  ;;  %v6289_v31 = vshll.u32 %v8353_v49, %v6274_v18 }
 0x5eb   : > { %v6142_v44 = vsel %vm13091_vm14, %v12869_v30, %v6139_v51  ;;  %v13131_v21 = vsub.s32 %v6423_v14, %v6426_v32  ;;  %v6290_v36 = vshrl.u32 %v8354_v56, %v6275_v59  ;;  %v13135_v20 = vand.u32 3, %v6143_v0 }
 0x5ec   : > { %8219 = vcosq.f32 %v6142_v44  ;;  %vm6292_vm1 = vcmp.lt.s32.totalorder %v13107_v62, 1  ;;  %v6308_v53 = vshll.u32 %v6268_v40, 8  ;;  %vm6295_vm2 = vcmp.lt.s32.totalorder %v13107_v62, 4 }
 0x5ed   : > { %8221 = vsinq.f32 %v6142_v44  ;;  %v6429_v61 = vsub.s32 0, %v13131_v21  ;;  %v6291_v17 = vor.u32 %v6290_v36, %v6289_v31  ;;  %v6276_v38 = vshrl.u32 %v8349_v39, %v6275_v59 }
 0x5ee   : > { %v6297_v24 = vsel %vm6295_vm2, %v6285_v42, 2102212464  ;;  %v6300_v26 = vsel %vm6292_vm1, %v6279_v3, %v6282_v10  ;;  %v6301_v52 = vsel %vm6295_vm2, %v6288_v6, 920167782  ;;  %vm6294_vm3 = vcmp.lt.s32.totalorder %v13107_v62, 3 }
 0x5ef   : > { %v7660_v58 = vmin.u32 %v6429_v61, %v13131_v21  ;;  %v6304_v28 = vsel %vm6292_vm1, %v6282_v10, %v6285_v42  ;;  %v13144_v13 = vadd.f32 %v12816_v27, %v620_v33  ;;  %vm6293_vm5 = vcmp.lt.s32.totalorder %v13107_v62, 2 }
 0x5f0   : > { %v6296_v37 = vsel %vm6292_vm1, %v6276_v38, %v6279_v3  ;;  %v6302_v23 = vsel %vm6294_vm3, %v6285_v42, %v6301_v52  ;;  %v6305_v14 = vsel %vm6295_vm2, %v6291_v17, 1326507024  ;;  %v6298_v41 = vsel %vm6294_vm3, %v6282_v10, %v6297_v24 }
 0x5f1   : > { %v6431_v18 = vclz %v7660_v58  ;;  %v6303_v8 = vsel %vm6293_vm5, %v6300_v26, %v6302_v23  ;;  %v6306_v11 = vsel %vm6294_vm3, %v6288_v6, %v6305_v14  ;;  %vm6365_vm4 = vcmp.lt.s32.totalorder %v12949_v4, 0 }
 0x5f2   : > { %v6307_v40 = vsel %vm6293_vm5, %v6304_v28, %v6306_v11  ;;  %v13152_v15 = vmul.u32.u64.low %v6308_v53, %v6303_v8  ;;  %v13153_v1 = vmul.u32.u64.high %v6308_v53, %v6303_v8, %v13152_v15  ;;  %vm6146_vm6 = vweird.f32 %v12869_v30  ;;  %v535_v28 = vpop.permute.xlu1 %534 }
 0x5f3   : > { %vm6148_vm7 = vcmp.lt.s32.totalorder %v13135_v20, 2  ;;  %v7661_v33 = vadd.s32 4294967294, %v6431_v18  ;;  %v13158_v59 = vmul.u32.u64.low %v6308_v53, %v6307_v40  ;;  %v13159_v55 = vmul.u32.u64.high %v6308_v53, %v6307_v40, %v13158_v59 }
 0x5f4   : > { %vm6149_vm10 = vcmp.eq.s32.totalorder %v13135_v20, 0  ;;  %vm6152_vm8 = vcmp.eq.s32.totalorder %v13135_v20, 2  ;;  %v6299_v46 = vsel %vm6293_vm5, %v6296_v37, %v6298_v41  ;;  %v6572_v12 = vand.u32 2139095040, %v13144_v13 }
 0x5f5   : > { %v6419_v48 = vadd.s32 %v13072_v25, %v13084_v29  ;;  %vm7662_vm9 = vcmp.lt.s32.totalorder %v7661_v33, 0  ;;  %v6569_v19 = vand.u32 2147483647, %v13144_v13  ;;  %v13170_v57 = vadd.f32 %v12816_v27, %v619_v35 }
 0x5f6   : > { %v8220_v54 = vpop.eup %8219  ;;  %v6434_v16 = vsel %vm7662_vm9, 0, %v7661_v33  ;;  %v6449_v50 = vsub.s32 4, %v13114_v5  ;;  %v6318_v2 = vadd.s32 1, %v13153_v1  ;;  %v6573_v34 = vshrl.u32 %v6572_v12, 23 }
 0x5f7   : > { %v8222_v62 = vpop.eup %8221  ;;  %v6153_v60 = vxor.u32 2147483648, %v8220_v54  ;;  %v6435_v0 = vsub.s32 32, %v6434_v16  ;;  %v6439_v32 = vsub.s32 4294967266, %v6434_v16  ;;  %v6315_v3 = vmul.u32 %v6308_v53, %v6299_v46 }
 0x5f8   : > { %v6150_v51 = vxor.u32 2147483648, %v8222_v62  ;;  %v6436_v25 = vshll.u32 %v13131_v21, %v6434_v16  ;;  %vm6317_vm11 = vc.u32 %v13159_v55, %v13152_v15  ;;  %v7667_v27 = vadd.s32 4294967169, %v6573_v34 }
 0x5f9   : > { %v6154_v29 = vsel %vm6152_vm8, %v6153_v60, %v8222_v62  ;;  %v6437_v35 = vshrl.u32 %v6419_v48, %v6435_v0  ;;  %v6440_v10 = vadd.s32 127, %v6439_v32  ;;  %v6319_v42 = vsel %vm6317_vm11, %v6318_v2, %v13153_v1 }
 0x5fa   : > { %v6151_v6 = vsel %vm6149_vm10, %v8220_v54, %v6150_v51  ;;  %v6320_v44 = vadd.s32 %v6319_v42, %v6315_v3  ;;  %v6576_v31 = vand.u32 8388607, %v6569_v19  ;;  %v6579_v21 = vadd.s32 1, %v7667_v27 }
 0x5fb   : > { %v6155_v36 = vsel %vm6148_vm7, %v6151_v6, %v6154_v29  ;;  %v6438_v53 = vor.u32 %v6437_v35, %v6436_v25  ;;  %v6441_v61 = vshll.u32 %v6440_v10, 23  ;;  %v6450_v17 = vsel %vm6365_vm4, %v6449_v50, %v13114_v5 }
 0x5fc   : > { %v6156_v38 = vsel %vm6146_vm6, nan, %v6155_v36  ;;  %v6321_v24 = vadd.s32 536870912, %v6320_v44  ;;  %vm6580_vm12 = vcmp.gt.s32.totalorder %v6579_v21, 0  ;;  %vm13194_vm13 = vcmp.le.f32.partialorder %v6363_v9, 0.7853982 }
 0x5fd   : > { %7342 = vst [vmem:[%s8782_s8 + $0x1a0] sm:$0xff] %v6156_v38  ;;  %v6442_v20 = vor.u32 4788187, %v6441_v61  ;;  %v6581_v52 = vsel %vm6580_vm12, %v6579_v21, 0  ;;  %v6469_v58 = vand.u32 2139095040, %v13170_v57  ;;  %v6452_v5 = vsel %vm13194_vm13, 0, %v6450_v17 }
 0x5fe   : > { %v13201_v37 = vshrl.u32 %v6321_v24, 30  ;;  %v6577_v30 = vor.u32 8388608, %v6576_v31  ;;  %v6583_v23 = vand.u32 31, %v6581_v52  ;;  %v6445_v18 = vcvt.s32.f32 %v6438_v53 }
 0x5ff   : > { %v6443_v14 = vand.u32 2147483647, %v6442_v20  ;;  %v622_v8 = vmul.f32 %v13004_v22, %v535_v28  ;;  %v13205_v40 = vand.u32 3, %v6452_v5  ;;  %v6466_v1 = vand.u32 2147483647, %v13170_v57 }
 0x600   : > { %v6323_v41 = vshll.u32 %v13201_v37, 30  ;;  %v6584_v9 = vsub.s32 32, %v6583_v23  ;;  %v6470_v33 = vshrl.u32 %v6469_v58, 23  ;;  %v13210_v46 = vshrl.u32 %v6581_v52, 5 }
 0x601   : > { %v6446_v11 = vmul.f32 %v6445_v18, %v6443_v14  ;;  %v13213_v48 = vshll.u32 %v6577_v30, 8  ;;  %v6586_v16 = vshll.u32 %v8349_v39, %v6583_v23  ;;  %v6589_v62 = vshll.u32 %v8350_v43, %v6583_v23 }
 0x602   : > { %v13208_v59 = vsub.s32 %v6320_v44, %v6323_v41  ;;  %v6587_v12 = vshrl.u32 %v8350_v43, %v6584_v9  ;;  %v6590_v50 = vshrl.u32 %v8351_v45, %v6584_v9  ;;  %v6593_v2 = vshrl.u32 %v8352_v47, %v6584_v9 }
 0x603   : > { %v6447_v54 = vxor.u32 2147483648, %v6446_v11  ;;  %v6592_v60 = vshll.u32 %v8351_v45, %v6583_v23  ;;  %v6596_v0 = vshrl.u32 %v8353_v49, %v6584_v9  ;;  %v6595_v51 = vshll.u32 %v8352_v47, %v6583_v23 }
 0x604   : > { %v6326_v34 = vsub.s32 0, %v13208_v59  ;;  %v6588_v3 = vor.u32 %v6587_v12, %v6586_v16  ;;  %v7663_v25 = vadd.s32 4294967169, %v6470_v33  ;;  %v6591_v35 = vor.u32 %v6590_v50, %v6589_v62  ;;  %v13258_v12 = vld [vmem:[%s13856_s2] ss:$0 sm:$0xff] }
 0x605   : > { %v6448_v32 = vsel %vm6365_vm4, %v6447_v54, %v6446_v11  ;;  %v6594_v10 = vor.u32 %v6593_v2, %v6592_v60  ;;  %v6597_v42 = vor.u32 %v6596_v0, %v6595_v51  ;;  %v6598_v6 = vshll.u32 %v8353_v49, %v6583_v23 }
 0x606   : > { %v6451_v27 = vsel %vm13194_vm13, %v12949_v4, %v6448_v32  ;;  %v7656_v29 = vmin.u32 %v6326_v34, %v13208_v59  ;;  %v6599_v44 = vshrl.u32 %v8354_v56, %v6584_v9  ;;  %v6585_v21 = vshrl.u32 %v8349_v39, %v6584_v9 }
 0x607   : > { %8223 = vcosq.f32 %v6451_v27  ;;  %vm6601_vm14 = vcmp.lt.s32.totalorder %v13210_v46, 1  ;;  %vm6602_vm15 = vcmp.lt.s32.totalorder %v13210_v46, 2  ;;  %vm6603_vm0 = vcmp.lt.s32.totalorder %v13210_v46, 3 }
 0x608   : > { %8225 = vsinq.f32 %v6451_v27  ;;  %v6328_v31 = vclz %v7656_v29  ;;  %v6600_v36 = vor.u32 %v6599_v44, %v6598_v6  ;;  %vm6604_vm1 = vcmp.lt.s32.totalorder %v13210_v46, 4 }
 0x609   : > { %v6606_v61 = vsel %vm6604_vm1, %v6594_v10, 2102212464  ;;  %v6609_v17 = vsel %vm6601_vm14, %v6588_v3, %v6591_v35  ;;  %v6610_v38 = vsel %vm6604_vm1, %v6597_v42, 920167782  ;;  %vm6262_vm2 = vcmp.lt.s32.totalorder %v13038_v7, 0 }
 0x60a   : > { %v7657_v53 = vadd.s32 4294967294, %v6328_v31  ;;  %v6605_v24 = vsel %vm6601_vm14, %v6585_v21, %v6588_v3  ;;  %v6611_v26 = vsel %vm6603_vm0, %v6594_v10, %v6610_v38  ;;  %v6613_v20 = vsel %vm6601_vm14, %v6591_v35, %v6594_v10 }
 0x60b   : > { %v6614_v52 = vsel %vm6604_vm1, %v6600_v36, 1326507024  ;;  %v6607_v58 = vsel %vm6603_vm0, %v6591_v35, %v6606_v61  ;;  %v6612_v28 = vsel %vm6602_vm15, %v6609_v17, %v6611_v26  ;;  %vm6455_vm5 = vweird.f32 %v12949_v4 }
 0x60c   : > { %vm7658_vm3 = vcmp.lt.s32.totalorder %v7657_v53, 0  ;;  %v6615_v5 = vsel %vm6603_vm0, %v6597_v42, %v6614_v52  ;;  %v13242_v14 = vmul.u32.u64.low %v13213_v48, %v6612_v28  ;;  %v13243_v18 = vmul.u32.u64.high %v13213_v48, %v6612_v28, %v13242_v14 }
 0x60d   : > { %v6331_v30 = vsel %vm7658_vm3, 0, %v7657_v53  ;;  %v6616_v23 = vsel %vm6602_vm15, %v6613_v20, %v6615_v5  ;;  %vm13249_vm4 = vcmp.le.f32.partialorder %v6260_v63, 0.7853982  ;;  %v6316_v9 = vadd.s32 %v13152_v15, %v13159_v55 }
 0x60e   : > { %v6332_v11 = vsub.s32 32, %v6331_v30  ;;  %v6336_v33 = vsub.s32 4294967266, %v6331_v30  ;;  %v13261_v54 = vadd.f32 %v13258_v12, %v622_v8  ;;  %v6346_v16 = vsub.s32 4, %v13201_v37 }
 0x60f   : > { %v13265_v63 = vmul.u32.u64.low %v13213_v48, %v6616_v23  ;;  %v13266_v50 = vmul.u32.u64.high %v13213_v48, %v6616_v23, %v13265_v63  ;;  %v6476_v2 = vadd.s32 1, %v7663_v25  ;;  %v6333_v34 = vshll.u32 %v13208_v59, %v6331_v30 }
 0x610   : > { %v6334_v15 = vshrl.u32 %v6316_v9, %v6332_v11  ;;  %v6337_v55 = vadd.s32 127, %v6336_v33  ;;  %v6608_v62 = vsel %vm6602_vm15, %v6605_v24, %v6607_v58  ;;  %vm6458_vm6 = vcmp.eq.s32.totalorder %v13205_v40, 0 }
 0x611   : > { %v8224_v60 = vpop.eup %8223  ;;  %v6627_v8 = vadd.s32 1, %v13243_v18  ;;  %v6473_v0 = vand.u32 8388607, %v6466_v1  ;;  %vm6477_vm7 = vcmp.gt.s32.totalorder %v6476_v2, 0  ;;  %vm6461_vm10 = vcmp.eq.s32.totalorder %v13205_v40, 2 }
 0x612   : > { %v8226_v32 = vpop.eup %8225  ;;  %v6462_v3 = vxor.u32 2147483648, %v8224_v60  ;;  %v6335_v51 = vor.u32 %v6334_v15, %v6333_v34  ;;  %v6338_v25 = vshll.u32 %v6337_v55, 23  ;;  %v6478_v27 = vsel %vm6477_vm7, %v6476_v2, 0 }
 0x613   : > { %v6459_v59 = vxor.u32 2147483648, %v8226_v32  ;;  %v6624_v46 = vmul.u32 %v13213_v48, %v6608_v62  ;;  %vm6626_vm8 = vc.u32 %v13266_v50, %v13242_v14  ;;  %v6347_v10 = vsel %vm6262_vm2, %v6346_v16, %v13201_v37 }
 0x614   : > { %v6463_v29 = vsel %vm6461_vm10, %v6462_v3, %v8226_v32  ;;  %v6339_v35 = vor.u32 4788187, %v6338_v25  ;;  %v6628_v42 = vsel %vm6626_vm8, %v6627_v8, %v13243_v18  ;;  %vm6457_vm9 = vcmp.lt.s32.totalorder %v13205_v40, 2 }
 0x615   : > { %v6460_v6 = vsel %vm6458_vm6, %v8224_v60, %v6459_v59  ;;  %v6629_v44 = vadd.s32 %v6628_v42, %v6624_v46  ;;  %v6480_v31 = vand.u32 31, %v6478_v27  ;;  %v6342_v36 = vcvt.s32.f32 %v6335_v51 }
 0x616   : > { %v6464_v48 = vsel %vm6457_vm9, %v6460_v6, %v6463_v29  ;;  %v6340_v21 = vand.u32 2147483647, %v6339_v35  ;;  %v6474_v53 = vor.u32 8388608, %v6473_v0  ;;  %v6349_v17 = vsel %vm13249_vm4, 0, %v6347_v10 }
 0x617   : > { %v6465_v61 = vsel %vm6455_vm5, nan, %v6464_v48  ;;  %v6630_v37 = vadd.s32 536870912, %v6629_v44  ;;  %v6481_v38 = vsub.s32 32, %v6480_v31  ;;  %v6479_v26 = vshrl.u32 %v6478_v27, 5 }
 0x618   : > { %7345 = vst [vmem:[%s8782_s8 + $0x1b8] sm:$0xff] %v6465_v61  ;;  %v6343_v24 = vmul.f32 %v6342_v36, %v6340_v21  ;;  %v6483_v40 = vshll.u32 %v8349_v39, %v6480_v31  ;;  %v6486_v20 = vshll.u32 %v8350_v43, %v6480_v31  ;;  %v6489_v4 = vshll.u32 %v8351_v45, %v6480_v31 }
 0x619   : > { %v13293_v52 = vshrl.u32 %v6630_v37, 30  ;;  %v6484_v58 = vshrl.u32 %v8350_v43, %v6481_v38  ;;  %v6487_v28 = vshrl.u32 %v8351_v45, %v6481_v38  ;;  %v6490_v30 = vshrl.u32 %v8352_v47, %v6481_v38 }
 0x61a   : > { %v6344_v5 = vxor.u32 2147483648, %v6343_v24  ;;  %v6492_v23 = vshll.u32 %v8352_v47, %v6480_v31  ;;  %v6493_v18 = vshrl.u32 %v8353_v49, %v6481_v38  ;;  %v6495_v16 = vshll.u32 %v8353_v49, %v6480_v31 }
 0x61b   : > { %v6632_v9 = vshll.u32 %v13293_v52, 30  ;;  %v6485_v11 = vor.u32 %v6484_v58, %v6483_v40  ;;  %v6488_v33 = vor.u32 %v6487_v28, %v6486_v20  ;;  %v6491_v2 = vor.u32 %v6490_v30, %v6489_v4 }
 0x61c   : > { %v6345_v63 = vsel %vm6262_vm2, %v6344_v5, %v6343_v24  ;;  %v6494_v34 = vor.u32 %v6493_v18, %v6492_v23  ;;  %v6496_v15 = vshrl.u32 %v8354_v56, %v6481_v38  ;;  %v13309_v62 = vand.u32 3, %v6349_v17 }
 0x61d   : > { %v6348_v55 = vsel %vm13249_vm4, %v13038_v7, %v6345_v63  ;;  %v13311_v60 = vsub.s32 %v6629_v44, %v6632_v9  ;;  %v6514_v0 = vshll.u32 %v6474_v53, 8  ;;  %v6778_v32 = vand.u32 2139095040, %v13261_v54 }
 0x61e   : > { %8227 = vcosq.f32 %v6348_v55  ;;  %v6497_v8 = vor.u32 %v6496_v15, %v6495_v16  ;;  %vm6498_vm11 = vcmp.lt.s32.totalorder %v6479_v26, 1  ;;  %vm6501_vm12 = vcmp.lt.s32.totalorder %v6479_v26, 4 }
 0x61f   : > { %8229 = vsinq.f32 %v6348_v55  ;;  %v6635_v3 = vsub.s32 0, %v13311_v60  ;;  %v6482_v51 = vshrl.u32 %v8349_v39, %v6481_v38  ;;  %v6503_v25 = vsel %vm6501_vm12, %v6491_v2, 2102212464 }
 0x620   : > { %v6506_v27 = vsel %vm6498_vm11, %v6485_v11, %v6488_v33  ;;  %v6507_v41 = vsel %vm6501_vm12, %v6494_v34, 920167782  ;;  %vm6499_vm13 = vcmp.lt.s32.totalorder %v6479_v26, 2  ;;  %vm6500_vm14 = vcmp.lt.s32.totalorder %v6479_v26, 3 }
 0x621   : > { %v7668_v59 = vmin.u32 %v6635_v3, %v13311_v60  ;;  %v6510_v46 = vsel %vm6498_vm11, %v6488_v33, %v6491_v2  ;;  %v6502_v29 = vsel %vm6498_vm11, %v6482_v51, %v6485_v11  ;;  %v6508_v35 = vsel %vm6500_vm14, %v6491_v2, %v6507_v41 }
 0x622   : > { %v6511_v10 = vsel %vm6501_vm12, %v6497_v8, 1326507024  ;;  %v6779_v42 = vshrl.u32 %v6778_v32, 23  ;;  %v6504_v44 = vsel %vm6500_vm14, %v6488_v33, %v6503_v25  ;;  %v6509_v31 = vsel %vm6499_vm13, %v6506_v27, %v6508_v35 }
 0x623   : > { %v6637_v6 = vclz %v7668_v59  ;;  %v6512_v48 = vsel %vm6500_vm14, %v6494_v34, %v6511_v10  ;;  %v13319_v36 = vmul.u32.u64.low %v6514_v0, %v6509_v31  ;;  %v13320_v53 = vmul.u32.u64.high %v6514_v0, %v6509_v31, %v13319_v36 }
 0x624   : > { %v6513_v21 = vsel %vm6499_vm13, %v6510_v46, %v6512_v48  ;;  %v7675_v61 = vadd.s32 4294967169, %v6779_v42  ;;  %vm6352_vm15 = vweird.f32 %v13038_v7  ;;  %vm6571_vm0 = vcmp.lt.s32.totalorder %v13144_v13, 0 }
 0x625   : > { %v7669_v17 = vadd.s32 4294967294, %v6637_v6  ;;  %v13325_v37 = vmul.u32.u64.low %v6514_v0, %v6513_v21  ;;  %v13326_v38 = vmul.u32.u64.high %v6514_v0, %v6513_v21, %v13325_v37  ;;  %vm6354_vm1 = vcmp.lt.s32.totalorder %v13309_v62, 2 }
 0x626   : > { %v6505_v24 = vsel %vm6499_vm13, %v6502_v29, %v6504_v44  ;;  %v6775_v40 = vand.u32 2147483647, %v13261_v54  ;;  %v6785_v20 = vadd.s32 1, %v7675_v61  ;;  %vm6355_vm2 = vcmp.eq.s32.totalorder %v13309_v62, 0 }
 0x627   : > { %vm6358_vm3 = vcmp.eq.s32.totalorder %v13309_v62, 2  ;;  %v6625_v58 = vadd.s32 %v13242_v14, %v13266_v50  ;;  %vm7670_vm5 = vcmp.lt.s32.totalorder %v7669_v17, 0  ;;  %v6655_v5 = vsub.s32 4, %v13293_v52 }
 0x628   : > { %v8228_v28 = vpop.eup %8227  ;;  %v6640_v4 = vsel %vm7670_vm5, 0, %v7669_v17  ;;  %v6524_v30 = vadd.s32 1, %v13320_v53  ;;  %vm6786_vm4 = vcmp.gt.s32.totalorder %v6785_v20, 0  ;;  %v6521_v11 = vmul.u32 %v6514_v0, %v6505_v24  ;;  %v530_v0 = vpop.permute.xlu0 %529 }
 0x629   : > { %v8230_v26 = vpop.eup %8229  ;;  %v6359_v23 = vxor.u32 2147483648, %v8228_v28  ;;  %v6641_v18 = vsub.s32 32, %v6640_v4  ;;  %v6645_v9 = vsub.s32 4294967266, %v6640_v4  ;;  %v6642_v16 = vshll.u32 %v13311_v60, %v6640_v4 }
 0x62a   : > { %v6356_v33 = vxor.u32 2147483648, %v8230_v26  ;;  %vm6523_vm6 = vc.u32 %v13326_v38, %v13319_v36  ;;  %v6787_v14 = vsel %vm6786_vm4, %v6785_v20, 0  ;;  %v13348_v55 = vsel %vm6571_vm0, %v6655_v5, %v13293_v52 }
 0x62b   : > { %v6360_v50 = vsel %vm6358_vm3, %v6359_v23, %v8230_v26  ;;  %v6643_v63 = vshrl.u32 %v6625_v58, %v6641_v18  ;;  %v6646_v2 = vadd.s32 127, %v6645_v9  ;;  %v6525_v34 = vsel %vm6523_vm6, %v6524_v30, %v13320_v53  ;;  %v545_v58 = vpop.permute.xlu1 %544 }
 0x62c   : > { %v6357_v15 = vsel %vm6355_vm2, %v8228_v28, %v6356_v33  ;;  %v6526_v60 = vadd.s32 %v6525_v34, %v6521_v11  ;;  %v6789_v8 = vand.u32 31, %v6787_v14  ;;  %vm13354_vm7 = vcmp.le.f32.partialorder %v6569_v19, 0.7853982 }
 0x62d   : > { %v6361_v32 = vsel %vm6354_vm1, %v6357_v15, %v6360_v50  ;;  %v6644_v51 = vor.u32 %v6643_v63, %v6642_v16  ;;  %v6647_v25 = vshll.u32 %v6646_v2, 23  ;;  %v6782_v52 = vand.u32 8388607, %v6775_v40 }
 0x62e   : > { %v6362_v27 = vsel %vm6352_vm15, nan, %v6361_v32  ;;  %v6527_v41 = vadd.s32 536870912, %v6526_v60  ;;  %v6790_v59 = vsub.s32 32, %v6789_v8  ;;  %v6658_v62 = vsel %vm13354_vm7, 0, %v13348_v55 }
 0x62f   : > { %7344 = vst [vmem:[%s8782_s8 + $0x1b0] sm:$0xff] %v6362_v27  ;;  %v6648_v46 = vor.u32 4788187, %v6647_v25  ;;  %v621_v19 = vmul.f32 %v13004_v22, %v530_v0  ;;  %v6792_v35 = vshll.u32 %v8349_v39, %v6789_v8  ;;  %v6651_v6 = vcvt.s32.f32 %v6644_v51 }
 0x630   : > { %v13367_v29 = vshrl.u32 %v6527_v41, 30  ;;  %v6793_v7 = vshrl.u32 %v8350_v43, %v6790_v59  ;;  %v6796_v10 = vshrl.u32 %v8351_v45, %v6790_v59  ;;  %v6799_v44 = vshrl.u32 %v8352_v47, %v6790_v59 }
 0x631   : > { %v6649_v42 = vand.u32 2147483647, %v6648_v46  ;;  %v6802_v31 = vshrl.u32 %v8353_v49, %v6790_v59  ;;  %v6783_v21 = vor.u32 8388608, %v6782_v52  ;;  %v6795_v53 = vshll.u32 %v8350_v43, %v6789_v8 }
 0x632   : > { %v6529_v48 = vshll.u32 %v13367_v29, 30  ;;  %v6798_v61 = vshll.u32 %v8351_v45, %v6789_v8  ;;  %v6788_v37 = vshrl.u32 %v6787_v14, 5  ;;  %v6794_v24 = vor.u32 %v6793_v7, %v6792_v35 }
 0x633   : > { %v6652_v17 = vmul.f32 %v6651_v6, %v6649_v42  ;;  %v6801_v20 = vshll.u32 %v8352_v47, %v6789_v8  ;;  %v6797_v4 = vor.u32 %v6796_v10, %v6795_v53  ;;  %v6805_v30 = vshrl.u32 %v8354_v56, %v6790_v59 }
 0x634   : > { %v13378_v28 = vsub.s32 %v6526_v60, %v6529_v48  ;;  %v6800_v5 = vor.u32 %v6799_v44, %v6798_v61  ;;  %v6804_v18 = vshll.u32 %v8353_v49, %v6789_v8  ;;  %v13383_v9 = vadd.f32 %v13258_v12, %v621_v19 }
 0x635   : > { %v6653_v26 = vxor.u32 2147483648, %v6652_v17  ;;  %v6803_v23 = vor.u32 %v6802_v31, %v6801_v20  ;;  %v6791_v33 = vshrl.u32 %v8349_v39, %v6790_v59  ;;  %v6823_v16 = vshll.u32 %v6783_v21, 8 }
 0x636   : > { %v6532_v11 = vsub.s32 0, %v13378_v28  ;;  %v624_v14 = vmul.f32 %v13004_v22, %v545_v58  ;;  %v6806_v63 = vor.u32 %v6805_v30, %v6804_v18  ;;  %vm6807_vm10 = vcmp.lt.s32.totalorder %v6788_v37, 1 }
 0x637   : > { %v6654_v50 = vsel %vm6571_vm0, %v6653_v26, %v6652_v17  ;;  %vm6810_vm8 = vcmp.lt.s32.totalorder %v6788_v37, 4  ;;  %v6815_v55 = vsel %vm6807_vm10, %v6794_v24, %v6797_v4  ;;  %vm6808_vm9 = vcmp.lt.s32.totalorder %v6788_v37, 2 }
 0x638   : > { %v6657_v2 = vsel %vm13354_vm7, %v13144_v13, %v6654_v50  ;;  %v7664_v34 = vmin.u32 %v6532_v11, %v13378_v28  ;;  %v6812_v15 = vsel %vm6810_vm8, %v6800_v5, 2102212464  ;;  %vm6809_vm11 = vcmp.lt.s32.totalorder %v6788_v37, 3 }
 0x639   : > { %8231 = vcosq.f32 %v6657_v2  ;;  %v6816_v22 = vsel %vm6810_vm8, %v6803_v23, 920167782  ;;  %vm6468_vm12 = vcmp.lt.s32.totalorder %v13170_v57, 0  ;;  %v6811_v8 = vsel %vm6807_vm10, %v6791_v33, %v6794_v24 }
 0x63a   : > { %8233 = vsinq.f32 %v6657_v2  ;;  %v6534_v60 = vclz %v7664_v34  ;;  %v6817_v0 = vsel %vm6809_vm11, %v6800_v5, %v6816_v22  ;;  %v6813_v32 = vsel %vm6809_vm11, %v6797_v4, %v6812_v15  ;;  %v540_v22 = vpop.permute.xlu0 %539 }
 0x63b   : > { %v6818_v3 = vsel %vm6808_vm9, %v6815_v55, %v6817_v0  ;;  %v6819_v51 = vsel %vm6807_vm10, %v6797_v4, %v6800_v5  ;;  %v6820_v25 = vsel %vm6810_vm8, %v6806_v63, 1326507024  ;;  %v6662_v46 = vand.u32 3, %v6658_v62 }
 0x63c   : > { %v7665_v27 = vadd.s32 4294967294, %v6534_v60  ;;  %v6821_v41 = vsel %vm6809_vm11, %v6803_v23, %v6820_v25  ;;  %v13402_v52 = vmul.u32.u64.low %v6823_v16, %v6818_v3  ;;  %v13403_v59 = vmul.u32.u64.high %v6823_v16, %v6818_v3, %v13402_v52 }
 0x63d   : > { %vm13408_vm13 = vcmp.le.f32.partialorder %v6466_v1, 0.7853982  ;;  %v6822_v35 = vsel %vm6808_vm9, %v6819_v51, %v6821_v41  ;;  %v6675_v7 = vand.u32 2139095040, %v13383_v9  ;;  %v6814_v10 = vsel %vm6808_vm9, %v6811_v8, %v6813_v32  ;;  %v13449_v41 = vld [vmem:[%s13855_s1] ss:$0 sm:$0xff] }
 0x63e   : > { %vm7666_vm14 = vcmp.lt.s32.totalorder %v7665_v27, 0  ;;  %v13415_v42 = vmul.u32.u64.low %v6823_v16, %v6822_v35  ;;  %v13416_v6 = vmul.u32.u64.high %v6823_v16, %v6822_v35, %v13415_v42  ;;  %v6552_v31 = vsub.s32 4, %v13367_v29 }
 0x63f   : > { %v6537_v44 = vsel %vm7666_vm14, 0, %v7665_v27  ;;  %v6676_v62 = vshrl.u32 %v6675_v7, 23  ;;  %v13420_v48 = vadd.f32 %v13258_v12, %v624_v14  ;;  %vm6661_vm15 = vweird.f32 %v13144_v13 }
 0x640   : > { %v6522_v1 = vadd.s32 %v13319_v36, %v13326_v38  ;;  %v6538_v21 = vsub.s32 32, %v6537_v44  ;;  %v6542_v53 = vsub.s32 4294967266, %v6537_v44  ;;  %v6833_v61 = vadd.s32 1, %v13403_v59 }
 0x641   : > { %vm6663_vm0 = vcmp.lt.s32.totalorder %v6662_v46, 2  ;;  %v6830_v17 = vmul.u32 %v6823_v16, %v6814_v10  ;;  %v6672_v37 = vand.u32 2147483647, %v13383_v9  ;;  %v7671_v24 = vadd.s32 4294967169, %v6676_v62 }
 0x642   : > { %v6539_v20 = vshll.u32 %v13378_v28, %v6537_v44  ;;  %v6540_v58 = vshrl.u32 %v6522_v1, %v6538_v21  ;;  %v6543_v4 = vadd.s32 127, %v6542_v53  ;;  %vm6832_vm1 = vc.u32 %v13416_v6, %v13402_v52 }
 0x643   : > { %v8232_v5 = vpop.eup %8231  ;;  %v6553_v36 = vsel %vm6468_vm12, %v6552_v31, %v13367_v29  ;;  %v6834_v38 = vsel %vm6832_vm1, %v6833_v61, %v13403_v59  ;;  %v6682_v30 = vadd.s32 1, %v7671_v24  ;;  %v6984_v26 = vand.u32 2139095040, %v13420_v48 }
 0x644   : > { %v8234_v23 = vpop.eup %8233  ;;  %v6668_v18 = vxor.u32 2147483648, %v8232_v5  ;;  %v6541_v11 = vor.u32 %v6540_v58, %v6539_v20  ;;  %v6544_v33 = vshll.u32 %v6543_v4, 23  ;;  %v6835_v28 = vadd.s32 %v6834_v38, %v6830_v17 }
 0x645   : > { %vm6664_vm2 = vcmp.eq.s32.totalorder %v6662_v46, 0  ;;  %v6665_v16 = vxor.u32 2147483648, %v8234_v23  ;;  %vm6667_vm3 = vcmp.eq.s32.totalorder %v6662_v46, 2  ;;  %vm6683_vm5 = vcmp.gt.s32.totalorder %v6682_v30, 0 }
 0x646   : > { %v6669_v14 = vsel %vm6667_vm3, %v6668_v18, %v8234_v23  ;;  %v6545_v50 = vor.u32 4788187, %v6544_v33  ;;  %v6555_v29 = vsel %vm13408_vm13, 0, %v6553_v36  ;;  %v6836_v63 = vadd.s32 536870912, %v6835_v28 }
 0x647   : > { %v6666_v2 = vsel %vm6664_vm2, %v8232_v5, %v6665_v16  ;;  %v6679_v34 = vand.u32 8388607, %v6672_v37  ;;  %v6684_v15 = vsel %vm6683_vm5, %v6682_v30, 0  ;;  %v6985_v55 = vshrl.u32 %v6984_v26, 23 }
 0x648   : > { %v6670_v60 = vsel %vm6663_vm0, %v6666_v2, %v6669_v14  ;;  %v6546_v8 = vand.u32 2147483647, %v6545_v50  ;;  %v6548_v0 = vcvt.s32.f32 %v6541_v11  ;;  %v13440_v32 = vshrl.u32 %v6836_v63, 30 }
 0x649   : > { %v6671_v3 = vsel %vm6661_vm15, nan, %v6670_v60  ;;  %v6686_v51 = vand.u32 31, %v6684_v15  ;;  %v13452_v59 = vmul.f32 %v13449_v41, %v540_v22  ;;  %v13454_v46 = vand.u32 3, %v6555_v29 }
 0x64a   : > { %7347 = vst [vmem:[%s8782_s8 + $0x1c8] sm:$0xff] %v6671_v3  ;;  %v6549_v25 = vmul.f32 %v6548_v0, %v6546_v8  ;;  %v6838_v27 = vshll.u32 %v13440_v32, 30  ;;  %v6680_v35 = vor.u32 8388608, %v6679_v34  ;;  %v7683_v10 = vadd.s32 4294967169, %v6985_v55 }
 0x64b   : > { %v6687_v7 = vsub.s32 32, %v6686_v51  ;;  %v6685_v44 = vshrl.u32 %v6684_v15, 5  ;;  %v6689_v31 = vshll.u32 %v8349_v39, %v6686_v51  ;;  %v6692_v1 = vshll.u32 %v8350_v43, %v6686_v51 }
 0x64c   : > { %v6550_v13 = vxor.u32 2147483648, %v6549_v25  ;;  %v13456_v42 = vsub.s32 %v6835_v28, %v6838_v27  ;;  %v6695_v53 = vshll.u32 %v8351_v45, %v6686_v51  ;;  %v6698_v20 = vshll.u32 %v8352_v47, %v6686_v51 }
 0x64d   : > { %v6690_v62 = vshrl.u32 %v8350_v43, %v6687_v7  ;;  %v6693_v21 = vshrl.u32 %v8351_v45, %v6687_v7  ;;  %v6696_v24 = vshrl.u32 %v8352_v47, %v6687_v7  ;;  %v6699_v36 = vshrl.u32 %v8353_v49, %v6687_v7 }
 0x64e   : > { %v6551_v61 = vsel %vm6468_vm12, %v6550_v13, %v6549_v25  ;;  %v6841_v17 = vsub.s32 0, %v13456_v42  ;;  %v13473_v30 = vshll.u32 %v6680_v35, 8  ;;  %v6991_v26 = vadd.s32 1, %v7683_v10 }
 0x64f   : > { %v6554_v58 = vsel %vm13408_vm13, %v13170_v57, %v6551_v61  ;;  %v6691_v4 = vor.u32 %v6690_v62, %v6689_v31  ;;  %v6694_v5 = vor.u32 %v6693_v21, %v6692_v1  ;;  %v6697_v23 = vor.u32 %v6696_v24, %v6695_v53 }
 0x650   : > { %8235 = vcosq.f32 %v6554_v58  ;;  %v7676_v38 = vmin.u32 %v6841_v17, %v13456_v42  ;;  %v6700_v18 = vor.u32 %v6699_v36, %v6698_v20  ;;  %vm6704_vm4 = vcmp.lt.s32.totalorder %v6685_v44, 1 }
 0x651   : > { %8237 = vsinq.f32 %v6554_v58  ;;  %v6688_v33 = vshrl.u32 %v8349_v39, %v6687_v7  ;;  %v6701_v19 = vshll.u32 %v8353_v49, %v6686_v51  ;;  %v6702_v28 = vshrl.u32 %v8354_v56, %v6687_v7 }
 0x652   : > { %v6843_v11 = vclz %v7676_v38  ;;  %vm6705_vm6 = vcmp.lt.s32.totalorder %v6685_v44, 2  ;;  %vm6706_vm7 = vcmp.lt.s32.totalorder %v6685_v44, 3  ;;  %vm6707_vm10 = vcmp.lt.s32.totalorder %v6685_v44, 4 }
 0x653   : > { %v6712_v16 = vsel %vm6704_vm4, %v6691_v4, %v6694_v5  ;;  %v6703_v50 = vor.u32 %v6702_v28, %v6701_v19  ;;  %v6709_v29 = vsel %vm6707_vm10, %v6697_v23, 2102212464  ;;  %v6713_v63 = vsel %vm6707_vm10, %v6700_v18, 920167782 }
 0x654   : > { %v7677_v14 = vadd.s32 4294967294, %v6843_v11  ;;  %vm6561_vm8 = vcmp.eq.s32.totalorder %v13454_v46, 0  ;;  %v6708_v2 = vsel %vm6704_vm4, %v6688_v33, %v6691_v4  ;;  %v6710_v34 = vsel %vm6706_vm7, %v6694_v5, %v6709_v29 }
 0x655   : > { %v6714_v15 = vsel %vm6706_vm7, %v6697_v23, %v6713_v63  ;;  %v6716_v55 = vsel %vm6704_vm4, %v6694_v5, %v6697_v23  ;;  %vm6777_vm9 = vcmp.lt.s32.totalorder %v13261_v54, 0  ;;  %v6717_v60 = vsel %vm6707_vm10, %v6703_v50, 1326507024 }
 0x656   : > { %vm7678_vm11 = vcmp.lt.s32.totalorder %v7677_v14, 0  ;;  %v6715_v22 = vsel %vm6705_vm6, %v6712_v16, %v6714_v15  ;;  %vm6992_vm12 = vcmp.gt.s32.totalorder %v6991_v26, 0  ;;  %vm6558_vm13 = vweird.f32 %v13170_v57 }
 0x657   : > { %v6846_v8 = vsel %vm7678_vm11, 0, %v7677_v14  ;;  %v6718_v0 = vsel %vm6706_vm7, %v6700_v18, %v6717_v60  ;;  %v13489_v3 = vmul.u32.u64.low %v13473_v30, %v6715_v22  ;;  %v13490_v51 = vmul.u32.u64.high %v13473_v30, %v6715_v22, %v13489_v3 }
 0x658   : > { %v6831_v25 = vadd.s32 %v13402_v52, %v13416_v6  ;;  %v6847_v27 = vsub.s32 32, %v6846_v8  ;;  %v6851_v35 = vsub.s32 4294967266, %v6846_v8  ;;  %v6719_v7 = vsel %vm6705_vm6, %v6716_v55, %v6718_v0 }
 0x659   : > { %v6711_v10 = vsel %vm6705_vm6, %v6708_v2, %v6710_v34  ;;  %v13498_v13 = vmul.u32.u64.low %v13473_v30, %v6719_v7  ;;  %v13499_v31 = vmul.u32.u64.high %v13473_v30, %v6719_v7, %v13498_v13  ;;  %v6993_v62 = vsel %vm6992_vm12, %v6991_v26, 0 }
 0x65a   : > { %v8236_v1 = vpop.eup %8235  ;;  %v6848_v21 = vshll.u32 %v13456_v42, %v6846_v8  ;;  %v6849_v53 = vshrl.u32 %v6831_v25, %v6847_v27  ;;  %v6852_v61 = vadd.s32 127, %v6851_v35  ;;  %v6995_v17 = vand.u32 31, %v6993_v62 }
 0x65b   : > { %v8238_v24 = vpop.eup %8237  ;;  %v6565_v20 = vxor.u32 2147483648, %v8236_v1  ;;  %v6861_v52 = vsub.s32 4, %v13440_v32  ;;  %v6730_v6 = vadd.s32 1, %v13490_v51  ;;  %v6981_v44 = vand.u32 2147483647, %v13420_v48 }
 0x65c   : > { %v6562_v58 = vxor.u32 2147483648, %v8238_v24  ;;  %vm6564_vm14 = vcmp.eq.s32.totalorder %v13454_v46, 2  ;;  %v6850_v4 = vor.u32 %v6849_v53, %v6848_v21  ;;  %v6853_v5 = vshll.u32 %v6852_v61, 23 }
 0x65d   : > { %v6566_v36 = vsel %vm6564_vm14, %v6565_v20, %v8238_v24  ;;  %v6727_v42 = vmul.u32 %v13473_v30, %v6711_v10  ;;  %vm6729_vm15 = vc.u32 %v13499_v31, %v13489_v3  ;;  %v6996_v38 = vsub.s32 32, %v6995_v17 }
 0x65e   : > { %vm6560_vm0 = vcmp.lt.s32.totalorder %v13454_v46, 2  ;;  %v6563_v26 = vsel %vm6561_vm8, %v8236_v1, %v6562_v58  ;;  %v6854_v23 = vor.u32 4788187, %v6853_v5  ;;  %v6731_v18 = vsel %vm6729_vm15, %v6730_v6, %v13490_v51 }
 0x65f   : > { %v6567_v11 = vsel %vm6560_vm0, %v6563_v26, %v6566_v36  ;;  %v6862_v33 = vsel %vm6777_vm9, %v6861_v52, %v13440_v32  ;;  %v6732_v19 = vadd.s32 %v6731_v18, %v6727_v42  ;;  %v6988_v30 = vand.u32 8388607, %v6981_v44 }
 0x660   : > { %v6568_v28 = vsel %vm6558_vm13, nan, %v6567_v11  ;;  %v6855_v16 = vand.u32 2147483647, %v6854_v23  ;;  %v6857_v14 = vcvt.s32.f32 %v6850_v4  ;;  %v6994_v50 = vshrl.u32 %v6993_v62, 5 }
 0x661   : > { %7346 = vst [vmem:[%s8782_s8 + $0x1c0] sm:$0xff] %v6568_v28  ;;  %v6733_v46 = vadd.s32 536870912, %v6732_v19  ;;  %v6999_v29 = vshrl.u32 %v8350_v43, %v6996_v38  ;;  %v7002_v63 = vshrl.u32 %v8351_v45, %v6996_v38  ;;  %v7005_v2 = vshrl.u32 %v8352_v47, %v6996_v38 }
 0x662   : > { %v6858_v34 = vmul.f32 %v6857_v14, %v6855_v16  ;;  %v6998_v32 = vshll.u32 %v8349_v39, %v6995_v17  ;;  %v7007_v15 = vshll.u32 %v8352_v47, %v6995_v17  ;;  %v7008_v55 = vshrl.u32 %v8353_v49, %v6996_v38 }
 0x663   : > { %v13527_v57 = vshrl.u32 %v6733_v46, 30  ;;  %v7001_v22 = vshll.u32 %v8350_v43, %v6995_v17  ;;  %v7004_v60 = vshll.u32 %v8351_v45, %v6995_v17  ;;  %v7011_v8 = vshrl.u32 %v8354_v56, %v6996_v38 }
 0x664   : > { %vm13534_vm1 = vcmp.le.f32.partialorder %v6775_v40, 0.7853982  ;;  %v6859_v51 = vxor.u32 2147483648, %v6858_v34  ;;  %v7009_v25 = vor.u32 %v7008_v55, %v7007_v15  ;;  %v7010_v27 = vshll.u32 %v8353_v49, %v6995_v17 }
 0x665   : > { %v6735_v35 = vshll.u32 %v13527_v57, 30  ;;  %v7000_v7 = vor.u32 %v6999_v29, %v6998_v32  ;;  %v7003_v10 = vor.u32 %v7002_v63, %v7001_v22  ;;  %v7006_v13 = vor.u32 %v7005_v2, %v7004_v60 }
 0x666   : > { %v6860_v62 = vsel %vm6777_vm9, %v6859_v51, %v6858_v34  ;;  %v6864_v1 = vsel %vm13534_vm1, 0, %v6862_v33  ;;  %v6989_v21 = vor.u32 8388608, %v6988_v30  ;;  %v7012_v40 = vor.u32 %v7011_v8, %v7010_v27 }
 0x667   : > { %v6863_v53 = vsel %vm13534_vm1, %v13261_v54, %v6860_v62  ;;  %v13547_v61 = vsub.s32 %v6732_v19, %v6735_v35  ;;  %vm7016_vm2 = vcmp.lt.s32.totalorder %v6994_v50, 4  ;;  %v13551_v17 = vadd.f32 %v13258_v12, %v13452_v59  ;;  %v555_v19 = vpop.permute.xlu1 %554 }
 0x668   : > { %8239 = vcosq.f32 %v6863_v53  ;;  %vm7013_vm3 = vcmp.lt.s32.totalorder %v6994_v50, 1  ;;  %vm7015_vm5 = vcmp.lt.s32.totalorder %v6994_v50, 3  ;;  %v7022_v24 = vsel %vm7016_vm2, %v7009_v25, 920167782 }
 0x669   : > { %8241 = vsinq.f32 %v6863_v53  ;;  %v6738_v20 = vsub.s32 0, %v13547_v61  ;;  %v7018_v52 = vsel %vm7016_vm2, %v7006_v13, 2102212464  ;;  %v7021_v6 = vsel %vm7013_vm3, %v7000_v7, %v7003_v10 }
 0x66a   : > { %v6997_v58 = vshrl.u32 %v8349_v39, %v6996_v38  ;;  %v7023_v4 = vsel %vm7015_vm5, %v7006_v13, %v7022_v24  ;;  %v7025_v5 = vsel %vm7013_vm3, %v7003_v10, %v7006_v13  ;;  %v7026_v36 = vsel %vm7016_vm2, %v7012_v40, 1326507024 }
 0x66b   : > { %v6868_v42 = vand.u32 3, %v6864_v1  ;;  %v7672_v26 = vmin.u32 %v6738_v20, %v13547_v61  ;;  %vm7014_vm4 = vcmp.lt.s32.totalorder %v6994_v50, 2  ;;  %v7029_v59 = vshll.u32 %v6989_v21, 8 }
 0x66c   : > { %v7017_v23 = vsel %vm7013_vm3, %v6997_v58, %v7000_v7  ;;  %v7019_v18 = vsel %vm7015_vm5, %v7003_v10, %v7018_v52  ;;  %v7024_v11 = vsel %vm7014_vm4, %v7021_v6, %v7023_v4  ;;  %v7027_v33 = vsel %vm7015_vm5, %v7009_v25, %v7026_v36 }
 0x66d   : > { %v6740_v30 = vclz %v7672_v26  ;;  %v7028_v28 = vsel %vm7014_vm4, %v7025_v5, %v7027_v33  ;;  %v13559_v16 = vmul.u32.u64.low %v7029_v59, %v7024_v11  ;;  %v13560_v38 = vmul.u32.u64.high %v7029_v59, %v7024_v11, %v13559_v16 }
 0x66e   : > { %v13563_v14 = vmul.u32.u64.low %v7029_v59, %v7028_v28  ;;  %v13564_v46 = vmul.u32.u64.high %v7029_v59, %v7028_v28, %v13563_v14  ;;  %v6881_v29 = vand.u32 2139095040, %v13551_v17  ;;  %vm6867_vm6 = vweird.f32 %v13261_v54  ;;  %v550_v54 = vpop.permute.xlu0 %549 }
 0x66f   : > { %v7673_v63 = vadd.s32 4294967294, %v6740_v30  ;;  %v7020_v2 = vsel %vm7014_vm4, %v7017_v23, %v7019_v18  ;;  %v6878_v34 = vand.u32 2147483647, %v13551_v17  ;;  %v626_v50 = vmul.f32 %v13449_v41, %v555_v19 }
 0x670   : > { %vm6870_vm7 = vcmp.eq.s32.totalorder %v6868_v42, 0  ;;  %vm6873_vm10 = vcmp.eq.s32.totalorder %v6868_v42, 2  ;;  %vm6674_vm8 = vcmp.lt.s32.totalorder %v13383_v9, 0  ;;  %v6882_v32 = vshrl.u32 %v6881_v29, 23 }
 0x671   : > { %v6728_v15 = vadd.s32 %v13489_v3, %v13499_v31  ;;  %vm7674_vm9 = vcmp.lt.s32.totalorder %v7673_v63, 0  ;;  %v6758_v55 = vsub.s32 4, %v13527_v57  ;;  %v7039_v22 = vadd.s32 1, %v13560_v38 }
 0x672   : > { %v8240_v60 = vpop.eup %8239  ;;  %v6743_v8 = vsel %vm7674_vm9, 0, %v7673_v63  ;;  %v7036_v0 = vmul.u32 %v7029_v59, %v7020_v2  ;;  %vm7038_vm11 = vc.u32 %v13564_v46, %v13559_v16  ;;  %v7679_v51 = vadd.s32 4294967169, %v6882_v32 }
 0x673   : > { %v8242_v25 = vpop.eup %8241  ;;  %v6874_v27 = vxor.u32 2147483648, %v8240_v60  ;;  %v6744_v35 = vsub.s32 32, %v6743_v8  ;;  %v6748_v7 = vsub.s32 4294967266, %v6743_v8  ;;  %v6885_v10 = vand.u32 8388607, %v6878_v34 }
 0x674   : > { %v6871_v3 = vxor.u32 2147483648, %v8242_v25  ;;  %v6745_v31 = vshll.u32 %v13547_v61, %v6743_v8  ;;  %v7040_v13 = vsel %vm7038_vm11, %v7039_v22, %v13560_v38  ;;  %v6888_v62 = vadd.s32 1, %v7679_v51 }
 0x675   : > { %v6875_v1 = vsel %vm6873_vm10, %v6874_v27, %v8242_v25  ;;  %v6746_v21 = vshrl.u32 %v6728_v15, %v6744_v35  ;;  %v6749_v40 = vadd.s32 127, %v6748_v7  ;;  %v7041_v53 = vadd.s32 %v7040_v13, %v7036_v0 }
 0x676   : > { %vm6869_vm12 = vcmp.lt.s32.totalorder %v6868_v42, 2  ;;  %v6872_v24 = vsel %vm6870_vm7, %v8240_v60, %v6871_v3  ;;  %v6759_v20 = vsel %vm6674_vm8, %v6758_v55, %v13527_v57  ;;  %vm6889_vm13 = vcmp.gt.s32.totalorder %v6888_v62, 0 }
 0x677   : > { %v6876_v52 = vsel %vm6869_vm12, %v6872_v24, %v6875_v1  ;;  %v6747_v6 = vor.u32 %v6746_v21, %v6745_v31  ;;  %v6750_v61 = vshll.u32 %v6749_v40, 23  ;;  %v7042_v58 = vadd.s32 536870912, %v7041_v53 }
 0x678   : > { %v6877_v4 = vsel %vm6867_vm6, nan, %v6876_v52  ;;  %vm13590_vm14 = vcmp.le.f32.partialorder %v6672_v37, 0.7853982  ;;  %v6890_v36 = vsel %vm6889_vm13, %v6888_v62, 0  ;;  %v13595_v42 = vadd.f32 %v13258_v12, %v626_v50 }
 0x679   : > { %7349 = vst [vmem:[%s8782_s8 + $0x1d8] sm:$0xff] %v6877_v4  ;;  %v6751_v57 = vor.u32 4788187, %v6750_v61  ;;  %v6761_v26 = vsel %vm13590_vm14, 0, %v6759_v20  ;;  %v13600_v59 = vshrl.u32 %v7042_v58, 30  ;;  %v6886_v23 = vor.u32 8388608, %v6885_v10 }
 0x67a   : > { %v6892_v18 = vand.u32 31, %v6890_v36  ;;  %v6754_v33 = vcvt.s32.f32 %v6747_v6  ;;  %v13603_v19 = vand.u32 3, %v6761_v26  ;;  %v7187_v12 = vand.u32 2147483647, %v13595_v42 }
 0x67b   : > { %v6752_v11 = vand.u32 2147483647, %v6751_v57  ;;  %v7044_v37 = vshll.u32 %v13600_v59, 30  ;;  %v13607_v28 = vmul.f32 %v13449_v41, %v550_v54  ;;  %v7037_v14 = vadd.s32 %v13559_v16, %v13564_v46 }
 0x67c   : > { %v6893_v30 = vsub.s32 32, %v6892_v18  ;;  %v13613_v63 = vshll.u32 %v6886_v23, 8  ;;  %v6895_v2 = vshll.u32 %v8349_v39, %v6892_v18  ;;  %v7190_v15 = vand.u32 2139095040, %v13595_v42 }
 0x67d   : > { %v6755_v38 = vmul.f32 %v6754_v33, %v6752_v11  ;;  %v13611_v29 = vsub.s32 %v7041_v53, %v7044_v37  ;;  %v6898_v22 = vshll.u32 %v8350_v43, %v6892_v18  ;;  %v6891_v16 = vshrl.u32 %v6890_v36, 5 }
 0x67e   : > { %v6896_v50 = vshrl.u32 %v8350_v43, %v6893_v30  ;;  %v6899_v32 = vshrl.u32 %v8351_v45, %v6893_v30  ;;  %v6902_v60 = vshrl.u32 %v8352_v47, %v6893_v30  ;;  %v6901_v46 = vshll.u32 %v8351_v45, %v6892_v18 }
 0x67f   : > { %v6756_v55 = vxor.u32 2147483648, %v6755_v38  ;;  %v7047_v41 = vsub.s32 0, %v13611_v29  ;;  %v6904_v8 = vshll.u32 %v8352_v47, %v6892_v18  ;;  %v6905_v0 = vshrl.u32 %v8353_v49, %v6893_v30 }
 0x680   : > { %v6897_v27 = vor.u32 %v6896_v50, %v6895_v2  ;;  %v6900_v35 = vor.u32 %v6899_v32, %v6898_v22  ;;  %v6903_v10 = vor.u32 %v6902_v60, %v6901_v46  ;;  %v7191_v31 = vshrl.u32 %v7190_v15, 23 }
 0x681   : > { %v6757_v51 = vsel %vm6674_vm8, %v6756_v55, %v6755_v38  ;;  %v7684_v25 = vmin.u32 %v7047_v41, %v13611_v29  ;;  %v6906_v3 = vor.u32 %v6905_v0, %v6904_v8  ;;  %v6907_v62 = vshll.u32 %v8353_v49, %v6892_v18 }
 0x682   : > { %v6760_v7 = vsel %vm13590_vm14, %v13383_v9, %v6757_v51  ;;  %v6908_v1 = vshrl.u32 %v8354_v56, %v6893_v30  ;;  %v6894_v21 = vshrl.u32 %v8349_v39, %v6893_v30  ;;  %vm6910_vm15 = vcmp.lt.s32.totalorder %v6891_v16, 1 }
 0x683   : > { %8243 = vcosq.f32 %v6760_v7  ;;  %v7049_v13 = vclz %v7684_v25  ;;  %vm6911_vm0 = vcmp.lt.s32.totalorder %v6891_v16, 2  ;;  %vm6913_vm1 = vcmp.lt.s32.totalorder %v6891_v16, 4 }
 0x684   : > { %8245 = vsinq.f32 %v6760_v7  ;;  %v6909_v53 = vor.u32 %v6908_v1, %v6907_v62  ;;  %v6918_v24 = vsel %vm6910_vm15, %v6897_v27, %v6900_v35  ;;  %vm6912_vm2 = vcmp.lt.s32.totalorder %v6891_v16, 3 }
 0x685   : > { %v7685_v40 = vadd.s32 4294967294, %v7049_v13  ;;  %v6915_v20 = vsel %vm6913_vm1, %v6903_v10, 2102212464  ;;  %v6919_v52 = vsel %vm6913_vm1, %v6906_v3, 920167782  ;;  %v6922_v6 = vsel %vm6910_vm15, %v6900_v35, %v6903_v10 }
 0x686   : > { %v6920_v61 = vsel %vm6912_vm2, %v6903_v10, %v6919_v52  ;;  %v6923_v58 = vsel %vm6913_vm1, %v6909_v53, 1326507024  ;;  %v7691_v4 = vadd.s32 4294967169, %v7191_v31  ;;  %v6914_v36 = vsel %vm6910_vm15, %v6894_v21, %v6897_v27 }
 0x687   : > { %vm7686_vm3 = vcmp.lt.s32.totalorder %v7685_v40, 0  ;;  %v6921_v57 = vsel %vm6911_vm0, %v6918_v24, %v6920_v61  ;;  %v6924_v26 = vsel %vm6912_vm2, %v6906_v3, %v6923_v58  ;;  %vm6983_vm5 = vcmp.lt.s32.totalorder %v13420_v48, 0  ;;  %v8283_v3 = vld [vmem:[%s13856_s2] ss:$0 sm:$0xff] }
 0x688   : > { %v7052_v5 = vsel %vm7686_vm3, 0, %v7685_v40  ;;  %v6916_v18 = vsel %vm6912_vm2, %v6900_v35, %v6915_v20  ;;  %v6925_v11 = vsel %vm6911_vm0, %v6922_v6, %v6924_v26  ;;  %vm6764_vm4 = vweird.f32 %v13383_v9 }
 0x689   : > { %v7053_v23 = vsub.s32 32, %v7052_v5  ;;  %v7057_v54 = vsub.s32 4294967266, %v7052_v5  ;;  %v13639_v33 = vmul.u32.u64.low %v13613_v63, %v6925_v11  ;;  %v13640_v37 = vmul.u32.u64.high %v13613_v63, %v6925_v11, %v13639_v33 }
 0x68a   : > { %v13643_v30 = vmul.u32.u64.low %v13613_v63, %v6921_v57  ;;  %v13644_v38 = vmul.u32.u64.high %v13613_v63, %v6921_v57, %v13643_v30  ;;  %v7054_v2 = vshll.u32 %v13611_v29, %v7052_v5  ;;  %v7197_v15 = vadd.s32 1, %v7691_v4 }
 0x68b   : > { %v7055_v50 = vshrl.u32 %v7037_v14, %v7053_v23  ;;  %v7058_v32 = vadd.s32 127, %v7057_v54  ;;  %vm6766_vm6 = vcmp.lt.s32.totalorder %v13603_v19, 2  ;;  %vm6767_vm7 = vcmp.eq.s32.totalorder %v13603_v19, 0 }
 0x68c   : > { %vm6770_vm10 = vcmp.eq.s32.totalorder %v13603_v19, 2  ;;  %v6917_v55 = vsel %vm6911_vm0, %v6914_v36, %v6916_v18  ;;  %vm13654_vm8 = vcmp.le.f32.partialorder %v6981_v44, 0.7853982  ;;  %v7194_v14 = vand.u32 8388607, %v7187_v12 }
 0x68d   : > { %v8244_v41 = vpop.eup %8243  ;;  %v7056_v60 = vor.u32 %v7055_v50, %v7054_v2  ;;  %v7059_v29 = vshll.u32 %v7058_v32, 23  ;;  %vm7198_vm9 = vcmp.gt.s32.totalorder %v7197_v15, 0  ;;  %v7067_v0 = vsub.s32 4, %v13600_v59 }
 0x68e   : > { %v8246_v46 = vpop.eup %8245  ;;  %v6771_v8 = vxor.u32 2147483648, %v8244_v41  ;;  %vm6935_vm11 = vc.u32 %v13640_v37, %v13643_v30  ;;  %v6936_v16 = vadd.s32 1, %v13644_v38  ;;  %v6933_v25 = vmul.u32 %v13613_v63, %v6917_v55 }
 0x68f   : > { %v6768_v51 = vxor.u32 2147483648, %v8246_v46  ;;  %v7060_v44 = vor.u32 4788187, %v7059_v29  ;;  %v7199_v27 = vsel %vm7198_vm9, %v7197_v15, 0  ;;  %v13672_v31 = vadd.f32 %v8283_v3, %v13607_v28 }
 0x690   : > { %v6772_v35 = vsel %vm6770_vm10, %v6771_v8, %v8246_v46  ;;  %v6937_v7 = vsel %vm6935_vm11, %v6936_v16, %v13644_v38  ;;  %v7201_v10 = vand.u32 31, %v7199_v27  ;;  %v7063_v63 = vcvt.s32.f32 %v7056_v60 }
 0x691   : > { %v6769_v13 = vsel %vm6767_vm7, %v8244_v41, %v6768_v51  ;;  %v7061_v62 = vand.u32 2147483647, %v7060_v44  ;;  %v6938_v1 = vadd.s32 %v6937_v7, %v6933_v25  ;;  %v7068_v40 = vsel %vm6983_vm5, %v7067_v0, %v13600_v59 }
 0x692   : > { %v6773_v21 = vsel %vm6766_vm6, %v6769_v13, %v6772_v35  ;;  %v7195_v53 = vor.u32 8388608, %v7194_v14  ;;  %v7202_v24 = vsub.s32 32, %v7201_v10  ;;  %v7204_v6 = vshll.u32 %v8349_v39, %v7201_v10 }
 0x693   : > { %v6774_v20 = vsel %vm6764_vm4, nan, %v6773_v21  ;;  %v7064_v28 = vmul.f32 %v7063_v63, %v7061_v62  ;;  %v6939_v52 = vadd.s32 536870912, %v6938_v1  ;;  %v7207_v58 = vshll.u32 %v8350_v43, %v7201_v10 }
 0x694   : > { %7348 = vst [vmem:[%s8782_s8 + $0x1d0] sm:$0xff] %v6774_v20  ;;  %v7205_v61 = vshrl.u32 %v8350_v43, %v7202_v24  ;;  %v7208_v19 = vshrl.u32 %v8351_v45, %v7202_v24  ;;  %v7211_v4 = vshrl.u32 %v8352_v47, %v7202_v24  ;;  %v7210_v36 = vshll.u32 %v8351_v45, %v7201_v10 }
 0x695   : > { %v7065_v5 = vxor.u32 2147483648, %v7064_v28  ;;  %v13689_v59 = vshrl.u32 %v6939_v52, 30  ;;  %v7214_v9 = vshrl.u32 %v8353_v49, %v7202_v24  ;;  %v7070_v57 = vsel %vm13654_vm8, 0, %v7068_v40 }
 0x696   : > { %v7200_v26 = vshrl.u32 %v7199_v27, 5  ;;  %v7206_v23 = vor.u32 %v7205_v61, %v7204_v6  ;;  %v7213_v54 = vshll.u32 %v8352_v47, %v7201_v10  ;;  %v7209_v33 = vor.u32 %v7208_v19, %v7207_v58 }
 0x697   : > { %v7066_v18 = vsel %vm6983_vm5, %v7065_v5, %v7064_v28  ;;  %v6941_v11 = vshll.u32 %v13689_v59, 30  ;;  %v7212_v38 = vor.u32 %v7211_v4, %v7210_v36  ;;  %v7216_v32 = vshll.u32 %v8353_v49, %v7201_v10 }
 0x698   : > { %v7069_v2 = vsel %vm13654_vm8, %v13420_v48, %v7066_v18  ;;  %v7215_v50 = vor.u32 %v7214_v9, %v7213_v54  ;;  %v7217_v15 = vshrl.u32 %v8354_v56, %v7202_v24  ;;  %v7074_v41 = vand.u32 3, %v7070_v57 }
 0x699   : > { %8247 = vcosq.f32 %v7069_v2  ;;  %v13704_v55 = vsub.s32 %v6938_v1, %v6941_v11  ;;  %v7087_v29 = vand.u32 2139095040, %v13672_v31  ;;  %vm7219_vm12 = vcmp.lt.s32.totalorder %v7200_v26, 1 }
 0x69a   : > { %8249 = vsinq.f32 %v7069_v2  ;;  %v7218_v60 = vor.u32 %v7217_v15, %v7216_v32  ;;  %vm7222_vm13 = vcmp.lt.s32.totalorder %v7200_v26, 4  ;;  %v7235_v46 = vshll.u32 %v7195_v53, 8 }
 0x69b   : > { %v6944_v14 = vsub.s32 0, %v13704_v55  ;;  %v7203_v22 = vshrl.u32 %v8349_v39, %v7202_v24  ;;  %v7224_v8 = vsel %vm7222_vm13, %v7212_v38, 2102212464  ;;  %v7227_v0 = vsel %vm7219_vm12, %v7206_v23, %v7209_v33 }
 0x69c   : > { %v7228_v16 = vsel %vm7222_vm13, %v7215_v50, 920167782  ;;  %vm7220_vm14 = vcmp.lt.s32.totalorder %v7200_v26, 2  ;;  %vm7221_vm15 = vcmp.lt.s32.totalorder %v7200_v26, 3  ;;  %v7231_v44 = vsel %vm7219_vm12, %v7209_v33, %v7212_v38 }
 0x69d   : > { %v7680_v51 = vmin.u32 %v6944_v14, %v13704_v55  ;;  %v7223_v25 = vsel %vm7219_vm12, %v7203_v22, %v7206_v23  ;;  %v7229_v27 = vsel %vm7221_vm15, %v7212_v38, %v7228_v16  ;;  %v7232_v35 = vsel %vm7222_vm13, %v7218_v60, 1326507024 }
 0x69e   : > { %v7088_v7 = vshrl.u32 %v7087_v29, 23  ;;  %v7225_v3 = vsel %vm7221_vm15, %v7209_v33, %v7224_v8  ;;  %v7230_v13 = vsel %vm7220_vm14, %v7227_v0, %v7229_v27  ;;  %v7233_v62 = vsel %vm7221_vm15, %v7215_v50, %v7232_v35 }
 0x69f   : > { %v6946_v10 = vclz %v7680_v51  ;;  %v7234_v63 = vsel %vm7220_vm14, %v7231_v44, %v7233_v62  ;;  %v13712_v1 = vmul.u32.u64.low %v7235_v46, %v7230_v13  ;;  %v13713_v21 = vmul.u32.u64.high %v7235_v46, %v7230_v13, %v13712_v1 }
 0x6a0   : > { %v7687_v40 = vadd.s32 4294967169, %v7088_v7  ;;  %v13716_v24 = vmul.u32.u64.low %v7235_v46, %v7234_v63  ;;  %v13717_v20 = vmul.u32.u64.high %v7235_v46, %v7234_v63, %v13716_v24  ;;  %vm7075_vm0 = vcmp.lt.s32.totalorder %v7074_v41, 2 }
 0x6a1   : > { %v7681_v53 = vadd.s32 4294967294, %v6946_v10  ;;  %vm7076_vm1 = vcmp.eq.s32.totalorder %v7074_v41, 0  ;;  %v7226_v28 = vsel %vm7220_vm14, %v7223_v25, %v7225_v3  ;;  %vm7079_vm2 = vcmp.eq.s32.totalorder %v7074_v41, 2 }
 0x6a2   : > { %v7094_v52 = vadd.s32 1, %v7687_v40  ;;  %v6934_v61 = vadd.s32 %v13643_v30, %v13640_v37  ;;  %v7084_v58 = vand.u32 2147483647, %v13672_v31  ;;  %v7245_v36 = vadd.s32 1, %v13713_v21 }
 0x6a3   : > { %v8248_v6 = vpop.eup %8247  ;;  %vm7682_vm3 = vcmp.lt.s32.totalorder %v7681_v53, 0  ;;  %v7242_v26 = vmul.u32 %v7235_v46, %v7226_v28  ;;  %vm7244_vm4 = vc.u32 %v13717_v20, %v13712_v1  ;;  %vm7073_vm6 = vweird.f32 %v13420_v48 }
 0x6a4   : > { %v8250_v19 = vpop.eup %8249  ;;  %v7080_v4 = vxor.u32 2147483648, %v8248_v6  ;;  %v6949_v5 = vsel %vm7682_vm3, 0, %v7681_v53  ;;  %vm7095_vm5 = vcmp.gt.s32.totalorder %v7094_v52, 0  ;;  %v7246_v38 = vsel %vm7244_vm4, %v7245_v36, %v13713_v21 }
 0x6a5   : > { %v7077_v9 = vxor.u32 2147483648, %v8250_v19  ;;  %v6950_v57 = vsub.s32 32, %v6949_v5  ;;  %v6954_v23 = vsub.s32 4294967266, %v6949_v5  ;;  %v6951_v18 = vshll.u32 %v13704_v55, %v6949_v5 }
 0x6a6   : > { %v7081_v54 = vsel %vm7079_vm2, %v7080_v4, %v8250_v19  ;;  %v7096_v37 = vsel %vm7095_vm5, %v7094_v52, 0  ;;  %v7247_v50 = vadd.s32 %v7246_v38, %v7242_v26  ;;  %v6964_v55 = vsub.s32 4, %v13689_v59 }
 0x6a7   : > { %v7078_v30 = vsel %vm7076_vm1, %v8248_v6, %v7077_v9  ;;  %v6952_v11 = vshrl.u32 %v6934_v61, %v6950_v57  ;;  %v6955_v33 = vadd.s32 127, %v6954_v23  ;;  %v7098_v32 = vand.u32 31, %v7096_v37 }
 0x6a8   : > { %v7082_v2 = vsel %vm7075_vm0, %v7078_v30, %v7081_v54  ;;  %v7248_v14 = vadd.s32 536870912, %v7247_v50  ;;  %v7091_v46 = vand.u32 8388607, %v7084_v58  ;;  %v7097_v13 = vshrl.u32 %v7096_v37, 5 }
 0x6a9   : > { %v7083_v15 = vsel %vm7073_vm6, nan, %v7082_v2  ;;  %v6953_v60 = vor.u32 %v6952_v11, %v6951_v18  ;;  %v6956_v29 = vshll.u32 %v6955_v33, 23  ;;  %v7099_v22 = vsub.s32 32, %v7098_v32 }
 0x6aa   : > { %7351 = vst [vmem:[%s8782_s8 + $0x1e8] sm:$0xff] %v7083_v15  ;;  %v7101_v16 = vshll.u32 %v8349_v39, %v7098_v32  ;;  %v7104_v48 = vshll.u32 %v8350_v43, %v7098_v32  ;;  %v13737_v41 = vshrl.u32 %v7248_v14, 30  ;;  %v7107_v25 = vshll.u32 %v8351_v45, %v7098_v32 }
 0x6ab   : > { %v6957_v8 = vor.u32 4788187, %v6956_v29  ;;  %v6960_v0 = vcvt.s32.f32 %v6953_v60  ;;  %v7102_v51 = vshrl.u32 %v8350_v43, %v7099_v22  ;;  %v7105_v44 = vshrl.u32 %v8351_v45, %v7099_v22 }
 0x6ac   : > { %v7108_v35 = vshrl.u32 %v8352_v47, %v7099_v22  ;;  %v7110_v7 = vshll.u32 %v8352_v47, %v7098_v32  ;;  %v7111_v10 = vshrl.u32 %v8353_v49, %v7099_v22  ;;  %v7250_v3 = vshll.u32 %v13737_v41, 30 }
 0x6ad   : > { %v6958_v27 = vand.u32 2147483647, %v6957_v8  ;;  %v7103_v62 = vor.u32 %v7102_v51, %v7101_v16  ;;  %v7106_v63 = vor.u32 %v7105_v44, %v7104_v48  ;;  %v7114_v43 = vshrl.u32 %v8354_v56, %v7099_v22 }
 0x6ae   : > { %v7109_v40 = vor.u32 %v7108_v35, %v7107_v25  ;;  %v7112_v53 = vor.u32 %v7111_v10, %v7110_v7  ;;  %vm6880_vm7 = vcmp.lt.s32.totalorder %v13551_v17, 0  ;;  %v7251_v45 = vsub.s32 %v7247_v50, %v7250_v3 }
 0x6af   : > { %v6961_v21 = vmul.f32 %v6960_v0, %v6958_v27  ;;  %v7092_v24 = vor.u32 8388608, %v7091_v46  ;;  %v7113_v28 = vshll.u32 %v8353_v49, %v7098_v32  ;;  %vm13751_vm10 = vcmp.le.f32.partialorder %v6878_v34, 0.7853982 }
 0x6b0   : > { %v6965_v6 = vsel %vm6880_vm7, %v6964_v55, %v13689_v59  ;;  %v7100_v61 = vshrl.u32 %v8349_v39, %v7099_v22  ;;  %v7253_v19 = vsub.s32 0, %v7251_v45  ;;  %vm7116_vm8 = vcmp.lt.s32.totalorder %v7097_v13, 1 }
 0x6b1   : > { %v6962_v52 = vxor.u32 2147483648, %v6961_v21  ;;  %v7115_v4 = vor.u32 %v7114_v43, %v7113_v28  ;;  %vm7119_vm9 = vcmp.lt.s32.totalorder %v7097_v13, 4  ;;  %v7124_v49 = vsel %vm7116_vm8, %v7103_v62, %v7106_v63 }
 0x6b2   : > { %v7121_v5 = vsel %vm7119_vm9, %v7109_v40, 2102212464  ;;  %v7125_v36 = vsel %vm7119_vm9, %v7112_v53, 920167782  ;;  %v7692_v9 = vmin.u32 %v7253_v19, %v7251_v45  ;;  %vm7118_vm11 = vcmp.lt.s32.totalorder %v7097_v13, 3 }
 0x6b3   : > { %v6963_v56 = vsel %vm6880_vm7, %v6962_v52, %v6961_v21  ;;  %v7132_v59 = vshll.u32 %v7092_v24, 8  ;;  %vm7117_vm12 = vcmp.lt.s32.totalorder %v7097_v13, 2  ;;  %v7120_v39 = vsel %vm7116_vm8, %v7100_v61, %v7103_v62 }
 0x6b4   : > { %v6966_v34 = vsel %vm13751_vm10, %v13551_v17, %v6963_v56  ;;  %v7126_v57 = vsel %vm7118_vm11, %v7109_v40, %v7125_v36  ;;  %v7255_v23 = vclz %v7692_v9  ;;  %v7122_v26 = vsel %vm7118_vm11, %v7106_v63, %v7121_v5 }
 0x6b5   : > { %8251 = vcosq.f32 %v6966_v34  ;;  %v7127_v54 = vsel %vm7117_vm12, %v7124_v49, %v7126_v57  ;;  %v7128_v18 = vsel %vm7116_vm8, %v7106_v63, %v7109_v40  ;;  %v7129_v37 = vsel %vm7119_vm9, %v7115_v4, 1326507024 }
 0x6b6   : > { %8253 = vsinq.f32 %v6966_v34  ;;  %v13767_v30 = vmul.u32.u64.low %v7132_v59, %v7127_v54  ;;  %v13768_v11 = vmul.u32.u64.high %v7132_v59, %v7127_v54, %v13767_v30  ;;  %v7693_v33 = vadd.s32 4294967294, %v7255_v23 }
 0x6b7   : > { %v7130_v38 = vsel %vm7118_vm11, %v7112_v53, %v7129_v37  ;;  %v6967_v2 = vsel %vm13751_vm10, 0, %v6965_v6  ;;  %v7123_v32 = vsel %vm7117_vm12, %v7120_v39, %v7122_v26  ;;  %v7243_v14 = vadd.s32 %v13712_v1, %v13717_v20 }
 0x6b8   : > { %v7131_v50 = vsel %vm7117_vm12, %v7128_v18, %v7130_v38  ;;  %vm7694_vm13 = vcmp.lt.s32.totalorder %v7693_v33, 0  ;;  %v7142_v55 = vadd.s32 1, %v13768_v11  ;;  %v6971_v8 = vand.u32 3, %v6967_v2 }
 0x6b9   : > { %v13775_v15 = vmul.u32.u64.low %v7132_v59, %v7131_v50  ;;  %v13776_v60 = vmul.u32.u64.high %v7132_v59, %v7131_v50, %v13775_v15  ;;  %v7258_v29 = vsel %vm7694_vm13, 0, %v7693_v33  ;;  %v7139_v0 = vmul.u32 %v7132_v59, %v7123_v32 }
 0x6ba   : > { %v7259_v46 = vsub.s32 32, %v7258_v29  ;;  %v7263_v22 = vsub.s32 4294967266, %v7258_v29  ;;  %v7260_v16 = vshll.u32 %v7251_v45, %v7258_v29  ;;  %vm6976_vm15 = vcmp.eq.s32.totalorder %v6971_v8, 2 }
 0x6bb   : > { %vm7141_vm14 = vc.u32 %v13776_v60, %v13767_v30  ;;  %vm6973_vm0 = vcmp.eq.s32.totalorder %v6971_v8, 0  ;;  %vm6970_vm1 = vweird.f32 %v13551_v17  ;;  %vm6972_vm2 = vcmp.lt.s32.totalorder %v6971_v8, 2 }
 0x6bc   : > { %v7261_v48 = vshrl.u32 %v7243_v14, %v7259_v46  ;;  %v7264_v51 = vadd.s32 127, %v7263_v22  ;;  %v7143_v25 = vsel %vm7141_vm14, %v7142_v55, %v13768_v11  ;;  %vm7189_vm3 = vcmp.lt.s32.totalorder %v13595_v42, 0 }
 0x6bd   : > { %v7144_v3 = vadd.s32 %v7143_v25, %v7139_v0  ;;  %vm7188_vm5 = vcmp.le.f32.partialorder %v7187_v12, 0.7853982  ;;  %v7273_v17 = vsub.s32 4, %v13737_v41  ;;  %v7140_v12 = vadd.s32 %v13767_v30, %v13776_v60 }
 0x6be   : > { %v7262_v7 = vor.u32 %v7261_v48, %v7260_v16  ;;  %v7265_v10 = vshll.u32 %v7264_v51, 23  ;;  %vm7279_vm8 = vweird.f32 %v13595_v42  ;;  %vm7086_vm9 = vcmp.lt.s32.totalorder %v13672_v31, 0 }
 0x6bf   : > { %v8252_v44 = vpop.eup %8251  ;;  %v7145_v62 = vadd.s32 536870912, %v7144_v3  ;;  %v7274_v56 = vsel %vm7189_vm3, %v7273_v17, %v13737_v41  ;;  %vm7085_vm11 = vcmp.le.f32.partialorder %v7084_v58, 0.7853982 }
 0x6c0   : > { %v8254_v27 = vpop.eup %8253  ;;  %v6977_v35 = vxor.u32 2147483648, %v8252_v44  ;;  %v7266_v13 = vor.u32 4788187, %v7265_v10  ;;  %v7269_v53 = vcvt.s32.f32 %v7262_v7  ;;  %v7276_v36 = vsel %vm7188_vm5, 0, %v7274_v56 }
 0x6c1   : > { %v6974_v1 = vxor.u32 2147483648, %v8254_v27  ;;  %v7146_v43 = vshrl.u32 %v7145_v62, 30  ;;  %v7280_v9 = vand.u32 3, %v7276_v36 }
 0x6c2   : > { %v6978_v20 = vsel %vm6976_vm15, %v6977_v35, %v8254_v27  ;;  %v7267_v40 = vand.u32 2147483647, %v7266_v13  ;;  %vm7176_vm15 = vweird.f32 %v13672_v31 }
 0x6c3   : > { %v6975_v63 = vsel %vm6973_vm0, %v8252_v44, %v6974_v1  ;;  %v7147_v28 = vshll.u32 %v7146_v43, 30  ;;  %vm7285_vm6 = vcmp.eq.s32.totalorder %v7280_v9, 2  ;;  %vm7282_vm7 = vcmp.eq.s32.totalorder %v7280_v9, 0 }
 0x6c4   : > { %v6979_v21 = vsel %vm6972_vm2, %v6975_v63, %v6978_v20  ;;  %v7270_v24 = vmul.f32 %v7269_v53, %v7267_v40  ;;  %vm7281_vm10 = vcmp.lt.s32.totalorder %v7280_v9, 2  ;;  %v7170_v46 = vsub.s32 4, %v7146_v43 }
 0x6c5   : > { %v6980_v45 = vsel %vm6970_vm1, nan, %v6979_v21  ;;  %v7148_v52 = vsub.s32 %v7144_v3, %v7147_v28 }
 0x6c6   : > { %7350 = vst [vmem:[%s8782_s8 + $0x1e0] sm:$0xff] %v6980_v45  ;;  %v7271_v47 = vxor.u32 2147483648, %v7270_v24 }
 0x6c7   : > { %v7150_v61 = vsub.s32 0, %v7148_v52 }
 0x6c8   : > { %v7272_v6 = vsel %vm7189_vm3, %v7271_v47, %v7270_v24 }
 0x6c9   : > { %v7275_v19 = vsel %vm7188_vm5, %v13595_v42, %v7272_v6  ;;  %v7688_v4 = vmin.u32 %v7150_v61, %v7148_v52  ;;  %v7171_v42 = vsel %vm7086_vm9, %v7170_v46, %v7146_v43 }
 0x6ca   : > { %8255 = vcosq.f32 %v7275_v19  ;;  %v7173_v8 = vsel %vm7085_vm11, 0, %v7171_v42 }
 0x6cb   : > { %8257 = vsinq.f32 %v7275_v19  ;;  %v7152_v5 = vclz %v7688_v4  ;;  %v7177_v0 = vand.u32 3, %v7173_v8 }
 0x6cd   : > { %v7689_v49 = vadd.s32 4294967294, %v7152_v5  ;;  %vm7182_vm12 = vcmp.eq.s32.totalorder %v7177_v0, 2  ;;  %vm7179_vm13 = vcmp.eq.s32.totalorder %v7177_v0, 0  ;;  %vm7178_vm14 = vcmp.lt.s32.totalorder %v7177_v0, 2 }
 0x6cf   : > { %vm7690_vm4 = vcmp.lt.s32.totalorder %v7689_v49, 0 }
 0x6d0   : > { %v7155_v34 = vsel %vm7690_vm4, 0, %v7689_v49 }
 0x6d1   : > { %v7156_v59 = vsub.s32 32, %v7155_v34  ;;  %v7160_v39 = vsub.s32 4294967266, %v7155_v34  ;;  %v7157_v23 = vshll.u32 %v7148_v52, %v7155_v34 }
 0x6d3   : > { %v7158_v26 = vshrl.u32 %v7140_v12, %v7156_v59  ;;  %v7161_v54 = vadd.s32 127, %v7160_v39 }
 0x6d4   : > { %v8256_v57 = vpop.eup %8255 }
 0x6d5   : > { %v8258_v18 = vpop.eup %8257  ;;  %v7286_v37 = vxor.u32 2147483648, %v8256_v57  ;;  %v7159_v41 = vor.u32 %v7158_v26, %v7157_v23  ;;  %v7162_v33 = vshll.u32 %v7161_v54, 23 }
 0x6d6   : > { %v7283_v11 = vxor.u32 2147483648, %v8258_v18 }
 0x6d7   : > { %v7287_v38 = vsel %vm7285_vm6, %v7286_v37, %v8258_v18  ;;  %v7163_v50 = vor.u32 4788187, %v7162_v33  ;;  %v7166_v60 = vcvt.s32.f32 %v7159_v41 }
 0x6d8   : > { %v7284_v2 = vsel %vm7282_vm7, %v8256_v57, %v7283_v11 }
 0x6d9   : > { %v7288_v30 = vsel %vm7281_vm10, %v7284_v2, %v7287_v38  ;;  %v7164_v15 = vand.u32 2147483647, %v7163_v50 }
 0x6da   : > { %v7289_v32 = vsel %vm7279_vm8, nan, %v7288_v30 }
 0x6db   : > { %7353 = vst [vmem:[%s8782_s8 + $0x1f8] sm:$0xff] %v7289_v32  ;;  %v7167_v29 = vmul.f32 %v7166_v60, %v7164_v15 }
 0x6dd   : > { %v7168_v55 = vxor.u32 2147483648, %v7167_v29 }
 0x6df   : > { %v7169_v14 = vsel %vm7086_vm9, %v7168_v55, %v7167_v29 }
 0x6e0   : > { %v7172_v22 = vsel %vm7085_vm11, %v13672_v31, %v7169_v14 }
 0x6e1   : > { %8259 = vcosq.f32 %v7172_v22 }
 0x6e2   : > { %8261 = vsinq.f32 %v7172_v22 }
 0x6eb   : > { %v8260_v16 = vpop.eup %8259 }
 0x6ec   : > { %v8262_v48 = vpop.eup %8261  ;;  %v7183_v51 = vxor.u32 2147483648, %v8260_v16 }
 0x6ed   : > { %v7180_v44 = vxor.u32 2147483648, %v8262_v48 }
 0x6ee   : > { %v7184_v58 = vsel %vm7182_vm12, %v7183_v51, %v8262_v48 }
 0x6ef   : > { %v7181_v25 = vsel %vm7179_vm13, %v8260_v16, %v7180_v44 }
 0x6f0   : > { %v7185_v27 = vsel %vm7178_vm14, %v7181_v25, %v7184_v58 }
 0x6f1   : > { %v7186_v35 = vsel %vm7176_vm15, nan, %v7185_v27 }
 0x6f2   : > { %7352 = vst [vmem:[%s8782_s8 + $0x1f0] sm:$0xff] %v7186_v35 }
 0x6f3   : > { %8297 = shalt.err (!%p8294_p3)
}
 0x6f4   : > { %s8298_s6 = scalar_lea.hbm %s13805_s5, 8192  ;;  %s8302_s19 = scalar_lea.hbm %s13857_s3, 16384 }
 0x6f5   : > { %p8299_p4 = scmp.ne.s32.totalorder %s13805_s5, %s8298_s6  ;;  %p8303_p9 = scmp.lt.u32.totalorder %s13805_s5, %s13857_s3 }
 0x6f6   : > { %p8304_p10 = scmp.lt.u32.totalorder %s8302_s19, %s8298_s6  ;;  %p8306_p12 = scmp.lt.u32.totalorder %s8298_s6, %s13805_s5 }
 0x6f7   : > { %p8300_p7 = pnand %p8299_p4, %p8416_p5 }
 0x6f8   : > { %p8305_p11 = por %p8304_p10, %p8303_p9 }
 0x6f9   : > { %p8301_p8 = pneg %p8300_p7 }
 0x6fa   : > { %p8307_p13 = por %p8306_p12, %p8305_p11 }
 0x6fc   : > { %p8308_p0 = pnand %p8307_p13, %p8301_p8 }
 0x6fe   : > { %8311 = shalt.err (!%p8308_p0)
}
 0x6ff   : > { %s8356_s25 = smov 128   ;;  %s8357_s26 = smov 8  }
 0x700   : > { %7957 = dma.vmem_to_hbm [thread:$0]  (%p8416_p5), %s13807_s29, 8192, %s13805_s5, %s13813_s16, %s8356_s25, %s8356_s25, %s8357_s26  }
 0x701 PF: > { %p7963_p1 = scmp.ge.s32.totalorder %s8346_s15, 2  ;;  %s7383_s27 = sand.u32 1, %s8334_s12  }
 0x702   : > { %s7384_s28 = scalar_lea.sflag [#allocation3], %s7383_s27 }
 0x703   : > { %p7960_p2 = pnand %p7963_p1, %p8420_p6 }
 0x705   : > { %8329 = dma.done.wait (!%p7960_p2), %s7384_s28, 8192  }
 0x706   : > { %8331 = vsyncadd (!%p7960_p2), %s7384_s28, 4294959104  ;;  %p13_p3 = scmp.ge.s32.totalorder %s8403_s18, 4   ;;  %s13984_s12 = smov %s8338_s13 }
 0x707   : > { %s13985_s13 = smov %s8342_s14  ;;  %s13986_s14 = smov %s8414_s21 }
 0x708   : > { %s13987_s15 = smov %s8403_s18  ;;  %15 = sbr.rel (!%p13_p3) target bundleno = 3 (0x3), region = 67 }
 0x70f   :  { %7389 = vsyncpa [#allocation3], 1 }
 0x710   :  { %7391 = vsyncpa [#allocation3 + $0x1], 1 }

</bundles_post_ra>
